<compile_context>
chip_gen: v7x
topology: tpu7x:2x2x1
jax: 0.10.0
libtpu: 0.0.40
codegen_flags: <defaults>
</compile_context>

<pallas_src>
import functools

import jax
import jax.numpy as jnp
from jax import lax
from jax.experimental import pallas as pl
from jax.experimental.pallas import tpu as pltpu


# ----------------------------------------------------------------------------
# Kernels
# ----------------------------------------------------------------------------

def _downsample_kernel(x_ref, w_ref, b_ref, o_ref, *, Ho, Wy, Cout):
    """5x5 / stride-2 conv, rewritten (wrapper-side) as a VALID 3x3 stride-1 conv
    over a space-to-depth packed, pre-padded, row-flattened input.

    x_ref : (1, (Ho+2)*Wy + 2, C4) bf16  row-flattened plane (+2 slack rows)
    w_ref : (9, C4, Cout) bf16           per-tap weight matrices
    b_ref : (1, Cout) f32
    o_ref : (1, Ho*Wy, Cout) bf16        extended output (2 garbage cols / row,
                                          sliced away in the wrapper)
    For a fixed tap (kh, kw) the needed input rows form one contiguous slice, so
    the conv is 9 accumulating matmuls straight out of VMEM.
    """
    M = Ho * Wy
    acc = jnp.zeros((M, Cout), jnp.float32)
    for kh in range(3):
        for kw in range(3):
            s = kh * Wy + kw
            acc = acc + jnp.dot(x_ref[0, s:s + M, :], w_ref[kh * 3 + kw],
                                preferred_element_type=jnp.float32)
    o_ref[0] = (acc + b_ref[...]).astype(o_ref.dtype)


def _res_stack_kernel(x_ref, w_ref, b_ref, mask_ref, o_ref,
                      a_pad, b_pad, res_ref, *, H, W, C, n_blocks, neg_slope):
    """Fused 6x BasicBlock + conv_alone; feature map resident in VMEM.

    x_ref   : (1, (H+2)*(W+2)+2, C) bf16  wrapper-padded, row-flattened plane
    w_ref   : (13, 9*C, C) bf16           BN-folded per-layer weights
    b_ref   : (13, 1, C)  f32             BN-folded biases
    mask_ref: (H*(W+2), 1) f32            1 at real pixels, 0 where the store
                                          would land on the zero halo
    o_ref   : (1, H*(W+2), C) bf16        extended conv_alone output
    a_pad/b_pad : bf16 ping-pong padded planes (residual carry / hidden `h`)
    res_ref : (H*(W+2), C) f32            exact f32 residual carry
    """
    Wp = W + 2
    M = H * Wp                       # extended outputs (2 garbage cols per row)
    start = Wp + 1                   # flat row of padded interior pixel (1, 1)

    mask = mask_ref[...]             # (M, 1) f32 {0, 1}

    # Per-grid-step init: a_pad <- padded input plane (halo already zero from
    # the wrapper pad); res <- f32 copy of the interior; only the two halo
    # strips of b_pad that are read-but-never-written need zeroing.
    a_pad[...] = x_ref[0]
    res_ref[...] = x_ref[0, start:start + M, :].astype(jnp.float32)
    zeros_strip = jnp.zeros((start, C), jnp.bfloat16)
    b_pad[0:start, :] = zeros_strip
    b_pad[start + M:start + M + start, :] = zeros_strip

    def conv3x3(src_ref, li):
        """'same' 3x3 conv of the padded plane: 9 per-tap accumulating matmuls."""
        wl = w_ref[li]                                    # (9*C, C) bf16
        acc = jnp.zeros((M, C), jnp.float32)
        for kh in range(3):
            for kw in range(3):
                s = kh * Wp + kw
                t = (kh * 3 + kw) * C
                acc = acc + jnp.dot(src_ref[s:s + M, :], wl[t:t + C, :],
                                    preferred_element_type=jnp.float32)
        return acc + b_ref[li]                            # BN folded into w/b

    def block_body(blk, carry):
        li = 2 * blk
        h = conv3x3(a_pad, li)
        h = jnp.where(h > 0, h, neg_slope * h)            # LeakyReLU(0.2)
        # single contiguous store into the interior; mask keeps the halo zero
        b_pad[start:start + M, :] = (h * mask).astype(jnp.bfloat16)
        out = res_ref[...] + conv3x3(b_pad, li + 1)       # residual add (f32)
        res_ref[...] = out
        a_pad[start:start + M, :] = (out * mask).astype(jnp.bfloat16)
        return carry

    lax.fori_loop(0, n_blocks, block_body, 0)

    o_ref[0] = conv3x3(a_pad, 2 * n_blocks).astype(o_ref.dtype)   # conv_alone


# ----------------------------------------------------------------------------
# Wrappers
# ----------------------------------------------------------------------------

_VMEM_LIMIT = 48 * 1024 * 1024


def _downsample_conv(x, w5, b):
    """Conv2d(Cin, Cout, kernel=5, stride=2, padding=2) + bias as a Pallas kernel."""
    N, H, W, Cin = x.shape
    assert H % 2 == 0 and W % 2 == 0, "even spatial dims required"
    Cout = w5.shape[-1]
    Ho, Wo = H // 2, W // 2
    Hy, Wy = Ho + 2, Wo + 2
    C4 = 4 * Cin

    # pad by 2 and space-to-depth (2x2 -> channels, order (ph, pw, ci)), then
    # row-flatten and add 2 slack rows so every tap slice stays in bounds.
    xp = jnp.pad(x.astype(jnp.bfloat16), ((0, 0), (2, 2), (2, 2), (0, 0)))
    y = (xp.reshape(N, Hy, 2, Wy, 2, Cin)
           .transpose(0, 1, 3, 2, 4, 5)
           .reshape(N, Hy * Wy, C4))
    y = jnp.pad(y, ((0, 0), (0, 2), (0, 0)))

    # 5x5 stride-2 taps -> 9 per-tap (C4, Cout) matrices (zero-pad to 6x6 taps)
    w6 = jnp.pad(w5, ((0, 1), (0, 1), (0, 0), (0, 0)))            # (6,6,Cin,Cout)
    wf = (w6.reshape(3, 2, 3, 2, Cin, Cout)
            .transpose(0, 2, 1, 3, 4, 5)                           # (bh,bw,ph,pw,ci,co)
            .reshape(9, C4, Cout)
            .astype(jnp.bfloat16))
    bf = b.reshape(1, Cout).astype(jnp.float32)

    Mq = Hy * Wy + 2
    M = Ho * Wy
    kernel = functools.partial(_downsample_kernel, Ho=Ho, Wy=Wy, Cout=Cout)
    out = pl.pallas_call(
        kernel,
        grid=(N,),
        in_specs=[
            pl.BlockSpec((1, Mq, C4), lambda n: (n, 0, 0)),
            pl.BlockSpec((9, C4, Cout), lambda n: (0, 0, 0)),
            pl.BlockSpec((1, Cout), lambda n: (0, 0)),
        ],
        out_specs=pl.BlockSpec((1, M, Cout), lambda n: (n, 0, 0)),
        out_shape=jax.ShapeDtypeStruct((N, M, Cout), jnp.bfloat16),
        compiler_params=pltpu.CompilerParams(
            dimension_semantics=("parallel",),
            vmem_limit_bytes=_VMEM_LIMIT),
    )(y, wf, bf)
    # drop the 2 garbage columns per row of the extended layout (fuses in XLA)
    return out.reshape(N, Ho, Wy, Cout)[:, :, :Wo, :]


def _residual_stack(x, w_stack, b_stack, n_blocks, neg_slope=0.2):
    """One fused pallas_call for all residual blocks + conv_alone."""
    N, H, W, C = x.shape
    Wp = W + 2
    M = H * Wp
    Mpad = (H + 2) * Wp + 2

    # zero-pad 1 pixel, row-flatten, add 2 slack rows (all cheap / fusable XLA)
    xp = jnp.pad(x.astype(jnp.bfloat16), ((0, 0), (1, 1), (1, 1), (0, 0)))
    xf = jnp.pad(xp.reshape(N, (H + 2) * Wp, C), ((0, 0), (0, 2), (0, 0)))

    # halo mask: 1 at real pixels of the extended layout, 0 at wrap columns
    mask = (jnp.arange(M) % Wp < W).astype(jnp.float32).reshape(M, 1)

    n_layers = w_stack.shape[0]
    kernel = functools.partial(_res_stack_kernel, H=H, W=W, C=C,
                               n_blocks=n_blocks, neg_slope=neg_slope)
    out = pl.pallas_call(
        kernel,
        grid=(N,),
        in_specs=[
            pl.BlockSpec((1, Mpad, C), lambda n: (n, 0, 0)),
            pl.BlockSpec((n_layers, 9 * C, C), lambda n: (0, 0, 0)),
            pl.BlockSpec((n_layers, 1, C), lambda n: (0, 0, 0)),
            pl.BlockSpec((M, 1), lambda n: (0, 0)),
        ],
        out_specs=pl.BlockSpec((1, M, C), lambda n: (n, 0, 0)),
        out_shape=jax.ShapeDtypeStruct((N, M, C), jnp.bfloat16),
        scratch_shapes=[
            pltpu.VMEM((Mpad, C), jnp.bfloat16),   # a_pad: carry / conv1 input
            pltpu.VMEM((Mpad, C), jnp.bfloat16),   # b_pad: conv1 out / conv2 in
            pltpu.VMEM((M, C), jnp.float32),       # exact f32 residual carry
        ],
        compiler_params=pltpu.CompilerParams(
            dimension_semantics=("parallel",),
            vmem_limit_bytes=_VMEM_LIMIT),
    )(xf, w_stack, b_stack, mask)
    return out.reshape(N, H, Wp, C)[:, :, :W, :]


def _fold_bn(w, b, gamma, beta, mean, var, eps=1e-5):
    """Fold inference-mode BatchNorm into the preceding conv's weight/bias."""
    scale = gamma / jnp.sqrt(var + eps)
    return w * scale[None, None, None, :], (b - mean) * scale + beta


def feature_extraction(x_nchw, params, k):
    """Equivalent of FeatureExtraction(k).forward; input/output are NCHW."""
    assert k >= 1
    out = jnp.transpose(x_nchw, (0, 2, 3, 1)).astype(jnp.float32)   # -> NHWC

    for i in range(k):                        # k stride-2 downsample convs
        d = params["down"][i]
        out = _downsample_conv(out, d["w"], d["b"])

    # Fold BN and stack all 13 (= 6*2 + conv_alone) 3x3 32->32 convs.
    C = 32
    ws, bs = [], []
    for blk in params["blocks"]:
        for j in (1, 2):
            w, b = _fold_bn(blk[f"w{j}"], blk[f"b{j}"], blk[f"gamma{j}"],
                            blk[f"beta{j}"], blk[f"mean{j}"], blk[f"var{j}"])
            ws.append(w.reshape(9 * C, C))
            bs.append(b.reshape(1, C))
    ws.append(params["wa"].reshape(9 * C, C))
    bs.append(params["ba"].reshape(1, C))
    w_stack = jnp.stack(ws).astype(jnp.bfloat16)    # (13, 288, 32)
    b_stack = jnp.stack(bs).astype(jnp.float32)     # (13, 1, 32)

    out = _residual_stack(out, w_stack, b_stack, n_blocks=len(params["blocks"]))
    return jnp.transpose(out, (0, 3, 1, 2))         # NHWC -> NCHW (bf16)


# ----------------------------------------------------------------------------
# Parameters and pure-JAX reference
# ----------------------------------------------------------------------------

def init_params(key, k):
    """PyTorch-like raw parameters (conv w/b, BN gamma/beta/running stats)."""
    def nxt():
        nonlocal key
        key, sub = jax.random.split(key)
        return sub

    def nrm(shape, scale):
        return scale * jax.random.normal(nxt(), shape, jnp.float32)

    params = {"down": [], "blocks": []}
    cin = 3
    for _ in range(k):                        # Conv2d(cin, 32, 5, stride=2, pad=2)
        params["down"].append({"w": nrm((5, 5, cin, 32), 0.05),
                               "b": nrm((32,), 0.01)})
        cin = 32
    for _ in range(6):                        # BasicBlock(32, 32, 1, None, 1, 1)
        blk = {}
        for j in (1, 2):
            blk[f"w{j}"] = nrm((3, 3, 32, 32), 0.05)
            blk[f"b{j}"] = nrm((32,), 0.01)
            blk[f"gamma{j}"] = 1.0 + nrm((32,), 0.05)
            blk[f"beta{j}"] = nrm((32,), 0.05)
            blk[f"mean{j}"] = jnp.zeros((32,), jnp.float32)  # default running stats
            blk[f"var{j}"] = jnp.ones((32,), jnp.float32)
        params["blocks"].append(blk)
    params["wa"] = nrm((3, 3, 32, 32), 0.05)  # conv_alone: Conv2d(32, 32, 3, 1, 1)
    params["ba"] = nrm((32,), 0.01)
    return params


def _ref_forward(x_nchw, params, k):
    """Pure-JAX (lax.conv) reference using the same bf16-matmul / f32-accumulation
    precision recipe as the Pallas path."""
    dn = ("NHWC", "HWIO", "NHWC")

    def conv(v, w, b, stride, pad):
        y = jax.lax.conv_general_dilated(
            v.astype(jnp.bfloat16), w.astype(jnp.bfloat16),
            window_strides=(stride, stride),
            padding=[(pad, pad), (pad, pad)],
            dimension_numbers=dn,
            preferred_element_type=jnp.float32)
        return y + b.reshape(1, 1, 1, -1).astype(jnp.float32)

    out = jnp.transpose(x_nchw, (0, 2, 3, 1)).astype(jnp.float32)
    for i in range(k):
        d = params["down"][i]
        out = conv(out, d["w"], d["b"], 2, 2).astype(jnp.bfloat16)
    out = out.astype(jnp.float32)
    for blk in params["blocks"]:
        w1, b1 = _fold_bn(blk["w1"], blk["b1"], blk["gamma1"], blk["beta1"],
                          blk["mean1"], blk["var1"])
        w2, b2 = _fold_bn(blk["w2"], blk["b2"], blk["gamma2"], blk["beta2"],
                          blk["mean2"], blk["var2"])
        h = conv(out, w1, b1, 1, 1)
        h = jnp.where(h > 0, h, 0.2 * h)
        out = out + conv(h, w2, b2, 1, 1)
    out = conv(out, params["wa"], params["ba"], 1, 1)
    return jnp.transpose(out, (0, 3, 1, 2))


# ----------------------------------------------------------------------------
# Main
# ----------------------------------------------------------------------------

if __name__ == "__main__":
    k = 2
    key = jax.random.PRNGKey(0)
    pkey, xkey = jax.random.split(key)
    x = jax.random.normal(xkey, (2, 3, 32, 32), jnp.float32)   # NCHW rgb image
    params = init_params(pkey, k)

    fe = jax.jit(functools.partial(feature_extraction, k=k))
    out = jax.block_until_ready(fe(x, params))
    assert out.shape == (2, 32, 32 // 2 ** k, 32 // 2 ** k), out.shape
    assert bool(jnp.all(jnp.isfinite(out.astype(jnp.float32))))

    ref = _ref_forward(x, params, k)
    err = float(jnp.max(jnp.abs(out.astype(jnp.float32) - ref)))
    assert err < 5e-2, f"max |pallas - reference| = {err}"
    print("KERNEL_OK")
</pallas_src>

<mosaic_0001>
module attributes {stable_mosaic.version = 11 : i64} {
  func.func @_downsample_kernel(%arg0: i32, %arg1: memref<1x326x12xbf16, #tpu.memory_space<vmem>>, %arg2: memref<9x12x32xbf16, #tpu.memory_space<vmem>>, %arg3: memref<1x32xf32, #tpu.memory_space<vmem>>, %arg4: memref<1x288x32xbf16, #tpu.memory_space<vmem>>) attributes {dimension_semantics = [#tpu.dimension_semantics<parallel>], iteration_bounds = array<i64: 2>, scalar_prefetch = 0 : i64, scratch_operands = 0 : i64, tpu.core_type = #tpu.core_type<tc>, window_params = [{transform_indices = @transform_0, window_bounds = array<i64: 1, 326, 12>}, {pipeline_mode = #tpu.pipeline_mode<synchronous>, transform_indices = @transform_1, window_bounds = array<i64: 9, 12, 32>}, {pipeline_mode = #tpu.pipeline_mode<synchronous>, transform_indices = @transform_2, window_bounds = array<i64: 1, 32>}, {transform_indices = @transform_3, window_bounds = array<i64: 1, 288, 32>}]} {
    %cst = arith.constant 0.000000e+00 : f32
    %0 = vector.broadcast %cst : f32 to vector<288x32xf32>
    %c0 = arith.constant 0 : index
    %c0_0 = arith.constant 0 : index
    %c0_1 = arith.constant 0 : index
    %1 = vector.load %arg1[%c0, %c0_0, %c0_1] : memref<1x326x12xbf16, #tpu.memory_space<vmem>>, vector<1x288x12xbf16>
    %2 = vector.shape_cast %1 : vector<1x288x12xbf16> to vector<288x12xbf16>
    %c0_2 = arith.constant 0 : index
    %c0_3 = arith.constant 0 : index
    %c0_4 = arith.constant 0 : index
    %3 = vector.load %arg2[%c0_2, %c0_3, %c0_4] : memref<9x12x32xbf16, #tpu.memory_space<vmem>>, vector<1x12x32xbf16>
    %4 = vector.shape_cast %3 : vector<1x12x32xbf16> to vector<12x32xbf16>
    %cst_5 = arith.constant dense<0.000000e+00> : vector<288x32xf32>
    %5 = tpu.matmul %2, %4, %cst_5 {dimension_numbers = #tpu.dot_dimension_numbers<[1], [0], [0], [1], [0, 0, 1, 1], [], []>} : vector<288x12xbf16>, vector<12x32xbf16>, vector<288x32xf32> -> vector<288x32xf32>
    %6 = arith.addf %0, %5 : vector<288x32xf32>
    %c0_6 = arith.constant 0 : index
    %c1 = arith.constant 1 : index
    %c0_7 = arith.constant 0 : index
    %7 = vector.load %arg1[%c0_6, %c1, %c0_7] : memref<1x326x12xbf16, #tpu.memory_space<vmem>>, vector<1x288x12xbf16>
    %8 = vector.shape_cast %7 : vector<1x288x12xbf16> to vector<288x12xbf16>
    %c1_8 = arith.constant 1 : index
    %c0_9 = arith.constant 0 : index
    %c0_10 = arith.constant 0 : index
    %9 = vector.load %arg2[%c1_8, %c0_9, %c0_10] : memref<9x12x32xbf16, #tpu.memory_space<vmem>>, vector<1x12x32xbf16>
    %10 = vector.shape_cast %9 : vector<1x12x32xbf16> to vector<12x32xbf16>
    %cst_11 = arith.constant dense<0.000000e+00> : vector<288x32xf32>
    %11 = tpu.matmul %8, %10, %cst_11 {dimension_numbers = #tpu.dot_dimension_numbers<[1], [0], [0], [1], [0, 0, 1, 1], [], []>} : vector<288x12xbf16>, vector<12x32xbf16>, vector<288x32xf32> -> vector<288x32xf32>
    %12 = arith.addf %6, %11 : vector<288x32xf32>
    %c0_12 = arith.constant 0 : index
    %c2 = arith.constant 2 : index
    %c0_13 = arith.constant 0 : index
    %13 = vector.load %arg1[%c0_12, %c2, %c0_13] : memref<1x326x12xbf16, #tpu.memory_space<vmem>>, vector<1x288x12xbf16>
    %14 = vector.shape_cast %13 : vector<1x288x12xbf16> to vector<288x12xbf16>
    %c2_14 = arith.constant 2 : index
    %c0_15 = arith.constant 0 : index
    %c0_16 = arith.constant 0 : index
    %15 = vector.load %arg2[%c2_14, %c0_15, %c0_16] : memref<9x12x32xbf16, #tpu.memory_space<vmem>>, vector<1x12x32xbf16>
    %16 = vector.shape_cast %15 : vector<1x12x32xbf16> to vector<12x32xbf16>
    %cst_17 = arith.constant dense<0.000000e+00> : vector<288x32xf32>
    %17 = tpu.matmul %14, %16, %cst_17 {dimension_numbers = #tpu.dot_dimension_numbers<[1], [0], [0], [1], [0, 0, 1, 1], [], []>} : vector<288x12xbf16>, vector<12x32xbf16>, vector<288x32xf32> -> vector<288x32xf32>
    %18 = arith.addf %12, %17 : vector<288x32xf32>
    %c0_18 = arith.constant 0 : index
    %c18 = arith.constant 18 : index
    %c0_19 = arith.constant 0 : index
    %19 = vector.load %arg1[%c0_18, %c18, %c0_19] : memref<1x326x12xbf16, #tpu.memory_space<vmem>>, vector<1x288x12xbf16>
    %20 = vector.shape_cast %19 : vector<1x288x12xbf16> to vector<288x12xbf16>
    %c3 = arith.constant 3 : index
    %c0_20 = arith.constant 0 : index
    %c0_21 = arith.constant 0 : index
    %21 = vector.load %arg2[%c3, %c0_20, %c0_21] : memref<9x12x32xbf16, #tpu.memory_space<vmem>>, vector<1x12x32xbf16>
    %22 = vector.shape_cast %21 : vector<1x12x32xbf16> to vector<12x32xbf16>
    %cst_22 = arith.constant dense<0.000000e+00> : vector<288x32xf32>
    %23 = tpu.matmul %20, %22, %cst_22 {dimension_numbers = #tpu.dot_dimension_numbers<[1], [0], [0], [1], [0, 0, 1, 1], [], []>} : vector<288x12xbf16>, vector<12x32xbf16>, vector<288x32xf32> -> vector<288x32xf32>
    %24 = arith.addf %18, %23 : vector<288x32xf32>
    %c0_23 = arith.constant 0 : index
    %c19 = arith.constant 19 : index
    %c0_24 = arith.constant 0 : index
    %25 = vector.load %arg1[%c0_23, %c19, %c0_24] : memref<1x326x12xbf16, #tpu.memory_space<vmem>>, vector<1x288x12xbf16>
    %26 = vector.shape_cast %25 : vector<1x288x12xbf16> to vector<288x12xbf16>
    %c4 = arith.constant 4 : index
    %c0_25 = arith.constant 0 : index
    %c0_26 = arith.constant 0 : index
    %27 = vector.load %arg2[%c4, %c0_25, %c0_26] : memref<9x12x32xbf16, #tpu.memory_space<vmem>>, vector<1x12x32xbf16>
    %28 = vector.shape_cast %27 : vector<1x12x32xbf16> to vector<12x32xbf16>
    %cst_27 = arith.constant dense<0.000000e+00> : vector<288x32xf32>
    %29 = tpu.matmul %26, %28, %cst_27 {dimension_numbers = #tpu.dot_dimension_numbers<[1], [0], [0], [1], [0, 0, 1, 1], [], []>} : vector<288x12xbf16>, vector<12x32xbf16>, vector<288x32xf32> -> vector<288x32xf32>
    %30 = arith.addf %24, %29 : vector<288x32xf32>
    %c0_28 = arith.constant 0 : index
    %c20 = arith.constant 20 : index
    %c0_29 = arith.constant 0 : index
    %31 = vector.load %arg1[%c0_28, %c20, %c0_29] : memref<1x326x12xbf16, #tpu.memory_space<vmem>>, vector<1x288x12xbf16>
    %32 = vector.shape_cast %31 : vector<1x288x12xbf16> to vector<288x12xbf16>
    %c5 = arith.constant 5 : index
    %c0_30 = arith.constant 0 : index
    %c0_31 = arith.constant 0 : index
    %33 = vector.load %arg2[%c5, %c0_30, %c0_31] : memref<9x12x32xbf16, #tpu.memory_space<vmem>>, vector<1x12x32xbf16>
    %34 = vector.shape_cast %33 : vector<1x12x32xbf16> to vector<12x32xbf16>
    %cst_32 = arith.constant dense<0.000000e+00> : vector<288x32xf32>
    %35 = tpu.matmul %32, %34, %cst_32 {dimension_numbers = #tpu.dot_dimension_numbers<[1], [0], [0], [1], [0, 0, 1, 1], [], []>} : vector<288x12xbf16>, vector<12x32xbf16>, vector<288x32xf32> -> vector<288x32xf32>
    %36 = arith.addf %30, %35 : vector<288x32xf32>
    %c0_33 = arith.constant 0 : index
    %c36 = arith.constant 36 : index
    %c0_34 = arith.constant 0 : index
    %37 = vector.load %arg1[%c0_33, %c36, %c0_34] : memref<1x326x12xbf16, #tpu.memory_space<vmem>>, vector<1x288x12xbf16>
    %38 = vector.shape_cast %37 : vector<1x288x12xbf16> to vector<288x12xbf16>
    %c6 = arith.constant 6 : index
    %c0_35 = arith.constant 0 : index
    %c0_36 = arith.constant 0 : index
    %39 = vector.load %arg2[%c6, %c0_35, %c0_36] : memref<9x12x32xbf16, #tpu.memory_space<vmem>>, vector<1x12x32xbf16>
    %40 = vector.shape_cast %39 : vector<1x12x32xbf16> to vector<12x32xbf16>
    %cst_37 = arith.constant dense<0.000000e+00> : vector<288x32xf32>
    %41 = tpu.matmul %38, %40, %cst_37 {dimension_numbers = #tpu.dot_dimension_numbers<[1], [0], [0], [1], [0, 0, 1, 1], [], []>} : vector<288x12xbf16>, vector<12x32xbf16>, vector<288x32xf32> -> vector<288x32xf32>
    %42 = arith.addf %36, %41 : vector<288x32xf32>
    %c0_38 = arith.constant 0 : index
    %c37 = arith.constant 37 : index
    %c0_39 = arith.constant 0 : index
    %43 = vector.load %arg1[%c0_38, %c37, %c0_39] : memref<1x326x12xbf16, #tpu.memory_space<vmem>>, vector<1x288x12xbf16>
    %44 = vector.shape_cast %43 : vector<1x288x12xbf16> to vector<288x12xbf16>
    %c7 = arith.constant 7 : index
    %c0_40 = arith.constant 0 : index
    %c0_41 = arith.constant 0 : index
    %45 = vector.load %arg2[%c7, %c0_40, %c0_41] : memref<9x12x32xbf16, #tpu.memory_space<vmem>>, vector<1x12x32xbf16>
    %46 = vector.shape_cast %45 : vector<1x12x32xbf16> to vector<12x32xbf16>
    %cst_42 = arith.constant dense<0.000000e+00> : vector<288x32xf32>
    %47 = tpu.matmul %44, %46, %cst_42 {dimension_numbers = #tpu.dot_dimension_numbers<[1], [0], [0], [1], [0, 0, 1, 1], [], []>} : vector<288x12xbf16>, vector<12x32xbf16>, vector<288x32xf32> -> vector<288x32xf32>
    %48 = arith.addf %42, %47 : vector<288x32xf32>
    %c0_43 = arith.constant 0 : index
    %c38 = arith.constant 38 : index
    %c0_44 = arith.constant 0 : index
    %49 = vector.load %arg1[%c0_43, %c38, %c0_44] : memref<1x326x12xbf16, #tpu.memory_space<vmem>>, vector<1x288x12xbf16>
    %50 = vector.shape_cast %49 : vector<1x288x12xbf16> to vector<288x12xbf16>
    %c8 = arith.constant 8 : index
    %c0_45 = arith.constant 0 : index
    %c0_46 = arith.constant 0 : index
    %51 = vector.load %arg2[%c8, %c0_45, %c0_46] : memref<9x12x32xbf16, #tpu.memory_space<vmem>>, vector<1x12x32xbf16>
    %52 = vector.shape_cast %51 : vector<1x12x32xbf16> to vector<12x32xbf16>
    %cst_47 = arith.constant dense<0.000000e+00> : vector<288x32xf32>
    %53 = tpu.matmul %50, %52, %cst_47 {dimension_numbers = #tpu.dot_dimension_numbers<[1], [0], [0], [1], [0, 0, 1, 1], [], []>} : vector<288x12xbf16>, vector<12x32xbf16>, vector<288x32xf32> -> vector<288x32xf32>
    %54 = arith.addf %48, %53 : vector<288x32xf32>
    %c0_48 = arith.constant 0 : index
    %c0_49 = arith.constant 0 : index
    %55 = vector.load %arg3[%c0_48, %c0_49] : memref<1x32xf32, #tpu.memory_space<vmem>>, vector<1x32xf32>
    %56 = vector.broadcast %55 : vector<1x32xf32> to vector<288x32xf32>
    %57 = arith.addf %54, %56 : vector<288x32xf32>
    %58 = arith.truncf %57 : vector<288x32xf32> to vector<288x32xbf16>
    %c0_50 = arith.constant 0 : index
    %c0_51 = arith.constant 0 : index
    %c0_52 = arith.constant 0 : index
    %59 = vector.load %arg4[%c0_50, %c0_51, %c0_52] : memref<1x288x32xbf16, #tpu.memory_space<vmem>>, vector<1x288x32xbf16>
    %60 = vector.shape_cast %59 : vector<1x288x32xbf16> to vector<288x32xbf16>
    %61 = vector.shape_cast %58 : vector<288x32xbf16> to vector<1x288x32xbf16>
    tpu.vector_store %arg4[%c0_50, %c0_51, %c0_52], %61 {strides = array<i32>} : memref<1x288x32xbf16, #tpu.memory_space<vmem>>, vector<1x288x32xbf16>,
    return
  }
  func.func @transform_0(%arg0: i32) -> (i32, i32, i32) {
    %c0_i32 = arith.constant 0 : i32
    %c0_i32_0 = arith.constant 0 : i32
    %c0_i32_1 = arith.constant 0 : i32
    return %arg0, %c0_i32, %c0_i32_0 : i32, i32, i32
  }
  func.func @transform_1(%arg0: i32) -> (i32, i32, i32) {
    %c0_i32 = arith.constant 0 : i32
    %c0_i32_0 = arith.constant 0 : i32
    %c0_i32_1 = arith.constant 0 : i32
    %c0_i32_2 = arith.constant 0 : i32
    return %c0_i32, %c0_i32_0, %c0_i32_1 : i32, i32, i32
  }
  func.func @transform_2(%arg0: i32) -> (i32, i32) {
    %c0_i32 = arith.constant 0 : i32
    %c0_i32_0 = arith.constant 0 : i32
    %c0_i32_1 = arith.constant 0 : i32
    return %c0_i32, %c0_i32_0 : i32, i32
  }
  func.func @transform_3(%arg0: i32) -> (i32, i32, i32) {
    %c0_i32 = arith.constant 0 : i32
    %c0_i32_0 = arith.constant 0 : i32
    %c0_i32_1 = arith.constant 0 : i32
    return %arg0, %c0_i32, %c0_i32_0 : i32, i32, i32
  }
}

module attributes {stable_mosaic.version = 11 : i64} {
  func.func @_downsample_kernel(%arg0: i32, %arg1: memref<1x102x128xbf16, #tpu.memory_space<vmem>>, %arg2: memref<9x128x32xbf16, #tpu.memory_space<vmem>>, %arg3: memref<1x32xf32, #tpu.memory_space<vmem>>, %arg4: memref<1x80x32xbf16, #tpu.memory_space<vmem>>) attributes {dimension_semantics = [#tpu.dimension_semantics<parallel>], iteration_bounds = array<i64: 2>, scalar_prefetch = 0 : i64, scratch_operands = 0 : i64, tpu.core_type = #tpu.core_type<tc>, window_params = [{transform_indices = @transform_0, window_bounds = array<i64: 1, 102, 128>}, {pipeline_mode = #tpu.pipeline_mode<synchronous>, transform_indices = @transform_1, window_bounds = array<i64: 9, 128, 32>}, {pipeline_mode = #tpu.pipeline_mode<synchronous>, transform_indices = @transform_2, window_bounds = array<i64: 1, 32>}, {transform_indices = @transform_3, window_bounds = array<i64: 1, 80, 32>}]} {
    %cst = arith.constant 0.000000e+00 : f32
    %0 = vector.broadcast %cst : f32 to vector<80x32xf32>
    %c0 = arith.constant 0 : index
    %c0_0 = arith.constant 0 : index
    %c0_1 = arith.constant 0 : index
    %1 = vector.load %arg1[%c0, %c0_0, %c0_1] : memref<1x102x128xbf16, #tpu.memory_space<vmem>>, vector<1x80x128xbf16>
    %2 = vector.shape_cast %1 : vector<1x80x128xbf16> to vector<80x128xbf16>
    %c0_2 = arith.constant 0 : index
    %c0_3 = arith.constant 0 : index
    %c0_4 = arith.constant 0 : index
    %3 = vector.load %arg2[%c0_2, %c0_3, %c0_4] : memref<9x128x32xbf16, #tpu.memory_space<vmem>>, vector<1x128x32xbf16>
    %4 = vector.shape_cast %3 : vector<1x128x32xbf16> to vector<128x32xbf16>
    %cst_5 = arith.constant dense<0.000000e+00> : vector<80x32xf32>
    %5 = tpu.matmul %2, %4, %cst_5 {dimension_numbers = #tpu.dot_dimension_numbers<[1], [0], [0], [1], [0, 0, 1, 1], [], []>} : vector<80x128xbf16>, vector<128x32xbf16>, vector<80x32xf32> -> vector<80x32xf32>
    %6 = arith.addf %0, %5 : vector<80x32xf32>
    %c0_6 = arith.constant 0 : index
    %c1 = arith.constant 1 : index
    %c0_7 = arith.constant 0 : index
    %7 = vector.load %arg1[%c0_6, %c1, %c0_7] : memref<1x102x128xbf16, #tpu.memory_space<vmem>>, vector<1x80x128xbf16>
    %8 = vector.shape_cast %7 : vector<1x80x128xbf16> to vector<80x128xbf16>
    %c1_8 = arith.constant 1 : index
    %c0_9 = arith.constant 0 : index
    %c0_10 = arith.constant 0 : index
    %9 = vector.load %arg2[%c1_8, %c0_9, %c0_10] : memref<9x128x32xbf16, #tpu.memory_space<vmem>>, vector<1x128x32xbf16>
    %10 = vector.shape_cast %9 : vector<1x128x32xbf16> to vector<128x32xbf16>
    %cst_11 = arith.constant dense<0.000000e+00> : vector<80x32xf32>
    %11 = tpu.matmul %8, %10, %cst_11 {dimension_numbers = #tpu.dot_dimension_numbers<[1], [0], [0], [1], [0, 0, 1, 1], [], []>} : vector<80x128xbf16>, vector<128x32xbf16>, vector<80x32xf32> -> vector<80x32xf32>
    %12 = arith.addf %6, %11 : vector<80x32xf32>
    %c0_12 = arith.constant 0 : index
    %c2 = arith.constant 2 : index
    %c0_13 = arith.constant 0 : index
    %13 = vector.load %arg1[%c0_12, %c2, %c0_13] : memref<1x102x128xbf16, #tpu.memory_space<vmem>>, vector<1x80x128xbf16>
    %14 = vector.shape_cast %13 : vector<1x80x128xbf16> to vector<80x128xbf16>
    %c2_14 = arith.constant 2 : index
    %c0_15 = arith.constant 0 : index
    %c0_16 = arith.constant 0 : index
    %15 = vector.load %arg2[%c2_14, %c0_15, %c0_16] : memref<9x128x32xbf16, #tpu.memory_space<vmem>>, vector<1x128x32xbf16>
    %16 = vector.shape_cast %15 : vector<1x128x32xbf16> to vector<128x32xbf16>
    %cst_17 = arith.constant dense<0.000000e+00> : vector<80x32xf32>
    %17 = tpu.matmul %14, %16, %cst_17 {dimension_numbers = #tpu.dot_dimension_numbers<[1], [0], [0], [1], [0, 0, 1, 1], [], []>} : vector<80x128xbf16>, vector<128x32xbf16>, vector<80x32xf32> -> vector<80x32xf32>
    %18 = arith.addf %12, %17 : vector<80x32xf32>
    %c0_18 = arith.constant 0 : index
    %c10 = arith.constant 10 : index
    %c0_19 = arith.constant 0 : index
    %19 = vector.load %arg1[%c0_18, %c10, %c0_19] : memref<1x102x128xbf16, #tpu.memory_space<vmem>>, vector<1x80x128xbf16>
    %20 = vector.shape_cast %19 : vector<1x80x128xbf16> to vector<80x128xbf16>
    %c3 = arith.constant 3 : index
    %c0_20 = arith.constant 0 : index
    %c0_21 = arith.constant 0 : index
    %21 = vector.load %arg2[%c3, %c0_20, %c0_21] : memref<9x128x32xbf16, #tpu.memory_space<vmem>>, vector<1x128x32xbf16>
    %22 = vector.shape_cast %21 : vector<1x128x32xbf16> to vector<128x32xbf16>
    %cst_22 = arith.constant dense<0.000000e+00> : vector<80x32xf32>
    %23 = tpu.matmul %20, %22, %cst_22 {dimension_numbers = #tpu.dot_dimension_numbers<[1], [0], [0], [1], [0, 0, 1, 1], [], []>} : vector<80x128xbf16>, vector<128x32xbf16>, vector<80x32xf32> -> vector<80x32xf32>
    %24 = arith.addf %18, %23 : vector<80x32xf32>
    %c0_23 = arith.constant 0 : index
    %c11 = arith.constant 11 : index
    %c0_24 = arith.constant 0 : index
    %25 = vector.load %arg1[%c0_23, %c11, %c0_24] : memref<1x102x128xbf16, #tpu.memory_space<vmem>>, vector<1x80x128xbf16>
    %26 = vector.shape_cast %25 : vector<1x80x128xbf16> to vector<80x128xbf16>
    %c4 = arith.constant 4 : index
    %c0_25 = arith.constant 0 : index
    %c0_26 = arith.constant 0 : index
    %27 = vector.load %arg2[%c4, %c0_25, %c0_26] : memref<9x128x32xbf16, #tpu.memory_space<vmem>>, vector<1x128x32xbf16>
    %28 = vector.shape_cast %27 : vector<1x128x32xbf16> to vector<128x32xbf16>
    %cst_27 = arith.constant dense<0.000000e+00> : vector<80x32xf32>
    %29 = tpu.matmul %26, %28, %cst_27 {dimension_numbers = #tpu.dot_dimension_numbers<[1], [0], [0], [1], [0, 0, 1, 1], [], []>} : vector<80x128xbf16>, vector<128x32xbf16>, vector<80x32xf32> -> vector<80x32xf32>
    %30 = arith.addf %24, %29 : vector<80x32xf32>
    %c0_28 = arith.constant 0 : index
    %c12 = arith.constant 12 : index
    %c0_29 = arith.constant 0 : index
    %31 = vector.load %arg1[%c0_28, %c12, %c0_29] : memref<1x102x128xbf16, #tpu.memory_space<vmem>>, vector<1x80x128xbf16>
    %32 = vector.shape_cast %31 : vector<1x80x128xbf16> to vector<80x128xbf16>
    %c5 = arith.constant 5 : index
    %c0_30 = arith.constant 0 : index
    %c0_31 = arith.constant 0 : index
    %33 = vector.load %arg2[%c5, %c0_30, %c0_31] : memref<9x128x32xbf16, #tpu.memory_space<vmem>>, vector<1x128x32xbf16>
    %34 = vector.shape_cast %33 : vector<1x128x32xbf16> to vector<128x32xbf16>
    %cst_32 = arith.constant dense<0.000000e+00> : vector<80x32xf32>
    %35 = tpu.matmul %32, %34, %cst_32 {dimension_numbers = #tpu.dot_dimension_numbers<[1], [0], [0], [1], [0, 0, 1, 1], [], []>} : vector<80x128xbf16>, vector<128x32xbf16>, vector<80x32xf32> -> vector<80x32xf32>
    %36 = arith.addf %30, %35 : vector<80x32xf32>
    %c0_33 = arith.constant 0 : index
    %c20 = arith.constant 20 : index
    %c0_34 = arith.constant 0 : index
    %37 = vector.load %arg1[%c0_33, %c20, %c0_34] : memref<1x102x128xbf16, #tpu.memory_space<vmem>>, vector<1x80x128xbf16>
    %38 = vector.shape_cast %37 : vector<1x80x128xbf16> to vector<80x128xbf16>
    %c6 = arith.constant 6 : index
    %c0_35 = arith.constant 0 : index
    %c0_36 = arith.constant 0 : index
    %39 = vector.load %arg2[%c6, %c0_35, %c0_36] : memref<9x128x32xbf16, #tpu.memory_space<vmem>>, vector<1x128x32xbf16>
    %40 = vector.shape_cast %39 : vector<1x128x32xbf16> to vector<128x32xbf16>
    %cst_37 = arith.constant dense<0.000000e+00> : vector<80x32xf32>
    %41 = tpu.matmul %38, %40, %cst_37 {dimension_numbers = #tpu.dot_dimension_numbers<[1], [0], [0], [1], [0, 0, 1, 1], [], []>} : vector<80x128xbf16>, vector<128x32xbf16>, vector<80x32xf32> -> vector<80x32xf32>
    %42 = arith.addf %36, %41 : vector<80x32xf32>
    %c0_38 = arith.constant 0 : index
    %c21 = arith.constant 21 : index
    %c0_39 = arith.constant 0 : index
    %43 = vector.load %arg1[%c0_38, %c21, %c0_39] : memref<1x102x128xbf16, #tpu.memory_space<vmem>>, vector<1x80x128xbf16>
    %44 = vector.shape_cast %43 : vector<1x80x128xbf16> to vector<80x128xbf16>
    %c7 = arith.constant 7 : index
    %c0_40 = arith.constant 0 : index
    %c0_41 = arith.constant 0 : index
    %45 = vector.load %arg2[%c7, %c0_40, %c0_41] : memref<9x128x32xbf16, #tpu.memory_space<vmem>>, vector<1x128x32xbf16>
    %46 = vector.shape_cast %45 : vector<1x128x32xbf16> to vector<128x32xbf16>
    %cst_42 = arith.constant dense<0.000000e+00> : vector<80x32xf32>
    %47 = tpu.matmul %44, %46, %cst_42 {dimension_numbers = #tpu.dot_dimension_numbers<[1], [0], [0], [1], [0, 0, 1, 1], [], []>} : vector<80x128xbf16>, vector<128x32xbf16>, vector<80x32xf32> -> vector<80x32xf32>
    %48 = arith.addf %42, %47 : vector<80x32xf32>
    %c0_43 = arith.constant 0 : index
    %c22 = arith.constant 22 : index
    %c0_44 = arith.constant 0 : index
    %49 = vector.load %arg1[%c0_43, %c22, %c0_44] : memref<1x102x128xbf16, #tpu.memory_space<vmem>>, vector<1x80x128xbf16>
    %50 = vector.shape_cast %49 : vector<1x80x128xbf16> to vector<80x128xbf16>
    %c8 = arith.constant 8 : index
    %c0_45 = arith.constant 0 : index
    %c0_46 = arith.constant 0 : index
    %51 = vector.load %arg2[%c8, %c0_45, %c0_46] : memref<9x128x32xbf16, #tpu.memory_space<vmem>>, vector<1x128x32xbf16>
    %52 = vector.shape_cast %51 : vector<1x128x32xbf16> to vector<128x32xbf16>
    %cst_47 = arith.constant dense<0.000000e+00> : vector<80x32xf32>
    %53 = tpu.matmul %50, %52, %cst_47 {dimension_numbers = #tpu.dot_dimension_numbers<[1], [0], [0], [1], [0, 0, 1, 1], [], []>} : vector<80x128xbf16>, vector<128x32xbf16>, vector<80x32xf32> -> vector<80x32xf32>
    %54 = arith.addf %48, %53 : vector<80x32xf32>
    %c0_48 = arith.constant 0 : index
    %c0_49 = arith.constant 0 : index
    %55 = vector.load %arg3[%c0_48, %c0_49] : memref<1x32xf32, #tpu.memory_space<vmem>>, vector<1x32xf32>
    %56 = vector.broadcast %55 : vector<1x32xf32> to vector<80x32xf32>
    %57 = arith.addf %54, %56 : vector<80x32xf32>
    %58 = arith.truncf %57 : vector<80x32xf32> to vector<80x32xbf16>
    %c0_50 = arith.constant 0 : index
    %c0_51 = arith.constant 0 : index
    %c0_52 = arith.constant 0 : index
    %59 = vector.load %arg4[%c0_50, %c0_51, %c0_52] : memref<1x80x32xbf16, #tpu.memory_space<vmem>>, vector<1x80x32xbf16>
    %60 = vector.shape_cast %59 : vector<1x80x32xbf16> to vector<80x32xbf16>
    %61 = vector.shape_cast %58 : vector<80x32xbf16> to vector<1x80x32xbf16>
    tpu.vector_store %arg4[%c0_50, %c0_51, %c0_52], %61 {strides = array<i32>} : memref<1x80x32xbf16, #tpu.memory_space<vmem>>, vector<1x80x32xbf16>,
    return
  }
  func.func @transform_0(%arg0: i32) -> (i32, i32, i32) {
    %c0_i32 = arith.constant 0 : i32
    %c0_i32_0 = arith.constant 0 : i32
    %c0_i32_1 = arith.constant 0 : i32
    return %arg0, %c0_i32, %c0_i32_0 : i32, i32, i32
  }
  func.func @transform_1(%arg0: i32) -> (i32, i32, i32) {
    %c0_i32 = arith.constant 0 : i32
    %c0_i32_0 = arith.constant 0 : i32
    %c0_i32_1 = arith.constant 0 : i32
    %c0_i32_2 = arith.constant 0 : i32
    return %c0_i32, %c0_i32_0, %c0_i32_1 : i32, i32, i32
  }
  func.func @transform_2(%arg0: i32) -> (i32, i32) {
    %c0_i32 = arith.constant 0 : i32
    %c0_i32_0 = arith.constant 0 : i32
    %c0_i32_1 = arith.constant 0 : i32
    return %c0_i32, %c0_i32_0 : i32, i32
  }
  func.func @transform_3(%arg0: i32) -> (i32, i32, i32) {
    %c0_i32 = arith.constant 0 : i32
    %c0_i32_0 = arith.constant 0 : i32
    %c0_i32_1 = arith.constant 0 : i32
    return %arg0, %c0_i32, %c0_i32_0 : i32, i32, i32
  }
}

module attributes {stable_mosaic.version = 11 : i64} {
  func.func @_res_stack_kernel(%arg0: i32, %arg1: memref<1x102x32xbf16, #tpu.memory_space<vmem>>, %arg2: memref<13x288x32xbf16, #tpu.memory_space<vmem>>, %arg3: memref<13x1x32xf32, #tpu.memory_space<vmem>>, %arg4: memref<80x1xf32, #tpu.memory_space<vmem>>, %arg5: memref<1x80x32xbf16, #tpu.memory_space<vmem>>, %arg6: memref<102x32xbf16, #tpu.memory_space<vmem>>, %arg7: memref<102x32xbf16, #tpu.memory_space<vmem>>, %arg8: memref<80x32xf32, #tpu.memory_space<vmem>>) attributes {dimension_semantics = [#tpu.dimension_semantics<parallel>], iteration_bounds = array<i64: 2>, scalar_prefetch = 0 : i64, scratch_operands = 3 : i64, tpu.core_type = #tpu.core_type<tc>, window_params = [{transform_indices = @transform_0, window_bounds = array<i64: 1, 102, 32>}, {pipeline_mode = #tpu.pipeline_mode<synchronous>, transform_indices = @transform_1, window_bounds = array<i64: 13, 288, 32>}, {pipeline_mode = #tpu.pipeline_mode<synchronous>, transform_indices = @transform_2, window_bounds = array<i64: 13, 1, 32>}, {pipeline_mode = #tpu.pipeline_mode<synchronous>, transform_indices = @transform_3, window_bounds = array<i64: 80, 1>}, {transform_indices = @transform_4, window_bounds = array<i64: 1, 80, 32>}]} {
    %c0 = arith.constant 0 : index
    %c0_0 = arith.constant 0 : index
    %0 = vector.load %arg4[%c0, %c0_0] : memref<80x1xf32, #tpu.memory_space<vmem>>, vector<80x1xf32>
    %c0_1 = arith.constant 0 : index
    %c0_2 = arith.constant 0 : index
    %c0_3 = arith.constant 0 : index
    %1 = vector.load %arg1[%c0_1, %c0_2, %c0_3] : memref<1x102x32xbf16, #tpu.memory_space<vmem>>, vector<1x102x32xbf16>
    %2 = vector.shape_cast %1 : vector<1x102x32xbf16> to vector<102x32xbf16>
    %c0_4 = arith.constant 0 : index
    %c0_5 = arith.constant 0 : index
    %3 = vector.load %arg6[%c0_4, %c0_5] : memref<102x32xbf16, #tpu.memory_space<vmem>>, vector<102x32xbf16>
    tpu.vector_store %arg6[%c0_4, %c0_5], %2 {strides = array<i32>} : memref<102x32xbf16, #tpu.memory_space<vmem>>, vector<102x32xbf16>,
    %c0_6 = arith.constant 0 : index
    %c11 = arith.constant 11 : index
    %c0_7 = arith.constant 0 : index
    %4 = vector.load %arg1[%c0_6, %c11, %c0_7] : memref<1x102x32xbf16, #tpu.memory_space<vmem>>, vector<1x80x32xbf16>
    %5 = vector.shape_cast %4 : vector<1x80x32xbf16> to vector<80x32xbf16>
    %6 = arith.extf %5 : vector<80x32xbf16> to vector<80x32xf32>
    %c0_8 = arith.constant 0 : index
    %c0_9 = arith.constant 0 : index
    %7 = vector.load %arg8[%c0_8, %c0_9] : memref<80x32xf32, #tpu.memory_space<vmem>>, vector<80x32xf32>
    tpu.vector_store %arg8[%c0_8, %c0_9], %6 {strides = array<i32>} : memref<80x32xf32, #tpu.memory_space<vmem>>, vector<80x32xf32>,
    %cst = arith.constant 0.000000e+00 : bf16
    %8 = vector.broadcast %cst : bf16 to vector<11x32xbf16>
    %c0_10 = arith.constant 0 : index
    %c0_11 = arith.constant 0 : index
    %9 = vector.load %arg7[%c0_10, %c0_11] : memref<102x32xbf16, #tpu.memory_space<vmem>>, vector<11x32xbf16>
    tpu.vector_store %arg7[%c0_10, %c0_11], %8 {strides = array<i32>} : memref<102x32xbf16, #tpu.memory_space<vmem>>, vector<11x32xbf16>,
    %c91 = arith.constant 91 : index
    %c0_12 = arith.constant 0 : index
    %10 = vector.load %arg7[%c91, %c0_12] : memref<102x32xbf16, #tpu.memory_space<vmem>>, vector<11x32xbf16>
    tpu.vector_store %arg7[%c91, %c0_12], %8 {strides = array<i32>} : memref<102x32xbf16, #tpu.memory_space<vmem>>, vector<11x32xbf16>,
    %c0_i32 = arith.constant 0 : i32
    %c6_i32 = arith.constant 6 : i32
    %11 = arith.addi %c0_i32, %c6_i32 : i32
    %c1_i32 = arith.constant 1 : i32
    scf.for %arg9 = %c0_i32 to %11 step %c1_i32  : i32 {
      %c2_i32 = arith.constant 2 : i32
      %59 = arith.muli %c2_i32, %arg9 : i32
      %60 = arith.index_cast %59 : i32 to index
      %c0_44 = arith.constant 0 : index
      %c0_45 = arith.constant 0 : index
      %61 = vector.load %arg2[%60, %c0_44, %c0_45] : memref<13x288x32xbf16, #tpu.memory_space<vmem>>, vector<1x288x32xbf16>
      %62 = vector.shape_cast %61 : vector<1x288x32xbf16> to vector<288x32xbf16>
      %cst_46 = arith.constant 0.000000e+00 : f32
      %63 = vector.broadcast %cst_46 : f32 to vector<80x32xf32>
      %c0_47 = arith.constant 0 : index
      %c0_48 = arith.constant 0 : index
      %64 = vector.load %arg6[%c0_47, %c0_48] : memref<102x32xbf16, #tpu.memory_space<vmem>>, vector<80x32xbf16>
      %65 = vector.extract_strided_slice %62 {offsets = [0, 0], sizes = [32, 32], strides = [1, 1]} : vector<288x32xbf16> to vector<32x32xbf16>
      %cst_49 = arith.constant dense<0.000000e+00> : vector<80x32xf32>
      %66 = tpu.matmul %64, %65, %cst_49 {dimension_numbers = #tpu.dot_dimension_numbers<[1], [0], [0], [1], [0, 0, 1, 1], [], []>} : vector<80x32xbf16>, vector<32x32xbf16>, vector<80x32xf32> -> vector<80x32xf32>
      %67 = arith.addf %63, %66 : vector<80x32xf32>
      %c1_50 = arith.constant 1 : index
      %c0_51 = arith.constant 0 : index
      %68 = vector.load %arg6[%c1_50, %c0_51] : memref<102x32xbf16, #tpu.memory_space<vmem>>, vector<80x32xbf16>
      %69 = vector.extract_strided_slice %62 {offsets = [32, 0], sizes = [32, 32], strides = [1, 1]} : vector<288x32xbf16> to vector<32x32xbf16>
      %cst_52 = arith.constant dense<0.000000e+00> : vector<80x32xf32>
      %70 = tpu.matmul %68, %69, %cst_52 {dimension_numbers = #tpu.dot_dimension_numbers<[1], [0], [0], [1], [0, 0, 1, 1], [], []>} : vector<80x32xbf16>, vector<32x32xbf16>, vector<80x32xf32> -> vector<80x32xf32>
      %71 = arith.addf %67, %70 : vector<80x32xf32>
      %c2_53 = arith.constant 2 : index
      %c0_54 = arith.constant 0 : index
      %72 = vector.load %arg6[%c2_53, %c0_54] : memref<102x32xbf16, #tpu.memory_space<vmem>>, vector<80x32xbf16>
      %73 = vector.extract_strided_slice %62 {offsets = [64, 0], sizes = [32, 32], strides = [1, 1]} : vector<288x32xbf16> to vector<32x32xbf16>
      %cst_55 = arith.constant dense<0.000000e+00> : vector<80x32xf32>
      %74 = tpu.matmul %72, %73, %cst_55 {dimension_numbers = #tpu.dot_dimension_numbers<[1], [0], [0], [1], [0, 0, 1, 1], [], []>} : vector<80x32xbf16>, vector<32x32xbf16>, vector<80x32xf32> -> vector<80x32xf32>
      %75 = arith.addf %71, %74 : vector<80x32xf32>
      %c10_56 = arith.constant 10 : index
      %c0_57 = arith.constant 0 : index
      %76 = vector.load %arg6[%c10_56, %c0_57] : memref<102x32xbf16, #tpu.memory_space<vmem>>, vector<80x32xbf16>
      %77 = vector.extract_strided_slice %62 {offsets = [96, 0], sizes = [32, 32], strides = [1, 1]} : vector<288x32xbf16> to vector<32x32xbf16>
      %cst_58 = arith.constant dense<0.000000e+00> : vector<80x32xf32>
      %78 = tpu.matmul %76, %77, %cst_58 {dimension_numbers = #tpu.dot_dimension_numbers<[1], [0], [0], [1], [0, 0, 1, 1], [], []>} : vector<80x32xbf16>, vector<32x32xbf16>, vector<80x32xf32> -> vector<80x32xf32>
      %79 = arith.addf %75, %78 : vector<80x32xf32>
      %c11_59 = arith.constant 11 : index
      %c0_60 = arith.constant 0 : index
      %80 = vector.load %arg6[%c11_59, %c0_60] : memref<102x32xbf16, #tpu.memory_space<vmem>>, vector<80x32xbf16>
      %81 = vector.extract_strided_slice %62 {offsets = [128, 0], sizes = [32, 32], strides = [1, 1]} : vector<288x32xbf16> to vector<32x32xbf16>
      %cst_61 = arith.constant dense<0.000000e+00> : vector<80x32xf32>
      %82 = tpu.matmul %80, %81, %cst_61 {dimension_numbers = #tpu.dot_dimension_numbers<[1], [0], [0], [1], [0, 0, 1, 1], [], []>} : vector<80x32xbf16>, vector<32x32xbf16>, vector<80x32xf32> -> vector<80x32xf32>
      %83 = arith.addf %79, %82 : vector<80x32xf32>
      %c12_62 = arith.constant 12 : index
      %c0_63 = arith.constant 0 : index
      %84 = vector.load %arg6[%c12_62, %c0_63] : memref<102x32xbf16, #tpu.memory_space<vmem>>, vector<80x32xbf16>
      %85 = vector.extract_strided_slice %62 {offsets = [160, 0], sizes = [32, 32], strides = [1, 1]} : vector<288x32xbf16> to vector<32x32xbf16>
      %cst_64 = arith.constant dense<0.000000e+00> : vector<80x32xf32>
      %86 = tpu.matmul %84, %85, %cst_64 {dimension_numbers = #tpu.dot_dimension_numbers<[1], [0], [0], [1], [0, 0, 1, 1], [], []>} : vector<80x32xbf16>, vector<32x32xbf16>, vector<80x32xf32> -> vector<80x32xf32>
      %87 = arith.addf %83, %86 : vector<80x32xf32>
      %c20_65 = arith.constant 20 : index
      %c0_66 = arith.constant 0 : index
      %88 = vector.load %arg6[%c20_65, %c0_66] : memref<102x32xbf16, #tpu.memory_space<vmem>>, vector<80x32xbf16>
      %89 = vector.extract_strided_slice %62 {offsets = [192, 0], sizes = [32, 32], strides = [1, 1]} : vector<288x32xbf16> to vector<32x32xbf16>
      %cst_67 = arith.constant dense<0.000000e+00> : vector<80x32xf32>
      %90 = tpu.matmul %88, %89, %cst_67 {dimension_numbers = #tpu.dot_dimension_numbers<[1], [0], [0], [1], [0, 0, 1, 1], [], []>} : vector<80x32xbf16>, vector<32x32xbf16>, vector<80x32xf32> -> vector<80x32xf32>
      %91 = arith.addf %87, %90 : vector<80x32xf32>
      %c21_68 = arith.constant 21 : index
      %c0_69 = arith.constant 0 : index
      %92 = vector.load %arg6[%c21_68, %c0_69] : memref<102x32xbf16, #tpu.memory_space<vmem>>, vector<80x32xbf16>
      %93 = vector.extract_strided_slice %62 {offsets = [224, 0], sizes = [32, 32], strides = [1, 1]} : vector<288x32xbf16> to vector<32x32xbf16>
      %cst_70 = arith.constant dense<0.000000e+00> : vector<80x32xf32>
      %94 = tpu.matmul %92, %93, %cst_70 {dimension_numbers = #tpu.dot_dimension_numbers<[1], [0], [0], [1], [0, 0, 1, 1], [], []>} : vector<80x32xbf16>, vector<32x32xbf16>, vector<80x32xf32> -> vector<80x32xf32>
      %95 = arith.addf %91, %94 : vector<80x32xf32>
      %c22_71 = arith.constant 22 : index
      %c0_72 = arith.constant 0 : index
      %96 = vector.load %arg6[%c22_71, %c0_72] : memref<102x32xbf16, #tpu.memory_space<vmem>>, vector<80x32xbf16>
      %97 = vector.extract_strided_slice %62 {offsets = [256, 0], sizes = [32, 32], strides = [1, 1]} : vector<288x32xbf16> to vector<32x32xbf16>
      %cst_73 = arith.constant dense<0.000000e+00> : vector<80x32xf32>
      %98 = tpu.matmul %96, %97, %cst_73 {dimension_numbers = #tpu.dot_dimension_numbers<[1], [0], [0], [1], [0, 0, 1, 1], [], []>} : vector<80x32xbf16>, vector<32x32xbf16>, vector<80x32xf32> -> vector<80x32xf32>
      %99 = arith.addf %95, %98 : vector<80x32xf32>
      %100 = arith.index_cast %59 : i32 to index
      %c0_74 = arith.constant 0 : index
      %c0_75 = arith.constant 0 : index
      %101 = vector.load %arg3[%100, %c0_74, %c0_75] : memref<13x1x32xf32, #tpu.memory_space<vmem>>, vector<1x1x32xf32>
      %102 = vector.shape_cast %101 : vector<1x1x32xf32> to vector<1x32xf32>
      %103 = vector.broadcast %102 : vector<1x32xf32> to vector<80x32xf32>
      %104 = arith.addf %99, %103 : vector<80x32xf32>
      %cst_76 = arith.constant 0.000000e+00 : f32
      %105 = vector.broadcast %cst_76 : f32 to vector<80x32xf32>
      %106 = arith.cmpf ogt, %104, %105 : vector<80x32xf32>
      %cst_77 = arith.constant 2.000000e-01 : f32
      %107 = vector.broadcast %cst_77 : f32 to vector<80x32xf32>
      %108 = arith.mulf %107, %104 : vector<80x32xf32>
      %109 = arith.select %106, %104, %108 : vector<80x32xi1>, vector<80x32xf32>
      %110 = vector.broadcast %0 : vector<80x1xf32> to vector<80x32xf32>
      %111 = arith.mulf %109, %110 : vector<80x32xf32>
      %112 = arith.truncf %111 : vector<80x32xf32> to vector<80x32xbf16>
      %c11_78 = arith.constant 11 : index
      %c0_79 = arith.constant 0 : index
      %113 = vector.load %arg7[%c11_78, %c0_79] : memref<102x32xbf16, #tpu.memory_space<vmem>>, vector<80x32xbf16>
      tpu.vector_store %arg7[%c11_78, %c0_79], %112 {strides = array<i32>} : memref<102x32xbf16, #tpu.memory_space<vmem>>, vector<80x32xbf16>,
      %c0_80 = arith.constant 0 : index
      %c0_81 = arith.constant 0 : index
      %114 = vector.load %arg8[%c0_80, %c0_81] : memref<80x32xf32, #tpu.memory_space<vmem>>, vector<80x32xf32>
      %c1_i32_82 = arith.constant 1 : i32
      %115 = arith.addi %59, %c1_i32_82 : i32
      %116 = arith.index_cast %115 : i32 to index
      %c0_83 = arith.constant 0 : index
      %c0_84 = arith.constant 0 : index
      %117 = vector.load %arg2[%116, %c0_83, %c0_84] : memref<13x288x32xbf16, #tpu.memory_space<vmem>>, vector<1x288x32xbf16>
      %118 = vector.shape_cast %117 : vector<1x288x32xbf16> to vector<288x32xbf16>
      %cst_85 = arith.constant 0.000000e+00 : f32
      %119 = vector.broadcast %cst_85 : f32 to vector<80x32xf32>
      %c0_86 = arith.constant 0 : index
      %c0_87 = arith.constant 0 : index
      %120 = vector.load %arg7[%c0_86, %c0_87] : memref<102x32xbf16, #tpu.memory_space<vmem>>, vector<80x32xbf16>
      %121 = vector.extract_strided_slice %118 {offsets = [0, 0], sizes = [32, 32], strides = [1, 1]} : vector<288x32xbf16> to vector<32x32xbf16>
      %cst_88 = arith.constant dense<0.000000e+00> : vector<80x32xf32>
      %122 = tpu.matmul %120, %121, %cst_88 {dimension_numbers = #tpu.dot_dimension_numbers<[1], [0], [0], [1], [0, 0, 1, 1], [], []>} : vector<80x32xbf16>, vector<32x32xbf16>, vector<80x32xf32> -> vector<80x32xf32>
      %123 = arith.addf %119, %122 : vector<80x32xf32>
      %c1_89 = arith.constant 1 : index
      %c0_90 = arith.constant 0 : index
      %124 = vector.load %arg7[%c1_89, %c0_90] : memref<102x32xbf16, #tpu.memory_space<vmem>>, vector<80x32xbf16>
      %125 = vector.extract_strided_slice %118 {offsets = [32, 0], sizes = [32, 32], strides = [1, 1]} : vector<288x32xbf16> to vector<32x32xbf16>
      %cst_91 = arith.constant dense<0.000000e+00> : vector<80x32xf32>
      %126 = tpu.matmul %124, %125, %cst_91 {dimension_numbers = #tpu.dot_dimension_numbers<[1], [0], [0], [1], [0, 0, 1, 1], [], []>} : vector<80x32xbf16>, vector<32x32xbf16>, vector<80x32xf32> -> vector<80x32xf32>
      %127 = arith.addf %123, %126 : vector<80x32xf32>
      %c2_92 = arith.constant 2 : index
      %c0_93 = arith.constant 0 : index
      %128 = vector.load %arg7[%c2_92, %c0_93] : memref<102x32xbf16, #tpu.memory_space<vmem>>, vector<80x32xbf16>
      %129 = vector.extract_strided_slice %118 {offsets = [64, 0], sizes = [32, 32], strides = [1, 1]} : vector<288x32xbf16> to vector<32x32xbf16>
      %cst_94 = arith.constant dense<0.000000e+00> : vector<80x32xf32>
      %130 = tpu.matmul %128, %129, %cst_94 {dimension_numbers = #tpu.dot_dimension_numbers<[1], [0], [0], [1], [0, 0, 1, 1], [], []>} : vector<80x32xbf16>, vector<32x32xbf16>, vector<80x32xf32> -> vector<80x32xf32>
      %131 = arith.addf %127, %130 : vector<80x32xf32>
      %c10_95 = arith.constant 10 : index
      %c0_96 = arith.constant 0 : index
      %132 = vector.load %arg7[%c10_95, %c0_96] : memref<102x32xbf16, #tpu.memory_space<vmem>>, vector<80x32xbf16>
      %133 = vector.extract_strided_slice %118 {offsets = [96, 0], sizes = [32, 32], strides = [1, 1]} : vector<288x32xbf16> to vector<32x32xbf16>
      %cst_97 = arith.constant dense<0.000000e+00> : vector<80x32xf32>
      %134 = tpu.matmul %132, %133, %cst_97 {dimension_numbers = #tpu.dot_dimension_numbers<[1], [0], [0], [1], [0, 0, 1, 1], [], []>} : vector<80x32xbf16>, vector<32x32xbf16>, vector<80x32xf32> -> vector<80x32xf32>
      %135 = arith.addf %131, %134 : vector<80x32xf32>
      %c11_98 = arith.constant 11 : index
      %c0_99 = arith.constant 0 : index
      %136 = vector.load %arg7[%c11_98, %c0_99] : memref<102x32xbf16, #tpu.memory_space<vmem>>, vector<80x32xbf16>
      %137 = vector.extract_strided_slice %118 {offsets = [128, 0], sizes = [32, 32], strides = [1, 1]} : vector<288x32xbf16> to vector<32x32xbf16>
      %cst_100 = arith.constant dense<0.000000e+00> : vector<80x32xf32>
      %138 = tpu.matmul %136, %137, %cst_100 {dimension_numbers = #tpu.dot_dimension_numbers<[1], [0], [0], [1], [0, 0, 1, 1], [], []>} : vector<80x32xbf16>, vector<32x32xbf16>, vector<80x32xf32> -> vector<80x32xf32>
      %139 = arith.addf %135, %138 : vector<80x32xf32>
      %c12_101 = arith.constant 12 : index
      %c0_102 = arith.constant 0 : index
      %140 = vector.load %arg7[%c12_101, %c0_102] : memref<102x32xbf16, #tpu.memory_space<vmem>>, vector<80x32xbf16>
      %141 = vector.extract_strided_slice %118 {offsets = [160, 0], sizes = [32, 32], strides = [1, 1]} : vector<288x32xbf16> to vector<32x32xbf16>
      %cst_103 = arith.constant dense<0.000000e+00> : vector<80x32xf32>
      %142 = tpu.matmul %140, %141, %cst_103 {dimension_numbers = #tpu.dot_dimension_numbers<[1], [0], [0], [1], [0, 0, 1, 1], [], []>} : vector<80x32xbf16>, vector<32x32xbf16>, vector<80x32xf32> -> vector<80x32xf32>
      %143 = arith.addf %139, %142 : vector<80x32xf32>
      %c20_104 = arith.constant 20 : index
      %c0_105 = arith.constant 0 : index
      %144 = vector.load %arg7[%c20_104, %c0_105] : memref<102x32xbf16, #tpu.memory_space<vmem>>, vector<80x32xbf16>
      %145 = vector.extract_strided_slice %118 {offsets = [192, 0], sizes = [32, 32], strides = [1, 1]} : vector<288x32xbf16> to vector<32x32xbf16>
      %cst_106 = arith.constant dense<0.000000e+00> : vector<80x32xf32>
      %146 = tpu.matmul %144, %145, %cst_106 {dimension_numbers = #tpu.dot_dimension_numbers<[1], [0], [0], [1], [0, 0, 1, 1], [], []>} : vector<80x32xbf16>, vector<32x32xbf16>, vector<80x32xf32> -> vector<80x32xf32>
      %147 = arith.addf %143, %146 : vector<80x32xf32>
      %c21_107 = arith.constant 21 : index
      %c0_108 = arith.constant 0 : index
      %148 = vector.load %arg7[%c21_107, %c0_108] : memref<102x32xbf16, #tpu.memory_space<vmem>>, vector<80x32xbf16>
      %149 = vector.extract_strided_slice %118 {offsets = [224, 0], sizes = [32, 32], strides = [1, 1]} : vector<288x32xbf16> to vector<32x32xbf16>
      %cst_109 = arith.constant dense<0.000000e+00> : vector<80x32xf32>
      %150 = tpu.matmul %148, %149, %cst_109 {dimension_numbers = #tpu.dot_dimension_numbers<[1], [0], [0], [1], [0, 0, 1, 1], [], []>} : vector<80x32xbf16>, vector<32x32xbf16>, vector<80x32xf32> -> vector<80x32xf32>
      %151 = arith.addf %147, %150 : vector<80x32xf32>
      %c22_110 = arith.constant 22 : index
      %c0_111 = arith.constant 0 : index
      %152 = vector.load %arg7[%c22_110, %c0_111] : memref<102x32xbf16, #tpu.memory_space<vmem>>, vector<80x32xbf16>
      %153 = vector.extract_strided_slice %118 {offsets = [256, 0], sizes = [32, 32], strides = [1, 1]} : vector<288x32xbf16> to vector<32x32xbf16>
      %cst_112 = arith.constant dense<0.000000e+00> : vector<80x32xf32>
      %154 = tpu.matmul %152, %153, %cst_112 {dimension_numbers = #tpu.dot_dimension_numbers<[1], [0], [0], [1], [0, 0, 1, 1], [], []>} : vector<80x32xbf16>, vector<32x32xbf16>, vector<80x32xf32> -> vector<80x32xf32>
      %155 = arith.addf %151, %154 : vector<80x32xf32>
      %156 = arith.index_cast %115 : i32 to index
      %c0_113 = arith.constant 0 : index
      %c0_114 = arith.constant 0 : index
      %157 = vector.load %arg3[%156, %c0_113, %c0_114] : memref<13x1x32xf32, #tpu.memory_space<vmem>>, vector<1x1x32xf32>
      %158 = vector.shape_cast %157 : vector<1x1x32xf32> to vector<1x32xf32>
      %159 = vector.broadcast %158 : vector<1x32xf32> to vector<80x32xf32>
      %160 = arith.addf %155, %159 : vector<80x32xf32>
      %161 = arith.addf %114, %160 : vector<80x32xf32>
      %c0_115 = arith.constant 0 : index
      %c0_116 = arith.constant 0 : index
      %162 = vector.load %arg8[%c0_115, %c0_116] : memref<80x32xf32, #tpu.memory_space<vmem>>, vector<80x32xf32>
      tpu.vector_store %arg8[%c0_115, %c0_116], %161 {strides = array<i32>} : memref<80x32xf32, #tpu.memory_space<vmem>>, vector<80x32xf32>,
      %163 = vector.broadcast %0 : vector<80x1xf32> to vector<80x32xf32>
      %164 = arith.mulf %161, %163 : vector<80x32xf32>
      %165 = arith.truncf %164 : vector<80x32xf32> to vector<80x32xbf16>
      %c11_117 = arith.constant 11 : index
      %c0_118 = arith.constant 0 : index
      %166 = vector.load %arg6[%c11_117, %c0_118] : memref<102x32xbf16, #tpu.memory_space<vmem>>, vector<80x32xbf16>
      tpu.vector_store %arg6[%c11_117, %c0_118], %165 {strides = array<i32>} : memref<102x32xbf16, #tpu.memory_space<vmem>>, vector<80x32xbf16>,
    }
    %c6_i32_13 = arith.constant 6 : i32
    %c12 = arith.constant 12 : index
    %c0_14 = arith.constant 0 : index
    %c0_15 = arith.constant 0 : index
    %12 = vector.load %arg2[%c12, %c0_14, %c0_15] : memref<13x288x32xbf16, #tpu.memory_space<vmem>>, vector<1x288x32xbf16>
    %13 = vector.shape_cast %12 : vector<1x288x32xbf16> to vector<288x32xbf16>
    %cst_16 = arith.constant 0.000000e+00 : f32
    %14 = vector.broadcast %cst_16 : f32 to vector<80x32xf32>
    %c0_17 = arith.constant 0 : index
    %c0_18 = arith.constant 0 : index
    %15 = vector.load %arg6[%c0_17, %c0_18] : memref<102x32xbf16, #tpu.memory_space<vmem>>, vector<80x32xbf16>
    %16 = vector.extract_strided_slice %13 {offsets = [0, 0], sizes = [32, 32], strides = [1, 1]} : vector<288x32xbf16> to vector<32x32xbf16>
    %cst_19 = arith.constant dense<0.000000e+00> : vector<80x32xf32>
    %17 = tpu.matmul %15, %16, %cst_19 {dimension_numbers = #tpu.dot_dimension_numbers<[1], [0], [0], [1], [0, 0, 1, 1], [], []>} : vector<80x32xbf16>, vector<32x32xbf16>, vector<80x32xf32> -> vector<80x32xf32>
    %18 = arith.addf %14, %17 : vector<80x32xf32>
    %c1 = arith.constant 1 : index
    %c0_20 = arith.constant 0 : index
    %19 = vector.load %arg6[%c1, %c0_20] : memref<102x32xbf16, #tpu.memory_space<vmem>>, vector<80x32xbf16>
    %20 = vector.extract_strided_slice %13 {offsets = [32, 0], sizes = [32, 32], strides = [1, 1]} : vector<288x32xbf16> to vector<32x32xbf16>
    %cst_21 = arith.constant dense<0.000000e+00> : vector<80x32xf32>
    %21 = tpu.matmul %19, %20, %cst_21 {dimension_numbers = #tpu.dot_dimension_numbers<[1], [0], [0], [1], [0, 0, 1, 1], [], []>} : vector<80x32xbf16>, vector<32x32xbf16>, vector<80x32xf32> -> vector<80x32xf32>
    %22 = arith.addf %18, %21 : vector<80x32xf32>
    %c2 = arith.constant 2 : index
    %c0_22 = arith.constant 0 : index
    %23 = vector.load %arg6[%c2, %c0_22] : memref<102x32xbf16, #tpu.memory_space<vmem>>, vector<80x32xbf16>
    %24 = vector.extract_strided_slice %13 {offsets = [64, 0], sizes = [32, 32], strides = [1, 1]} : vector<288x32xbf16> to vector<32x32xbf16>
    %cst_23 = arith.constant dense<0.000000e+00> : vector<80x32xf32>
    %25 = tpu.matmul %23, %24, %cst_23 {dimension_numbers = #tpu.dot_dimension_numbers<[1], [0], [0], [1], [0, 0, 1, 1], [], []>} : vector<80x32xbf16>, vector<32x32xbf16>, vector<80x32xf32> -> vector<80x32xf32>
    %26 = arith.addf %22, %25 : vector<80x32xf32>
    %c10 = arith.constant 10 : index
    %c0_24 = arith.constant 0 : index
    %27 = vector.load %arg6[%c10, %c0_24] : memref<102x32xbf16, #tpu.memory_space<vmem>>, vector<80x32xbf16>
    %28 = vector.extract_strided_slice %13 {offsets = [96, 0], sizes = [32, 32], strides = [1, 1]} : vector<288x32xbf16> to vector<32x32xbf16>
    %cst_25 = arith.constant dense<0.000000e+00> : vector<80x32xf32>
    %29 = tpu.matmul %27, %28, %cst_25 {dimension_numbers = #tpu.dot_dimension_numbers<[1], [0], [0], [1], [0, 0, 1, 1], [], []>} : vector<80x32xbf16>, vector<32x32xbf16>, vector<80x32xf32> -> vector<80x32xf32>
    %30 = arith.addf %26, %29 : vector<80x32xf32>
    %c11_26 = arith.constant 11 : index
    %c0_27 = arith.constant 0 : index
    %31 = vector.load %arg6[%c11_26, %c0_27] : memref<102x32xbf16, #tpu.memory_space<vmem>>, vector<80x32xbf16>
    %32 = vector.extract_strided_slice %13 {offsets = [128, 0], sizes = [32, 32], strides = [1, 1]} : vector<288x32xbf16> to vector<32x32xbf16>
    %cst_28 = arith.constant dense<0.000000e+00> : vector<80x32xf32>
    %33 = tpu.matmul %31, %32, %cst_28 {dimension_numbers = #tpu.dot_dimension_numbers<[1], [0], [0], [1], [0, 0, 1, 1], [], []>} : vector<80x32xbf16>, vector<32x32xbf16>, vector<80x32xf32> -> vector<80x32xf32>
    %34 = arith.addf %30, %33 : vector<80x32xf32>
    %c12_29 = arith.constant 12 : index
    %c0_30 = arith.constant 0 : index
    %35 = vector.load %arg6[%c12_29, %c0_30] : memref<102x32xbf16, #tpu.memory_space<vmem>>, vector<80x32xbf16>
    %36 = vector.extract_strided_slice %13 {offsets = [160, 0], sizes = [32, 32], strides = [1, 1]} : vector<288x32xbf16> to vector<32x32xbf16>
    %cst_31 = arith.constant dense<0.000000e+00> : vector<80x32xf32>
    %37 = tpu.matmul %35, %36, %cst_31 {dimension_numbers = #tpu.dot_dimension_numbers<[1], [0], [0], [1], [0, 0, 1, 1], [], []>} : vector<80x32xbf16>, vector<32x32xbf16>, vector<80x32xf32> -> vector<80x32xf32>
    %38 = arith.addf %34, %37 : vector<80x32xf32>
    %c20 = arith.constant 20 : index
    %c0_32 = arith.constant 0 : index
    %39 = vector.load %arg6[%c20, %c0_32] : memref<102x32xbf16, #tpu.memory_space<vmem>>, vector<80x32xbf16>
    %40 = vector.extract_strided_slice %13 {offsets = [192, 0], sizes = [32, 32], strides = [1, 1]} : vector<288x32xbf16> to vector<32x32xbf16>
    %cst_33 = arith.constant dense<0.000000e+00> : vector<80x32xf32>
    %41 = tpu.matmul %39, %40, %cst_33 {dimension_numbers = #tpu.dot_dimension_numbers<[1], [0], [0], [1], [0, 0, 1, 1], [], []>} : vector<80x32xbf16>, vector<32x32xbf16>, vector<80x32xf32> -> vector<80x32xf32>
    %42 = arith.addf %38, %41 : vector<80x32xf32>
    %c21 = arith.constant 21 : index
    %c0_34 = arith.constant 0 : index
    %43 = vector.load %arg6[%c21, %c0_34] : memref<102x32xbf16, #tpu.memory_space<vmem>>, vector<80x32xbf16>
    %44 = vector.extract_strided_slice %13 {offsets = [224, 0], sizes = [32, 32], strides = [1, 1]} : vector<288x32xbf16> to vector<32x32xbf16>
    %cst_35 = arith.constant dense<0.000000e+00> : vector<80x32xf32>
    %45 = tpu.matmul %43, %44, %cst_35 {dimension_numbers = #tpu.dot_dimension_numbers<[1], [0], [0], [1], [0, 0, 1, 1], [], []>} : vector<80x32xbf16>, vector<32x32xbf16>, vector<80x32xf32> -> vector<80x32xf32>
    %46 = arith.addf %42, %45 : vector<80x32xf32>
    %c22 = arith.constant 22 : index
    %c0_36 = arith.constant 0 : index
    %47 = vector.load %arg6[%c22, %c0_36] : memref<102x32xbf16, #tpu.memory_space<vmem>>, vector<80x32xbf16>
    %48 = vector.extract_strided_slice %13 {offsets = [256, 0], sizes = [32, 32], strides = [1, 1]} : vector<288x32xbf16> to vector<32x32xbf16>
    %cst_37 = arith.constant dense<0.000000e+00> : vector<80x32xf32>
    %49 = tpu.matmul %47, %48, %cst_37 {dimension_numbers = #tpu.dot_dimension_numbers<[1], [0], [0], [1], [0, 0, 1, 1], [], []>} : vector<80x32xbf16>, vector<32x32xbf16>, vector<80x32xf32> -> vector<80x32xf32>
    %50 = arith.addf %46, %49 : vector<80x32xf32>
    %c12_38 = arith.constant 12 : index
    %c0_39 = arith.constant 0 : index
    %c0_40 = arith.constant 0 : index
    %51 = vector.load %arg3[%c12_38, %c0_39, %c0_40] : memref<13x1x32xf32, #tpu.memory_space<vmem>>, vector<1x1x32xf32>
    %52 = vector.shape_cast %51 : vector<1x1x32xf32> to vector<1x32xf32>
    %53 = vector.broadcast %52 : vector<1x32xf32> to vector<80x32xf32>
    %54 = arith.addf %50, %53 : vector<80x32xf32>
    %55 = arith.truncf %54 : vector<80x32xf32> to vector<80x32xbf16>
    %c0_41 = arith.constant 0 : index
    %c0_42 = arith.constant 0 : index
    %c0_43 = arith.constant 0 : index
    %56 = vector.load %arg5[%c0_41, %c0_42, %c0_43] : memref<1x80x32xbf16, #tpu.memory_space<vmem>>, vector<1x80x32xbf16>
    %57 = vector.shape_cast %56 : vector<1x80x32xbf16> to vector<80x32xbf16>
    %58 = vector.shape_cast %55 : vector<80x32xbf16> to vector<1x80x32xbf16>
    tpu.vector_store %arg5[%c0_41, %c0_42, %c0_43], %58 {strides = array<i32>} : memref<1x80x32xbf16, #tpu.memory_space<vmem>>, vector<1x80x32xbf16>,
    return
  }
  func.func @transform_0(%arg0: i32) -> (i32, i32, i32) {
    %c0_i32 = arith.constant 0 : i32
    %c0_i32_0 = arith.constant 0 : i32
    %c0_i32_1 = arith.constant 0 : i32
    return %arg0, %c0_i32, %c0_i32_0 : i32, i32, i32
  }
  func.func @transform_1(%arg0: i32) -> (i32, i32, i32) {
    %c0_i32 = arith.constant 0 : i32
    %c0_i32_0 = arith.constant 0 : i32
    %c0_i32_1 = arith.constant 0 : i32
    %c0_i32_2 = arith.constant 0 : i32
    return %c0_i32, %c0_i32_0, %c0_i32_1 : i32, i32, i32
  }
  func.func @transform_2(%arg0: i32) -> (i32, i32, i32) {
    %c0_i32 = arith.constant 0 : i32
    %c0_i32_0 = arith.constant 0 : i32
    %c0_i32_1 = arith.constant 0 : i32
    %c0_i32_2 = arith.constant 0 : i32
    return %c0_i32, %c0_i32_0, %c0_i32_1 : i32, i32, i32
  }
  func.func @transform_3(%arg0: i32) -> (i32, i32) {
    %c0_i32 = arith.constant 0 : i32
    %c0_i32_0 = arith.constant 0 : i32
    %c0_i32_1 = arith.constant 0 : i32
    return %c0_i32, %c0_i32_0 : i32, i32
  }
  func.func @transform_4(%arg0: i32) -> (i32, i32, i32) {
    %c0_i32 = arith.constant 0 : i32
    %c0_i32_0 = arith.constant 0 : i32
    %c0_i32_1 = arith.constant 0 : i32
    return %arg0, %c0_i32, %c0_i32_0 : i32, i32, i32
  }
}

</mosaic_0001>

<bundles_post_ra>
// kernel: feature_extraction.3
= control target key start
LH: loop header
LB: loop body
LE: loop exit
PB: predicated region body
PF: predicated region fallthrough
CT: control target
= control target key end

     0   :  { %s5217_s12 = smov 0   ;;  %s6177_s0 = inlined_call_operand.vmem [shape: bf16[2,326,12], index: 0, kind: input, shape index: {}]   ;;  %s6178_s1 = inlined_call_operand.vmem [shape: bf16[9,12,32], index: 1, kind: input, shape index: {}]   ;;  %s6179_s2 = inlined_call_operand.vmem [shape: f32[1,32], index: 2, kind: input, shape index: {}]   ;;  %s6180_s3 = inlined_call_operand.vmem [shape: bf16[2,288,32], index: 3, kind: output, shape index: {}]  }
   0x1 LB: > { %s3953_s13 = sadd.s32 4294967295, %s5195_s12   ;;  %p3957_p0 = scmp.ge.s32.totalorder %s5195_s12, 1  ;;  %s5195_s12 = sphi %s5217_s12, %s13_s12  }
   0x2   : > { %p137_p1 = scmp.lt.s32.totalorder %s5195_s12, 3 }
   0x4   : > { %p138_p2 = pnand %p3957_p0, %p137_p1 }
   0x5   : > { %vm516_vm0 = vcmask (!%p138_p2), 1045504   ;;  %p161_p3 = scmp.lt.s32.totalorder (!%p138_p2), %s3953_s13, 1  ;;  %v5107_v0 = vld [vmem:[%s6178_s1 + $0x20] sm:$0x3f] (!%p138_p2)   ;;  %v5108_v1 = vld [vmem:[%s6178_s1 + $0x8] sm:$0x3f] (!%p138_p2)  }
   0x6   : > { %141 = sbr.rel (%p138_p2) target bundleno = 573 (0x23d), region = 32  ;;  %5091 = vmatprep.subr.msk.bf16.mxu0 (!%p138_p2), %vm516_vm0, %v5107_v0  ;;  %v5235_v2 = vsel (!%p138_p2), %vm516_vm0, %v5107_v0, 0  ;;  %5087 = vmatprep.subr.msk.bf16.mxu1 (!%p138_p2), %vm516_vm0, %v5108_v1  ;;  %v518_v3 = vsel (!%p138_p2), %vm516_vm0, %v5108_v1, 0  ;;  %v5113_v4 = vld [vmem:[%s6178_s1 + $0x28] sm:$0x3f] (!%p138_p2)   ;;  %vm461_vm2 = vcmask (!%p138_p2), 97280  }
   0x7   : > { %4608 = vmatpush3.bf16.msra.mxu0 (!%p138_p2), %v5235_v2  ;;  %4456 = vmatpush3.bf16.msra.mxu1 (!%p138_p2), %v518_v3  ;;  %vm307_vm1 = vsmask.f32 (!%p138_p2), 7424  ;;  %v5117_v5 = vld [vmem:[%s6178_s1] sm:$0x3f] (!%p138_p2)   ;;  %v5254_v6 = vsel (!%p138_p2), %vm516_vm0, %v5113_v4, 0  ;;  %vm925_vm4 = vcmask (!%p138_p2), 1046528  }
   0x8   : > { %5093 = vmatprep.subr.msk.bf16.mxu0 (!%p138_p2), %vm516_vm0, %v5113_v4  ;;  %5088 = vmatprep.subr.msk.bf16.mxu1 (!%p138_p2), %vm516_vm0, %v5117_v5  ;;  %vm1690_vm3 = vsmask.f32 (!%p138_p2), 6400  ;;  %v739_v12 = vsel (!%p138_p2), %vm516_vm0, %v5117_v5, 0  ;;  %vm2908_vm5 = vsmask.f32 (!%p138_p2), 5376  ;;  %vm3361_vm6 = vcmask (!%p138_p2), 1044480  }
   0x9   : > { %vm3861_vm7 = vcmask (!%p138_p2), 257024  }
   0xd   : > { %s6182_s13 = smov (!%p161_p3, %s3953_s13), 1 }
   0xe   : > { %s5097_s18 = smul.u32 164, %s6182_s13 }
   0xf   : > { %s5098_s11 = smul.u32 144, %s6182_s13 }
  0x10   : > { %s5250_s25 = scalar_lea.vmem %s6177_s0, %s5097_s18 }
  0x11   : > { %v172_v7 = vld [vmem:[%s5250_s25] sm:$0xf]  ;;  %v5258_v8 = vld [vmem:[%s5250_s25 + $0x4] sm:$0xf]  ;;  %v5265_v10 = vld [vmem:[%s5250_s25 + $0x8] sm:$0xff]   ;;  %s6057_s18 = scalar_lea.vmem %s6180_s3, %s5098_s11 }
  0x12   : > { %v5262_v9 = vcombine.low %v172_v7, %v5258_v8  ;;  %v1238_v11 = vld [vmem:[%s5250_s25 + $0x8] sm:$0xe]  ;;  %v5270_v13 = vld [vmem:[%s5250_s25 + $0xc] sm:$0xf]  ;;  %v316_v16 = vshll.u32 %v5265_v10, 16  ;;  %v320_v17 = vshrl.u32 %v5265_v10, 16 }
  0x13   : > { %v5277_v18 = vld [vmem:[%s5250_s25 + $0x10] sm:$0xff]   ;;  %v5283_v20 = vcombine.low %v1238_v11, %v5270_v13  ;;  %v5291_v28 = vld [vmem:[%s5250_s25 + $0x18] sm:$0xff]   ;;  %v5297_v34 = vld [vmem:[%s5250_s25 + $0x20] sm:$0xff]  }
  0x14   : > { %v309_v14 = vshrl.u32 %v5262_v9, 16  ;;  %v311_v15 = vshll.u32 %v5262_v9, 16  ;;  %v5280_v19 = vld [vmem:[%s5250_s25 + $0x10] sm:$0xff]   ;;  %v318_v22 = vrot.slane %v316_v16, 1  ;;  %v1700_v23 = vshrl.u32 %v5277_v18, 16  ;;  %v5294_v33 = vld [vmem:[%s5250_s25 + $0x18] sm:$0xff]  }
  0x15   : > { %v1703_v24 = vshll.u32 %v5277_v18, 16  ;;  %v1692_v25 = vshrl.u32 %v5283_v20, 16  ;;  %v1695_v26 = vshll.u32 %v5283_v20, 16  ;;  %v324_v27 = vshll.u32 %v5280_v19, 16  ;;  %v5307_v47 = vld [vmem:[%s5250_s25 + $0x20] sm:$0xff]   ;;  %v5310_v48 = vld [vmem:[%s5250_s25 + $0x28] sm:$0xff]  }
  0x16   : > { %v313_v21 = vrot.slane %v311_v15, 1  ;;  %v322_v30 = vor.u32 %v320_v17, %v318_v22  ;;  %v1702_v31 = vrot.slane %v1700_v23, 1  ;;  %v1709_v38 = vshrl.u32 %v5291_v28, 16  ;;  %v5316_v53 = vld [vmem:[%s5250_s25 + $0x28] sm:$0xff]   ;;  %v5322_v58 = vld [vmem:[%s5250_s25 + $0x30] sm:$0xff]  }
  0x17   : > { %v1705_v32 = vrot.slane %v1703_v24, 2  ;;  %v1694_v35 = vrot.slane %v1692_v25, 1  ;;  %v1697_v36 = vrot.slane %v1695_v26, 2  ;;  %v326_v37 = vrot.slane %v324_v27, 1  ;;  %v5327_v63 = vld [vmem:[%s5250_s25 + $0x30] sm:$0xff]  }
  0x18   : > { %v314_v29 = vor.u32 %v313_v21, %v309_v14  ;;  %v1712_v41 = vshll.u32 %v5291_v28, 16  ;;  %v328_v42 = vshrl.u32 %v5280_v19, 16  ;;  %v1711_v45 = vrot.slane %v1709_v38, 1  ;;  %v5339_v21 = vld [vmem:[%s5250_s25 + $0x38] sm:$0xff]  }
  0x19   : > { %v1706_v40 = vor.u32 %v1705_v32, %v1702_v31  ;;  %v1698_v43 = vor.u32 %v1697_v36, %v1694_v35  ;;  %v327_v44 = vsel %vm307_vm1, %v322_v30, %v326_v37  ;;  %v332_v46 = vshll.u32 %v5294_v33, 16  ;;  %v5348_v31 = vld [vmem:[%s5250_s25 + $0x38] sm:$0xff]  }
  0x1a   : > { %v319_v39 = vsel %vm307_vm1, %v314_v29, %v318_v22  ;;  %v1714_v49 = vrot.slane %v1712_v41, 2  ;;  %v330_v50 = vor.u32 %v328_v42, %v326_v37  ;;  %v1718_v51 = vshrl.u32 %v5297_v34, 16  ;;  %v5357_v41 = vld [vmem:[%s5250_s25 + $0x40] sm:$0xff]  }
  0x1b   : > { %4457 = vmatprep.mubr.msk.bf16.mxu1 %vm461_vm2, %v319_v39  ;;  %v1721_v52 = vshll.u32 %v5297_v34, 16  ;;  %v1707_v54 = vsel %vm1690_vm3, %v1698_v43, %v1706_v40  ;;  %v334_v55 = vrot.slane %v332_v46, 1  ;;  %v336_v56 = vshrl.u32 %v5294_v33, 16  ;;  %v5362_v46 = vld [vmem:[%s5250_s25 + $0x40] sm:$0xff]  }
  0x1c   : > { %4458 = vmatmul.mubr.msk.bf16.vlgmr.msra.gmra.mrb[0].mxu1 %vm461_vm2, %v327_v44  ;;  %v340_v57 = vshll.u32 %v5307_v47, 16  ;;  %4609 = vmatprep.mubr.msk.bf16.mxu0 %vm461_vm2, %v1707_v54  ;;  %v1715_v59 = vor.u32 %v1714_v49, %v1711_v45  ;;  %v1720_v60 = vrot.slane %v1718_v51, 1  ;;  %v1727_v62 = vshrl.u32 %v5310_v48, 16 }
  0x1d   : > { %4494 = vmatpush3.bf16.msra.mxu1 %v739_v12  ;;  %v1723_v61 = vrot.slane %v1721_v52, 2  ;;  %v335_v0 = vsel %vm307_vm1, %v330_v50, %v334_v55  ;;  %v338_v1 = vor.u32 %v336_v56, %v334_v55  ;;  %v1730_v4 = vshll.u32 %v5310_v48, 16 }
  0x1e   : > { %v342_v3 = vrot.slane %v340_v57, 1  ;;  %v1716_v5 = vsel %vm1690_vm3, %v1706_v40, %v1715_v59  ;;  %4461 = vmatprep.mubr.msk.bf16.mxu1 %vm461_vm2, %v335_v0  ;;  %v1729_v11 = vrot.slane %v1727_v62, 1  ;;  %v344_v12 = vshrl.u32 %v5307_v47, 16 }
  0x1f   : > { %v1724_v7 = vor.u32 %v1723_v61, %v1720_v60  ;;  %4610 = vmatmul.mubr.msk.bf16.vlgmr.msra.gmra.mrb[0].mxu0 %vm461_vm2, %v1716_v5  ;;  %v1732_v15 = vrot.slane %v1730_v4, 2  ;;  %v348_v16 = vshll.u32 %v5316_v53, 16  ;;  %v1736_v17 = vshrl.u32 %v5322_v58, 16  ;;  %v5373_v60 = vld [vmem:[%s5250_s25 + $0x48] sm:$0xff]   ;;  %v5382_v5 = vld [vmem:[%s5250_s25 + $0x50] sm:$0xff]  }
  0x20   : > { %v343_v14 = vsel %vm307_vm1, %v338_v1, %v342_v3  ;;  %4646 = vmatpush3.bf16.msra.mxu0 %v5254_v6  ;;  %v346_v23 = vor.u32 %v344_v12, %v342_v3  ;;  %v1739_v24 = vshll.u32 %v5322_v58, 16  ;;  %v352_v25 = vshrl.u32 %v5316_v53, 16 }
  0x21   : > { %v1725_v22 = vsel %vm1690_vm3, %v1715_v59, %v1724_v7  ;;  %v1733_v26 = vor.u32 %v1732_v15, %v1729_v11  ;;  %v350_v27 = vrot.slane %v348_v16, 1  ;;  %v1738_v29 = vrot.slane %v1736_v17, 1  ;;  %v5370_v59 = vld [vmem:[%s5250_s25 + $0x48] sm:$0xff]   ;;  %v5390_v17 = vld [vmem:[%s5250_s25 + $0x50] sm:$0xff]  }
  0x22   : > { %4613 = vmatprep.mubr.msk.bf16.mxu0 %vm461_vm2, %v1725_v22  ;;  %v356_v30 = vshll.u32 %v5327_v63, 16  ;;  %v1741_v6 = vrot.slane %v1739_v24, 2  ;;  %v1745_v32 = vshrl.u32 %v5339_v21, 16  ;;  %v1748_v35 = vshll.u32 %v5339_v21, 16  ;;  %v5395_v24 = vld [vmem:[%s5250_s25 + $0x58] sm:$0xff]  }
  0x23   : > { %v360_v36 = vshrl.u32 %v5327_v63, 16  ;;  %v1734_v37 = vsel %vm1690_vm3, %v1724_v7, %v1733_v26  ;;  %v351_v38 = vsel %vm307_vm1, %v346_v23, %v350_v27  ;;  %v354_v39 = vor.u32 %v352_v25, %v350_v27 }
  0x24   : > { %4462 = vmatmul.mubr.msk.bf16.gmra.mrb[4].mxu1 %vm461_vm2, %v343_v14  ;;  %v358_v40 = vrot.slane %v356_v30, 1  ;;  %v1742_v42 = vor.u32 %v1741_v6, %v1738_v29  ;;  %v1747_v43 = vrot.slane %v1745_v32, 1  ;;  %v1750_v44 = vrot.slane %v1748_v35, 2 }
  0x25   : > { %4465 = vmatprep.mubr.msk.bf16.mxu1 %vm461_vm2, %v351_v38  ;;  %v364_v45 = vshll.u32 %v5348_v31, 16  ;;  %v1754_v51 = vshrl.u32 %v5357_v41, 16  ;;  %v1757_v52 = vshll.u32 %v5357_v41, 16  ;;  %v368_v57 = vshrl.u32 %v5348_v31, 16 }
  0x26   : > { %v359_v49 = vsel %vm307_vm1, %v354_v39, %v358_v40  ;;  %v362_v50 = vor.u32 %v360_v36, %v358_v40  ;;  %v1743_v54 = vsel %vm1690_vm3, %v1733_v26, %v1742_v42  ;;  %v1751_v55 = vor.u32 %v1750_v44, %v1747_v43  ;;  %v5400_v36 = vld [vmem:[%s5250_s25 + $0x58] sm:$0xff]  }
  0x27   : > { %v366_v56 = vrot.slane %v364_v45, 1  ;;  %4614 = vmatmul.mubr.msk.bf16.gmra.mrb[4].mxu0 %vm461_vm2, %v1734_v37  ;;  %v1756_v61 = vrot.slane %v1754_v51, 1  ;;  %v1759_v62 = vrot.slane %v1757_v52, 2  ;;  %v372_v0 = vshll.u32 %v5362_v46, 16  ;;  %v5405_v37 = vld [vmem:[%s6178_s1 + $0x30] sm:$0x3f]  }
  0x28   : > { %v376_v1 = vshrl.u32 %v5362_v46, 16  ;;  %4617 = vmatprep.mubr.msk.bf16.mxu0 %vm461_vm2, %v1743_v54  ;;  %v1763_v4 = vshrl.u32 %v5370_v59, 16  ;;  %v1766_v11 = vshll.u32 %v5370_v59, 16  ;;  %v380_v12 = vshll.u32 %v5373_v60, 16  ;;  %5094 = vmatprep.subr.msk.bf16.mxu0 %vm516_vm0, %v5405_v37  ;;  %v2136_v52 = vld [vmem:[%s5250_s25 + $0x8] sm:$0xc] }
  0x29   : > { %v367_v3 = vsel %vm307_vm1, %v362_v50, %v366_v56  ;;  %v1760_v7 = vor.u32 %v1759_v62, %v1756_v61  ;;  %v374_v14 = vrot.slane %v372_v0, 1  ;;  %v1772_v15 = vshrl.u32 %v5382_v5, 16  ;;  %v5421_v54 = vld [vmem:[%s5250_s25 + $0x60] sm:$0xff]  }
  0x2a   : > { %v1775_v16 = vshll.u32 %v5382_v5, 16  ;;  %v1752_v22 = vsel %vm1690_vm3, %v1742_v42, %v1751_v55  ;;  %v370_v23 = vor.u32 %v368_v57, %v366_v56  ;;  %v1765_v25 = vrot.slane %v1763_v4, 1 }
  0x2b   : > { %v1768_v26 = vrot.slane %v1766_v11, 2  ;;  %v378_v27 = vor.u32 %v376_v1, %v374_v14  ;;  %v382_v29 = vrot.slane %v380_v12, 1  ;;  %v1761_v30 = vsel %vm1690_vm3, %v1751_v55, %v1760_v7  ;;  %v5426_v1 = vld [vmem:[%s5250_s25 + $0x68] sm:$0xff]  }
  0x2c   : > { %4466 = vmatmul.mubr.msk.bf16.gmra.mrb[8].mxu1 %vm461_vm2, %v359_v49  ;;  %v1774_v6 = vrot.slane %v1772_v15, 1  ;;  %v1777_v32 = vrot.slane %v1775_v16, 2  ;;  %v388_v35 = vshll.u32 %v5390_v17, 16  ;;  %v375_v38 = vsel %vm307_vm1, %v370_v23, %v374_v14 }
  0x2d   : > { %4469 = vmatprep.mubr.msk.bf16.mxu1 %vm461_vm2, %v367_v3  ;;  %v384_v39 = vshrl.u32 %v5373_v60, 16  ;;  %v1781_v40 = vshrl.u32 %v5395_v24, 16  ;;  %v1784_v42 = vshll.u32 %v5395_v24, 16  ;;  %v1769_v43 = vor.u32 %v1768_v26, %v1765_v25  ;;  %v5443_v26 = vld [vmem:[%s5250_s25 + $0x70] sm:$0xff]  }
  0x2e   : > { %v383_v44 = vsel %vm307_vm1, %v378_v27, %v382_v29  ;;  %v392_v45 = vshrl.u32 %v5390_v17, 16  ;;  %v396_v49 = vshll.u32 %v5400_v36, 16  ;;  %v1778_v50 = vor.u32 %v1777_v32, %v1774_v6  ;;  %v5448_v27 = vld [vmem:[%s6178_s1 + $0x10] sm:$0x3f]  }
  0x2f   : > { %4618 = vmatmul.mubr.msk.bf16.gmra.mrb[8].mxu0 %vm461_vm2, %v1752_v22  ;;  %v390_v51 = vrot.slane %v388_v35, 1  ;;  %v386_v55 = vor.u32 %v384_v39, %v382_v29  ;;  %v1783_v56 = vrot.slane %v1781_v40, 1  ;;  %v1786_v57 = vrot.slane %v1784_v42, 2  ;;  %5089 = vmatprep.subr.msk.bf16.mxu1 %vm516_vm0, %v5448_v27 }
  0x30   : > { %4621 = vmatprep.mubr.msk.bf16.mxu0 %vm461_vm2, %v1761_v30  ;;  %v1770_v61 = vsel %vm1690_vm3, %v1760_v7, %v1769_v43  ;;  %v398_v0 = vrot.slane %v396_v49, 1  ;;  %v1779_v3 = vsel %vm1690_vm3, %v1769_v43, %v1778_v50  ;;  %v4105_v4 = vcombine.low %v2136_v52, %v5270_v13 }
  0x31   : > { %v394_v62 = vor.u32 %v392_v45, %v390_v51  ;;  %v404_v11 = vshll.u32 %v5421_v54, 16  ;;  %v391_v12 = vsel %vm307_vm1, %v386_v55, %v390_v51  ;;  %v400_v14 = vshrl.u32 %v5400_v36, 16 }
  0x32   : > { %v5435_v7 = vor.u32 %v1786_v57, %v1783_v56  ;;  %v408_v16 = vshrl.u32 %v5421_v54, 16  ;;  %v412_v22 = vshll.u32 %v5426_v1, 16  ;;  %v2144_v13 = vrot.slane %v4105_v4, 2  ;;  %v5476_v57 = vld [vmem:[%s5250_s25 + $0x88] sm:$0xff]  }
  0x33   : > { %v399_v15 = vsel %vm307_vm1, %v394_v62, %v398_v0  ;;  %v2145_v23 = vrot.slane %v5277_v18, 2  ;;  %v406_v25 = vrot.slane %v404_v11, 1  ;;  %v402_v29 = vor.u32 %v400_v14, %v398_v0  ;;  %v5454_v18 = vld [vmem:[%s5250_s25 + $0x78] sm:$0xff]  }
  0x34   : > { %4470 = vmatmul.mubr.msk.bf16.gmra.mrb[12].mxu1 %vm461_vm2, %v375_v38  ;;  %v1788_v30 = vsel %vm1690_vm3, %v1778_v50, %v5435_v7  ;;  %v414_v32 = vrot.slane %v412_v22, 1  ;;  %v420_v38 = vshll.u32 %v5443_v26, 16  ;;  %v2147_v40 = vrot.slane %v5291_v28, 2  ;;  %v5470_v50 = vld [vmem:[%s5250_s25 + $0x80] sm:$0xff]   ;;  %v5485_v0 = vld [vmem:[%s6178_s1 + $0x38] sm:$0x3f]  }
  0x35   : > { %4473 = vmatprep.mubr.msk.bf16.mxu1 %vm461_vm2, %v383_v44  ;;  %v410_v6 = vor.u32 %v408_v16, %v406_v25  ;;  %v2146_v35 = vsel %vm516_vm0, %v2144_v13, %v2145_v23  ;;  %v407_v39 = vsel %vm307_vm1, %v402_v29, %v406_v25  ;;  %v416_v42 = vshrl.u32 %v5426_v1, 16  ;;  %v5497_v16 = vld [vmem:[%s5250_s25 + $0x90] ss:$0 sps:$4 sm:$0x11]  }
  0x36   : > { %v424_v44 = vshrl.u32 %v5443_v26, 16  ;;  %v428_v45 = vshll.u32 %v5454_v18, 16  ;;  %v2149_v49 = vrot.slane %v5297_v34, 2  ;;  %v422_v51 = vrot.slane %v420_v38, 1 }
  0x37   : > { %4622 = vmatmul.mubr.msk.bf16.gmra.mrb[12].mxu0 %vm461_vm2, %v1770_v61  ;;  %v415_v43 = vsel %vm307_vm1, %v410_v6, %v414_v32  ;;  %v418_v28 = vor.u32 %v416_v42, %v414_v32  ;;  %v2148_v52 = vsel %vm516_vm0, %v2145_v23, %v2147_v40  ;;  %v2686_v61 = vsel %vm516_vm0, %v5405_v37, 0 }
  0x38   : > { %4625 = vmatprep.mubr.msk.bf16.mxu0 %vm461_vm2, %v1779_v3  ;;  %v426_v55 = vor.u32 %v424_v44, %v422_v51  ;;  %v430_v56 = vrot.slane %v428_v45, 1  ;;  %v2150_v34 = vsel %vm516_vm0, %v2147_v40, %v2149_v49  ;;  %v436_v62 = vshll.u32 %v5470_v50, 16 }
  0x39   : > { %v423_v3 = vsel %vm307_vm1, %v418_v28, %v422_v51  ;;  %v2151_v4 = vrot.slane %v5310_v48, 2  ;;  %v432_v11 = vshrl.u32 %v5454_v18, 16  ;;  %v444_v14 = vshll.u32 %v5476_v57, 16  ;;  %v5528_v51 = vld [vmem:[%s5250_s25 + $0x60] sm:$0xff]  }
  0x3a   : > { %v431_v37 = vsel %vm307_vm1, %v426_v55, %v430_v56  ;;  %v438_v48 = vrot.slane %v436_v62, 1  ;;  %v452_v6 = vshll.u32 %v5497_v16, 16  ;;  %v2155_v32 = vrot.slane %v5339_v21, 2  ;;  %v5553_v55 = vld [vmem:[%s5250_s25 + $0x70] sm:$0xff]   ;;  %v5565_v62 = vld [vmem:[%s5250_s25 + $0x78] sm:$0xff]  }
  0x3b   : > { %v434_v22 = vor.u32 %v432_v11, %v430_v56  ;;  %v2152_v13 = vsel %vm516_vm0, %v2149_v49, %v2151_v4  ;;  %v446_v25 = vrot.slane %v444_v14, 1  ;;  %v2157_v38 = vrot.slane %v5357_v41, 2  ;;  %v5581_v14 = vld [vmem:[%s5250_s25 + $0x88] sm:$0xff]  }
  0x3c   : > { %4474 = vmatmul.mubr.msk.bf16.gmra.mrb[16].mxu1 %vm461_vm2, %v391_v12  ;;  %v440_v12 = vshrl.u32 %v5470_v50, 16  ;;  %v454_v40 = vrot.slane %v452_v6, 1  ;;  %v2159_v21 = vrot.slane %v5370_v59, 2  ;;  %v2161_v41 = vrot.slane %v5382_v5, 2 }
  0x3d   : > { %4477 = vmatprep.mubr.msk.bf16.mxu1 %vm461_vm2, %v399_v15  ;;  %v2153_v15 = vrot.slane %v5322_v58, 2  ;;  %v439_v58 = vsel %vm307_vm1, %v434_v22, %v438_v48  ;;  %v2163_v59 = vrot.slane %v5395_v24, 2  ;;  %v1023_v5 = vsel %vm516_vm0, %v5448_v27, 0 }
  0x3e   : > { %v442_v23 = vor.u32 %v440_v12, %v438_v48  ;;  %v2160_v45 = vsel %vm516_vm0, %v2157_v38, %v2159_v21  ;;  %v2162_v49 = vsel %vm516_vm0, %v2159_v21, %v2161_v41  ;;  %v2165_v28 = vrot.slane %v5528_v51, 2  ;;  %v5585_v48 = vld [vmem:[%s5250_s25 + $0x90] sm:$0xff]  }
  0x3f   : > { %4626 = vmatmul.mubr.msk.bf16.gmra.mrb[16].mxu0 %vm461_vm2, %v1788_v30  ;;  %v2154_v29 = vsel %vm516_vm0, %v2151_v4, %v2153_v15  ;;  %v448_v30 = vshrl.u32 %v5476_v57, 16  ;;  %v2156_v42 = vsel %vm516_vm0, %v2153_v15, %v2155_v32  ;;  %v2164_v24 = vsel %vm516_vm0, %v2161_v41, %v2163_v59  ;;  %v5569_v4 = vld [vmem:[%s5250_s25 + $0x80] sm:$0xff]  }
  0x40   : > { %4647 = vmatprep.mubr.msk.bf16.mxu0 %vm461_vm2, %v2146_v35  ;;  %v447_v35 = vsel %vm307_vm1, %v442_v23, %v446_v25  ;;  %v2166_v27 = vsel %vm516_vm0, %v2163_v59, %v2165_v28  ;;  %v2171_v11 = vrot.slane %v5565_v62, 2  ;;  %v2175_v22 = vrot.slane %v5581_v14, 2  ;;  %v2456_v23 = vld [vmem:[%s5250_s25 + $0x10] sm:$0xc] }
  0x41   : > { %v3139_v59 = vsel %vm516_vm0, %v5485_v0, 0 }
  0x44   : > { %4478 = vmatmul.mubr.msk.bf16.gmra.mrb[20].mxu1 %vm461_vm2, %v407_v39  ;;  %v450_v39 = vor.u32 %v448_v30, %v446_v25  ;;  %v5595_v25 = vld [vmem:[%s5250_s25 + $0x14] sm:$0xf] }
  0x45   : > { %4481 = vmatprep.mubr.msk.bf16.mxu1 %vm461_vm2, %v415_v43  ;;  %v2158_v43 = vsel %vm516_vm0, %v2155_v32, %v2157_v38  ;;  %v5605_v6 = vcombine.low %v2456_v23, %v5595_v25  ;;  %v5608_v32 = vld [vmem:[%s5250_s25 + $0x18] sm:$0xff]  }
  0x46   : > { %v455_v44 = vsel %vm307_vm1, %v450_v39, %v454_v40  ;;  %v2590_v39 = vrot.slane %v5608_v32, 2 }
  0x47   : > { %4648 = vmatmul.mubr.msk.bf16.vlgmr.msra.gmra.mrb[0].mxu0 %vm461_vm2, %v2148_v52  ;;  %v5547_v52 = vld [vmem:[%s5250_s25 + $0x68] sm:$0xff]   ;;  %v2589_v38 = vrot.slane %v5605_v6, 2 }
  0x48   : > { %4684 = vmatpush3.bf16.msra.mxu0 %v2686_v61  ;;  %4651 = vmatprep.mubr.msk.bf16.mxu0 %vm461_vm2, %v2150_v34  ;;  %v2167_v56 = vrot.slane %v5547_v52, 2  ;;  %v2169_v61 = vrot.slane %v5553_v55, 2 }
  0x49   : > { %5095 = vmatprep.subr.msk.bf16.mxu0 %vm516_vm0, %v5485_v0 }
  0x4a   : > { %v2168_v34 = vsel %vm516_vm0, %v2165_v28, %v2167_v56  ;;  %v2172_v12 = vsel %vm516_vm0, %v2169_v61, %v2171_v11  ;;  %v5643_v28 = vld [vmem:[%s5250_s25 + $0x38] sm:$0xff]  }
  0x4c   : > { %4482 = vmatmul.mubr.msk.bf16.gmra.mrb[24].mxu1 %vm461_vm2, %v423_v3  ;;  %v2170_v3 = vsel %vm516_vm0, %v2167_v56, %v2169_v61  ;;  %v2598_v56 = vrot.slane %v5643_v28, 2  ;;  %v5662_v61 = vld [vmem:[%s5250_s25 + $0x40] sm:$0xff]  }
  0x4d   : > { %4485 = vmatprep.mubr.msk.bf16.mxu1 %vm461_vm2, %v431_v37  ;;  %v2173_v37 = vrot.slane %v5569_v4, 2 }
  0x4f   : > { %4652 = vmatmul.mubr.msk.bf16.gmra.mrb[4].mxu0 %vm461_vm2, %v2152_v13  ;;  %v2174_v15 = vsel %vm516_vm0, %v2171_v11, %v2173_v37  ;;  %v2177_v13 = vrot.slane %v5585_v48, 2  ;;  %v918_v11 = vld [vmem:[%s5250_s25] sm:$0xe] }
  0x50   : > { %4655 = vmatprep.mubr.msk.bf16.mxu0 %vm461_vm2, %v2154_v29  ;;  %v2176_v29 = vsel %vm516_vm0, %v2173_v37, %v2175_v22  ;;  %v2600_v37 = vrot.slane %v5662_v61, 2 }
  0x51   : > { %v2178_v30 = vsel %vm516_vm0, %v2175_v22, %v2177_v13 }
  0x52   : > { %v2601_v22 = vsel %vm516_vm0, %v2598_v56, %v2600_v37 }
  0x54   : > { %4486 = vmatmul.mubr.msk.bf16.gmra.mrb[28].mxu1 %vm461_vm2, %v439_v58  ;;  %v5601_v58 = vld [vmem:[%s5250_s25 + $0x98] ss:$0 sps:$4 sm:$0x33]  }
  0x55   : > { %4489 = vmatprep.mubr.msk.bf16.mxu1 %vm461_vm2, %v447_v35  ;;  %v2179_v35 = vrot.slane %v5601_v58, 2 }
  0x57   : > { %4656 = vmatmul.mubr.msk.bf16.gmra.mrb[8].mxu0 %vm461_vm2, %v2156_v42  ;;  %v2180_v40 = vsel %vm516_vm0, %v2177_v13, %v2179_v35  ;;  %v5621_v42 = vld [vmem:[%s5250_s25 + $0x20] sm:$0xff]   ;;  %v5680_v13 = vld [vmem:[%s5250_s25 + $0x50] sm:$0xff]  }
  0x58   : > { %4659 = vmatprep.mubr.msk.bf16.mxu0 %vm461_vm2, %v2158_v43  ;;  %v2591_v43 = vsel %vm516_vm0, %v2589_v38, %v2590_v39  ;;  %v2592_v21 = vrot.slane %v5621_v42, 2  ;;  %v2604_v35 = vrot.slane %v5680_v13, 2 }
  0x5c   : > { %4490 = vmatmul.mubr.msk.bf16.gmra.mrb[32].mxu1 %vm461_vm2, %v455_v44  ;;  %v5625_v44 = vld [vmem:[%s5250_s25 + $0x28] sm:$0xff]  }
  0x5d   : > { %4495 = vmatprep.mubr.msk.bf16.mxu1 %vm461_vm2, %v5262_v9  ;;  %v5538_v9 = vld [vmem:[%s6178_s1 + $0x18] sm:$0x3f]   ;;  %v2594_v41 = vrot.slane %v5625_v44, 2 }
  0x5f   : > { %4660 = vmatmul.mubr.msk.bf16.gmra.mrb[12].mxu0 %vm461_vm2, %v2160_v45  ;;  %v2593_v45 = vsel %vm516_vm0, %v2590_v39, %v2592_v21 }
  0x60   : > { %4663 = vmatprep.mubr.msk.bf16.mxu0 %vm461_vm2, %v2162_v49  ;;  %v5637_v49 = vld [vmem:[%s5250_s25 + $0x30] sm:$0xff]  }
  0x64   : > { %4496 = vmatmul.mubr.msk.bf16.vlgmr.msra.gmra.mrb[0].mxu1 %vm461_vm2, %v5265_v10 }
  0x65   : > { %4499 = vmatprep.mubr.msk.bf16.mxu1 %vm461_vm2, %v5280_v19  ;;  %4532 = vmatpush3.bf16.msra.mxu1 %v1023_v5  ;;  %v2595_v5 = vsel %vm516_vm0, %v2592_v21, %v2594_v41  ;;  %v931_v21 = vrot.slane %v5294_v33, 1 }
  0x66   : > { %5090 = vmatprep.subr.msk.bf16.mxu1 %vm516_vm0, %v5538_v9 }
  0x67   : > { %4664 = vmatmul.mubr.msk.bf16.gmra.mrb[16].mxu0 %vm461_vm2, %v2164_v24  ;;  %v5648_v24 = vld [vmem:[%s6178_s1 + $0x40] sm:$0x3f]  }
  0x68   : > { %4667 = vmatprep.mubr.msk.bf16.mxu0 %vm461_vm2, %v2166_v27  ;;  %v2596_v27 = vrot.slane %v5637_v49, 2 }
  0x6a   : > { %v2597_v0 = vsel %vm516_vm0, %v2594_v41, %v2596_v27 }
  0x6c   : > { %4500 = vmatmul.mubr.msk.bf16.gmra.mrb[4].mxu1 %vm461_vm2, %v5294_v33 }
  0x6d   : > { %4503 = vmatprep.mubr.msk.bf16.mxu1 %vm461_vm2, %v5307_v47 }
  0x6f   : > { %4668 = vmatmul.mubr.msk.bf16.gmra.mrb[20].mxu0 %vm461_vm2, %v2168_v34  ;;  %v2599_v34 = vsel %vm516_vm0, %v2596_v27, %v2598_v56  ;;  %v1468_v27 = vsel %vm516_vm0, %v5538_v9, 0  ;;  %v933_v56 = vrot.slane %v5307_v47, 1  ;;  %v5178_v9 = vld [vmem:[%s6178_s1 + $0x20] sm:$0x3f]  }
  0x70   : > { %4671 = vmatprep.mubr.msk.bf16.mxu0 %vm461_vm2, %v2170_v3  ;;  %v5666_v3 = vld [vmem:[%s5250_s25 + $0x48] sm:$0xff]  }
  0x71   : > { %v934_v47 = vsel %vm925_vm4, %v931_v21, %v933_v56 }
  0x74   : > { %4504 = vmatmul.mubr.msk.bf16.gmra.mrb[8].mxu1 %vm461_vm2, %v5316_v53 }
  0x75   : > { %4507 = vmatprep.mubr.msk.bf16.mxu1 %vm461_vm2, %v5327_v63 }
  0x77   : > { %4672 = vmatmul.mubr.msk.bf16.gmra.mrb[24].mxu0 %vm461_vm2, %v2172_v12  ;;  %v4021_v12 = vcombine.low %v918_v11, %v5258_v8  ;;  %v5685_v8 = vld [vmem:[%s5250_s25 + $0x58] sm:$0xff]   ;;  %v935_v11 = vrot.slane %v5316_v53, 1 }
  0x78   : > { %4675 = vmatprep.mubr.msk.bf16.mxu0 %vm461_vm2, %v2174_v15  ;;  %v2602_v15 = vrot.slane %v5666_v3, 2  ;;  %v2606_v39 = vrot.slane %v5685_v8, 2 }
  0x79   : > { %v926_v23 = vrot.slane %v4021_v12, 1  ;;  %v5727_v12 = vld [vmem:[%s5250_s25 + $0x78] sm:$0xff]   ;;  %v936_v53 = vsel %vm925_vm4, %v933_v56, %v935_v11 }
  0x7a   : > { %v2607_v41 = vsel %vm516_vm0, %v2604_v35, %v2606_v39 }
  0x7c   : > { %4508 = vmatmul.mubr.msk.bf16.gmra.mrb[12].mxu1 %vm461_vm2, %v5348_v31 }
  0x7d   : > { %4511 = vmatprep.mubr.msk.bf16.mxu1 %vm461_vm2, %v5362_v46 }
  0x7f   : > { %4676 = vmatmul.mubr.msk.bf16.gmra.mrb[28].mxu0 %vm461_vm2, %v2176_v29  ;;  %v927_v29 = vrot.slane %v5265_v10, 1  ;;  %v929_v10 = vrot.slane %v5280_v19, 1 }
  0x80   : > { %4679 = vmatprep.mubr.msk.bf16.mxu0 %vm461_vm2, %v2178_v30  ;;  %v2603_v30 = vsel %vm516_vm0, %v2600_v37, %v2602_v15 }
  0x81   : > { %v928_v38 = vsel %vm925_vm4, %v926_v23, %v927_v29  ;;  %v937_v23 = vrot.slane %v5327_v63, 1 }
  0x84   : > { %4512 = vmatmul.mubr.msk.bf16.gmra.mrb[16].mxu1 %vm461_vm2, %v5373_v60 }
  0x85   : > { %4515 = vmatprep.mubr.msk.bf16.mxu1 %vm461_vm2, %v5390_v17 }
  0x87   : > { %4680 = vmatmul.mubr.msk.bf16.gmra.mrb[32].mxu0 %vm461_vm2, %v2180_v40  ;;  %v2605_v40 = vsel %vm516_vm0, %v2602_v15, %v2604_v35  ;;  %v939_v35 = vrot.slane %v5348_v31, 1  ;;  %v941_v31 = vrot.slane %v5362_v46, 1 }
  0x88   : > { %4685 = vmatprep.mubr.msk.bf16.mxu0 %vm461_vm2, %v2591_v43  ;;  %v5698_v43 = vld [vmem:[%s5250_s25 + $0x60] sm:$0xff]  }
  0x89   : > { %v2608_v19 = vrot.slane %v5698_v43, 2 }
  0x8c   : > { %4516 = vmatmul.mubr.msk.bf16.gmra.mrb[20].mxu1 %vm461_vm2, %v5400_v36 }
  0x8d   : > { %4519 = vmatprep.mubr.msk.bf16.mxu1 %vm461_vm2, %v5421_v54 }
  0x8f   : > { %4686 = vmatmul.mubr.msk.bf16.vlgmr.msra.gmra.mrb[0].mxu0 %vm461_vm2, %v2593_v45  ;;  %v5703_v45 = vld [vmem:[%s5250_s25 + $0x68] sm:$0xff]  }
  0x90   : > { %4722 = vmatpush3.bf16.msra.mxu0 %v3139_v59  ;;  %4689 = vmatprep.mubr.msk.bf16.mxu0 %vm461_vm2, %v2595_v5  ;;  %v930_v59 = vsel %vm925_vm4, %v927_v29, %v929_v10  ;;  %v932_v5 = vsel %vm925_vm4, %v929_v10, %v931_v21  ;;  %v2610_v33 = vrot.slane %v5703_v45, 2  ;;  %v938_v10 = vsel %vm925_vm4, %v935_v11, %v937_v23 }
  0x91   : > { %5096 = vmatprep.subr.msk.bf16.mxu0 %vm516_vm0, %v5648_v24  ;;  %v2910_v11 = vshrl.u32 %v5605_v6, 16 }
  0x92   : > { %v2611_v37 = vsel %vm516_vm0, %v2608_v19, %v2610_v33 }
  0x94   : > { %4520 = vmatmul.mubr.msk.bf16.gmra.mrb[24].mxu1 %vm461_vm2, %v5426_v1 }
  0x95   : > { %4523 = vmatprep.mubr.msk.bf16.mxu1 %vm461_vm2, %v5443_v26 }
  0x97   : > { %4690 = vmatmul.mubr.msk.bf16.gmra.mrb[4].mxu0 %vm461_vm2, %v2597_v0  ;;  %v2609_v0 = vsel %vm516_vm0, %v2606_v39, %v2608_v19  ;;  %v5745_v39 = vld [vmem:[%s5250_s25 + $0x88] sm:$0xff]   ;;  %v943_v19 = vrot.slane %v5373_v60, 1  ;;  %v2913_v60 = vshll.u32 %v5605_v6, 16 }
  0x98   : > { %4693 = vmatprep.mubr.msk.bf16.mxu0 %vm461_vm2, %v2599_v34  ;;  %v5718_v34 = vld [vmem:[%s5250_s25 + $0x70] sm:$0xff]   ;;  %v2618_v21 = vrot.slane %v5745_v39, 2 }
  0x99   : > { %v2612_v15 = vrot.slane %v5718_v34, 2  ;;  %v944_v46 = vsel %vm925_vm4, %v941_v31, %v943_v19 }
  0x9b   : > { %v2613_v29 = vsel %vm516_vm0, %v2610_v33, %v2612_v15  ;;  %v942_v33 = vsel %vm925_vm4, %v939_v35, %v941_v31 }
  0x9c   : > { %4524 = vmatmul.mubr.msk.bf16.gmra.mrb[28].mxu1 %vm461_vm2, %v5454_v18 }
  0x9d   : > { %4527 = vmatprep.mubr.msk.bf16.mxu1 %vm461_vm2, %v5470_v50 }
  0x9f   : > { %4694 = vmatmul.mubr.msk.bf16.gmra.mrb[8].mxu0 %vm461_vm2, %v2601_v22  ;;  %v2614_v22 = vrot.slane %v5727_v12, 2 }
  0xa0   : > { %4697 = vmatprep.mubr.msk.bf16.mxu0 %vm461_vm2, %v2603_v30  ;;  %v5740_v30 = vld [vmem:[%s5250_s25 + $0x80] sm:$0xff]  }
  0xa1   : > { %v2616_v63 = vrot.slane %v5740_v30, 2 }
  0xa4   : > { %4528 = vmatmul.mubr.msk.bf16.gmra.mrb[32].mxu1 %vm461_vm2, %v5476_v57 }
  0xa5   : > { %4533 = vmatprep.mubr.msk.bf16.mxu1 %vm461_vm2, %v928_v38  ;;  %v2615_v38 = vsel %vm516_vm0, %v2612_v15, %v2614_v22 }
  0xa7   : > { %4698 = vmatmul.mubr.msk.bf16.gmra.mrb[12].mxu0 %vm461_vm2, %v2605_v40  ;;  %v940_v40 = vsel %vm925_vm4, %v937_v23, %v939_v35  ;;  %v947_v23 = vrot.slane %v5400_v36, 1  ;;  %v2915_v35 = vrot.slane %v2913_v60, 3  ;;  %v2936_v36 = vshrl.u32 %v5625_v44, 16 }
  0xa8   : > { %4701 = vmatprep.mubr.msk.bf16.mxu0 %vm461_vm2, %v2607_v41  ;;  %v2617_v41 = vsel %vm516_vm0, %v2614_v22, %v2616_v63  ;;  %v5173_v22 = vld [vmem:[%s5250_s25 + $0xa0] ss:$0 sps:$4 sm:$0x33]  }
  0xac   : > { %4534 = vmatmul.mubr.msk.bf16.vlgmr.msra.gmra.mrb[0].mxu1 %vm461_vm2, %v930_v59  ;;  %v5758_v59 = vld [vmem:[%s5250_s25 + $0x90] sm:$0xff]  }
  0xad   : > { %4537 = vmatprep.mubr.msk.bf16.mxu1 %vm461_vm2, %v932_v5  ;;  %4570 = vmatpush3.bf16.msra.mxu1 %v1468_v27  ;;  %v5762_v5 = vld [vmem:[%s5250_s25 + $0x98] sm:$0xff]   ;;  %v2619_v27 = vsel %vm516_vm0, %v2616_v63, %v2618_v21  ;;  %v2620_v56 = vrot.slane %v5758_v59, 2  ;;  %v2624_v63 = vrot.slane %v5173_v22, 2 }
  0xae   : > { %5092 = vmatprep.subr.msk.bf16.mxu1 %vm516_vm0, %v5178_v9  ;;  %v2918_v9 = vshrl.u32 %v5608_v32, 16 }
  0xaf   : > { %4702 = vmatmul.mubr.msk.bf16.gmra.mrb[16].mxu0 %vm461_vm2, %v2609_v0  ;;  %v2622_v0 = vrot.slane %v5762_v5, 2  ;;  %v2621_v15 = vsel %vm516_vm0, %v2618_v21, %v2620_v56  ;;  %v2930_v21 = vshll.u32 %v5621_v42, 16 }
  0xb0   : > { %4705 = vmatprep.mubr.msk.bf16.mxu0 %vm461_vm2, %v2611_v37  ;;  %v2921_v37 = vshll.u32 %v5608_v32, 16  ;;  %v2920_v6 = vrot.slane %v2918_v9, 2  ;;  %v2938_v9 = vrot.slane %v2936_v36, 2  ;;  %v2963_v36 = vshrl.u32 %v5662_v61, 16 }
  0xb4   : > { %4538 = vmatmul.mubr.msk.bf16.gmra.mrb[4].mxu1 %vm461_vm2, %v934_v47  ;;  %v945_v47 = vrot.slane %v5390_v17, 1 }
  0xb5   : > { %4541 = vmatprep.mubr.msk.bf16.mxu1 %vm461_vm2, %v936_v53  ;;  %v2623_v53 = vsel %vm516_vm0, %v2620_v56, %v2622_v0 }
  0xb6   : > { %v948_v17 = vsel %vm925_vm4, %v945_v47, %v947_v23 }
  0xb7   : > { %4706 = vmatmul.mubr.msk.bf16.gmra.mrb[20].mxu0 %vm461_vm2, %v2613_v29  ;;  %v2912_v29 = vrot.slane %v2910_v11, 2  ;;  %v951_v11 = vrot.slane %v5426_v1, 1  ;;  %v2954_v1 = vshrl.u32 %v5643_v28, 16 }
  0xb8   : > { %4709 = vmatprep.mubr.msk.bf16.mxu0 %vm461_vm2, %v2615_v38  ;;  %v2923_v38 = vrot.slane %v2921_v37, 3 }
  0xb9   : > { %v2916_v31 = vor.u32 %v2915_v35, %v2912_v29  ;;  %v2957_v29 = vshll.u32 %v5643_v28, 16 }
  0xbc   : > { %4542 = vmatmul.mubr.msk.bf16.gmra.mrb[8].mxu1 %vm461_vm2, %v938_v10  ;;  %v946_v10 = vsel %vm925_vm4, %v943_v19, %v945_v47  ;;  %v949_v19 = vrot.slane %v5421_v54, 1  ;;  %v2945_v54 = vshrl.u32 %v5637_v49, 16 }
  0xbd   : > { %4545 = vmatprep.mubr.msk.bf16.mxu1 %vm461_vm2, %v940_v40  ;;  %v2927_v40 = vshrl.u32 %v5621_v42, 16 }
  0xbe   : > { %v950_v47 = vsel %vm925_vm4, %v947_v23, %v949_v19  ;;  %v953_v23 = vrot.slane %v5443_v26, 1  ;;  %v2966_v26 = vshll.u32 %v5662_v61, 16 }
  0xbf   : > { %4710 = vmatmul.mubr.msk.bf16.gmra.mrb[24].mxu0 %vm461_vm2, %v2617_v41  ;;  %v2924_v41 = vor.u32 %v2923_v38, %v2920_v6  ;;  %v2929_v56 = vrot.slane %v2927_v40, 2  ;;  %v2947_v6 = vrot.slane %v2945_v54, 2  ;;  %v2956_v40 = vrot.slane %v2954_v1, 2 }
  0xc0   : > { %4713 = vmatprep.mubr.msk.bf16.mxu0 %vm461_vm2, %v2619_v27  ;;  %v2939_v27 = vshll.u32 %v5625_v44, 16  ;;  %v2981_v54 = vshrl.u32 %v5680_v13, 16  ;;  %v2993_v1 = vshll.u32 %v5685_v8, 16 }
  0xc1   : > { %v2925_v60 = vsel %vm2908_vm5, %v2916_v31, %v2924_v41  ;;  %v954_v31 = vsel %vm925_vm4, %v951_v11, %v953_v23 }
  0xc2   : > { %v2941_v37 = vrot.slane %v2939_v27, 3 }
  0xc4   : > { %4546 = vmatmul.mubr.msk.bf16.gmra.mrb[12].mxu1 %vm461_vm2, %v942_v33  ;;  %v2625_v33 = vsel %vm516_vm0, %v2622_v0, %v2624_v63  ;;  %v2948_v0 = vshll.u32 %v5637_v49, 16  ;;  %v2942_v22 = vor.u32 %v2941_v37, %v2938_v9  ;;  %v3459_v63 = vsel %vm516_vm0, %v5648_v24, 0 }
  0xc5   : > { %4549 = vmatprep.mubr.msk.bf16.mxu1 %vm461_vm2, %v944_v46  ;;  %v2932_v46 = vrot.slane %v2930_v21, 3  ;;  %v2959_v21 = vrot.slane %v2957_v29, 3  ;;  %v2972_v24 = vshrl.u32 %v5666_v3, 16 }
  0xc6   : > { %v2950_v38 = vrot.slane %v2948_v0, 3  ;;  %v2984_v0 = vshll.u32 %v5680_v13, 16 }
  0xc7   : > { %4714 = vmatmul.mubr.msk.bf16.gmra.mrb[28].mxu0 %vm461_vm2, %v2621_v15  ;;  %v2933_v15 = vor.u32 %v2932_v46, %v2929_v56  ;;  %v2960_v27 = vor.u32 %v2959_v21, %v2956_v40  ;;  %v2965_v56 = vrot.slane %v2963_v36, 2  ;;  %v2968_v46 = vrot.slane %v2966_v26, 3 }
  0xc8   : > { %4717 = vmatprep.mubr.msk.bf16.mxu0 %vm461_vm2, %v2623_v53  ;;  %v952_v53 = vsel %vm925_vm4, %v949_v19, %v951_v11  ;;  %v2975_v19 = vshll.u32 %v5666_v3, 16  ;;  %v2974_v37 = vrot.slane %v2972_v24, 2  ;;  %v2995_v21 = vrot.slane %v2993_v1, 3  ;;  %v5180_v24 = vld [vmem:[%s5250_s25 + $0x18] sm:$0xff]  }
  0xc9   : > { %v2934_v35 = vsel %vm2908_vm5, %v2924_v41, %v2933_v15  ;;  %v2951_v41 = vor.u32 %v2950_v38, %v2947_v6  ;;  %v2986_v6 = vrot.slane %v2984_v0, 3  ;;  %v1371_v38 = vrot.slane %v5283_v20, 1 }
  0xca   : > { %v2999_v26 = vshrl.u32 %v5698_v43, 16  ;;  %v3002_v20 = vshll.u32 %v5698_v43, 16  ;;  %v3020_v0 = vshll.u32 %v5718_v34, 16  ;;  %v3029_v1 = vshll.u32 %v5727_v12, 16 }
  0xcb   : > { %v2952_v11 = vsel %vm2908_vm5, %v2942_v22, %v2951_v41  ;;  %v2961_v9 = vsel %vm2908_vm5, %v2951_v41, %v2960_v27 }
  0xcc   : > { %4550 = vmatmul.mubr.msk.bf16.gmra.mrb[16].mxu1 %vm461_vm2, %v946_v10  ;;  %v955_v10 = vrot.slane %v5454_v18, 1 }
  0xcd   : > { %4553 = vmatprep.mubr.msk.bf16.mxu1 %vm461_vm2, %v948_v17  ;;  %v2943_v17 = vsel %vm2908_vm5, %v2933_v15, %v2942_v22 }
  0xce   : > { %v956_v18 = vsel %vm925_vm4, %v953_v23, %v955_v10  ;;  %v961_v23 = vrot.slane %v5497_v16, 1 }
  0xcf   : > { %4718 = vmatmul.mubr.msk.bf16.gmra.mrb[32].mxu0 %vm461_vm2, %v2625_v33  ;;  %v957_v33 = vrot.slane %v5470_v50, 1 }
  0xd0   : > { %4723 = vmatprep.mubr.msk.bf16.mxu0 %vm461_vm2, %v2925_v60  ;;  %v959_v60 = vrot.slane %v5476_v57, 1  ;;  %v2990_v57 = vshrl.u32 %v5685_v8, 16 }
  0xd1   : > { %v958_v15 = vsel %vm925_vm4, %v955_v10, %v957_v33  ;;  %v5179_v10 = vld [vmem:[%s5250_s25 + $0x10] sm:$0xff]  }
  0xd2   : > { %v960_v50 = vsel %vm925_vm4, %v957_v33, %v959_v60  ;;  %v2992_v40 = vrot.slane %v2990_v57, 2  ;;  %v3026_v57 = vshrl.u32 %v5727_v12, 16 }
  0xd4   : > { %4554 = vmatmul.mubr.msk.bf16.gmra.mrb[20].mxu1 %vm461_vm2, %v950_v47  ;;  %v2977_v47 = vrot.slane %v2975_v19, 3  ;;  %v2996_v41 = vor.u32 %v2995_v21, %v2992_v40  ;;  %v1374_v19 = vrot.slane %v5180_v24, 1  ;;  %v3028_v40 = vrot.slane %v3026_v57, 2 }
  0xd5   : > { %4557 = vmatprep.mubr.msk.bf16.mxu1 %vm461_vm2, %v952_v53  ;;  %v2969_v53 = vor.u32 %v2968_v46, %v2965_v56  ;;  %v3001_v56 = vrot.slane %v2999_v26, 2  ;;  %v3004_v46 = vrot.slane %v3002_v20, 3  ;;  %v3031_v21 = vrot.slane %v3029_v1, 3  ;;  %v5186_v1 = vld [vmem:[%s5250_s25 + $0x48] sm:$0xff]  }
  0xd6   : > { %v2978_v22 = vor.u32 %v2977_v47, %v2974_v37  ;;  %v3038_v26 = vshll.u32 %v5740_v30, 16  ;;  %v3065_v57 = vshll.u32 %v5762_v5, 16 }
  0xd7   : > { %4724 = vmatmul.mubr.msk.bf16.vlgmr.msra.gmra.mrb[0].mxu0 %vm461_vm2, %v2934_v35  ;;  %v2970_v29 = vsel %vm2908_vm5, %v2960_v27, %v2969_v53  ;;  %v2983_v35 = vrot.slane %v2981_v54, 2  ;;  %v3011_v27 = vshll.u32 %v5703_v45, 16  ;;  %v3017_v54 = vshrl.u32 %v5718_v34, 16 }
  0xd8   : > { %4760 = vmatpush3.bf16.msra.mxu0 %v3459_v63  ;;  %4727 = vmatprep.mubr.msk.bf16.mxu0 %vm461_vm2, %v2943_v17  ;;  %v1372_v63 = vrot.slane %v5179_v10, 1  ;;  %v2979_v17 = vsel %vm2908_vm5, %v2969_v53, %v2978_v22  ;;  %v3005_v53 = vor.u32 %v3004_v46, %v3001_v56  ;;  %v5183_v10 = vld [vmem:[%s5250_s25 + $0x30] sm:$0xff]   ;;  %v3032_v20 = vor.u32 %v3031_v21, %v3028_v40  ;;  %v5185_v46 = vld [vmem:[%s5250_s25 + $0x40] sm:$0xff]  }
  0xd9   : > { %v2987_v36 = vor.u32 %v2986_v6, %v2983_v35  ;;  %v3013_v47 = vrot.slane %v3011_v27, 3  ;;  %v3019_v6 = vrot.slane %v3017_v54, 2  ;;  %v5184_v27 = vld [vmem:[%s5250_s25 + $0x38] sm:$0xff]   ;;  %v3040_v56 = vrot.slane %v3038_v26, 3 }
  0xda   : > { %v1373_v16 = vsel %vm925_vm4, %v1371_v38, %v1372_v63  ;;  %v3006_v35 = vsel %vm2908_vm5, %v2996_v41, %v3005_v53  ;;  %v3022_v38 = vrot.slane %v3020_v0, 3  ;;  %v1382_v24 = vrot.slane %v5184_v27, 1 }
  0xdb   : > { %v2988_v33 = vsel %vm2908_vm5, %v2978_v22, %v2987_v36  ;;  %v3056_v54 = vshll.u32 %v5758_v59, 16  ;;  %v3067_v21 = vrot.slane %v3065_v57, 3  ;;  %v3367_v57 = vrot.slane %v5625_v44, 3 }
  0xdc   : > { %4558 = vmatmul.mubr.msk.bf16.gmra.mrb[24].mxu1 %vm461_vm2, %v954_v31  ;;  %v962_v31 = vsel %vm925_vm4, %v959_v60, %v961_v23  ;;  %v3369_v44 = vrot.slane %v5637_v49, 3 }
  0xdd   : > { %4561 = vmatprep.mubr.msk.bf16.mxu1 %vm461_vm2, %v956_v18  ;;  %v3008_v18 = vshrl.u32 %v5703_v45, 16 }
  0xdf   : > { %4728 = vmatmul.mubr.msk.bf16.gmra.mrb[4].mxu0 %vm461_vm2, %v2952_v11  ;;  %v5181_v11 = vld [vmem:[%s5250_s25 + $0x20] sm:$0xff]   ;;  %v3010_v37 = vrot.slane %v3008_v18, 2  ;;  %v3047_v18 = vshll.u32 %v5745_v39, 16 }
  0xe0   : > { %4731 = vmatprep.mubr.msk.bf16.mxu0 %vm461_vm2, %v2961_v9  ;;  %v1376_v60 = vrot.slane %v5181_v11, 1  ;;  %v2997_v9 = vsel %vm2908_vm5, %v2987_v36, %v2996_v41  ;;  %v3023_v36 = vor.u32 %v3022_v38, %v3019_v6  ;;  %v3044_v41 = vshrl.u32 %v5745_v39, 16  ;;  %v5187_v38 = vld [vmem:[%s5250_s25 + $0x50] sm:$0xff]  }
  0xe1   : > { %v3014_v22 = vor.u32 %v3013_v47, %v3010_v37  ;;  %v1384_v11 = vrot.slane %v5185_v46, 1  ;;  %v3049_v37 = vrot.slane %v3047_v18, 3  ;;  %v3058_v6 = vrot.slane %v3056_v54, 3  ;;  %v5188_v18 = vld [vmem:[%s5250_s25 + $0x58] sm:$0xff]  }
  0xe2   : > { %v1390_v27 = vrot.slane %v5188_v18, 1  ;;  %v1799_v18 = vshrl.u32 %v5547_v52, 16 }
  0xe4   : > { %4562 = vmatmul.mubr.msk.bf16.gmra.mrb[28].mxu1 %vm461_vm2, %v958_v15  ;;  %v1375_v15 = vsel %vm925_vm4, %v1372_v63, %v1374_v19  ;;  %v1380_v63 = vrot.slane %v5183_v10, 1  ;;  %v1388_v10 = vrot.slane %v5187_v38, 1  ;;  %v3371_v38 = vrot.slane %v5643_v28, 3 }
  0xe5   : > { %4565 = vmatprep.mubr.msk.bf16.mxu1 %vm461_vm2, %v960_v50  ;;  %v1377_v50 = vsel %vm925_vm4, %v1374_v19, %v1376_v60  ;;  %v3024_v19 = vsel %vm2908_vm5, %v3014_v22, %v3023_v36 }
  0xe6   : > { %v1383_v47 = vsel %vm925_vm4, %v1380_v63, %v1382_v24  ;;  %v3372_v49 = vsel %vm3361_vm6, %v3369_v44, %v3371_v38 }
  0xe7   : > { %4732 = vmatmul.mubr.msk.bf16.gmra.mrb[8].mxu0 %vm461_vm2, %v2970_v29  ;;  %v5182_v29 = vld [vmem:[%s5250_s25 + $0x28] sm:$0xff]  }
  0xe8   : > { %4735 = vmatprep.mubr.msk.bf16.mxu0 %vm461_vm2, %v2979_v17  ;;  %v1378_v23 = vrot.slane %v5182_v29, 1  ;;  %v3015_v17 = vsel %vm2908_vm5, %v3005_v53, %v3014_v22  ;;  %v1385_v53 = vsel %vm925_vm4, %v1382_v24, %v1384_v11  ;;  %v3062_v22 = vshrl.u32 %v5762_v5, 16 }
  0xe9   : > { %v1386_v29 = vrot.slane %v5186_v1, 1  ;;  %v1398_v1 = vrot.slane %v5565_v62, 1 }
  0xea   : > { %v3064_v40 = vrot.slane %v3062_v22, 2 }
  0xec   : > { %4566 = vmatmul.mubr.msk.bf16.gmra.mrb[32].mxu1 %vm461_vm2, %v962_v31  ;;  %v1379_v31 = vsel %vm925_vm4, %v1376_v60, %v1378_v23  ;;  %v3033_v60 = vsel %vm2908_vm5, %v3023_v36, %v3032_v20 }
  0xed   : > { %4571 = vmatprep.mubr.msk.bf16.mxu1 %vm461_vm2, %v1373_v16  ;;  %v3035_v16 = vshrl.u32 %v5740_v30, 16 }
  0xef   : > { %4736 = vmatmul.mubr.msk.bf16.gmra.mrb[12].mxu0 %vm461_vm2, %v2988_v33  ;;  %v3037_v33 = vrot.slane %v3035_v16, 2 }
  0xf0   : > { %4739 = vmatprep.mubr.msk.bf16.mxu0 %vm461_vm2, %v2997_v9  ;;  %v3046_v9 = vrot.slane %v3044_v41, 2  ;;  %v3354_v41 = vld [vmem:[%s5250_s25 + $0x10] sm:$0x8] }
  0xf2   : > { %v3050_v0 = vor.u32 %v3049_v37, %v3046_v9 }
  0xf4   : > { %4572 = vmatmul.mubr.msk.bf16.vlgmr.msra.gmra.mrb[0].mxu1 %vm461_vm2, %v1375_v15  ;;  %v3041_v15 = vor.u32 %v3040_v56, %v3037_v33  ;;  %v1392_v56 = vrot.slane %v5528_v51, 1 }
  0xf5   : > { %4575 = vmatprep.mubr.msk.bf16.mxu1 %vm461_vm2, %v1377_v50  ;;  %4798 = vmatpush3.bf16.msra.mxu1 %v5235_v2  ;;  %v1381_v2 = vsel %vm925_vm4, %v1378_v23, %v1380_v63  ;;  %v3053_v50 = vshrl.u32 %v5758_v59, 16  ;;  %v5898_v63 = vld [vmem:[%s5250_s25 + $0xa0] ss:$0 sps:$4 sm:$0x77]  }
  0xf6   : > { %v3042_v23 = vsel %vm2908_vm5, %v3032_v20, %v3041_v15  ;;  %v3071_v16 = vshrl.u32 %v5898_v63, 16  ;;  %v3074_v26 = vshll.u32 %v5898_v63, 16  ;;  %v3068_v20 = vor.u32 %v3067_v21, %v3064_v40 }
  0xf7   : > { %4740 = vmatmul.mubr.msk.bf16.gmra.mrb[16].mxu0 %vm461_vm2, %v3006_v35  ;;  %v3055_v35 = vrot.slane %v3053_v50, 2  ;;  %v1393_v37 = vsel %vm925_vm4, %v1390_v27, %v1392_v56  ;;  %v1396_v50 = vrot.slane %v5553_v55, 1  ;;  %v1404_v40 = vrot.slane %v5585_v48, 1 }
  0xf8   : > { %4743 = vmatprep.mubr.msk.bf16.mxu0 %vm461_vm2, %v3015_v17  ;;  %v3051_v17 = vsel %vm2908_vm5, %v3041_v15, %v3050_v0  ;;  %v3076_v33 = vrot.slane %v3074_v26, 3  ;;  %v3363_v15 = vrot.slane %v5608_v32, 3  ;;  %v3365_v32 = vrot.slane %v5621_v42, 3 }
  0xf9   : > { %v3059_v36 = vor.u32 %v3058_v6, %v3055_v35  ;;  %v1399_v42 = vsel %vm925_vm4, %v1396_v50, %v1398_v1  ;;  %v1790_v21 = vshrl.u32 %v5528_v51, 16 }
  0xfa   : > { %v3368_v35 = vsel %vm3361_vm6, %v3365_v32, %v3367_v57 }
  0xfb   : > { %v3060_v24 = vsel %vm2908_vm5, %v3050_v0, %v3059_v36  ;;  %v3069_v46 = vsel %vm2908_vm5, %v3059_v36, %v3068_v20  ;;  %v5177_v36 = vld [vmem:[%s5250_s25 + $0x98] ss:$0 sps:$4 sm:$0x11]   ;;  %v1792_v26 = vrot.slane %v1790_v21, 1 }
  0xfc   : > { %4576 = vmatmul.mubr.msk.bf16.gmra.mrb[4].mxu1 %vm461_vm2, %v1379_v31  ;;  %v1387_v31 = vsel %vm925_vm4, %v1384_v11, %v1386_v29  ;;  %v4189_v11 = vcombine.low %v3354_v41, %v5595_v25  ;;  %v3375_v41 = vrot.slane %v5666_v3, 3 }
  0xfd   : > { %4579 = vmatprep.mubr.msk.bf16.mxu1 %vm461_vm2, %v1381_v2  ;;  %v1389_v2 = vsel %vm925_vm4, %v1386_v29, %v1388_v10  ;;  %v3366_v29 = vsel %vm3361_vm6, %v3363_v15, %v3365_v32 }
  0xff   : > { %4744 = vmatmul.mubr.msk.bf16.gmra.mrb[20].mxu0 %vm461_vm2, %v3024_v19  ;;  %v3073_v19 = vrot.slane %v3071_v16, 2 }
 0x100   : > { %4747 = vmatprep.mubr.msk.bf16.mxu0 %vm461_vm2, %v3033_v60  ;;  %v1391_v60 = vsel %vm925_vm4, %v1388_v10, %v1390_v27  ;;  %v1402_v10 = vrot.slane %v5581_v14, 1  ;;  %v1802_v27 = vshll.u32 %v5547_v52, 16 }
 0x101   : > { %v3077_v9 = vor.u32 %v3076_v33, %v3073_v19  ;;  %v1811_v33 = vshll.u32 %v5553_v55, 16 }
 0x102   : > { %v1405_v16 = vsel %vm925_vm4, %v1402_v10, %v1404_v40 }
 0x103   : > { %v3078_v25 = vsel %vm2908_vm5, %v3068_v20, %v3077_v9 }
 0x104   : > { %4580 = vmatmul.mubr.msk.bf16.gmra.mrb[8].mxu1 %vm461_vm2, %v1383_v47  ;;  %v3362_v47 = vrot.slane %v4189_v11, 3  ;;  %v1804_v11 = vrot.slane %v1802_v27, 2 }
 0x105   : > { %4583 = vmatprep.mubr.msk.bf16.mxu1 %vm461_vm2, %v1385_v53  ;;  %v1394_v53 = vrot.slane %v5547_v52, 1 }
 0x106   : > { %v3364_v54 = vsel %vm3361_vm6, %v3362_v47, %v3363_v15  ;;  %v3379_v47 = vrot.slane %v5685_v8, 3  ;;  %v1817_v15 = vshrl.u32 %v5565_v62, 16 }
 0x107   : > { %4748 = vmatmul.mubr.msk.bf16.gmra.mrb[24].mxu0 %vm461_vm2, %v3042_v23  ;;  %v1395_v0 = vsel %vm925_vm4, %v1392_v56, %v1394_v53  ;;  %v1397_v22 = vsel %vm925_vm4, %v1394_v53, %v1396_v50  ;;  %v1400_v23 = vrot.slane %v5569_v4, 1  ;;  %v1820_v53 = vshll.u32 %v5565_v62, 16 }
 0x108   : > { %4751 = vmatprep.mubr.msk.bf16.mxu0 %vm461_vm2, %v3051_v17  ;;  %v3370_v17 = vsel %vm3361_vm6, %v3367_v57, %v3369_v44 }
 0x109   : > { %v1401_v6 = vsel %vm925_vm4, %v1398_v1, %v1400_v23  ;;  %v1403_v28 = vsel %vm925_vm4, %v1400_v23, %v1402_v10  ;;  %v1822_v32 = vrot.slane %v1820_v53, 2  ;;  %v1835_v23 = vshrl.u32 %v5581_v14, 16 }
 0x10b   : > { %v1837_v10 = vrot.slane %v1835_v23, 1 }
 0x10c   : > { %4584 = vmatmul.mubr.msk.bf16.gmra.mrb[12].mxu1 %vm461_vm2, %v1387_v31  ;;  %v1793_v31 = vshll.u32 %v5528_v51, 16  ;;  %v1406_v51 = vrot.slane %v5177_v36, 1  ;;  %v1856_v36 = vshll.u32 %v5601_v58, 16 }
 0x10d   : > { %4587 = vmatprep.mubr.msk.bf16.mxu1 %vm461_vm2, %v1389_v2  ;;  %v3373_v2 = vrot.slane %v5662_v61, 3  ;;  %v1808_v61 = vshrl.u32 %v5553_v55, 16 }
 0x10e   : > { %v1795_v20 = vrot.slane %v1793_v31, 2  ;;  %v1407_v3 = vsel %vm925_vm4, %v1404_v40, %v1406_v51  ;;  %v3385_v40 = vrot.slane %v5718_v34, 3 }
 0x10f   : > { %4752 = vmatmul.mubr.msk.bf16.gmra.mrb[28].mxu0 %vm461_vm2, %v3060_v24  ;;  %v3374_v24 = vsel %vm3361_vm6, %v3371_v38, %v3373_v2  ;;  %v3376_v56 = vsel %vm3361_vm6, %v3373_v2, %v3375_v41  ;;  %v1810_v9 = vrot.slane %v1808_v61, 1  ;;  %v3395_v61 = vrot.slane %v5762_v5, 3 }
 0x110   : > { %4755 = vmatprep.mubr.msk.bf16.mxu0 %vm461_vm2, %v3069_v46  ;;  %v1796_v19 = vor.u32 %v1795_v20, %v1792_v26  ;;  %v1801_v46 = vrot.slane %v1799_v18, 1  ;;  %v3391_v18 = vrot.slane %v5745_v39, 3 }
 0x112   : > { %v1797_v52 = vsel %vm1690_vm3, %v5435_v7, %v1796_v19  ;;  %v1805_v55 = vor.u32 %v1804_v11, %v1801_v46  ;;  %v1829_v7 = vshll.u32 %v5569_v4, 16 }
 0x114   : > { %4588 = vmatmul.mubr.msk.bf16.gmra.mrb[16].mxu1 %vm461_vm2, %v1391_v60  ;;  %v3377_v60 = vrot.slane %v5680_v13, 3  ;;  %v1826_v13 = vshrl.u32 %v5569_v4, 16  ;;  %v1806_v8 = vsel %vm1690_vm3, %v1796_v19, %v1805_v55  ;;  %v1831_v1 = vrot.slane %v1829_v7, 2 }
 0x115   : > { %4591 = vmatprep.mubr.msk.bf16.mxu1 %vm461_vm2, %v1393_v37  ;;  %v1813_v37 = vrot.slane %v1811_v33, 2 }
 0x116   : > { %v1828_v57 = vrot.slane %v1826_v13, 1 }
 0x117   : > { %4756 = vmatmul.mubr.msk.bf16.gmra.mrb[32].mxu0 %vm461_vm2, %v3078_v25  ;;  %v3378_v25 = vsel %vm3361_vm6, %v3375_v41, %v3377_v60  ;;  %v1814_v50 = vor.u32 %v1813_v37, %v1810_v9  ;;  %v3389_v41 = vrot.slane %v5740_v30, 3  ;;  %v3393_v30 = vrot.slane %v5758_v59, 3 }
 0x118   : > { %4761 = vmatprep.mubr.msk.bf16.mxu0 %vm461_vm2, %v3364_v54  ;;  %v3380_v54 = vsel %vm3361_vm6, %v3377_v60, %v3379_v47  ;;  %v1832_v44 = vor.u32 %v1831_v1, %v1828_v57 }
 0x119   : > { %v1815_v62 = vsel %vm1690_vm3, %v1805_v55, %v1814_v50  ;;  %v3394_v39 = vsel %vm3361_vm6, %v3391_v18, %v3393_v30  ;;  %v3396_v33 = vsel %vm3361_vm6, %v3393_v30, %v3395_v61 }
 0x11c   : > { %4592 = vmatmul.mubr.msk.bf16.gmra.mrb[20].mxu1 %vm461_vm2, %v1395_v0  ;;  %v1819_v0 = vrot.slane %v1817_v15, 1 }
 0x11d   : > { %4595 = vmatprep.mubr.msk.bf16.mxu1 %vm461_vm2, %v1397_v22  ;;  %v3381_v22 = vrot.slane %v5698_v43, 3  ;;  %v1844_v43 = vshrl.u32 %v5585_v48, 16 }
 0x11e   : > { %v1823_v4 = vor.u32 %v1822_v32, %v1819_v0 }
 0x11f   : > { %4762 = vmatmul.mubr.msk.bf16.vlgmr.msra.gmra.mrb[0].mxu0 %vm461_vm2, %v3366_v29  ;;  %v3383_v29 = vrot.slane %v5703_v45, 3  ;;  %v1846_v21 = vrot.slane %v1844_v43, 1 }
 0x120   : > { %4765 = vmatprep.mubr.msk.bf16.mxu0 %vm461_vm2, %v3368_v35  ;;  %v1838_v35 = vshll.u32 %v5581_v14, 16  ;;  %v1824_v45 = vsel %vm1690_vm3, %v1814_v50, %v1823_v4  ;;  %v1833_v14 = vsel %vm1690_vm3, %v1823_v4, %v1832_v44 }
 0x121   : > { %v3384_v38 = vsel %vm3361_vm6, %v3381_v22, %v3383_v29  ;;  %v3386_v2 = vsel %vm3361_vm6, %v3383_v29, %v3385_v40 }
 0x124   : > { %4596 = vmatmul.mubr.msk.bf16.gmra.mrb[24].mxu1 %vm461_vm2, %v1399_v42  ;;  %v3382_v42 = vsel %vm3361_vm6, %v3379_v47, %v3381_v22  ;;  %v6051_v22 = vld [vmem:[%s6179_s2] ss:$0 sm:$0xff] }
 0x125   : > { %4599 = vmatprep.mubr.msk.bf16.mxu1 %vm461_vm2, %v1401_v6  ;;  %v1847_v6 = vshll.u32 %v5585_v48, 16 }
 0x127   : > { %4766 = vmatmul.mubr.msk.bf16.gmra.mrb[4].mxu0 %vm461_vm2, %v3370_v17  ;;  %v1840_v17 = vrot.slane %v1838_v35, 2  ;;  %v1849_v31 = vrot.slane %v1847_v6, 2 }
 0x128   : > { %4769 = vmatprep.mubr.msk.bf16.mxu0 %vm461_vm2, %v3372_v49  ;;  %v3387_v49 = vrot.slane %v5727_v12, 3  ;;  %v1858_v12 = vrot.slane %v1856_v36, 2 }
 0x129   : > { %v1841_v48 = vor.u32 %v1840_v17, %v1837_v10 }
 0x12a   : > { %v3388_v34 = vsel %vm3361_vm6, %v3385_v40, %v3387_v49  ;;  %v3390_v27 = vsel %vm3361_vm6, %v3387_v49, %v3389_v41 }
 0x12b   : > { %v1842_v26 = vsel %vm1690_vm3, %v1832_v44, %v1841_v48 }
 0x12c   : > { %4600 = vmatmul.mubr.msk.bf16.gmra.mrb[28].mxu1 %vm461_vm2, %v1403_v28  ;;  %v1853_v28 = vshrl.u32 %v5601_v58, 16 }
 0x12d   : > { %4603 = vmatprep.mubr.msk.bf16.mxu1 %vm461_vm2, %v1405_v16  ;;  %v1850_v16 = vor.u32 %v1849_v31, %v1846_v21 }
 0x12e   : > { %v1855_v20 = vrot.slane %v1853_v28, 1 }
 0x12f   : > { %4770 = vmatmul.mubr.msk.bf16.gmra.mrb[8].mxu0 %vm461_vm2, %v3374_v24  ;;  %v1851_v51 = vsel %vm1690_vm3, %v1841_v48, %v1850_v16  ;;  %v3392_v24 = vsel %vm3361_vm6, %v3389_v41, %v3391_v18 }
 0x130   : > { %4773 = vmatprep.mubr.msk.bf16.mxu0 %vm461_vm2, %v3376_v56  ;;  %v1859_v58 = vor.u32 %v1858_v12, %v1855_v20  ;;  %v3397_v56 = vrot.slane %v5898_v63, 3 }
 0x132   : > { %v1860_v19 = vsel %vm1690_vm3, %v1850_v16, %v1859_v58 }
 0x134   : > { %4604 = vmatmul.mubr.msk.bf16.gmra.mrb[32].mxu1 %vm461_vm2, %v1407_v3  ;;  %v3398_v3 = vsel %vm3361_vm6, %v3395_v61, %v3397_v56 }
 0x135   : > { %4629 = vmatprep.mubr.msk.bf16.mxu1 %vm461_vm2, %v1797_v52 }
 0x137   : > { %4774 = vmatmul.mubr.msk.bf16.gmra.mrb[12].mxu0 %vm461_vm2, %v3378_v25 }
 0x138   : > { %4777 = vmatprep.mubr.msk.bf16.mxu0 %vm461_vm2, %v3380_v54 }
 0x13c   : > { %4630 = vmatmul.mubr.msk.bf16.vlgmr.msra.gmra.mrb[20].mxu1 %vm461_vm2, %v1806_v8 }
 0x13d   : > { %4633 = vmatprep.mubr.msk.bf16.mxu1 %vm461_vm2, %v1815_v62 }
 0x13f   : > { %4778 = vmatmul.mubr.msk.bf16.gmra.mrb[16].mxu0 %vm461_vm2, %v3382_v42 }
 0x140   : > { %4781 = vmatprep.mubr.msk.bf16.mxu0 %vm461_vm2, %v3384_v38 }
 0x144   : > { %4634 = vmatmul.mubr.msk.bf16.gmra.mrb[24].mxu1 %vm461_vm2, %v1824_v45 }
 0x145   : > { %4637 = vmatprep.mubr.msk.bf16.mxu1 %vm461_vm2, %v1833_v14 }
 0x147   : > { %4782 = vmatmul.mubr.msk.bf16.gmra.mrb[20].mxu0 %vm461_vm2, %v3386_v2 }
 0x148   : > { %4785 = vmatprep.mubr.msk.bf16.mxu0 %vm461_vm2, %v3388_v34 }
 0x14c   : > { %4638 = vmatmul.mubr.msk.bf16.gmra.mrb[28].mxu1 %vm461_vm2, %v1842_v26 }
 0x14d   : > { %4641 = vmatprep.mubr.msk.bf16.mxu1 %vm461_vm2, %v1851_v51 }
 0x14f   : > { %4786 = vmatmul.mubr.msk.bf16.gmra.mrb[24].mxu0 %vm461_vm2, %v3390_v27 }
 0x150   : > { %4789 = vmatprep.mubr.msk.bf16.mxu0 %vm461_vm2, %v3392_v24 }
 0x154   : > { %4642 = vmatmul.mubr.msk.bf16.gmra.mrb[32].mxu1 %vm461_vm2, %v1860_v19 }
 0x157   : > { %4790 = vmatmul.mubr.msk.bf16.gmra.mrb[28].mxu0 %vm461_vm2, %v3394_v39 }
 0x158   : > { %4793 = vmatprep.mubr.msk.bf16.mxu0 %vm461_vm2, %v3396_v33 }
 0x15f   : > { %4794 = vmatmul.mubr.msk.bf16.gmra.mrb[32].mxu0 %vm461_vm2, %v3398_v3 }
 0x1c7   : > { %v4573_v46 = vpop.f32.mrb[0].mxu1 }
 0x1c8   : > { %v1504_v59 = vpop.f32.mrb[1].mxu1 }
 0x1c9   : > { %v4574_v11 = vpop.f32.mrb[2].mxu1 }
 0x1ca   : > { %v1507_v5 = vpop.f32.mrb[3].mxu1 }
 0x1cf   : > { %v4577_v60 = vpop.f32.mrb[4].mxu1 }
 0x1d0   : > { %v1520_v52 = vpop.f32.mrb[5].mxu1 }
 0x1d1   : > { %v4578_v9 = vpop.f32.mrb[6].mxu1 }
 0x1d2   : > { %v1523_v37 = vpop.f32.mrb[7].mxu1 }
 0x1d7   : > { %v4581_v47 = vpop.f32.mrb[8].mxu1 }
 0x1d8   : > { %v1536_v55 = vpop.f32.mrb[9].mxu1 }
 0x1d9   : > { %v4582_v15 = vpop.f32.mrb[10].mxu1 }
 0x1da   : > { %v1539_v53 = vpop.f32.mrb[11].mxu1 }
 0x1df   : > { %v6031_v25 = vpop.f32.mrb[12].mxu1 }
 0x1e0   : > { %v6033_v63 = vpop.f32.mrb[13].mxu1 }
 0x1e1   : > { %v6035_v50 = vpop.f32.mrb[14].mxu1 }
 0x1e2   : > { %v6037_v13 = vpop.f32.mrb[15].mxu1 }
 0x1e7   : > { %v6039_v7 = vpop.f32.mrb[16].mxu1 }
 0x1e8   : > { %v6041_v54 = vpop.f32.mrb[17].mxu1 }
 0x1e9   : > { %v6043_v8 = vpop.f32.mrb[18].mxu1 }
 0x1ea   : > { %v6045_v0 = vpop.f32.mrb[19].mxu1 }
 0x1f2   : > { %v4763_v32 = vpop.f32.mrb[0].mxu0 }
 0x1f3   : > { %v4799_v62 = vadd.f32 %v4763_v32, %v4573_v46  ;;  %v3495_v57 = vpop.f32.mrb[1].mxu0 }
 0x1f4   : > { %v4800_v1 = vadd.f32 %v3495_v57, %v1504_v59  ;;  %v4764_v29 = vpop.f32.mrb[2].mxu0 }
 0x1f5   : > { %v3683_v4 = vadd.f32 %v4799_v62, %v6051_v22  ;;  %v4801_v23 = vadd.f32 %v4764_v29, %v4574_v11  ;;  %v3498_v35 = vpop.f32.mrb[3].mxu0 }
 0x1f6   : > { %v3681_v42 = vadd.f32 %v4800_v1, %v6051_v22  ;;  %v4802_v44 = vadd.f32 %v3498_v35, %v1507_v5 }
 0x1f7   : > { %v4250_v43 = vpack.c.bf16 %v3683_v4, %v3683_v4  ;;  %v3684_v6 = vadd.f32 %v4801_v23, %v6051_v22 }
 0x1f8   : > { %v4248_v38 = vpack.c.bf16 %v3681_v42, %v3681_v42  ;;  %v3682_v45 = vadd.f32 %v4802_v44, %v6051_v22 }
 0x1f9   : > { %3864 = vst.msk [vmem:[%s6057_s18 + $0x8] sm:$0xf] %vm3861_vm7, %v4250_v43  ;;  %v4251_v10 = vpack.c.bf16 %v3684_v6, %v3684_v6 }
 0x1fa   : > { %3862 = vst.msk [vmem:[%s6057_s18] sm:$0xf] %vm3861_vm7, %v4248_v38  ;;  %v4249_v17 = vpack.c.bf16 %v3682_v45, %v3682_v45  ;;  %v4767_v40 = vpop.f32.mrb[4].mxu0 }
 0x1fb   : > { %3865 = vst.msk [vmem:[%s6057_s18 + $0xc] sm:$0xf] %vm3861_vm7, %v4251_v10  ;;  %v4803_v14 = vadd.f32 %v4767_v40, %v4577_v60  ;;  %v3511_v21 = vpop.f32.mrb[5].mxu0 }
 0x1fc   : > { %3863 = vst.msk [vmem:[%s6057_s18 + $0x4] sm:$0xf] %vm3861_vm7, %v4249_v17  ;;  %v4804_v31 = vadd.f32 %v3511_v21, %v1520_v52  ;;  %v4768_v49 = vpop.f32.mrb[6].mxu0 }
 0x1fd   : > { %v3687_v48 = vadd.f32 %v4803_v14, %v6051_v22  ;;  %v4805_v28 = vadd.f32 %v4768_v49, %v4578_v9  ;;  %v3514_v36 = vpop.f32.mrb[7].mxu0 }
 0x1fe   : > { %v3685_v2 = vadd.f32 %v4804_v31, %v6051_v22  ;;  %v4806_v16 = vadd.f32 %v3514_v36, %v1523_v37 }
 0x1ff   : > { %v4254_v34 = vpack.c.bf16 %v3687_v48, %v3687_v48  ;;  %v3688_v26 = vadd.f32 %v4805_v28, %v6051_v22 }
 0x200   : > { %v4252_v20 = vpack.c.bf16 %v3685_v2, %v3685_v2  ;;  %v3686_v12 = vadd.f32 %v4806_v16, %v6051_v22 }
 0x201   : > { %3868 = vst.msk [vmem:[%s6057_s18 + $0x18] sm:$0xf] %vm3861_vm7, %v4254_v34  ;;  %v4255_v41 = vpack.c.bf16 %v3688_v26, %v3688_v26 }
 0x202   : > { %3866 = vst.msk [vmem:[%s6057_s18 + $0x10] sm:$0xf] %vm3861_vm7, %v4252_v20  ;;  %v4253_v51 = vpack.c.bf16 %v3686_v12, %v3686_v12  ;;  %v4771_v18 = vpop.f32.mrb[8].mxu0 }
 0x203   : > { %3869 = vst.msk [vmem:[%s6057_s18 + $0x1c] sm:$0xf] %vm3861_vm7, %v4255_v41  ;;  %v4807_v58 = vadd.f32 %v4771_v18, %v4581_v47  ;;  %v3527_v27 = vpop.f32.mrb[9].mxu0 }
 0x204   : > { %3867 = vst.msk [vmem:[%s6057_s18 + $0x14] sm:$0xf] %vm3861_vm7, %v4253_v51  ;;  %v4808_v24 = vadd.f32 %v3527_v27, %v1536_v55  ;;  %v4772_v19 = vpop.f32.mrb[10].mxu0 }
 0x205   : > { %v3691_v30 = vadd.f32 %v4807_v58, %v6051_v22  ;;  %v4809_v61 = vadd.f32 %v4772_v19, %v4582_v15  ;;  %v3530_v39 = vpop.f32.mrb[11].mxu0 }
 0x206   : > { %v3689_v33 = vadd.f32 %v4808_v24, %v6051_v22  ;;  %v4810_v56 = vadd.f32 %v3530_v39, %v1539_v53 }
 0x207   : > { %v4258_v3 = vpack.c.bf16 %v3691_v30, %v3691_v30  ;;  %v3692_v46 = vadd.f32 %v4809_v61, %v6051_v22 }
 0x208   : > { %v4256_v59 = vpack.c.bf16 %v3689_v33, %v3689_v33  ;;  %v3690_v11 = vadd.f32 %v4810_v56, %v6051_v22 }
 0x209   : > { %3872 = vst.msk [vmem:[%s6057_s18 + $0x28] sm:$0xf] %vm3861_vm7, %v4258_v3  ;;  %v4259_v5 = vpack.c.bf16 %v3692_v46, %v3692_v46 }
 0x20a   : > { %3870 = vst.msk [vmem:[%s6057_s18 + $0x20] sm:$0xf] %vm3861_vm7, %v4256_v59  ;;  %v4257_v60 = vpack.c.bf16 %v3690_v11, %v3690_v11  ;;  %v4775_v52 = vpop.f32.mrb[12].mxu0 }
 0x20b   : > { %3873 = vst.msk [vmem:[%s6057_s18 + $0x2c] sm:$0xf] %vm3861_vm7, %v4259_v5  ;;  %v4811_v9 = vadd.f32 %v4775_v52, %v6031_v25  ;;  %v3543_v37 = vpop.f32.mrb[13].mxu0 }
 0x20c   : > { %3871 = vst.msk [vmem:[%s6057_s18 + $0x24] sm:$0xf] %vm3861_vm7, %v4257_v60  ;;  %v4812_v47 = vadd.f32 %v3543_v37, %v6033_v63  ;;  %v4776_v55 = vpop.f32.mrb[14].mxu0 }
 0x20d   : > { %v3695_v15 = vadd.f32 %v4811_v9, %v6051_v22  ;;  %v4813_v53 = vadd.f32 %v4776_v55, %v6035_v50  ;;  %v3546_v32 = vpop.f32.mrb[15].mxu0 }
 0x20e   : > { %v3693_v57 = vadd.f32 %v4812_v47, %v6051_v22  ;;  %v4814_v1 = vadd.f32 %v3546_v32, %v6037_v13 }
 0x20f   : > { %v4631_v62 = vpop.f32.mrb[20].mxu1  ;;  %v4262_v29 = vpack.c.bf16 %v3695_v15, %v3695_v15  ;;  %v3696_v4 = vadd.f32 %v4813_v53, %v6051_v22 }
 0x210   : > { %v2037_v25 = vpop.f32.mrb[21].mxu1  ;;  %v4260_v63 = vpack.c.bf16 %v3693_v57, %v3693_v57  ;;  %v3694_v35 = vadd.f32 %v4814_v1, %v6051_v22 }
 0x211   : > { %v4632_v23 = vpop.f32.mrb[22].mxu1  ;;  %3876 = vst.msk [vmem:[%s6057_s18 + $0x38] sm:$0xf] %vm3861_vm7, %v4262_v29  ;;  %v4263_v50 = vpack.c.bf16 %v3696_v4, %v3696_v4 }
 0x212   : > { %v2040_v42 = vpop.f32.mrb[23].mxu1  ;;  %3874 = vst.msk [vmem:[%s6057_s18 + $0x30] sm:$0xf] %vm3861_vm7, %v4260_v63  ;;  %v4261_v44 = vpack.c.bf16 %v3694_v35, %v3694_v35  ;;  %v4779_v43 = vpop.f32.mrb[16].mxu0 }
 0x213   : > { %3877 = vst.msk [vmem:[%s6057_s18 + $0x3c] sm:$0xf] %vm3861_vm7, %v4263_v50  ;;  %v4815_v13 = vadd.f32 %v4779_v43, %v6039_v7  ;;  %v3559_v6 = vpop.f32.mrb[17].mxu0 }
 0x214   : > { %3875 = vst.msk [vmem:[%s6057_s18 + $0x34] sm:$0xf] %vm3861_vm7, %v4261_v44  ;;  %v4816_v38 = vadd.f32 %v3559_v6, %v6041_v54  ;;  %v4780_v45 = vpop.f32.mrb[18].mxu0 }
 0x215   : > { %v3699_v10 = vadd.f32 %v4815_v13, %v6051_v22  ;;  %v4817_v17 = vadd.f32 %v4780_v45, %v6043_v8  ;;  %v3562_v40 = vpop.f32.mrb[19].mxu0 }
 0x216   : > { %v3697_v21 = vadd.f32 %v4816_v38, %v6051_v22  ;;  %v4818_v31 = vadd.f32 %v3562_v40, %v6045_v0 }
 0x217   : > { %v4635_v14 = vpop.f32.mrb[24].mxu1  ;;  %v4266_v49 = vpack.c.bf16 %v3699_v10, %v3699_v10  ;;  %v3700_v48 = vadd.f32 %v4817_v17, %v6051_v22 }
 0x218   : > { %v2053_v7 = vpop.f32.mrb[25].mxu1  ;;  %v4264_v54 = vpack.c.bf16 %v3697_v21, %v3697_v21  ;;  %v3698_v36 = vadd.f32 %v4818_v31, %v6051_v22 }
 0x219   : > { %v4636_v28 = vpop.f32.mrb[26].mxu1  ;;  %3880 = vst.msk [vmem:[%s6057_s18 + $0x48] sm:$0xf] %vm3861_vm7, %v4266_v49  ;;  %v4267_v8 = vpack.c.bf16 %v3700_v48, %v3700_v48 }
 0x21a   : > { %v2056_v2 = vpop.f32.mrb[27].mxu1  ;;  %3878 = vst.msk [vmem:[%s6057_s18 + $0x40] sm:$0xf] %vm3861_vm7, %v4264_v54  ;;  %v4265_v16 = vpack.c.bf16 %v3698_v36, %v3698_v36  ;;  %v4783_v34 = vpop.f32.mrb[20].mxu0 }
 0x21b   : > { %3881 = vst.msk [vmem:[%s6057_s18 + $0x4c] sm:$0xf] %vm3861_vm7, %v4267_v8  ;;  %v4819_v0 = vadd.f32 %v4783_v34, %v4631_v62  ;;  %v3575_v26 = vpop.f32.mrb[21].mxu0 }
 0x21c   : > { %3879 = vst.msk [vmem:[%s6057_s18 + $0x44] sm:$0xf] %vm3861_vm7, %v4265_v16  ;;  %v4820_v20 = vadd.f32 %v3575_v26, %v2037_v25  ;;  %v4784_v12 = vpop.f32.mrb[22].mxu0 }
 0x21d   : > { %v3703_v41 = vadd.f32 %v4819_v0, %v6051_v22  ;;  %v4821_v51 = vadd.f32 %v4784_v12, %v4632_v23  ;;  %v3578_v18 = vpop.f32.mrb[23].mxu0 }
 0x21e   : > { %v3701_v27 = vadd.f32 %v4820_v20, %v6051_v22  ;;  %v4822_v24 = vadd.f32 %v3578_v18, %v2040_v42 }
 0x21f   : > { %v4639_v58 = vpop.f32.mrb[28].mxu1  ;;  %v4270_v30 = vpack.c.bf16 %v3703_v41, %v3703_v41  ;;  %v3704_v61 = vadd.f32 %v4821_v51, %v6051_v22 }
 0x220   : > { %v2069_v19 = vpop.f32.mrb[29].mxu1  ;;  %v4268_v33 = vpack.c.bf16 %v3701_v27, %v3701_v27  ;;  %v3702_v56 = vadd.f32 %v4822_v24, %v6051_v22 }
 0x221   : > { %v4640_v39 = vpop.f32.mrb[30].mxu1  ;;  %3884 = vst.msk [vmem:[%s6057_s18 + $0x58] sm:$0xf] %vm3861_vm7, %v4270_v30  ;;  %v4271_v46 = vpack.c.bf16 %v3704_v61, %v3704_v61 }
 0x222   : > { %v2072_v3 = vpop.f32.mrb[31].mxu1  ;;  %3882 = vst.msk [vmem:[%s6057_s18 + $0x50] sm:$0xf] %vm3861_vm7, %v4268_v33  ;;  %v4269_v59 = vpack.c.bf16 %v3702_v56, %v3702_v56  ;;  %v4787_v11 = vpop.f32.mrb[24].mxu0 }
 0x223   : > { %3885 = vst.msk [vmem:[%s6057_s18 + $0x5c] sm:$0xf] %vm3861_vm7, %v4271_v46  ;;  %v4823_v5 = vadd.f32 %v4787_v11, %v4635_v14  ;;  %v3591_v60 = vpop.f32.mrb[25].mxu0 }
 0x224   : > { %3883 = vst.msk [vmem:[%s6057_s18 + $0x54] sm:$0xf] %vm3861_vm7, %v4269_v59  ;;  %v4824_v52 = vadd.f32 %v3591_v60, %v2053_v7  ;;  %v4788_v9 = vpop.f32.mrb[26].mxu0 }
 0x225   : > { %v3707_v37 = vadd.f32 %v4823_v5, %v6051_v22  ;;  %v4825_v47 = vadd.f32 %v4788_v9, %v4636_v28  ;;  %v3594_v55 = vpop.f32.mrb[27].mxu0 }
 0x226   : > { %v3705_v53 = vadd.f32 %v4824_v52, %v6051_v22  ;;  %v4826_v32 = vadd.f32 %v3594_v55, %v2056_v2 }
 0x227   : > { %v4643_v15 = vpop.f32.mrb[32].mxu1  ;;  %v4274_v57 = vpack.c.bf16 %v3707_v37, %v3707_v37  ;;  %v3708_v1 = vadd.f32 %v4825_v47, %v6051_v22 }
 0x228   : > { %v2085_v62 = vpop.f32.mrb[33].mxu1  ;;  %v4272_v29 = vpack.c.bf16 %v3705_v53, %v3705_v53  ;;  %v3706_v4 = vadd.f32 %v4826_v32, %v6051_v22 }
 0x229   : > { %v4644_v25 = vpop.f32.mrb[34].mxu1  ;;  %3888 = vst.msk [vmem:[%s6057_s18 + $0x68] sm:$0xf] %vm3861_vm7, %v4274_v57  ;;  %v4275_v63 = vpack.c.bf16 %v3708_v1, %v3708_v1 }
 0x22a   : > { %v2088_v23 = vpop.f32.mrb[35].mxu1  ;;  %3886 = vst.msk [vmem:[%s6057_s18 + $0x60] sm:$0xf] %vm3861_vm7, %v4272_v29  ;;  %v4273_v35 = vpack.c.bf16 %v3706_v4, %v3706_v4  ;;  %v4791_v42 = vpop.f32.mrb[28].mxu0 }
 0x22b   : > { %3889 = vst.msk [vmem:[%s6057_s18 + $0x6c] sm:$0xf] %vm3861_vm7, %v4275_v63  ;;  %v4827_v50 = vadd.f32 %v4791_v42, %v4639_v58  ;;  %v3607_v44 = vpop.f32.mrb[29].mxu0 }
 0x22c   : > { %3887 = vst.msk [vmem:[%s6057_s18 + $0x64] sm:$0xf] %vm3861_vm7, %v4273_v35  ;;  %v4828_v43 = vadd.f32 %v3607_v44, %v2069_v19  ;;  %v4792_v13 = vpop.f32.mrb[30].mxu0 }
 0x22d   : > { %v3711_v6 = vadd.f32 %v4827_v50, %v6051_v22  ;;  %v4829_v38 = vadd.f32 %v4792_v13, %v4640_v39  ;;  %v3610_v45 = vpop.f32.mrb[31].mxu0 }
 0x22e   : > { %v3709_v10 = vadd.f32 %v4828_v43, %v6051_v22  ;;  %v4830_v17 = vadd.f32 %v3610_v45, %v2072_v3 }
 0x22f   : > { %v4278_v40 = vpack.c.bf16 %v3711_v6, %v3711_v6  ;;  %v3712_v14 = vadd.f32 %v4829_v38, %v6051_v22 }
 0x230   : > { %v4276_v21 = vpack.c.bf16 %v3709_v10, %v3709_v10  ;;  %v3710_v31 = vadd.f32 %v4830_v17, %v6051_v22 }
 0x231   : > { %3892 = vst.msk [vmem:[%s6057_s18 + $0x78] sm:$0xf] %vm3861_vm7, %v4278_v40  ;;  %v4279_v7 = vpack.c.bf16 %v3712_v14, %v3712_v14 }
 0x232   : > { %3890 = vst.msk [vmem:[%s6057_s18 + $0x70] sm:$0xf] %vm3861_vm7, %v4276_v21  ;;  %v4277_v49 = vpack.c.bf16 %v3710_v31, %v3710_v31  ;;  %v4795_v48 = vpop.f32.mrb[32].mxu0 }
 0x233   : > { %3893 = vst.msk [vmem:[%s6057_s18 + $0x7c] sm:$0xf] %vm3861_vm7, %v4279_v7  ;;  %v4831_v28 = vadd.f32 %v4795_v48, %v4643_v15  ;;  %v3623_v54 = vpop.f32.mrb[33].mxu0 }
 0x234   : > { %3891 = vst.msk [vmem:[%s6057_s18 + $0x74] sm:$0xf] %vm3861_vm7, %v4277_v49  ;;  %v4832_v36 = vadd.f32 %v3623_v54, %v2085_v62  ;;  %v4796_v2 = vpop.f32.mrb[34].mxu0 }
 0x235   : > { %v3715_v8 = vadd.f32 %v4831_v28, %v6051_v22  ;;  %v4833_v16 = vadd.f32 %v4796_v2, %v4644_v25  ;;  %v3626_v34 = vpop.f32.mrb[35].mxu0 }
 0x236   : > { %v3713_v0 = vadd.f32 %v4832_v36, %v6051_v22  ;;  %v4834_v26 = vadd.f32 %v3626_v34, %v2088_v23 }
 0x237   : > { %v4282_v20 = vpack.c.bf16 %v3715_v8, %v3715_v8  ;;  %v3716_v12 = vadd.f32 %v4833_v16, %v6051_v22 }
 0x238   : > { %v4280_v41 = vpack.c.bf16 %v3713_v0, %v3713_v0  ;;  %v3714_v51 = vadd.f32 %v4834_v26, %v6051_v22 }
 0x239   : > { %3896 = vst.msk [vmem:[%s6057_s18 + $0x88] sm:$0xf] %vm3861_vm7, %v4282_v20  ;;  %v4283_v18 = vpack.c.bf16 %v3716_v12, %v3716_v12 }
 0x23a   : > { %3894 = vst.msk [vmem:[%s6057_s18 + $0x80] sm:$0xf] %vm3861_vm7, %v4280_v41  ;;  %v4281_v58 = vpack.c.bf16 %v3714_v51, %v3714_v51 }
 0x23b   : > { %3897 = vst.msk [vmem:[%s6057_s18 + $0x8c] sm:$0xf] %vm3861_vm7, %v4283_v18 }
 0x23c   : > { %3895 = vst.msk [vmem:[%s6057_s18 + $0x84] sm:$0xf] %vm3861_vm7, %v4281_v58 }
 0x23d PF: > { %s13_s12 = sadd.s32 1, %s5195_s12  }
 0x23e   : > { %p10_p4 = scmp.ge.s32.totalorder %s13_s12, 4  }
 0x240   :  { %12 = sbr.rel (!%p10_p4) target bundleno = 1 (0x1), region = 70 }

// kernel: feature_extraction.4
= control target key start
LH: loop header
LB: loop body
LE: loop exit
PB: predicated region body
PF: predicated region fallthrough
CT: control target
= control target key end

     0   :  { %s2846_s12 = smov 0   ;;  %s3456_s0 = inlined_call_operand.vmem [shape: bf16[2,102,128], index: 0, kind: input, shape index: {}]   ;;  %s3457_s1 = inlined_call_operand.vmem [shape: bf16[9,128,32], index: 1, kind: input, shape index: {}]   ;;  %s3458_s2 = inlined_call_operand.vmem [shape: f32[1,32], index: 2, kind: input, shape index: {}]   ;;  %s3459_s3 = inlined_call_operand.vmem [shape: bf16[2,80,32], index: 3, kind: output, shape index: {}]  }
   0x1 LB: > { %s1999_s13 = sadd.s32 4294967295, %s2822_s12   ;;  %p2003_p0 = scmp.ge.s32.totalorder %s2822_s12, 1  ;;  %s2822_s12 = sphi %s2846_s12, %s13_s12  }
   0x2   : > { %p137_p1 = scmp.lt.s32.totalorder %s2822_s12, 3 }
   0x4   : > { %p138_p2 = pnand %p2003_p0, %p137_p1 }
   0x5   : > { %v2721_v0 = vld [vmem:[%s3457_s1 + $0x40] sm:$0xff] (!%p138_p2)   ;;  %v2824_v1 = vmov (!%p138_p2), 0.0   ;;  %v2723_v3 = vld [vmem:[%s3457_s1 + $0x48] sm:$0xff] (!%p138_p2)   ;;  %vm2825_vm0 = vmmov (!%p138_p2), 0   ;;  %p161_p3 = scmp.lt.s32.totalorder (!%p138_p2), %s1999_s13, 1  ;;  %v2725_v5 = vld [vmem:[%s3457_s1 + $0x50] sm:$0xff] (!%p138_p2)  }
   0x6   : > { %141 = sbr.rel (%p138_p2) target bundleno = 435 (0x1b3), region = 32  ;;  %2369 = vmatprep.subr.bf16.mxu0 (!%p138_p2), %v2824_v1  ;;  %2405 = vmatprep.subr.bf16.mxu1 (!%p138_p2), %v2824_v1  ;;  %v2722_v2 = vld [vmem:[%s3457_s1] sm:$0xff] (!%p138_p2)   ;;  %v2724_v4 = vld [vmem:[%s3457_s1 + $0x8] sm:$0xff] (!%p138_p2)   ;;  %v2726_v6 = vld [vmem:[%s3457_s1 + $0x10] sm:$0xff] (!%p138_p2)   ;;  %vm244_vm1 = vsmask.f32 (!%p138_p2), 7424 }
   0x7   : > { %2370 = vmatpush3.bf16.msra.mxu0 (!%p138_p2), %v2721_v0  ;;  %2385 = vmatprep.mubr.msk.bf16.mxu0 (!%p138_p2), %vm2825_vm0, %v2824_v1  ;;  %v2727_v7 = vld [vmem:[%s3457_s1 + $0x58] sm:$0xff] (!%p138_p2)   ;;  %v2729_v9 = vld [vmem:[%s3457_s1 + $0x60] sm:$0xff] (!%p138_p2)   ;;  %v2731_v13 = vld [vmem:[%s3457_s1 + $0x68] sm:$0xff] (!%p138_p2)   ;;  %vm562_vm2 = vcmask (!%p138_p2), 1046528   ;;  %vm934_vm3 = vsmask.f32 (!%p138_p2), 6400 }
   0x8   : > { %2406 = vmatpush3.bf16.msra.mxu1 (!%p138_p2), %v2722_v2  ;;  %2371 = vmatprep.subr.bf16.mxu0 (!%p138_p2), %v2824_v1  ;;  %v2728_v8 = vld [vmem:[%s3457_s1 + $0x18] sm:$0xff] (!%p138_p2)   ;;  %v2730_v10 = vld [vmem:[%s3457_s1 + $0x20] sm:$0xff] (!%p138_p2)   ;;  %v2732_v16 = vld [vmem:[%s3457_s1 + $0x28] sm:$0xff] (!%p138_p2)   ;;  %vm1145_vm4 = vcmask (!%p138_p2), 1045504   ;;  %vm1517_vm5 = vsmask.f32 (!%p138_p2), 5376 }
   0x9   : > { %2407 = vmatprep.subr.bf16.mxu1 (!%p138_p2), %v2824_v1  ;;  %2421 = vmatprep.mubr.msk.bf16.mxu1 (!%p138_p2), %vm2825_vm0, %v2824_v1  ;;  %v2733_v18 = vld [vmem:[%s3457_s1 + $0x70] sm:$0xff] (!%p138_p2)   ;;  %v2735_v23 = vld [vmem:[%s3457_s1 + $0x78] sm:$0xff] (!%p138_p2)   ;;  %v2739_v28 = vld [vmem:[%s3457_s1 + $0x80] sm:$0xff] (!%p138_p2)   ;;  %vm1728_vm6 = vcmask (!%p138_p2), 1044480   ;;  %vm1933_vm7 = vcmask (!%p138_p2), 257024  }
   0xa   : > { %v2734_v22 = vld [vmem:[%s3457_s1 + $0x30] sm:$0xff] (!%p138_p2)   ;;  %v2736_v24 = vld [vmem:[%s3457_s1 + $0x38] sm:$0xff] (!%p138_p2)   ;;  %v2742_v32 = vld [vmem:[%s3457_s1 + $0xc0] sm:$0xff] (!%p138_p2)  }
   0xb   : > { %2372 = vmatpush3.bf16.msra.mxu0 (!%p138_p2), %v2723_v3  ;;  %v2740_v34 = vld [vmem:[%s3457_s1 + $0x88] sm:$0xff] (!%p138_p2)   ;;  %v2743_v40 = vld [vmem:[%s3457_s1 + $0x90] sm:$0xff] (!%p138_p2)   ;;  %v2746_v44 = vld [vmem:[%s3457_s1 + $0x98] sm:$0xff] (!%p138_p2)  }
   0xc   : > { %2408 = vmatpush3.bf16.msra.mxu1 (!%p138_p2), %v2724_v4  ;;  %2373 = vmatprep.subr.bf16.mxu0 (!%p138_p2), %v2824_v1  ;;  %v2744_v37 = vld [vmem:[%s3457_s1 + $0xc8] sm:$0xff] (!%p138_p2)   ;;  %v2747_v42 = vld [vmem:[%s3457_s1 + $0xd0] sm:$0xff] (!%p138_p2)   ;;  %v2749_v47 = vld [vmem:[%s3457_s1 + $0xd8] sm:$0xff] (!%p138_p2)  }
   0xd   : > { %s3461_s13 = smov (!%p161_p3, %s1999_s13), 1  ;;  %2409 = vmatprep.subr.bf16.mxu1 %v2824_v1  ;;  %v2748_v48 = vld [vmem:[%s3457_s1 + $0xa0] sm:$0xff]   ;;  %v2752_v56 = vld [vmem:[%s3457_s1 + $0xa8] sm:$0xff]   ;;  %v2754_v61 = vld [vmem:[%s3457_s1 + $0xb0] sm:$0xff]  }
   0xe   : > { %s2709_s26 = smul.u32 52, %s3461_s13  ;;  %v2751_v52 = vld [vmem:[%s3457_s1 + $0xe0] sm:$0xff]   ;;  %v2753_v57 = vld [vmem:[%s3457_s1 + $0xe8] sm:$0xff]   ;;  %v2756_v62 = vld [vmem:[%s3457_s1 + $0xf0] sm:$0xff]  }
   0xf   : > { %2374 = vmatpush3.bf16.msra.mxu0 %v2725_v5  ;;  %v2757_v63 = vld [vmem:[%s3457_s1 + $0xb8] sm:$0xff]  }
  0x10   : > { %2410 = vmatpush3.bf16.msra.mxu1 %v2726_v6  ;;  %2375 = vmatprep.subr.bf16.mxu0 %v2824_v1  ;;  %s2896_s6 = scalar_lea.vmem %s3456_s0, %s2709_s26  ;;  %v2758_v3 = vld [vmem:[%s3457_s1 + $0xf8] sm:$0xff]  }
  0x11   : > { %2411 = vmatprep.subr.bf16.mxu1 %v2824_v1  ;;  %v172_v11 = vld [vmem:[%s2896_s6] sm:$0xf]  ;;  %v2908_v12 = vld [vmem:[%s2896_s6 + $0x4] sm:$0xf]  ;;  %v2915_v15 = vld [vmem:[%s2896_s6 + $0x8] sm:$0xff]  }
  0x12   : > { %v2022_v14 = vcombine.low %v172_v11, %v2908_v12  ;;  %v253_v21 = vshll.u32 %v2915_v15, 16  ;;  %v2938_v27 = vld [vmem:[%s2896_s6 + $0x10] sm:$0xff]   ;;  %v257_v30 = vshrl.u32 %v2915_v15, 16  ;;  %v2954_v33 = vld [vmem:[%s2896_s6 + $0x18] sm:$0xff]   ;;  %v2983_v45 = vld [vmem:[%s2896_s6 + $0x20] sm:$0xff]  }
  0x13   : > { %2376 = vmatpush3.bf16.msra.mxu0 %v2727_v7  ;;  %v261_v31 = vshll.u32 %v2938_v27, 16  ;;  %v269_v38 = vshll.u32 %v2954_v33, 16  ;;  %v265_v41 = vshrl.u32 %v2938_v27, 16  ;;  %v273_v50 = vshrl.u32 %v2954_v33, 16  ;;  %v541_v4 = vld [vmem:[%s2896_s6] sm:$0xe] }
  0x14   : > { %2412 = vmatpush3.bf16.msra.mxu1 %v2728_v8  ;;  %2377 = vmatprep.subr.bf16.mxu0 %v2824_v1  ;;  %v248_v17 = vshll.u32 %v2022_v14, 16  ;;  %v246_v19 = vshrl.u32 %v2022_v14, 16  ;;  %v255_v26 = vrot.slane %v253_v21, 1  ;;  %v277_v51 = vshll.u32 %v2983_v45, 16  ;;  %v710_v5 = vld [vmem:[%s2896_s6 + $0x4] sm:$0xe] }
  0x15   : > { %2413 = vmatprep.subr.bf16.mxu1 %v2824_v1  ;;  %v263_v36 = vrot.slane %v261_v31, 1  ;;  %v271_v43 = vrot.slane %v269_v38, 1  ;;  %v3006_v53 = vld [vmem:[%s2896_s6 + $0x28] ss:$0 sps:$4 sm:$0x11]   ;;  %v281_v59 = vshrl.u32 %v2983_v45, 16  ;;  %v2060_v8 = vcombine.low %v541_v4, %v2908_v12 }
  0x16   : > { %v250_v20 = vrot.slane %v248_v17, 1  ;;  %v259_v35 = vor.u32 %v257_v30, %v255_v26  ;;  %v279_v55 = vrot.slane %v277_v51, 1  ;;  %v285_v60 = vshll.u32 %v3006_v53, 16  ;;  %v3048_v6 = vld [vmem:[%s2896_s6 + $0x8] sm:$0xf]  ;;  %v2762_v17 = vld [vmem:[%s3457_s1 + $0x100] sm:$0xff]  }
  0x17   : > { %2378 = vmatpush3.bf16.msra.mxu0 %v2729_v9  ;;  %v267_v46 = vor.u32 %v265_v41, %v263_v36  ;;  %v275_v54 = vor.u32 %v273_v50, %v271_v43  ;;  %v3054_v9 = vcombine.low %v710_v5, %v3048_v6  ;;  %v563_v11 = vrot.slane %v2060_v8, 1  ;;  %v2769_v30 = vld [vmem:[%s3457_s1 + $0x118] sm:$0xff]   ;;  %v2776_v41 = vld [vmem:[%s3457_s1 + $0x168] sm:$0xff]  }
  0x18   : > { %2414 = vmatpush3.bf16.msra.mxu1 %v2730_v10  ;;  %2379 = vmatprep.subr.bf16.mxu0 %v2824_v1  ;;  %v251_v25 = vor.u32 %v250_v20, %v246_v19  ;;  %v264_v39 = vsel %vm244_vm1, %v259_v35, %v263_v36  ;;  %v283_v0 = vor.u32 %v281_v59, %v279_v55  ;;  %v287_v2 = vrot.slane %v285_v60, 1  ;;  %v3057_v10 = vld [vmem:[%s2896_s6 + $0xc] sm:$0xff]   ;;  %v3075_v19 = vld [vmem:[%s2896_s6 + $0x14] sm:$0xff]   ;;  %v3128_v36 = vld [vmem:[%s2896_s6 + $0x24] sm:$0xff]  }
  0x19   : > { %2415 = vmatprep.subr.bf16.mxu1 %v2824_v1  ;;  %v272_v49 = vsel %vm244_vm1, %v267_v46, %v271_v43  ;;  %v280_v58 = vsel %vm244_vm1, %v275_v54, %v279_v55  ;;  %v564_v12 = vrot.slane %v2915_v15, 1  ;;  %v2763_v20 = vld [vmem:[%s3457_s1 + $0x108] sm:$0xff]   ;;  %v566_v21 = vrot.slane %v2938_v27, 1  ;;  %v2779_v46 = vld [vmem:[%s3457_s1 + $0x170] sm:$0xff]   ;;  %v2781_v54 = vld [vmem:[%s3457_s1 + $0x178] sm:$0xff]  }
  0x1a   : > { %v256_v29 = vsel %vm244_vm1, %v251_v25, %v255_v26  ;;  %v288_v7 = vsel %vm244_vm1, %v283_v0, %v287_v2  ;;  %v2766_v25 = vld [vmem:[%s3457_s1 + $0x110] sm:$0xff]   ;;  %v570_v38 = vrot.slane %v2983_v45, 1  ;;  %v2778_v43 = vld [vmem:[%s2896_s6 + $0x2c] ss:$0 sps:$4 sm:$0x11]   ;;  %v944_v50 = vshrl.u32 %v3057_v10, 16 }
  0x1b   : > { %2380 = vmatpush3.bf16.msra.mxu0 %v2731_v13  ;;  %v766_v13 = vrot.slane %v3054_v9, 1  ;;  %v947_v51 = vshll.u32 %v3057_v10, 16  ;;  %v1124_v55 = vld [vmem:[%s2896_s6 + $0x4] sm:$0xc]  ;;  %v953_v2 = vshrl.u32 %v3075_v19, 16  ;;  %v1147_v5 = vrot.slane %v3057_v10, 2 }
  0x1c   : > { %2416 = vmatpush3.bf16.msra.mxu1 %v2732_v16  ;;  %2381 = vmatprep.subr.bf16.mxu0 %v2824_v1  ;;  %v565_v16 = vsel %vm562_vm2, %v563_v11, %v564_v12  ;;  %v946_v59 = vrot.slane %v944_v50, 1 }
  0x1d   : > { %2417 = vmatprep.subr.bf16.mxu1 %v2824_v1  ;;  %v949_v60 = vrot.slane %v947_v51, 2  ;;  %v955_v8 = vrot.slane %v953_v2, 1  ;;  %v3273_v51 = vld [vmem:[%s2896_s6 + $0x10] sm:$0xff]  }
  0x1f   : > { %2382 = vmatpush3.bf16.msra.mxu0 %v2733_v18  ;;  %v950_v0 = vor.u32 %v949_v60, %v946_v59  ;;  %v1530_v59 = vshll.u32 %v3273_v51, 16  ;;  %v2799_v60 = vld [vmem:[%s3457_s1 + $0x1f8] sm:$0xff]  }
  0x20   : > { %2418 = vmatpush3.bf16.msra.mxu1 %v2734_v22  ;;  %2383 = vmatprep.subr.bf16.mxu0 %v2824_v1  ;;  %v769_v22 = vrot.slane %v3075_v19, 1 }
  0x21   : > { %2419 = vmatprep.subr.bf16.mxu1 %v2824_v1 }
  0x23   : > { %2384 = vmatpush3.bf16.msra.mxu0 %v2735_v23  ;;  %v2767_v23 = vld [vmem:[%s3457_s1 + $0x148] sm:$0xff]  }
  0x24   : > { %2420 = vmatpush3.bf16.msra.mxu1 %v2736_v24  ;;  %2441 = vmatprep.subr.bf16.mxu0 %v2824_v1  ;;  %v567_v24 = vsel %vm562_vm2, %v564_v12, %v566_v21  ;;  %v2785_v12 = vld [vmem:[%s3457_s1 + $0x1c0] sm:$0xff]  }
  0x25   : > { %2477 = vmatprep.subr.bf16.mxu1 %v2824_v1 }
  0x26   : > { %2386 = vmatmul.mubr.bf16.vlgmr.msra.gmra.mrb[0].mxu0 %v256_v29  ;;  %v568_v29 = vrot.slane %v2954_v33, 1 }
  0x27   : > { %2422 = vmatmul.mubr.bf16.vlgmr.msra.gmra.mrb[0].mxu1 %v2022_v14  ;;  %2442 = vmatpush3.bf16.msra.mxu0 %v2739_v28  ;;  %v767_v14 = vrot.slane %v3057_v10, 1  ;;  %v2770_v28 = vld [vmem:[%s3457_s1 + $0x150] sm:$0xff]   ;;  %v2784_v10 = vld [vmem:[%s3457_s1 + $0x188] sm:$0xff]  }
  0x28   : > { %2443 = vmatprep.subr.bf16.mxu0 %v2824_v1  ;;  %2389 = vmatprep.mubr.msk.bf16.mxu0 %vm2825_vm0, %v2824_v1 }
  0x29   : > { %2425 = vmatprep.mubr.msk.bf16.mxu1 %vm2825_vm0, %v2824_v1  ;;  %2478 = vmatpush3.bf16.msra.mxu1 %v2742_v32  ;;  %v768_v18 = vsel %vm562_vm2, %v766_v13, %v767_v14  ;;  %v770_v26 = vsel %vm562_vm2, %v767_v14, %v769_v22  ;;  %v2772_v32 = vld [vmem:[%s3457_s1 + $0x158] sm:$0xff]  }
  0x2a   : > { %2479 = vmatprep.subr.bf16.mxu1 %v2824_v1 }
  0x2b   : > { %2444 = vmatpush3.bf16.msra.mxu0 %v2740_v34  ;;  %v2771_v34 = vld [vmem:[%s3457_s1 + $0x120] sm:$0xff]  }
  0x2c   : > { %2445 = vmatprep.subr.bf16.mxu0 %v2824_v1 }
  0x2d   : > { %2480 = vmatpush3.bf16.msra.mxu1 %v2744_v37  ;;  %v2774_v37 = vld [vmem:[%s3457_s1 + $0x160] sm:$0xff]  }
  0x2e   : > { %2390 = vmatmul.mubr.bf16.gmra.mrb[4].mxu0 %v264_v39  ;;  %2481 = vmatprep.subr.bf16.mxu1 %v2824_v1  ;;  %v2775_v39 = vld [vmem:[%s3457_s1 + $0x128] sm:$0xff]  }
  0x2f   : > { %2426 = vmatmul.mubr.bf16.gmra.mrb[4].mxu1 %v2915_v15  ;;  %2446 = vmatpush3.bf16.msra.mxu0 %v2743_v40  ;;  %v2765_v15 = vld [vmem:[%s3457_s1 + $0x140] sm:$0xff]   ;;  %v773_v40 = vrot.slane %v3128_v36, 1 }
  0x30   : > { %2393 = vmatprep.mubr.msk.bf16.mxu0 %vm2825_vm0, %v2824_v1  ;;  %2429 = vmatprep.mubr.msk.bf16.mxu1 %vm2825_vm0, %v2824_v1 }
  0x31   : > { %2447 = vmatprep.subr.bf16.mxu0 %v2824_v1  ;;  %2482 = vmatpush3.bf16.msra.mxu1 %v2747_v42  ;;  %v571_v42 = vsel %vm562_vm2, %v568_v29, %v570_v38 }
  0x32   : > { %2483 = vmatprep.subr.bf16.mxu1 %v2824_v1 }
  0x33   : > { %2448 = vmatpush3.bf16.msra.mxu0 %v2746_v44 }
  0x34   : > { %2449 = vmatprep.subr.bf16.mxu0 %v2824_v1 }
  0x35   : > { %2484 = vmatpush3.bf16.msra.mxu1 %v2749_v47  ;;  %v572_v47 = vrot.slane %v3006_v53, 1  ;;  %v2780_v53 = vld [vmem:[%s3457_s1 + $0x138] sm:$0xff]  }
  0x36   : > { %2394 = vmatmul.mubr.bf16.gmra.mrb[8].mxu0 %v272_v49  ;;  %2485 = vmatprep.subr.bf16.mxu1 %v2824_v1  ;;  %v939_v49 = vshll.u32 %v3054_v9, 16 }
  0x37   : > { %2430 = vmatmul.mubr.bf16.gmra.mrb[8].mxu1 %v2938_v27  ;;  %2450 = vmatpush3.bf16.msra.mxu0 %v2748_v48  ;;  %v3101_v27 = vld [vmem:[%s2896_s6 + $0x1c] sm:$0xff]   ;;  %v936_v48 = vshrl.u32 %v3054_v9, 16 }
  0x38   : > { %2397 = vmatprep.mubr.msk.bf16.mxu0 %vm2825_vm0, %v2824_v1  ;;  %2433 = vmatprep.mubr.msk.bf16.mxu1 %vm2825_vm0, %v2824_v1  ;;  %v771_v31 = vrot.slane %v3101_v27, 1  ;;  %v962_v14 = vshrl.u32 %v3101_v27, 16 }
  0x39   : > { %2451 = vmatprep.subr.bf16.mxu0 %v2824_v1  ;;  %2486 = vmatpush3.bf16.msra.mxu1 %v2751_v52  ;;  %v775_v52 = vrot.slane %v2778_v43, 1  ;;  %v2794_v43 = vld [vmem:[%s3457_s1 + $0x1e8] sm:$0xff]  }
  0x3a   : > { %2487 = vmatprep.subr.bf16.mxu1 %v2824_v1  ;;  %v772_v35 = vsel %vm562_vm2, %v769_v22, %v771_v31  ;;  %v774_v44 = vsel %vm562_vm2, %v771_v31, %v773_v40 }
  0x3b   : > { %2452 = vmatpush3.bf16.msra.mxu0 %v2752_v56  ;;  %v573_v56 = vsel %vm562_vm2, %v570_v38, %v572_v47 }
  0x3c   : > { %2453 = vmatprep.subr.bf16.mxu0 %v2824_v1 }
  0x3d   : > { %2488 = vmatpush3.bf16.msra.mxu1 %v2753_v57  ;;  %v938_v57 = vrot.slane %v936_v48, 1 }
  0x3e   : > { %2398 = vmatmul.mubr.bf16.gmra.mrb[12].mxu0 %v280_v58  ;;  %2489 = vmatprep.subr.bf16.mxu1 %v2824_v1  ;;  %v941_v58 = vrot.slane %v939_v49, 2 }
  0x3f   : > { %2434 = vmatmul.mubr.bf16.gmra.mrb[12].mxu1 %v2954_v33  ;;  %2401 = vmatprep.mubr.msk.bf16.mxu0 %vm2825_vm0, %v2824_v1  ;;  %v569_v33 = vsel %vm562_vm2, %v566_v21, %v568_v29  ;;  %v964_v21 = vrot.slane %v962_v14, 1  ;;  %v1151_v29 = vrot.slane %v3101_v27, 2 }
  0x40   : > { %2437 = vmatprep.mubr.msk.bf16.mxu1 %vm2825_vm0, %v2824_v1  ;;  %2454 = vmatpush3.bf16.msra.mxu0 %v2754_v61  ;;  %v776_v61 = vsel %vm562_vm2, %v773_v40, %v775_v52  ;;  %v2797_v52 = vld [vmem:[%s3457_s1 + $0x1f0] sm:$0xff]  }
  0x41   : > { %2490 = vmatpush3.bf16.msra.mxu1 %v2756_v62  ;;  %2455 = vmatprep.subr.bf16.mxu0 %v2824_v1  ;;  %v2140_v62 = vcombine.low %v1124_v55, %v3048_v6  ;;  %v2798_v55 = vld [vmem:[%s3457_s1 + $0x1b8] sm:$0xff]  }
  0x42   : > { %2491 = vmatprep.subr.bf16.mxu1 %v2824_v1 }
  0x43   : > { %v1146_v4 = vrot.slane %v2140_v62, 2 }
  0x44   : > { %2456 = vmatpush3.bf16.msra.mxu0 %v2757_v63  ;;  %v942_v63 = vor.u32 %v941_v58, %v938_v57  ;;  %v1527_v58 = vshrl.u32 %v3273_v51, 16 }
  0x45   : > { %2492 = vmatpush3.bf16.msra.mxu1 %v2758_v3  ;;  %2513 = vmatprep.subr.bf16.mxu0 %v2824_v1  ;;  %v956_v3 = vshll.u32 %v3075_v19, 16  ;;  %v1148_v11 = vsel %vm1145_vm4, %v1146_v4, %v1147_v5  ;;  %v3296_v4 = vld [vmem:[%s2896_s6 + $0x18] sm:$0xff]  }
  0x46   : > { %2402 = vmatmul.mubr.bf16.gmra.mrb[16].mxu0 %v288_v7  ;;  %2549 = vmatprep.subr.bf16.mxu1 %v2824_v1  ;;  %v951_v6 = vsel %vm934_vm3, %v942_v63, %v950_v0  ;;  %v2783_v7 = vld [vmem:[%s3457_s1 + $0x180] sm:$0xff]   ;;  %v1529_v2 = vrot.slane %v1527_v58, 2 }
  0x47   : > { %2438 = vmatmul.mubr.bf16.gmra.mrb[16].mxu1 %v2983_v45  ;;  %2457 = vmatprep.mubr.msk.bf16.mxu0 %vm2825_vm0, %v2824_v1  ;;  %v2777_v45 = vld [vmem:[%s3457_s1 + $0x130] sm:$0xff]   ;;  %v958_v9 = vrot.slane %v956_v3, 2  ;;  %v1532_v3 = vrot.slane %v1530_v59, 3 }
  0x48   : > { %2493 = vmatprep.mubr.msk.bf16.mxu1 %vm2825_vm0, %v2824_v1 }
  0x49   : > { %v959_v13 = vor.u32 %v958_v9, %v955_v8  ;;  %v1533_v8 = vor.u32 %v1532_v3, %v1529_v2  ;;  %v1536_v9 = vshrl.u32 %v3296_v4, 16 }
  0x4b   : > { %v1538_v14 = vrot.slane %v1536_v9, 2 }
  0x4e   : > { %2458 = vmatmul.mubr.bf16.vlgmr.msra.gmra.mrb[20].mxu0 %v565_v16  ;;  %v965_v16 = vshll.u32 %v3101_v27, 16 }
  0x4f   : > { %2494 = vmatmul.mubr.bf16.vlgmr.msra.gmra.mrb[20].mxu1 %v768_v18  ;;  %2514 = vmatpush3.bf16.msra.mxu0 %v2762_v17  ;;  %v1149_v17 = vrot.slane %v3075_v19, 2  ;;  %v2787_v18 = vld [vmem:[%s3457_s1 + $0x1c8] sm:$0xff]  }
  0x50   : > { %2515 = vmatprep.subr.bf16.mxu0 %v2824_v1  ;;  %2461 = vmatprep.mubr.msk.bf16.mxu0 %vm2825_vm0, %v2824_v1  ;;  %v967_v22 = vrot.slane %v965_v16, 2 }
  0x51   : > { %2497 = vmatprep.mubr.msk.bf16.mxu1 %vm2825_vm0, %v2824_v1  ;;  %2550 = vmatpush3.bf16.msra.mxu1 %v2765_v15  ;;  %v960_v15 = vsel %vm934_vm3, %v950_v0, %v959_v13  ;;  %v1150_v19 = vsel %vm1145_vm4, %v1147_v5, %v1149_v17  ;;  %v1152_v27 = vsel %vm1145_vm4, %v1149_v17, %v1151_v29  ;;  %v3313_v17 = vld [vmem:[%s2896_s6 + $0x20] sm:$0xff]  }
  0x52   : > { %2551 = vmatprep.subr.bf16.mxu1 %v2824_v1 }
  0x53   : > { %2516 = vmatpush3.bf16.msra.mxu0 %v2763_v20  ;;  %v2786_v20 = vld [vmem:[%s3457_s1 + $0x190] sm:$0xff]  }
  0x54   : > { %2517 = vmatprep.subr.bf16.mxu0 %v2824_v1 }
  0x55   : > { %2552 = vmatpush3.bf16.msra.mxu1 %v2767_v23  ;;  %v2789_v23 = vld [vmem:[%s3457_s1 + $0x1d0] sm:$0xff]  }
  0x56   : > { %2462 = vmatmul.mubr.bf16.gmra.mrb[24].mxu0 %v567_v24  ;;  %2553 = vmatprep.subr.bf16.mxu1 %v2824_v1  ;;  %v968_v24 = vor.u32 %v967_v22, %v964_v21  ;;  %v1545_v21 = vshrl.u32 %v3313_v17, 16  ;;  %v1548_v22 = vshll.u32 %v3313_v17, 16 }
  0x57   : > { %2498 = vmatmul.mubr.bf16.gmra.mrb[24].mxu1 %v770_v26  ;;  %2518 = vmatpush3.bf16.msra.mxu0 %v2766_v25  ;;  %v2788_v25 = vld [vmem:[%s3457_s1 + $0x198] sm:$0xff]   ;;  %v971_v26 = vshrl.u32 %v3128_v36, 16 }
  0x58   : > { %2465 = vmatprep.mubr.msk.bf16.mxu0 %vm2825_vm0, %v2824_v1  ;;  %2501 = vmatprep.mubr.msk.bf16.mxu1 %vm2825_vm0, %v2824_v1  ;;  %v969_v31 = vsel %vm934_vm3, %v959_v13, %v968_v24 }
  0x59   : > { %2519 = vmatprep.subr.bf16.mxu0 %v2824_v1  ;;  %2554 = vmatpush3.bf16.msra.mxu1 %v2770_v28  ;;  %v974_v28 = vshll.u32 %v3128_v36, 16 }
  0x5a   : > { %2555 = vmatprep.subr.bf16.mxu1 %v2824_v1 }
  0x5b   : > { %2520 = vmatpush3.bf16.msra.mxu0 %v2769_v30  ;;  %v2791_v30 = vld [vmem:[%s3457_s1 + $0x1d8] sm:$0xff]  }
  0x5c   : > { %2521 = vmatprep.subr.bf16.mxu0 %v2824_v1 }
  0x5d   : > { %2556 = vmatpush3.bf16.msra.mxu1 %v2772_v32  ;;  %v2790_v32 = vld [vmem:[%s3457_s1 + $0x1a0] sm:$0xff]  }
  0x5e   : > { %2466 = vmatmul.mubr.bf16.gmra.mrb[28].mxu0 %v569_v33  ;;  %2557 = vmatprep.subr.bf16.mxu1 %v2824_v1  ;;  %v973_v33 = vrot.slane %v971_v26, 1  ;;  %v1550_v26 = vrot.slane %v1548_v22, 3 }
  0x5f   : > { %2502 = vmatmul.mubr.bf16.gmra.mrb[28].mxu1 %v772_v35  ;;  %2522 = vmatpush3.bf16.msra.mxu0 %v2771_v34  ;;  %v976_v34 = vrot.slane %v974_v28, 2  ;;  %v2796_v35 = vld [vmem:[%s2896_s6 + $0x2c] ss:$0 sps:$4 sm:$0x33]  }
  0x60   : > { %2469 = vmatprep.mubr.msk.bf16.mxu0 %vm2825_vm0, %v2824_v1  ;;  %2505 = vmatprep.mubr.msk.bf16.mxu1 %vm2825_vm0, %v2824_v1  ;;  %v980_v40 = vshrl.u32 %v2796_v35, 16  ;;  %v3334_v28 = vld [vmem:[%s2896_s6 + $0x28] sm:$0xff]  }
  0x61   : > { %2523 = vmatprep.subr.bf16.mxu0 %v2824_v1  ;;  %2558 = vmatpush3.bf16.msra.mxu1 %v2774_v37  ;;  %v2792_v37 = vld [vmem:[%s3457_s1 + $0x1e0] sm:$0xff]   ;;  %v977_v38 = vor.u32 %v976_v34, %v973_v33  ;;  %v1557_v33 = vshll.u32 %v3334_v28, 16 }
  0x62   : > { %2559 = vmatprep.subr.bf16.mxu1 %v2824_v1  ;;  %v982_v47 = vrot.slane %v980_v40, 1  ;;  %v1356_v40 = vrot.slane %v3334_v28, 2 }
  0x63   : > { %2524 = vmatpush3.bf16.msra.mxu0 %v2775_v39  ;;  %v2793_v39 = vld [vmem:[%s3457_s1 + $0x1a8] sm:$0xff]  }
  0x64   : > { %2525 = vmatprep.subr.bf16.mxu0 %v2824_v1 }
  0x65   : > { %2560 = vmatpush3.bf16.msra.mxu1 %v2776_v41  ;;  %v983_v41 = vshll.u32 %v2796_v35, 16 }
  0x66   : > { %2470 = vmatmul.mubr.bf16.gmra.mrb[32].mxu0 %v571_v42  ;;  %2561 = vmatprep.subr.bf16.mxu1 %v2824_v1  ;;  %v1153_v42 = vrot.slane %v3128_v36, 2  ;;  %v2795_v36 = vld [vmem:[%s3457_s1 + $0x1b0] sm:$0xff]  }
  0x67   : > { %2506 = vmatmul.mubr.bf16.gmra.mrb[32].mxu1 %v774_v44  ;;  %2473 = vmatprep.mubr.msk.bf16.mxu0 %vm2825_vm0, %v2824_v1  ;;  %v1293_v44 = vld [vmem:[%s2896_s6 + $0x8] sm:$0xc]  ;;  %v985_v48 = vrot.slane %v983_v41, 2 }
  0x68   : > { %2509 = vmatprep.mubr.msk.bf16.mxu1 %vm2825_vm0, %v2824_v1  ;;  %2526 = vmatpush3.bf16.msra.mxu0 %v2777_v45  ;;  %v3262_v45 = vld [vmem:[%s2896_s6 + $0xc] sm:$0xf]  ;;  %v1154_v49 = vsel %vm1145_vm4, %v1151_v29, %v1153_v42  ;;  %v1354_v29 = vrot.slane %v3313_v17, 2 }
  0x69   : > { %2562 = vmatpush3.bf16.msra.mxu1 %v2779_v46  ;;  %2527 = vmatprep.subr.bf16.mxu0 %v2824_v1  ;;  %v978_v46 = vsel %vm934_vm3, %v968_v24, %v977_v38  ;;  %v2165_v50 = vcombine.low %v1293_v44, %v3262_v45  ;;  %v2810_v41 = vld [vmem:[%s3457_s1 + $0x228] sm:$0xff]  }
  0x6a   : > { %2563 = vmatprep.subr.bf16.mxu1 %v2824_v1 }
  0x6b   : > { %v1522_v57 = vshll.u32 %v2165_v50, 16  ;;  %v1349_v5 = vrot.slane %v2165_v50, 2 }
  0x6c   : > { %2528 = vmatpush3.bf16.msra.mxu0 %v2780_v53  ;;  %v986_v53 = vor.u32 %v985_v48, %v982_v47  ;;  %v2812_v47 = vld [vmem:[%s2896_s6 + $0x30] ss:$0 sps:$4 sm:$0x33]  }
  0x6d   : > { %2564 = vmatpush3.bf16.msra.mxu1 %v2781_v54  ;;  %2585 = vmatprep.subr.bf16.mxu0 %v2824_v1  ;;  %v1155_v54 = vrot.slane %v2796_v35, 2  ;;  %v1524_v0 = vrot.slane %v1522_v57, 3  ;;  %v2808_v35 = vld [vmem:[%s3457_s1 + $0x220] sm:$0xff]  }
  0x6e   : > { %2474 = vmatmul.mubr.bf16.gmra.mrb[36].mxu0 %v573_v56  ;;  %2621 = vmatprep.subr.bf16.mxu1 %v2824_v1  ;;  %v1519_v56 = vshrl.u32 %v2165_v50, 16 }
  0x6f   : > { %2510 = vmatmul.mubr.bf16.gmra.mrb[36].mxu1 %v776_v61  ;;  %2529 = vmatprep.mubr.msk.bf16.mxu0 %vm2825_vm0, %v2824_v1  ;;  %v987_v61 = vsel %vm934_vm3, %v977_v38, %v986_v53  ;;  %v1156_v62 = vsel %vm1145_vm4, %v1153_v42, %v1155_v54  ;;  %v1559_v38 = vrot.slane %v1557_v33, 3  ;;  %v2814_v54 = vld [vmem:[%s3457_s1 + $0x238] sm:$0xff]  }
  0x70   : > { %2565 = vmatprep.mubr.msk.bf16.mxu1 %vm2825_vm0, %v2824_v1  ;;  %v1521_v63 = vrot.slane %v1519_v56, 2 }
  0x76   : > { %2530 = vmatmul.mubr.bf16.vlgmr.msra.gmra.mrb[40].mxu0 %v951_v6  ;;  %v1350_v6 = vrot.slane %v3273_v51, 2 }
  0x77   : > { %2566 = vmatmul.mubr.bf16.vlgmr.msra.gmra.mrb[40].mxu1 %v1148_v11  ;;  %2586 = vmatpush3.bf16.msra.mxu0 %v2783_v7  ;;  %v1525_v7 = vor.u32 %v1524_v0, %v1521_v63  ;;  %v1539_v11 = vshll.u32 %v3296_v4, 16  ;;  %v1732_v0 = vrot.slane %v3296_v4, 3 }
  0x78   : > { %2587 = vmatprep.subr.bf16.mxu0 %v2824_v1  ;;  %2533 = vmatprep.mubr.msk.bf16.mxu0 %vm2825_vm0, %v2824_v1 }
  0x79   : > { %2569 = vmatprep.mubr.msk.bf16.mxu1 %vm2825_vm0, %v2824_v1  ;;  %2622 = vmatpush3.bf16.msra.mxu1 %v2785_v12  ;;  %v1351_v12 = vsel %vm1145_vm4, %v1349_v5, %v1350_v6  ;;  %v1534_v13 = vsel %vm1517_vm5, %v1525_v7, %v1533_v8  ;;  %v1541_v16 = vrot.slane %v1539_v11, 3 }
  0x7a   : > { %2623 = vmatprep.subr.bf16.mxu1 %v2824_v1 }
  0x7b   : > { %2588 = vmatpush3.bf16.msra.mxu0 %v2784_v10  ;;  %v2802_v10 = vld [vmem:[%s3457_s1 + $0x200] sm:$0xff]  }
  0x7c   : > { %2589 = vmatprep.subr.bf16.mxu0 %v2824_v1 }
  0x7d   : > { %2624 = vmatpush3.bf16.msra.mxu1 %v2787_v18  ;;  %v2803_v18 = vld [vmem:[%s3457_s1 + $0x208] sm:$0xff]  }
  0x7e   : > { %2534 = vmatmul.mubr.bf16.gmra.mrb[44].mxu0 %v960_v15  ;;  %2625 = vmatprep.subr.bf16.mxu1 %v2824_v1  ;;  %v1352_v15 = vrot.slane %v3296_v4, 2 }
  0x7f   : > { %2570 = vmatmul.mubr.bf16.gmra.mrb[44].mxu1 %v1150_v19  ;;  %2590 = vmatpush3.bf16.msra.mxu0 %v2786_v20  ;;  %v1542_v20 = vor.u32 %v1541_v16, %v1538_v14 }
  0x80   : > { %2537 = vmatprep.mubr.msk.bf16.mxu0 %vm2825_vm0, %v2824_v1  ;;  %2573 = vmatprep.mubr.msk.bf16.mxu1 %vm2825_vm0, %v2824_v1  ;;  %v1353_v19 = vsel %vm1145_vm4, %v1350_v6, %v1352_v15  ;;  %v1355_v34 = vsel %vm1145_vm4, %v1352_v15, %v1354_v29 }
  0x81   : > { %2591 = vmatprep.subr.bf16.mxu0 %v2824_v1  ;;  %2626 = vmatpush3.bf16.msra.mxu1 %v2789_v23  ;;  %v2805_v23 = vld [vmem:[%s3457_s1 + $0x210] sm:$0xff]   ;;  %v1543_v24 = vsel %vm1517_vm5, %v1533_v8, %v1542_v20 }
  0x82   : > { %2627 = vmatprep.subr.bf16.mxu1 %v2824_v1 }
  0x83   : > { %2592 = vmatpush3.bf16.msra.mxu0 %v2788_v25  ;;  %v1547_v25 = vrot.slane %v1545_v21, 2 }
  0x84   : > { %2593 = vmatprep.subr.bf16.mxu0 %v2824_v1 }
  0x85   : > { %2628 = vmatpush3.bf16.msra.mxu1 %v2791_v30  ;;  %v2807_v30 = vld [vmem:[%s3457_s1 + $0x218] sm:$0xff]  }
  0x86   : > { %2538 = vmatmul.mubr.bf16.gmra.mrb[48].mxu0 %v969_v31  ;;  %2629 = vmatprep.subr.bf16.mxu1 %v2824_v1  ;;  %v1551_v31 = vor.u32 %v1550_v26, %v1547_v25 }
  0x87   : > { %2574 = vmatmul.mubr.bf16.gmra.mrb[48].mxu1 %v1152_v27  ;;  %2594 = vmatpush3.bf16.msra.mxu0 %v2790_v32  ;;  %v1554_v32 = vshrl.u32 %v3334_v28, 16 }
  0x88   : > { %2541 = vmatprep.mubr.msk.bf16.mxu0 %vm2825_vm0, %v2824_v1  ;;  %2577 = vmatprep.mubr.msk.bf16.mxu1 %vm2825_vm0, %v2824_v1  ;;  %v1552_v27 = vsel %vm1517_vm5, %v1542_v20, %v1551_v31 }
  0x89   : > { %2595 = vmatprep.subr.bf16.mxu0 %v2824_v1  ;;  %2630 = vmatpush3.bf16.msra.mxu1 %v2792_v37  ;;  %v1556_v37 = vrot.slane %v1554_v32, 2 }
  0x8a   : > { %2631 = vmatprep.subr.bf16.mxu1 %v2824_v1 }
  0x8b   : > { %2596 = vmatpush3.bf16.msra.mxu0 %v2793_v39  ;;  %v3356_v39 = vld [vmem:[%s2896_s6 + $0x30] ss:$0 sps:$4 sm:$0x77]   ;;  %v1560_v42 = vor.u32 %v1559_v38, %v1556_v37 }
  0x8c   : > { %2597 = vmatprep.subr.bf16.mxu0 %v2824_v1  ;;  %v1566_v44 = vshll.u32 %v3356_v39, 16 }
  0x8d   : > { %2632 = vmatpush3.bf16.msra.mxu1 %v2794_v43  ;;  %v1563_v43 = vshrl.u32 %v3356_v39, 16  ;;  %v1561_v48 = vsel %vm1517_vm5, %v1551_v31, %v1560_v42 }
  0x8e   : > { %2542 = vmatmul.mubr.bf16.gmra.mrb[52].mxu0 %v978_v46  ;;  %2633 = vmatprep.subr.bf16.mxu1 %v2824_v1  ;;  %v1357_v46 = vsel %vm1145_vm4, %v1354_v29, %v1356_v40  ;;  %v1568_v50 = vrot.slane %v1566_v44, 3 }
  0x8f   : > { %2578 = vmatmul.mubr.bf16.gmra.mrb[52].mxu1 %v1154_v49  ;;  %2545 = vmatprep.mubr.msk.bf16.mxu0 %vm2825_vm0, %v2824_v1  ;;  %v2811_v49 = vld [vmem:[%s3457_s1 + $0x230] sm:$0xff]  }
  0x90   : > { %2581 = vmatprep.mubr.msk.bf16.mxu1 %vm2825_vm0, %v2824_v1  ;;  %2598 = vmatpush3.bf16.msra.mxu0 %v2795_v36  ;;  %v1565_v36 = vrot.slane %v1563_v43, 2 }
  0x91   : > { %2634 = vmatpush3.bf16.msra.mxu1 %v2797_v52  ;;  %2599 = vmatprep.subr.bf16.mxu0 %v2824_v1  ;;  %v1358_v52 = vrot.slane %v2812_v47, 2 }
  0x92   : > { %2635 = vmatprep.subr.bf16.mxu1 %v2824_v1  ;;  %v1569_v53 = vor.u32 %v1568_v50, %v1565_v36 }
  0x93   : > { %v1359_v56 = vsel %vm1145_vm4, %v1356_v40, %v1358_v52 }
  0x94   : > { %2600 = vmatpush3.bf16.msra.mxu0 %v2798_v55  ;;  %v1707_v55 = vld [vmem:[%s2896_s6 + $0x8] sm:$0x8]  ;;  %v1570_v58 = vsel %vm1517_vm5, %v1560_v42, %v1569_v53  ;;  %s2710_s6 = smul.u32 40, %s3461_s13 }
  0x95   : > { %2636 = vmatpush3.bf16.msra.mxu1 %v2799_v60  ;;  %2657 = vmatprep.subr.bf16.mxu0 %v2824_v1  ;;  %v2220_v57 = vcombine.low %v1707_v55, %v3262_v45  ;;  %v1730_v60 = vrot.slane %v3273_v51, 3  ;;  %v1736_v45 = vrot.slane %v3334_v28, 3  ;;  %v1738_v51 = vrot.slane %v3356_v39, 3 }
  0x96   : > { %2546 = vmatmul.mubr.bf16.gmra.mrb[56].mxu0 %v987_v61  ;;  %2693 = vmatprep.subr.bf16.mxu1 %v2824_v1  ;;  %v1734_v61 = vrot.slane %v3313_v17, 3  ;;  %s3427_s21 = scalar_lea.vmem %s3459_s3, %s2710_s6 }
  0x97   : > { %2582 = vmatmul.mubr.bf16.gmra.mrb[56].mxu1 %v1156_v62  ;;  %2601 = vmatprep.mubr.msk.bf16.mxu0 %vm2825_vm0, %v2824_v1  ;;  %v1729_v59 = vrot.slane %v2220_v57, 3  ;;  %v1733_v2 = vsel %vm1728_vm6, %v1730_v60, %v1732_v0  ;;  %v1739_v3 = vsel %vm1728_vm6, %v1736_v45, %v1738_v51 }
  0x98   : > { %2637 = vmatprep.mubr.msk.bf16.mxu1 %vm2825_vm0, %v2824_v1  ;;  %v1737_v63 = vsel %vm1728_vm6, %v1734_v61, %v1736_v45  ;;  %v1735_v5 = vsel %vm1728_vm6, %v1732_v0, %v1734_v61 }
  0x99   : > { %v1731_v62 = vsel %vm1728_vm6, %v1729_v59, %v1730_v60 }
  0x9e   : > { %2602 = vmatmul.mubr.bf16.vlgmr.msra.gmra.mrb[60].mxu0 %v1351_v12 }
  0x9f   : > { %2638 = vmatmul.mubr.bf16.vlgmr.msra.gmra.mrb[60].mxu1 %v1534_v13  ;;  %2658 = vmatpush3.bf16.msra.mxu0 %v2802_v10 }
  0xa0   : > { %2659 = vmatprep.subr.bf16.mxu0 %v2824_v1  ;;  %2605 = vmatprep.mubr.msk.bf16.mxu0 %vm2825_vm0, %v2824_v1 }
  0xa1   : > { %2641 = vmatprep.mubr.msk.bf16.mxu1 %vm2825_vm0, %v2824_v1  ;;  %2701 = vmatpush3.bf16.msra.mxu1 %v2802_v10 }
  0xa2   : > { %2694 = vmatprep.subr.bf16.mxu1 %v2824_v1 }
  0xa3   : > { %2660 = vmatpush3.bf16.msra.mxu0 %v2803_v18 }
  0xa4   : > { %2661 = vmatprep.subr.bf16.mxu0 %v2824_v1 }
  0xa5   : > { %2702 = vmatpush3.bf16.msra.mxu1 %v2803_v18 }
  0xa6   : > { %2606 = vmatmul.mubr.bf16.gmra.mrb[64].mxu0 %v1353_v19  ;;  %2695 = vmatprep.subr.bf16.mxu1 %v2824_v1 }
  0xa7   : > { %2642 = vmatmul.mubr.bf16.gmra.mrb[64].mxu1 %v1543_v24  ;;  %2662 = vmatpush3.bf16.msra.mxu0 %v2805_v23 }
  0xa8   : > { %2609 = vmatprep.mubr.msk.bf16.mxu0 %vm2825_vm0, %v2824_v1  ;;  %2645 = vmatprep.mubr.msk.bf16.mxu1 %vm2825_vm0, %v2824_v1 }
  0xa9   : > { %2663 = vmatprep.subr.bf16.mxu0 %v2824_v1  ;;  %2703 = vmatpush3.bf16.msra.mxu1 %v2805_v23 }
  0xaa   : > { %2696 = vmatprep.subr.bf16.mxu1 %v2824_v1 }
  0xab   : > { %2664 = vmatpush3.bf16.msra.mxu0 %v2807_v30 }
  0xac   : > { %2665 = vmatprep.subr.bf16.mxu0 %v2824_v1 }
  0xad   : > { %2704 = vmatpush3.bf16.msra.mxu1 %v2807_v30 }
  0xae   : > { %2610 = vmatmul.mubr.bf16.gmra.mrb[68].mxu0 %v1355_v34  ;;  %2697 = vmatprep.subr.bf16.mxu1 %v2824_v1 }
  0xaf   : > { %2646 = vmatmul.mubr.bf16.gmra.mrb[68].mxu1 %v1552_v27  ;;  %2666 = vmatpush3.bf16.msra.mxu0 %v2808_v35 }
  0xb0   : > { %2613 = vmatprep.mubr.msk.bf16.mxu0 %vm2825_vm0, %v2824_v1  ;;  %2649 = vmatprep.mubr.msk.bf16.mxu1 %vm2825_vm0, %v2824_v1 }
  0xb1   : > { %2705 = vmatpush3.bf16.msra.mxu1 %v2808_v35  ;;  %2667 = vmatprep.subr.bf16.mxu0 %v2824_v1 }
  0xb2   : > { %2698 = vmatprep.subr.bf16.mxu1 %v2824_v1 }
  0xb3   : > { %2668 = vmatpush3.bf16.msra.mxu0 %v2810_v41 }
  0xb4   : > { %2669 = vmatprep.subr.bf16.mxu0 %v2824_v1 }
  0xb5   : > { %2706 = vmatpush3.bf16.msra.mxu1 %v2810_v41 }
  0xb6   : > { %2614 = vmatmul.mubr.bf16.gmra.mrb[72].mxu0 %v1357_v46  ;;  %2699 = vmatprep.subr.bf16.mxu1 %v2824_v1 }
  0xb7   : > { %2650 = vmatmul.mubr.bf16.gmra.mrb[72].mxu1 %v1561_v48  ;;  %2617 = vmatprep.mubr.msk.bf16.mxu0 %vm2825_vm0, %v2824_v1 }
  0xb8   : > { %2653 = vmatprep.mubr.msk.bf16.mxu1 %vm2825_vm0, %v2824_v1  ;;  %2670 = vmatpush3.bf16.msra.mxu0 %v2811_v49 }
  0xb9   : > { %2707 = vmatpush3.bf16.msra.mxu1 %v2811_v49  ;;  %2671 = vmatprep.subr.bf16.mxu0 %v2824_v1 }
  0xba   : > { %2700 = vmatprep.subr.bf16.mxu1 %v2824_v1 }
  0xbc   : > { %2672 = vmatpush3.bf16.msra.mxu0 %v2814_v54 }
  0xbd   : > { %2708 = vmatpush3.bf16.msra.mxu1 %v2814_v54 }
  0xbe   : > { %2618 = vmatmul.mubr.bf16.gmra.mrb[76].mxu0 %v1359_v56 }
  0xbf   : > { %2654 = vmatmul.mubr.bf16.gmra.mrb[76].mxu1 %v1570_v58  ;;  %2673 = vmatprep.mubr.msk.bf16.mxu0 %vm2825_vm0, %v2824_v1 }
  0xc0   : > { %2685 = vmatprep.mubr.msk.bf16.mxu1 %vm2825_vm0, %v2824_v1 }
  0xc6   : > { %2674 = vmatmul.mubr.bf16.vlgmr.msra.gmra.mrb[80].mxu0 %v1731_v62 }
  0xc7   : > { %2686 = vmatmul.mubr.bf16.vlgmr.msra.gmra.mrb[80].mxu1 %v1737_v63  ;;  %2677 = vmatprep.mubr.msk.bf16.mxu0 %vm2825_vm0, %v2824_v1 }
  0xc8   : > { %2689 = vmatprep.mubr.msk.bf16.mxu1 %vm2825_vm0, %v2824_v1 }
  0xce   : > { %2678 = vmatmul.mubr.bf16.gmra.mrb[84].mxu0 %v1733_v2 }
  0xcf   : > { %2690 = vmatmul.mubr.bf16.gmra.mrb[84].mxu1 %v1739_v3  ;;  %2681 = vmatprep.mubr.msk.bf16.mxu0 %vm2825_vm0, %v2824_v1 }
  0xd6   : > { %2682 = vmatmul.mubr.bf16.gmra.mrb[88].mxu0 %v1735_v5 }
  0xf9   : > { %v376_v6 = vpop.f32.mrb[0].mxu0 }
  0xfa   : > { %v502_v7 = vpop.f32.mrb[0].mxu1  ;;  %v2387_v4 = vpop.f32.mrb[1].mxu0 }
  0xfb   : > { %v503_v8 = vadd.f32 %v502_v7, %v376_v6  ;;  %v2423_v9 = vpop.f32.mrb[1].mxu1  ;;  %v379_v11 = vpop.f32.mrb[2].mxu0 }
  0xfc   : > { %v505_v12 = vpop.f32.mrb[2].mxu1  ;;  %v2388_v10 = vpop.f32.mrb[3].mxu0 }
  0xfd   : > { %v506_v13 = vadd.f32 %v505_v12, %v379_v11  ;;  %v2424_v14 = vpop.f32.mrb[3].mxu1 }
 0x101   : > { %v384_v16 = vpop.f32.mrb[4].mxu0 }
 0x102   : > { %v510_v17 = vpop.f32.mrb[4].mxu1  ;;  %v2391_v18 = vpop.f32.mrb[5].mxu0 }
 0x103   : > { %v511_v15 = vadd.f32 %v510_v17, %v384_v16  ;;  %v2427_v20 = vpop.f32.mrb[5].mxu1  ;;  %v387_v21 = vpop.f32.mrb[6].mxu0 }
 0x104   : > { %v513_v1 = vpop.f32.mrb[6].mxu1  ;;  %v2392_v22 = vpop.f32.mrb[7].mxu0 }
 0x105   : > { %v514_v19 = vadd.f32 %v513_v1, %v387_v21  ;;  %v2428_v23 = vpop.f32.mrb[7].mxu1 }
 0x109   : > { %v392_v24 = vpop.f32.mrb[8].mxu0 }
 0x10a   : > { %v518_v25 = vpop.f32.mrb[8].mxu1  ;;  %v2395_v26 = vpop.f32.mrb[9].mxu0 }
 0x10b   : > { %v519_v28 = vadd.f32 %v518_v25, %v392_v24  ;;  %v2431_v29 = vpop.f32.mrb[9].mxu1  ;;  %v395_v30 = vpop.f32.mrb[10].mxu0 }
 0x10c   : > { %v521_v31 = vpop.f32.mrb[10].mxu1  ;;  %v2396_v32 = vpop.f32.mrb[11].mxu0 }
 0x10d   : > { %v522_v33 = vadd.f32 %v521_v31, %v395_v30  ;;  %v2432_v34 = vpop.f32.mrb[11].mxu1 }
 0x111   : > { %v400_v35 = vpop.f32.mrb[12].mxu0 }
 0x112   : > { %v526_v27 = vpop.f32.mrb[12].mxu1  ;;  %v2399_v37 = vpop.f32.mrb[13].mxu0 }
 0x113   : > { %v527_v38 = vadd.f32 %v526_v27, %v400_v35  ;;  %v2435_v39 = vpop.f32.mrb[13].mxu1  ;;  %v403_v40 = vpop.f32.mrb[14].mxu0 }
 0x114   : > { %v529_v41 = vpop.f32.mrb[14].mxu1  ;;  %v2400_v42 = vpop.f32.mrb[15].mxu0 }
 0x115   : > { %v530_v43 = vadd.f32 %v529_v41, %v403_v40  ;;  %v2436_v44 = vpop.f32.mrb[15].mxu1 }
 0x119   : > { %v408_v46 = vpop.f32.mrb[16].mxu0 }
 0x11a   : > { %v534_v47 = vpop.f32.mrb[16].mxu1  ;;  %v2403_v48 = vpop.f32.mrb[17].mxu0 }
 0x11b   : > { %v535_v49 = vadd.f32 %v534_v47, %v408_v46  ;;  %v2439_v36 = vpop.f32.mrb[17].mxu1  ;;  %v411_v50 = vpop.f32.mrb[18].mxu0 }
 0x11c   : > { %v537_v52 = vpop.f32.mrb[18].mxu1  ;;  %v2404_v53 = vpop.f32.mrb[19].mxu0 }
 0x11d   : > { %v538_v54 = vadd.f32 %v537_v52, %v411_v50  ;;  %v2440_v55 = vpop.f32.mrb[19].mxu1 }
 0x121   : > { %v661_v56 = vpop.f32.mrb[20].mxu0 }
 0x122   : > { %v700_v57 = vadd.f32 %v661_v56, %v503_v8  ;;  %v2459_v58 = vpop.f32.mrb[21].mxu0  ;;  %v864_v59 = vpop.f32.mrb[20].mxu1 }
 0x123   : > { %v664_v60 = vpop.f32.mrb[22].mxu0  ;;  %v2495_v61 = vpop.f32.mrb[21].mxu1 }
 0x124   : > { %v701_v45 = vadd.f32 %v664_v60, %v506_v13  ;;  %v903_v62 = vadd.f32 %v864_v59, %v700_v57  ;;  %v2460_v63 = vpop.f32.mrb[23].mxu0  ;;  %v867_v0 = vpop.f32.mrb[22].mxu1 }
 0x125   : > { %v2496_v51 = vpop.f32.mrb[23].mxu1 }
 0x126   : > { %v904_v2 = vadd.f32 %v867_v0, %v701_v45 }
 0x129   : > { %v669_v3 = vpop.f32.mrb[24].mxu0 }
 0x12a   : > { %v702_v5 = vadd.f32 %v669_v3, %v511_v15  ;;  %v2463_v6 = vpop.f32.mrb[25].mxu0  ;;  %v872_v7 = vpop.f32.mrb[24].mxu1 }
 0x12b   : > { %v672_v4 = vpop.f32.mrb[26].mxu0  ;;  %v2499_v9 = vpop.f32.mrb[25].mxu1 }
 0x12c   : > { %v703_v11 = vadd.f32 %v672_v4, %v514_v19  ;;  %v905_v12 = vadd.f32 %v872_v7, %v702_v5  ;;  %v2464_v10 = vpop.f32.mrb[27].mxu0  ;;  %v875_v8 = vpop.f32.mrb[26].mxu1 }
 0x12d   : > { %v2500_v14 = vpop.f32.mrb[27].mxu1 }
 0x12e   : > { %v906_v16 = vadd.f32 %v875_v8, %v703_v11 }
 0x131   : > { %v677_v17 = vpop.f32.mrb[28].mxu0 }
 0x132   : > { %v704_v18 = vadd.f32 %v677_v17, %v519_v28  ;;  %v2467_v13 = vpop.f32.mrb[29].mxu0  ;;  %v880_v20 = vpop.f32.mrb[28].mxu1 }
 0x133   : > { %v680_v21 = vpop.f32.mrb[30].mxu0  ;;  %v2503_v1 = vpop.f32.mrb[29].mxu1 }
 0x134   : > { %v705_v22 = vadd.f32 %v680_v21, %v522_v33  ;;  %v907_v23 = vadd.f32 %v880_v20, %v704_v18  ;;  %v2468_v24 = vpop.f32.mrb[31].mxu0  ;;  %v883_v15 = vpop.f32.mrb[30].mxu1 }
 0x135   : > { %v2504_v25 = vpop.f32.mrb[31].mxu1 }
 0x136   : > { %v908_v26 = vadd.f32 %v883_v15, %v705_v22 }
 0x139   : > { %v685_v29 = vpop.f32.mrb[32].mxu0 }
 0x13a   : > { %v706_v30 = vadd.f32 %v685_v29, %v527_v38  ;;  %v2471_v19 = vpop.f32.mrb[33].mxu0  ;;  %v888_v31 = vpop.f32.mrb[32].mxu1 }
 0x13b   : > { %v688_v32 = vpop.f32.mrb[34].mxu0  ;;  %v2507_v34 = vpop.f32.mrb[33].mxu1 }
 0x13c   : > { %v707_v35 = vadd.f32 %v688_v32, %v530_v43  ;;  %v909_v27 = vadd.f32 %v888_v31, %v706_v30  ;;  %v2472_v37 = vpop.f32.mrb[35].mxu0  ;;  %v891_v28 = vpop.f32.mrb[34].mxu1 }
 0x13d   : > { %v2508_v39 = vpop.f32.mrb[35].mxu1 }
 0x13e   : > { %v910_v40 = vadd.f32 %v891_v28, %v707_v35 }
 0x141   : > { %v693_v41 = vpop.f32.mrb[36].mxu0 }
 0x142   : > { %v708_v42 = vadd.f32 %v693_v41, %v535_v49  ;;  %v2475_v33 = vpop.f32.mrb[37].mxu0  ;;  %v896_v44 = vpop.f32.mrb[36].mxu1 }
 0x143   : > { %v696_v46 = vpop.f32.mrb[38].mxu0  ;;  %v2511_v47 = vpop.f32.mrb[37].mxu1 }
 0x144   : > { %v709_v48 = vadd.f32 %v696_v46, %v538_v54  ;;  %v911_v36 = vadd.f32 %v896_v44, %v708_v42  ;;  %v2476_v50 = vpop.f32.mrb[39].mxu0  ;;  %v899_v38 = vpop.f32.mrb[38].mxu1 }
 0x145   : > { %v2512_v52 = vpop.f32.mrb[39].mxu1 }
 0x146   : > { %v912_v53 = vadd.f32 %v899_v38, %v709_v48 }
 0x149   : > { %v1075_v55 = vpop.f32.mrb[40].mxu0 }
 0x14a   : > { %v1114_v56 = vadd.f32 %v1075_v55, %v903_v62  ;;  %v2531_v43 = vpop.f32.mrb[41].mxu0  ;;  %v1244_v57 = vpop.f32.mrb[40].mxu1 }
 0x14b   : > { %v1078_v58 = vpop.f32.mrb[42].mxu0  ;;  %v2567_v59 = vpop.f32.mrb[41].mxu1 }
 0x14c   : > { %v1115_v60 = vadd.f32 %v1078_v58, %v904_v2  ;;  %v1283_v61 = vadd.f32 %v1244_v57, %v1114_v56  ;;  %v2532_v45 = vpop.f32.mrb[43].mxu0  ;;  %v1247_v49 = vpop.f32.mrb[42].mxu1 }
 0x14d   : > { %v2568_v63 = vpop.f32.mrb[43].mxu1 }
 0x14e   : > { %v1284_v0 = vadd.f32 %v1247_v49, %v1115_v60 }
 0x151   : > { %v1083_v51 = vpop.f32.mrb[44].mxu0 }
 0x152   : > { %v1116_v3 = vadd.f32 %v1083_v51, %v905_v12  ;;  %v2535_v54 = vpop.f32.mrb[45].mxu0  ;;  %v1252_v5 = vpop.f32.mrb[44].mxu1 }
 0x153   : > { %v1086_v6 = vpop.f32.mrb[46].mxu0  ;;  %v2571_v7 = vpop.f32.mrb[45].mxu1 }
 0x154   : > { %v1117_v4 = vadd.f32 %v1086_v6, %v906_v16  ;;  %v1285_v9 = vadd.f32 %v1252_v5, %v1116_v3  ;;  %v2536_v11 = vpop.f32.mrb[47].mxu0  ;;  %v1255_v62 = vpop.f32.mrb[46].mxu1 }
 0x155   : > { %v2572_v10 = vpop.f32.mrb[47].mxu1 }
 0x156   : > { %v1286_v8 = vadd.f32 %v1255_v62, %v1117_v4 }
 0x159   : > { %v1091_v14 = vpop.f32.mrb[48].mxu0 }
 0x15a   : > { %v1118_v17 = vadd.f32 %v1091_v14, %v907_v23  ;;  %v2539_v2 = vpop.f32.mrb[49].mxu0  ;;  %v1260_v18 = vpop.f32.mrb[48].mxu1 }
 0x15b   : > { %v1094_v13 = vpop.f32.mrb[50].mxu0  ;;  %v2575_v20 = vpop.f32.mrb[49].mxu1 }
 0x15c   : > { %v1119_v21 = vadd.f32 %v1094_v13, %v908_v26  ;;  %v1287_v1 = vadd.f32 %v1260_v18, %v1118_v17  ;;  %v2540_v22 = vpop.f32.mrb[51].mxu0  ;;  %v1263_v12 = vpop.f32.mrb[50].mxu1 }
 0x15d   : > { %v2576_v24 = vpop.f32.mrb[51].mxu1 }
 0x15e   : > { %v1288_v15 = vadd.f32 %v1263_v12, %v1119_v21 }
 0x161   : > { %v1099_v25 = vpop.f32.mrb[52].mxu0 }
 0x162   : > { %v1120_v29 = vadd.f32 %v1099_v25, %v909_v27  ;;  %v2543_v16 = vpop.f32.mrb[53].mxu0  ;;  %v1268_v30 = vpop.f32.mrb[52].mxu1 }
 0x163   : > { %v1102_v19 = vpop.f32.mrb[54].mxu0  ;;  %v2579_v31 = vpop.f32.mrb[53].mxu1 }
 0x164   : > { %v1121_v32 = vadd.f32 %v1102_v19, %v910_v40  ;;  %v1289_v34 = vadd.f32 %v1268_v30, %v1120_v29  ;;  %v2544_v35 = vpop.f32.mrb[55].mxu0  ;;  %v1271_v23 = vpop.f32.mrb[54].mxu1 }
 0x165   : > { %v2580_v37 = vpop.f32.mrb[55].mxu1 }
 0x166   : > { %v1290_v28 = vadd.f32 %v1271_v23, %v1121_v32 }
 0x169   : > { %v1107_v39 = vpop.f32.mrb[56].mxu0 }
 0x16a   : > { %v1122_v41 = vadd.f32 %v1107_v39, %v911_v36  ;;  %v2547_v26 = vpop.f32.mrb[57].mxu0  ;;  %v1276_v42 = vpop.f32.mrb[56].mxu1 }
 0x16b   : > { %v1110_v33 = vpop.f32.mrb[58].mxu0  ;;  %v2583_v44 = vpop.f32.mrb[57].mxu1 }
 0x16c   : > { %v1123_v46 = vadd.f32 %v1110_v33, %v912_v53  ;;  %v1291_v47 = vadd.f32 %v1276_v42, %v1122_v41  ;;  %v2548_v48 = vpop.f32.mrb[59].mxu0  ;;  %v1279_v27 = vpop.f32.mrb[58].mxu1 }
 0x16d   : > { %v2584_v50 = vpop.f32.mrb[59].mxu1 }
 0x16e   : > { %v1292_v38 = vadd.f32 %v1279_v27, %v1123_v46  ;;  %v2229_v50 = vld [vmem:[%s3458_s2] ss:$0 sm:$0xff] }
 0x171   : > { %v1447_v52 = vpop.f32.mrb[60].mxu0 }
 0x172   : > { %v1486_v55 = vadd.f32 %v1447_v52, %v1283_v61  ;;  %v2603_v40 = vpop.f32.mrb[61].mxu0  ;;  %v1658_v56 = vpop.f32.mrb[60].mxu1 }
 0x173   : > { %v1450_v43 = vpop.f32.mrb[62].mxu0  ;;  %v2639_v57 = vpop.f32.mrb[61].mxu1 }
 0x174   : > { %v1487_v58 = vadd.f32 %v1450_v43, %v1284_v0  ;;  %v1697_v59 = vadd.f32 %v1658_v56, %v1486_v55  ;;  %v2604_v60 = vpop.f32.mrb[63].mxu0  ;;  %v1661_v36 = vpop.f32.mrb[62].mxu1 }
 0x175   : > { %v2640_v45 = vpop.f32.mrb[63].mxu1 }
 0x176   : > { %v1698_v49 = vadd.f32 %v1661_v36, %v1487_v58 }
 0x179   : > { %v1455_v63 = vpop.f32.mrb[64].mxu0 }
 0x17a   : > { %v1488_v51 = vadd.f32 %v1455_v63, %v1285_v9  ;;  %v2607_v53 = vpop.f32.mrb[65].mxu0  ;;  %v1666_v3 = vpop.f32.mrb[64].mxu1 }
 0x17b   : > { %v1458_v54 = vpop.f32.mrb[66].mxu0  ;;  %v2643_v5 = vpop.f32.mrb[65].mxu1 }
 0x17c   : > { %v1489_v6 = vadd.f32 %v1458_v54, %v1286_v8  ;;  %v3412_v7 = vadd.f32 %v1666_v3, %v1488_v51  ;;  %v2608_v61 = vpop.f32.mrb[67].mxu0  ;;  %v1669_v4 = vpop.f32.mrb[66].mxu1 }
 0x17d   : > { %v2644_v11 = vpop.f32.mrb[67].mxu1 }
 0x17e   : > { %v3414_v62 = vadd.f32 %v1669_v4, %v1489_v6 }
 0x181   : > { %v1463_v0 = vpop.f32.mrb[68].mxu0 }
 0x182   : > { %v1490_v10 = vadd.f32 %v1463_v0, %v1287_v1  ;;  %v2611_v14 = vpop.f32.mrb[69].mxu0  ;;  %v1674_v17 = vpop.f32.mrb[68].mxu1 }
 0x183   : > { %v1466_v2 = vpop.f32.mrb[70].mxu0  ;;  %v2647_v18 = vpop.f32.mrb[69].mxu1 }
 0x184   : > { %v1491_v13 = vadd.f32 %v1466_v2, %v1288_v15  ;;  %v3416_v9 = vadd.f32 %v1674_v17, %v1490_v10  ;;  %v2612_v20 = vpop.f32.mrb[71].mxu0  ;;  %v1677_v21 = vpop.f32.mrb[70].mxu1 }
 0x185   : > { %v2648_v22 = vpop.f32.mrb[71].mxu1 }
 0x186   : > { %v3418_v8 = vadd.f32 %v1677_v21, %v1491_v13 }
 0x189   : > { %v1471_v12 = vpop.f32.mrb[72].mxu0 }
 0x18a   : > { %v1492_v24 = vadd.f32 %v1471_v12, %v1289_v34  ;;  %v2615_v25 = vpop.f32.mrb[73].mxu0  ;;  %v1682_v29 = vpop.f32.mrb[72].mxu1 }
 0x18b   : > { %v1474_v16 = vpop.f32.mrb[74].mxu0  ;;  %v2651_v30 = vpop.f32.mrb[73].mxu1 }
 0x18c   : > { %v1493_v19 = vadd.f32 %v1474_v16, %v1290_v28  ;;  %v1703_v1 = vadd.f32 %v1682_v29, %v1492_v24  ;;  %v2616_v31 = vpop.f32.mrb[75].mxu0  ;;  %v1685_v32 = vpop.f32.mrb[74].mxu1 }
 0x18d   : > { %v2652_v35 = vpop.f32.mrb[75].mxu1 }
 0x18e   : > { %v1704_v15 = vadd.f32 %v1685_v32, %v1493_v19 }
 0x191   : > { %v1479_v23 = vpop.f32.mrb[76].mxu0 }
 0x192   : > { %v1494_v37 = vadd.f32 %v1479_v23, %v1291_v47  ;;  %v2619_v39 = vpop.f32.mrb[77].mxu0  ;;  %v1690_v41 = vpop.f32.mrb[76].mxu1 }
 0x193   : > { %v1482_v26 = vpop.f32.mrb[78].mxu0  ;;  %v2655_v42 = vpop.f32.mrb[77].mxu1 }
 0x194   : > { %v1495_v33 = vadd.f32 %v1482_v26, %v1292_v38  ;;  %v1705_v44 = vadd.f32 %v1690_v41, %v1494_v37  ;;  %v2620_v34 = vpop.f32.mrb[79].mxu0  ;;  %v1693_v46 = vpop.f32.mrb[78].mxu1 }
 0x195   : > { %v2656_v48 = vpop.f32.mrb[79].mxu1 }
 0x196   : > { %v1706_v27 = vadd.f32 %v1693_v46, %v1495_v33 }
 0x199   : > { %v1827_v28 = vpop.f32.mrb[80].mxu0 }
 0x19a   : > { %v1866_v52 = vadd.f32 %v1827_v28, %v1697_v59  ;;  %v1851_v55 = vpop.f32.mrb[80].mxu1  ;;  %v2675_v40 = vpop.f32.mrb[81].mxu0 }
 0x19b   : > { %v1872_v47 = vadd.f32 %v1851_v55, %v1703_v1  ;;  %v2687_v56 = vpop.f32.mrb[81].mxu1  ;;  %v1830_v43 = vpop.f32.mrb[82].mxu0 }
 0x19c   : > { %v1883_v57 = vadd.f32 %v2229_v50, %v1866_v52  ;;  %v1867_v58 = vadd.f32 %v1830_v43, %v1698_v49  ;;  %v1854_v38 = vpop.f32.mrb[82].mxu1  ;;  %v2676_v60 = vpop.f32.mrb[83].mxu0 }
 0x19d   : > { %v1889_v36 = vadd.f32 %v2229_v50, %v1872_v47  ;;  %v1873_v59 = vadd.f32 %v1854_v38, %v1704_v15  ;;  %v2688_v45 = vpop.f32.mrb[83].mxu1 }
 0x19e   : > { %v2242_v63 = vpack.c.bf16 %v1883_v57, %v1883_v57  ;;  %v1884_v51 = vadd.f32 %v2229_v50, %v1867_v58 }
 0x19f   : > { %v2248_v53 = vpack.c.bf16 %v1889_v36, %v1889_v36  ;;  %v1890_v3 = vadd.f32 %v2229_v50, %v1873_v59 }
 0x1a0   : > { %1934 = vst.msk [vmem:[%s3427_s21] sm:$0xf] %vm1933_vm7, %v2242_v63  ;;  %v2243_v49 = vpack.c.bf16 %v1884_v51, %v1884_v51 }
 0x1a1   : > { %1940 = vst.msk [vmem:[%s3427_s21 + $0x18] sm:$0xf] %vm1933_vm7, %v2248_v53  ;;  %v2249_v54 = vpack.c.bf16 %v1890_v3, %v1890_v3  ;;  %v1835_v5 = vpop.f32.mrb[84].mxu0 }
 0x1a2   : > { %1935 = vst.msk [vmem:[%s3427_s21 + $0x4] sm:$0xf] %vm1933_vm7, %v2243_v49  ;;  %v1868_v6 = vadd.f32 %v1835_v5, %v3412_v7  ;;  %v1859_v61 = vpop.f32.mrb[84].mxu1  ;;  %v2679_v4 = vpop.f32.mrb[85].mxu0 }
 0x1a3   : > { %1941 = vst.msk [vmem:[%s3427_s21 + $0x1c] sm:$0xf] %vm1933_vm7, %v2249_v54  ;;  %v1874_v11 = vadd.f32 %v1859_v61, %v1705_v44  ;;  %v2691_v0 = vpop.f32.mrb[85].mxu1  ;;  %v1838_v10 = vpop.f32.mrb[86].mxu0 }
 0x1a4   : > { %v1885_v14 = vadd.f32 %v2229_v50, %v1868_v6  ;;  %v1869_v17 = vadd.f32 %v1838_v10, %v3414_v62  ;;  %v1862_v2 = vpop.f32.mrb[86].mxu1  ;;  %v2680_v18 = vpop.f32.mrb[87].mxu0 }
 0x1a5   : > { %v1891_v13 = vadd.f32 %v2229_v50, %v1874_v11  ;;  %v1875_v20 = vadd.f32 %v1862_v2, %v1706_v27  ;;  %v2692_v21 = vpop.f32.mrb[87].mxu1 }
 0x1a6   : > { %v2244_v7 = vpack.c.bf16 %v1885_v14, %v1885_v14  ;;  %v1886_v22 = vadd.f32 %v2229_v50, %v1869_v17 }
 0x1a7   : > { %v2250_v12 = vpack.c.bf16 %v1891_v13, %v1891_v13  ;;  %v1892_v24 = vadd.f32 %v2229_v50, %v1875_v20 }
 0x1a8   : > { %1936 = vst.msk [vmem:[%s3427_s21 + $0x8] sm:$0xf] %vm1933_vm7, %v2244_v7  ;;  %v2245_v25 = vpack.c.bf16 %v1886_v22, %v1886_v22 }
 0x1a9   : > { %1942 = vst.msk [vmem:[%s3427_s21 + $0x20] sm:$0xf] %vm1933_vm7, %v2250_v12  ;;  %v2251_v29 = vpack.c.bf16 %v1892_v24, %v1892_v24  ;;  %v1843_v16 = vpop.f32.mrb[88].mxu0 }
 0x1aa   : > { %1937 = vst.msk [vmem:[%s3427_s21 + $0xc] sm:$0xf] %vm1933_vm7, %v2245_v25  ;;  %v1870_v62 = vadd.f32 %v1843_v16, %v3416_v9  ;;  %v2683_v30 = vpop.f32.mrb[89].mxu0 }
 0x1ab   : > { %1943 = vst.msk [vmem:[%s3427_s21 + $0x24] sm:$0xf] %vm1933_vm7, %v2251_v29  ;;  %v1846_v19 = vpop.f32.mrb[90].mxu0 }
 0x1ac   : > { %v1887_v1 = vadd.f32 %v2229_v50, %v1870_v62  ;;  %v1871_v31 = vadd.f32 %v1846_v19, %v3418_v8  ;;  %v2684_v32 = vpop.f32.mrb[91].mxu0 }
 0x1ae   : > { %v2246_v35 = vpack.c.bf16 %v1887_v1, %v1887_v1  ;;  %v1888_v15 = vadd.f32 %v2229_v50, %v1871_v31 }
 0x1b0   : > { %1938 = vst.msk [vmem:[%s3427_s21 + $0x10] sm:$0xf] %vm1933_vm7, %v2246_v35  ;;  %v2247_v23 = vpack.c.bf16 %v1888_v15, %v1888_v15 }
 0x1b2   : > { %1939 = vst.msk [vmem:[%s3427_s21 + $0x14] sm:$0xf] %vm1933_vm7, %v2247_v23 }
 0x1b3 PF: > { %s13_s12 = sadd.s32 1, %s2822_s12  }
 0x1b4   : > { %p10_p4 = scmp.ge.s32.totalorder %s13_s12, 4  }
 0x1b6   :  { %12 = sbr.rel (!%p10_p4) target bundleno = 1 (0x1), region = 70 }

// kernel: feature_extraction.5
= control target key start
LH: loop header
LB: loop body
LE: loop exit
PB: predicated region body
PF: predicated region fallthrough
CT: control target
= control target key end

     0   :  { %s6426_s15 = smov 0   ;;  %s7799_s0 = inlined_call_operand.vmem [shape: bf16[2,102,32], index: 0, kind: input, shape index: {}]   ;;  %s7800_s1 = inlined_call_operand.vmem [shape: bf16[13,288,32], index: 1, kind: input, shape index: {}]   ;;  %s7801_s2 = inlined_call_operand.vmem [shape: f32[13,1,32], index: 2, kind: input, shape index: {}]   ;;  %s7802_s3 = inlined_call_operand.vmem [shape: f32[80,1], index: 3, kind: input, shape index: {}]   ;;  %s7803_s4 = inlined_call_operand.vmem [shape: bf16[2,80,32], index: 4, kind: output, shape index: {}]  }
   0x1 LB: > { %s4959_s16 = sadd.s32 4294967295, %s6389_s15   ;;  %p4963_p0 = scmp.ge.s32.totalorder %s6389_s15, 1  ;;  %s6389_s15 = sphi %s6426_s15, %s14_s15  }
   0x2   : > { %p162_p1 = scmp.lt.s32.totalorder %s6389_s15, 3 }
   0x4   : > { %p163_p2 = pnand %p4963_p0, %p162_p1 }
   0x5   : > { %p188_p3 = scmp.lt.s32.totalorder (!%p163_p2), %s4959_s16, 1  ;;  %v6437_v0 = vld [vmem:[%s7802_s3] sm:$0xff] (!%p163_p2)  ;;  %v6442_v1 = vld [vmem:[%s7802_s3 + $0x8] sm:$0xff] (!%p163_p2)  ;;  %v6447_v2 = vld [vmem:[%s7802_s3 + $0x10] sm:$0xff] (!%p163_p2)  ;;  %vm222_vm0 = vcmask (!%p163_p2), 257024   ;;  %vm235_vm1 = vcmask (!%p163_p2), 256000  }
   0x6   : > { %166 = sbr.rel (%p163_p2) target bundleno = 1285 (0x505), region = 36  ;;  %v6452_v3 = vld [vmem:[%s7802_s3 + $0x18] sm:$0xff] (!%p163_p2)  ;;  %v6457_v4 = vld [vmem:[%s7802_s3 + $0x20] sm:$0xff] (!%p163_p2)  ;;  %v6462_v5 = vld [vmem:[%s7802_s3 + $0x28] sm:$0xff] (!%p163_p2)  ;;  %v6395_v9 = vmov (!%p163_p2), 0   ;;  %vm273_vm2 = vcmask (!%p163_p2), 254976  }
   0x7   : > { %v6467_v6 = vld [vmem:[%s7802_s3 + $0x30] sm:$0xff] (!%p163_p2)  ;;  %v6472_v7 = vld [vmem:[%s7802_s3 + $0x38] sm:$0xff] (!%p163_p2)  ;;  %v6477_v8 = vld [vmem:[%s7802_s3 + $0x40] sm:$0xff] (!%p163_p2)  ;;  %272 = vst.msk [vmem:[#allocation3] sm:$0xf] (!%p163_p2), %vm222_vm0, %v6395_v9  ;;  %vm279_vm3 = vcmask (!%p163_p2), 257025  }
   0x8   : > { %285 = vst.msk [vmem:[#allocation3 + $0x30] sm:$0x7] (!%p163_p2), %vm235_vm1, %v6395_v9  ;;  %v6484_v10 = vld [vmem:[%s7802_s3 + $0x48] sm:$0xff] (!%p163_p2)  ;;  %vm274_vm4 = vsmask.f32 (!%p163_p2), 1280  ;;  %vm259_vm8 = vcmask (!%p163_p2), 261123  }
   0x9   : > { %v276_v11 = vld [vmem:[#allocation3 + $0x4] sm:$0x3] (!%p163_p2)  ;;  %vm6487_vm5 = vmand (!%p163_p2), %vm273_vm2, %vm274_vm4  ;;  %vm280_vm6 = vsmask.f32 (!%p163_p2), 7942  ;;  %v282_v13 = vld [vmem:[#allocation3 + $0x2c] sm:$0xe] (!%p163_p2) }
   0xa   : > { %v277_v14 = vsel (!%p163_p2), %vm6487_vm5, 0, %v276_v11  ;;  %vm6493_vm7 = vmand (!%p163_p2), %vm279_vm3, %vm280_vm6  ;;  %vm261_vm9 = vcmask (!%p163_p2), 261120   ;;  %s6553_s20 = smov (!%p163_p2), 0  }
   0xb   : > { %278 = vst [vmem:[#allocation3 + $0x4] sm:$0x3] (!%p163_p2), %v277_v14  ;;  %v283_v16 = vsel (!%p163_p2), %vm6493_vm7, 0, %v282_v13 }
   0xc   : > { %284 = vst [vmem:[#allocation3 + $0x2c] sm:$0xe] (!%p163_p2), %v283_v16 }
   0xd   : > { %s7811_s16 = smov (!%p188_p3, %s4959_s16), 1 }
   0xe   : > { %s6231_s11 = smul.u32 52, %s7811_s16 }
   0xf   : > { %s6232_s12 = smul.u32 40, %s7811_s16 }
  0x10   : > { %s6500_s17 = scalar_lea.vmem %s7799_s0, %s6231_s11 }
  0x11   : > { %s6507_s19 = scalar_lea.vmem %s7803_s4, %s6232_s12  ;;  %v209_v17 = vld [vmem:[%s6500_s17] sm:$0xf]  ;;  %v210_v18 = vld [vmem:[%s6500_s17 + $0x4] sm:$0xf]  ;;  %v211_v19 = vld [vmem:[%s6500_s17 + $0x8] sm:$0xf] }
  0x12   : > { %223 = vst.msk [vmem:[#allocation2] sm:$0xf] %vm222_vm0, %v209_v17  ;;  %224 = vst.msk [vmem:[#allocation2 + $0x4] sm:$0xf] %vm222_vm0, %v210_v18  ;;  %v212_v20 = vld [vmem:[%s6500_s17 + $0xc] sm:$0xf] }
  0x13   : > { %225 = vst.msk [vmem:[#allocation2 + $0x8] sm:$0xf] %vm222_vm0, %v211_v19  ;;  %v213_v21 = vld [vmem:[%s6500_s17 + $0x10] sm:$0xf]  ;;  %v214_v22 = vld [vmem:[%s6500_s17 + $0x14] sm:$0xf] }
  0x14   : > { %226 = vst.msk [vmem:[#allocation2 + $0xc] sm:$0xf] %vm222_vm0, %v212_v20  ;;  %227 = vst.msk [vmem:[#allocation2 + $0x10] sm:$0xf] %vm222_vm0, %v213_v21  ;;  %v215_v23 = vld [vmem:[%s6500_s17 + $0x18] sm:$0xf] }
  0x15   : > { %228 = vst.msk [vmem:[#allocation2 + $0x14] sm:$0xf] %vm222_vm0, %v214_v22  ;;  %v216_v24 = vld [vmem:[%s6500_s17 + $0x1c] sm:$0xf]  ;;  %v217_v25 = vld [vmem:[%s6500_s17 + $0x20] sm:$0xf] }
  0x16   : > { %229 = vst.msk [vmem:[#allocation2 + $0x18] sm:$0xf] %vm222_vm0, %v215_v23  ;;  %230 = vst.msk [vmem:[#allocation2 + $0x1c] sm:$0xf] %vm222_vm0, %v216_v24  ;;  %v218_v26 = vld [vmem:[%s6500_s17 + $0x24] sm:$0xf] }
  0x17   : > { %231 = vst.msk [vmem:[#allocation2 + $0x20] sm:$0xf] %vm222_vm0, %v217_v25  ;;  %v219_v27 = vld [vmem:[%s6500_s17 + $0x28] sm:$0xf]  ;;  %v220_v28 = vld [vmem:[%s6500_s17 + $0x2c] sm:$0xf] }
  0x18   : > { %232 = vst.msk [vmem:[#allocation2 + $0x24] sm:$0xf] %vm222_vm0, %v218_v26  ;;  %233 = vst.msk [vmem:[#allocation2 + $0x28] sm:$0xf] %vm222_vm0, %v219_v27  ;;  %v221_v29 = vld [vmem:[%s6500_s17 + $0x30] sm:$0x7] }
  0x19   : > { %234 = vst.msk [vmem:[#allocation2 + $0x2c] sm:$0xf] %vm222_vm0, %v220_v28  ;;  %v237_v30 = vld [vmem:[%s6500_s17 + $0x4] sm:$0xe]  ;;  %v5386_v31 = vld [vmem:[%s6500_s17 + $0x8] sm:$0xff]   ;;  %v5387_v35 = vld [vmem:[%s6500_s17 + $0x10] sm:$0xff]  }
  0x1a   : > { %236 = vst.msk [vmem:[#allocation2 + $0x30] sm:$0x7] %vm235_vm1, %v221_v29  ;;  %v248_v32 = vunpack.c.l.bf16 %v237_v30  ;;  %v5372_v33 = vunpack.c.l.bf16 %v5386_v31  ;;  %v5373_v34 = vunpack.c.h.bf16 %v5386_v31  ;;  %v5388_v36 = vld [vmem:[%s6500_s17 + $0x18] sm:$0xff]   ;;  %v5389_v37 = vld [vmem:[%s6500_s17 + $0x20] sm:$0xff]   ;;  %v5376_v38 = vunpack.c.l.bf16 %v5387_v35  ;;  %v246_v42 = vld [vmem:[%s6500_s17 + $0x28] sm:$0xf] }
  0x1b   : > { %v5377_v39 = vunpack.c.h.bf16 %v5387_v35  ;;  %v5380_v40 = vunpack.c.l.bf16 %v5388_v36  ;;  %v5381_v41 = vunpack.c.h.bf16 %v5388_v36  ;;  %v247_v43 = vld [vmem:[%s6500_s17 + $0x2c] sm:$0x3]  ;;  %v5384_v44 = vunpack.c.l.bf16 %v5389_v37 }
  0x1c   : > { %260 = vst.msk [vmem:[#allocation4 - $0x3] sm:$0xf8] %vm259_vm8, %v248_v32  ;;  %v5385_v45 = vunpack.c.h.bf16 %v5389_v37  ;;  %v257_v46 = vunpack.c.l.bf16 %v246_v42  ;;  %v258_v47 = vunpack.c.l.bf16 %v247_v43 }
  0x1d   : > { %262 = vst.msk [vmem:[#allocation4 + $0x5] sm:$0xff] %vm261_vm9, %v5372_v33  ;;  %263 = vst.msk [vmem:[#allocation4 + $0xd] sm:$0xff] %vm261_vm9, %v5373_v34 }
  0x1e   : > { %264 = vst.msk [vmem:[#allocation4 + $0x15] sm:$0xff] %vm261_vm9, %v5376_v38  ;;  %265 = vst.msk [vmem:[#allocation4 + $0x1d] sm:$0xff] %vm261_vm9, %v5377_v39 }
  0x1f   : > { %266 = vst.msk [vmem:[#allocation4 + $0x25] sm:$0xff] %vm261_vm9, %v5380_v40  ;;  %267 = vst.msk [vmem:[#allocation4 + $0x2d] sm:$0xff] %vm261_vm9, %v5381_v41 }
  0x20   : > { %268 = vst.msk [vmem:[#allocation4 + $0x35] sm:$0xff] %vm261_vm9, %v5384_v44  ;;  %269 = vst.msk [vmem:[#allocation4 + $0x3d] sm:$0xff] %vm261_vm9, %v5385_v45 }
  0x21   : > { %270 = vst.msk [vmem:[#allocation4 + $0x45] sm:$0xff] %vm261_vm9, %v257_v46 }
  0x22   : > { %271 = vst.msk [vmem:[#allocation4 + $0x4d] sm:$0x7] %vm235_vm1, %v258_v47 }
  0x23 LB: >> { %v332_v48 = vld [vmem:[#allocation2] sm:$0xf]  ;;  %v6558_v49 = vld [vmem:[#allocation2 + $0x4] sm:$0xf]  ;;  %v6396_v50 = vmov 0.0   ;;  %v6563_v52 = vld [vmem:[#allocation2 + $0x8] sm:$0xff]   ;;  %s6393_s20 = sphi %s6553_s20, %s291_s20  }
  0x24   : >> { %5579 = vmatprep.subr.bf16.mxu0 %v6396_v50  ;;  %5603 = vmatprep.subr.bf16.mxu1 %v6396_v50  ;;  %v4969_v51 = vcombine.low %v332_v48, %v6558_v49  ;;  %s5339_s21 = smul.u32 288, %s6393_s20  ;;  %vm6397_vm10 = vmmov 0   ;;  %v380_v55 = vshll.u32 %v6563_v52, 16  ;;  %vm371_vm11 = vsmask.f32 7424  ;;  %v6577_v58 = vld [vmem:[#allocation2 + $0x10] sm:$0xff]  }
  0x25   : >> { %5583 = vmatprep.mubr.msk.bf16.mxu0 %vm6397_vm10, %v6396_v50  ;;  %5607 = vmatprep.mubr.msk.bf16.mxu1 %vm6397_vm10, %v6396_v50  ;;  %v384_v9 = vshrl.u32 %v6563_v52, 16  ;;  %v388_v14 = vshll.u32 %v6577_v58, 16  ;;  %v6593_v19 = vld [vmem:[#allocation2 + $0x18] sm:$0xff]   ;;  %v392_v23 = vshrl.u32 %v6577_v58, 16  ;;  %v6613_v27 = vld [vmem:[#allocation2 + $0x20] sm:$0xff]   ;;  %v6646_v45 = vld [vmem:[#allocation2 + $0xc] sm:$0xff]  }
  0x26   : >> { %v373_v53 = vshrl.u32 %v4969_v51, 16  ;;  %v375_v54 = vshll.u32 %v4969_v51, 16  ;;  %s6574_s24 = scalar_lea.vmem %s7800_s1, %s5339_s21  ;;  %v382_v62 = vrot.slane %v380_v55, 1  ;;  %v396_v24 = vshll.u32 %v6593_v19, 16  ;;  %v611_v39 = vld [vmem:[#allocation2] sm:$0xe] }
  0x27   : >> { %v6257_v56 = vld [vmem:[%s6574_s24 + $0x10] sm:$0xff]   ;;  %v6258_v59 = vld [vmem:[%s6574_s24] sm:$0xff]   ;;  %v6259_v60 = vld [vmem:[%s6574_s24 + $0x18] sm:$0xff]   ;;  %v390_v18 = vrot.slane %v388_v14, 1  ;;  %v400_v29 = vshrl.u32 %v6593_v19, 16  ;;  %v404_v30 = vshll.u32 %v6613_v27, 16  ;;  %v4989_v43 = vcombine.low %v611_v39, %v6558_v49 }
  0x28   : >> { %v377_v57 = vrot.slane %v375_v54, 1  ;;  %5580 = vmatpush3.bf16.msra.mxu0 %v6257_v56  ;;  %5604 = vmatpush3.bf16.msra.mxu1 %v6258_v59  ;;  %v6260_v63 = vld [vmem:[%s6574_s24 + $0x8] sm:$0xff]   ;;  %v6263_v13 = vld [vmem:[%s6574_s24 + $0x20] sm:$0xff]   ;;  %v6269_v16 = vld [vmem:[%s6574_s24 + $0x30] sm:$0xff]   ;;  %v386_v17 = vor.u32 %v384_v9, %v382_v62  ;;  %v398_v26 = vrot.slane %v396_v24, 1  ;;  %v408_v35 = vshrl.u32 %v6613_v27, 16 }
  0x29   : >> { %5581 = vmatprep.subr.bf16.mxu0 %v6396_v50  ;;  %5605 = vmatprep.subr.bf16.mxu1 %v6396_v50  ;;  %v6266_v20 = vld [vmem:[%s6574_s24 + $0x28] sm:$0xff]   ;;  %v6270_v21 = vld [vmem:[%s6574_s24 + $0x38] sm:$0xff]   ;;  %v394_v25 = vor.u32 %v392_v23, %v390_v18  ;;  %v406_v33 = vrot.slane %v404_v30, 1  ;;  %v737_v40 = vld [vmem:[#allocation2 + $0x4] sm:$0xe]  ;;  %vm615_vm12 = vcmask 1046528  }
  0x2a   : >> { %v378_v61 = vor.u32 %v377_v57, %v373_v53  ;;  %v391_v22 = vsel %vm371_vm11, %v386_v17, %v390_v18  ;;  %v6621_v31 = vld [vmem:[#allocation2 + $0x28] ss:$0 sps:$4 sm:$0x11]   ;;  %v402_v32 = vor.u32 %v400_v29, %v398_v26  ;;  %v616_v46 = vrot.slane %v4989_v43, 1  ;;  %v6272_v53 = vld [vmem:[%s6574_s24 + $0x40] sm:$0xff]   ;;  %v6660_v54 = vld [vmem:[#allocation2 + $0x14] sm:$0xff]  }
  0x2b   : >> { %v399_v28 = vsel %vm371_vm11, %v394_v25, %v398_v26  ;;  %v412_v36 = vshll.u32 %v6621_v31, 16  ;;  %v410_v37 = vor.u32 %v408_v35, %v406_v33  ;;  %v6639_v41 = vld [vmem:[#allocation2 + $0x8] sm:$0xf]  ;;  %v617_v47 = vrot.slane %v6563_v52, 1  ;;  %v6280_v57 = vld [vmem:[%s6574_s24 + $0x50] sm:$0xff]   ;;  %s4966_s25 = sshll.u32 %s6393_s20, 1 }
  0x2c   : >> { %5582 = vmatpush3.bf16.msra.mxu0 %v6259_v60  ;;  %v383_v11 = vsel %vm371_vm11, %v378_v61, %v382_v62  ;;  %5606 = vmatpush3.bf16.msra.mxu1 %v6260_v63  ;;  %v407_v34 = vsel %vm371_vm11, %v402_v32, %v406_v33  ;;  %v6644_v44 = vcombine.low %v737_v40, %v6639_v41  ;;  %v777_v49 = vrot.slane %v6646_v45, 1  ;;  %v6277_v59 = vld [vmem:[%s6574_s24 + $0x48] sm:$0xff]   ;;  %v6281_v60 = vld [vmem:[%s6574_s24 + $0x58] sm:$0xff]   ;;  %s6936_s28 = scalar_lea.vmem %s7801_s2, %s4966_s25  ;;  %s291_s20 = sadd.s32 1, %s6393_s20  }
  0x2d   : >> { %5627 = vmatprep.subr.bf16.mxu0 %v6396_v50  ;;  %5651 = vmatprep.subr.bf16.mxu1 %v6396_v50  ;;  %v414_v38 = vrot.slane %v412_v36, 1  ;;  %v619_v56 = vrot.slane %v6577_v58, 1  ;;  %v621_v63 = vrot.slane %v6593_v19, 1  ;;  %v6692_v14 = vld [vmem:[#allocation2 + $0x24] sm:$0xff]   ;;  %v911_v24 = vshrl.u32 %v6646_v45, 16  ;;  %p288_p4 = scmp.ge.s32.totalorder %s291_s20, 6  }
  0x2e   : >> { %v776_v48 = vrot.slane %v6644_v44, 1  ;;  %v783_v17 = vrot.slane %v6692_v14, 1  ;;  %v906_v23 = vshll.u32 %v6644_v44, 16  ;;  %v914_v25 = vshll.u32 %v6646_v45, 16 }
  0x2f   : >> { %5584 = vmatmul.mubr.msk.bf16.vlgmr.msra.gmra.mrb[0].mxu0 %vm261_vm9, %v383_v11  ;;  %5608 = vmatmul.mubr.msk.bf16.vlgmr.msra.gmra.mrb[0].mxu1 %vm261_vm9, %v4969_v51  ;;  %v415_v42 = vsel %vm371_vm11, %v410_v37, %v414_v38  ;;  %v618_v51 = vsel %vm615_vm12, %v616_v46, %v617_v47  ;;  %v620_v61 = vsel %vm615_vm12, %v617_v47, %v619_v56  ;;  %v920_v37 = vshrl.u32 %v6660_v54, 16  ;;  %v6286_v47 = vld [vmem:[%s6574_s24 + $0x70] sm:$0xff]  }
  0x30   : >> { %5628 = vmatpush3.bf16.msra.mxu0 %v6263_v13  ;;  %5587 = vmatprep.mubr.msk.bf16.mxu0 %vm6397_vm10, %v6396_v50  ;;  %v778_v55 = vsel %vm615_vm12, %v776_v48, %v777_v49  ;;  %v622_v11 = vsel %vm615_vm12, %v619_v56, %v621_v63  ;;  %v908_v30 = vrot.slane %v906_v23, 2  ;;  %v916_v32 = vrot.slane %v914_v25, 2 }
  0x31   : >> { %5611 = vmatprep.mubr.msk.bf16.mxu1 %vm6397_vm10, %v6396_v50  ;;  %5629 = vmatprep.subr.bf16.mxu0 %v6396_v50  ;;  %v923_v38 = vshll.u32 %v6660_v54, 16  ;;  %vm901_vm13 = vsmask.f32 6400  ;;  %v1071_v40 = vrot.slane %v6646_v45, 2  ;;  %vm1069_vm14 = vcmask 1045504  }
  0x32   : >> { %5652 = vmatpush3.bf16.msra.mxu1 %v6269_v16  ;;  %v623_v16 = vrot.slane %v6613_v27, 1  ;;  %v922_v43 = vrot.slane %v920_v37, 1  ;;  %vm1355_vm15 = vsmask.f32 5376  ;;  %vm1523_vm1 = vcmask 1044480  }
  0x33   : >> { %5653 = vmatprep.subr.bf16.mxu1 %v6396_v50  ;;  %vm1783_vm6 = vsmask.f32 5392 }
  0x34   : >> { %5630 = vmatpush3.bf16.msra.mxu0 %v6266_v20  ;;  %v624_v18 = vsel %vm615_vm12, %v621_v63, %v623_v16  ;;  %v6279_v20 = vld [vmem:[#allocation2 + $0x2c] ss:$0 sps:$4 sm:$0x11]  }
  0x35   : >> { %5675 = vmatprep.subr.bf16.mxu0 %v6396_v50  ;;  %v785_v26 = vrot.slane %v6279_v20, 1  ;;  %v1191_v20 = vld [vmem:[#allocation2 + $0x8] sm:$0xc] }
  0x36   : >> { %5654 = vmatpush3.bf16.msra.mxu1 %v6270_v21  ;;  %v625_v21 = vrot.slane %v6621_v31, 1  ;;  %v913_v31 = vrot.slane %v911_v24, 1 }
  0x37   : >> { %5588 = vmatmul.mubr.msk.bf16.gmra.mrb[4].mxu0 %vm261_vm9, %v391_v22  ;;  %5699 = vmatprep.subr.bf16.mxu1 %v6396_v50  ;;  %v903_v22 = vshrl.u32 %v6644_v44, 16  ;;  %v786_v33 = vsel %vm615_vm12, %v783_v17, %v785_v26  ;;  %v925_v44 = vrot.slane %v923_v38, 2 }
  0x38   : >> { %5612 = vmatmul.mubr.msk.bf16.gmra.mrb[4].mxu1 %vm261_vm9, %v6563_v52  ;;  %5591 = vmatprep.mubr.msk.bf16.mxu0 %vm6397_vm10, %v6396_v50  ;;  %v779_v52 = vrot.slane %v6660_v54, 1  ;;  %v917_v36 = vor.u32 %v916_v32, %v913_v31 }
  0x39   : >> { %5615 = vmatprep.mubr.msk.bf16.mxu1 %vm6397_vm10, %v6396_v50  ;;  %v905_v29 = vrot.slane %v903_v22, 1  ;;  %v926_v48 = vor.u32 %v925_v44, %v922_v43 }
  0x3a   : >> { %v780_v62 = vsel %vm615_vm12, %v777_v49, %v779_v52 }
  0x3b   : >> { %v909_v35 = vor.u32 %v908_v30, %v905_v29  ;;  %v927_v56 = vsel %vm901_vm13, %v917_v36, %v926_v48 }
  0x3f   : >> { %5592 = vmatmul.mubr.msk.bf16.gmra.mrb[8].mxu0 %vm261_vm9, %v399_v28  ;;  %v626_v28 = vsel %vm615_vm12, %v623_v16, %v625_v21  ;;  %v6766_v21 = vld [vmem:[#allocation2 + $0xc] sm:$0xf] }
  0x40   : >> { %5616 = vmatmul.mubr.msk.bf16.gmra.mrb[8].mxu1 %vm261_vm9, %v6577_v58  ;;  %5595 = vmatprep.mubr.msk.bf16.mxu0 %vm6397_vm10, %v6396_v50  ;;  %v6675_v58 = vld [vmem:[#allocation2 + $0x1c] sm:$0xff]   ;;  %v5026_v26 = vcombine.low %v1191_v20, %v6766_v21 }
  0x41   : >> { %5619 = vmatprep.mubr.msk.bf16.mxu1 %vm6397_vm10, %v6396_v50  ;;  %v781_v9 = vrot.slane %v6675_v58, 1  ;;  %v929_v49 = vshrl.u32 %v6675_v58, 16  ;;  %v932_v45 = vshll.u32 %v6675_v58, 16 }
  0x42   : >> { %v1357_v29 = vshrl.u32 %v5026_v26, 16  ;;  %v1360_v30 = vshll.u32 %v5026_v26, 16 }
  0x43   : >> { %v782_v13 = vsel %vm615_vm12, %v779_v52, %v781_v9 }
  0x44   : >> { %v1362_v37 = vrot.slane %v1360_v30, 3 }
  0x47   : >> { %5596 = vmatmul.mubr.msk.bf16.gmra.mrb[12].mxu0 %vm261_vm9, %v407_v34 }
  0x48   : >> { %5620 = vmatmul.mubr.msk.bf16.gmra.mrb[12].mxu1 %vm261_vm9, %v6593_v19  ;;  %5599 = vmatprep.mubr.msk.bf16.mxu0 %vm6397_vm10, %v6396_v50  ;;  %v784_v19 = vsel %vm615_vm12, %v781_v9, %v783_v17 }
  0x49   : >> { %5623 = vmatprep.mubr.msk.bf16.mxu1 %vm6397_vm10, %v6396_v50 }
  0x4f   : >> { %5600 = vmatmul.mubr.msk.bf16.gmra.mrb[16].mxu0 %vm261_vm9, %v415_v42  ;;  %v6282_v42 = vld [vmem:[%s6574_s24 + $0x60] sm:$0xff]  }
  0x50   : >> { %5624 = vmatmul.mubr.msk.bf16.gmra.mrb[16].mxu1 %vm261_vm9, %v6613_v27  ;;  %5631 = vmatprep.mubr.msk.bf16.mxu0 %vm6397_vm10, %v6396_v50  ;;  %v1065_v27 = vld [vmem:[#allocation2 + $0x4] sm:$0xc] }
  0x51   : >> { %5655 = vmatprep.mubr.msk.bf16.mxu1 %vm6397_vm10, %v6396_v50  ;;  %v5018_v34 = vcombine.low %v1065_v27, %v6639_v41  ;;  %v918_v41 = vsel %vm901_vm13, %v909_v35, %v917_v36  ;;  %v6771_v27 = vld [vmem:[#allocation2 + $0x10] sm:$0xff]   ;;  %v6398_v35 = vmov 0   ;;  %v1359_v36 = vrot.slane %v1357_v29, 2 }
  0x52   : >> { %v1365_v31 = vshrl.u32 %v6771_v27, 16  ;;  %v1368_v32 = vshll.u32 %v6771_v27, 16  ;;  %6255 = vset.pattern.permute.xlu0 %v6398_v35  ;;  %6256 = vset.pattern.permute.xlu1 %v6398_v35 }
  0x53   : >> { %v1070_v39 = vrot.slane %v5018_v34, 2  ;;  %1695 = vperm.xlu0 %6255, %v6437_v0   ;;  %1705 = vperm.xlu1 %6256, %v6447_v2   ;;  %v1363_v43 = vor.u32 %v1362_v37, %v1359_v36 }
  0x54   : >> { %v1367_v38 = vrot.slane %v1365_v31, 2 }
  0x55   : >> { %v1072_v46 = vsel %vm1069_vm14, %v1070_v39, %v1071_v40  ;;  %v1370_v39 = vrot.slane %v1368_v32, 3 }
  0x57   : >> { %5632 = vmatmul.mubr.msk.bf16.vlgmr.msra.gmra.mrb[20].mxu0 %vm261_vm9, %v618_v51  ;;  %v6284_v51 = vld [vmem:[%s6574_s24 + $0x68] sm:$0xff]   ;;  %v1371_v44 = vor.u32 %v1370_v39, %v1367_v38  ;;  %1700 = vperm.xlu0 %6255, %v6442_v1   ;;  %v1525_v39 = vrot.slane %v6771_v27, 3 }
  0x58   : >> { %5676 = vmatpush3.bf16.msra.mxu0 %v6272_v53  ;;  %5656 = vmatmul.mubr.msk.bf16.vlgmr.msra.gmra.mrb[20].mxu1 %vm261_vm9, %v778_v55  ;;  %v1073_v53 = vrot.slane %v6660_v54, 2  ;;  %v6287_v55 = vld [vmem:[%s6574_s24 + $0x78] sm:$0xff]  }
  0x59   : >> { %5635 = vmatprep.mubr.msk.bf16.mxu0 %vm6397_vm10, %v6396_v50  ;;  %5659 = vmatprep.mubr.msk.bf16.mxu1 %vm6397_vm10, %v6396_v50 }
  0x5a   : >> { %5677 = vmatprep.subr.bf16.mxu0 %v6396_v50  ;;  %5700 = vmatpush3.bf16.msra.mxu1 %v6280_v57  ;;  %v931_v57 = vrot.slane %v929_v49, 1  ;;  %v1074_v52 = vsel %vm1069_vm14, %v1071_v40, %v1073_v53  ;;  %v6783_v40 = vld [vmem:[#allocation2 + $0x18] sm:$0xff]   ;;  %v6290_v49 = vld [vmem:[%s6574_s24 + $0x80] sm:$0xff]  }
  0x5b   : >> { %5701 = vmatprep.subr.bf16.mxu1 %v6396_v50  ;;  %1710 = vperm.xlu1 %6256, %v6452_v3  }
  0x5c   : >> { %5678 = vmatpush3.bf16.msra.mxu0 %v6277_v59  ;;  %v934_v59 = vrot.slane %v932_v45, 2  ;;  %v1372_v45 = vsel %vm1355_vm15, %v1363_v43, %v1371_v44  ;;  %1715 = vperm.xlu0 %6255, %v6457_v4  }
  0x5d   : >> { %5723 = vmatprep.subr.bf16.mxu0 %v6396_v50 }
  0x5e   : >> { %5702 = vmatpush3.bf16.msra.mxu1 %v6281_v60  ;;  %v935_v54 = vor.u32 %v934_v59, %v931_v57  ;;  %v938_v60 = vshrl.u32 %v6692_v14, 16  ;;  %v6293_v57 = vld [vmem:[%s6574_s24 + $0x88] sm:$0xff]  }
  0x5f   : >> { %5636 = vmatmul.mubr.msk.bf16.gmra.mrb[24].mxu0 %vm261_vm9, %v620_v61  ;;  %5747 = vmatprep.subr.bf16.mxu1 %v6396_v50  ;;  %v941_v61 = vshll.u32 %v6692_v14, 16 }
  0x60   : >> { %5660 = vmatmul.mubr.msk.bf16.gmra.mrb[24].mxu1 %vm261_vm9, %v780_v62  ;;  %5639 = vmatprep.mubr.msk.bf16.mxu0 %vm6397_vm10, %v6396_v50  ;;  %v1075_v62 = vrot.slane %v6675_v58, 2  ;;  %v936_v63 = vsel %vm901_vm13, %v926_v48, %v935_v54  ;;  %v940_v9 = vrot.slane %v938_v60, 1  ;;  %v1077_v58 = vrot.slane %v6692_v14, 2 }
  0x61   : >> { %5663 = vmatprep.mubr.msk.bf16.mxu1 %vm6397_vm10, %v6396_v50  ;;  %1720 = vperm.xlu1 %6256, %v6462_v5  }
  0x62   : >> { %v1076_v16 = vsel %vm1069_vm14, %v1073_v53, %v1075_v62  ;;  %v1078_v25 = vsel %vm1069_vm14, %v1075_v62, %v1077_v58  ;;  %1725 = vperm.xlu0 %6255, %v6467_v6  }
  0x65   : >> { %1730 = vperm.xlu1 %6256, %v6472_v7  }
  0x66   : >> { %1735 = vperm.xlu0 %6255, %v6477_v8  }
  0x67   : >> { %5640 = vmatmul.mubr.msk.bf16.gmra.mrb[28].mxu0 %vm261_vm9, %v622_v11  ;;  %v943_v11 = vrot.slane %v941_v61, 2 }
  0x68   : >> { %5664 = vmatmul.mubr.msk.bf16.gmra.mrb[28].mxu1 %vm261_vm9, %v782_v13  ;;  %5643 = vmatprep.mubr.msk.bf16.mxu0 %vm6397_vm10, %v6396_v50  ;;  %v6285_v13 = vld [vmem:[#allocation2 + $0x2c] ss:$0 sps:$4 sm:$0x33]  }
  0x69   : >> { %5667 = vmatprep.mubr.msk.bf16.mxu1 %vm6397_vm10, %v6396_v50  ;;  %v944_v17 = vor.u32 %v943_v11, %v940_v9  ;;  %v6820_v9 = vld [vmem:[#allocation2 + $0x28] sm:$0xff]   ;;  %1740 = vperm.xlu1 %6256, %v6484_v10  }
  0x6b   : >> { %v945_v22 = vsel %vm901_vm13, %v935_v54, %v944_v17 }
  0x6f   : >> { %5644 = vmatmul.mubr.msk.bf16.gmra.mrb[32].mxu0 %vm261_vm9, %v624_v18  ;;  %v947_v18 = vshrl.u32 %v6285_v13, 16 }
  0x70   : >> { %5668 = vmatmul.mubr.msk.bf16.gmra.mrb[32].mxu1 %vm261_vm9, %v784_v19  ;;  %5647 = vmatprep.mubr.msk.bf16.mxu0 %vm6397_vm10, %v6396_v50  ;;  %v950_v19 = vshll.u32 %v6285_v13, 16 }
  0x71   : >> { %5671 = vmatprep.mubr.msk.bf16.mxu1 %vm6397_vm10, %v6396_v50  ;;  %v949_v23 = vrot.slane %v947_v18, 1 }
  0x72   : >> { %v952_v24 = vrot.slane %v950_v19, 2 }
  0x74   : >> { %v953_v14 = vor.u32 %v952_v24, %v949_v23  ;;  %v1237_v23 = vrot.slane %v6820_v9, 2 }
  0x77   : >> { %5648 = vmatmul.mubr.msk.bf16.gmra.mrb[36].mxu0 %vm261_vm9, %v626_v28  ;;  %v1079_v28 = vrot.slane %v6285_v13, 2 }
  0x78   : >> { %5672 = vmatmul.mubr.msk.bf16.gmra.mrb[36].mxu1 %vm261_vm9, %v786_v33  ;;  %5679 = vmatprep.mubr.msk.bf16.mxu0 %vm6397_vm10, %v6396_v50  ;;  %v954_v33 = vsel %vm901_vm13, %v944_v17, %v953_v14  ;;  %v1395_v17 = vshll.u32 %v6820_v9, 16 }
  0x79   : >> { %5703 = vmatprep.mubr.msk.bf16.mxu1 %vm6397_vm10, %v6396_v50  ;;  %v1080_v34 = vsel %vm1069_vm14, %v1077_v58, %v1079_v28  ;;  %v6295_v28 = vld [vmem:[#allocation2 + $0x30] ss:$0 sps:$4 sm:$0x33]  }
  0x7a   : >> { %v1397_v20 = vrot.slane %v1395_v17, 3  ;;  %v1239_v32 = vrot.slane %v6295_v28, 2 }
  0x7c   : >> { %v1240_v35 = vsel %vm1069_vm14, %v1237_v23, %v1239_v32 }
  0x7f   : >> { %5680 = vmatmul.mubr.msk.bf16.vlgmr.msra.gmra.mrb[40].mxu0 %vm261_vm9, %v918_v41  ;;  %v1230_v41 = vrot.slane %v5026_v26, 2 }
  0x80   : >> { %5724 = vmatpush3.bf16.msra.mxu0 %v6282_v42  ;;  %5704 = vmatmul.mubr.msk.bf16.vlgmr.msra.gmra.mrb[40].mxu1 %vm261_vm9, %v1072_v46  ;;  %v1231_v42 = vrot.slane %v6771_v27, 2  ;;  %v1374_v46 = vshrl.u32 %v6783_v40, 16 }
  0x81   : >> { %5683 = vmatprep.mubr.msk.bf16.mxu0 %vm6397_vm10, %v6396_v50  ;;  %5707 = vmatprep.mubr.msk.bf16.mxu1 %vm6397_vm10, %v6396_v50 }
  0x82   : >> { %5725 = vmatprep.subr.bf16.mxu0 %v6396_v50  ;;  %5748 = vmatpush3.bf16.msra.mxu1 %v6286_v47  ;;  %v1377_v47 = vshll.u32 %v6783_v40, 16  ;;  %v1232_v48 = vsel %vm1069_vm14, %v1230_v41, %v1231_v42 }
  0x83   : >> { %5749 = vmatprep.subr.bf16.mxu1 %v6396_v50 }
  0x84   : >> { %5726 = vmatpush3.bf16.msra.mxu0 %v6284_v51  ;;  %v1376_v51 = vrot.slane %v1374_v46, 2  ;;  %v1379_v53 = vrot.slane %v1377_v47, 3 }
  0x85   : >> { %5771 = vmatprep.subr.bf16.mxu0 %v6396_v50 }
  0x86   : >> { %5750 = vmatpush3.bf16.msra.mxu1 %v6287_v55  ;;  %v6801_v55 = vld [vmem:[#allocation2 + $0x20] sm:$0xff]   ;;  %v1380_v59 = vor.u32 %v1379_v53, %v1376_v51 }
  0x87   : >> { %5684 = vmatmul.mubr.msk.bf16.gmra.mrb[44].mxu0 %vm261_vm9, %v927_v56  ;;  %5795 = vmatprep.subr.bf16.mxu1 %v6396_v50  ;;  %v1233_v56 = vrot.slane %v6783_v40, 2  ;;  %v1386_v54 = vshll.u32 %v6801_v55, 16  ;;  %v1235_v11 = vrot.slane %v6801_v55, 2  ;;  %v1529_v27 = vrot.slane %v6801_v55, 3 }
  0x88   : >> { %5708 = vmatmul.mubr.msk.bf16.gmra.mrb[44].mxu1 %vm261_vm9, %v1074_v52  ;;  %5687 = vmatprep.mubr.msk.bf16.mxu0 %vm6397_vm10, %v6396_v50  ;;  %v1383_v52 = vshrl.u32 %v6801_v55, 16  ;;  %v1381_v61 = vsel %vm1355_vm15, %v1371_v44, %v1380_v59  ;;  %v1531_v44 = vrot.slane %v6820_v9, 3 }
  0x89   : >> { %5711 = vmatprep.mubr.msk.bf16.mxu1 %vm6397_vm10, %v6396_v50  ;;  %v1234_v60 = vsel %vm1069_vm14, %v1231_v42, %v1233_v56  ;;  %v1236_v18 = vsel %vm1069_vm14, %v1233_v56, %v1235_v11  ;;  %v1238_v14 = vsel %vm1069_vm14, %v1235_v11, %v1237_v23 }
  0x8a   : >> { %v1385_v62 = vrot.slane %v1383_v52, 2 }
  0x8f   : >> { %5688 = vmatmul.mubr.msk.bf16.gmra.mrb[48].mxu0 %vm261_vm9, %v936_v63  ;;  %v1388_v63 = vrot.slane %v1386_v54, 3 }
  0x90   : >> { %5712 = vmatmul.mubr.msk.bf16.gmra.mrb[48].mxu1 %vm261_vm9, %v1076_v16  ;;  %5691 = vmatprep.mubr.msk.bf16.mxu0 %vm6397_vm10, %v6396_v50  ;;  %v1392_v16 = vshrl.u32 %v6820_v9, 16 }
  0x91   : >> { %5715 = vmatprep.mubr.msk.bf16.mxu1 %vm6397_vm10, %v6396_v50  ;;  %v1389_v13 = vor.u32 %v1388_v63, %v1385_v62 }
  0x92   : >> { %v1394_v58 = vrot.slane %v1392_v16, 2 }
  0x93   : >> { %v1390_v19 = vsel %vm1355_vm15, %v1380_v59, %v1389_v13 }
  0x94   : >> { %v1398_v24 = vor.u32 %v1397_v20, %v1394_v58 }
  0x96   : >> { %v1399_v29 = vsel %vm1355_vm15, %v1389_v13, %v1398_v24 }
  0x97   : >> { %5692 = vmatmul.mubr.msk.bf16.gmra.mrb[52].mxu0 %vm261_vm9, %v945_v22  ;;  %v6296_v22 = vld [vmem:[#allocation2 + $0x30] ss:$0 sps:$4 sm:$0x77]  }
  0x98   : >> { %5716 = vmatmul.mubr.msk.bf16.gmra.mrb[52].mxu1 %vm261_vm9, %v1078_v25  ;;  %5695 = vmatprep.mubr.msk.bf16.mxu0 %vm6397_vm10, %v6396_v50  ;;  %v1401_v25 = vshrl.u32 %v6296_v22, 16  ;;  %v1404_v26 = vshll.u32 %v6296_v22, 16  ;;  %v1533_v46 = vrot.slane %v6296_v22, 3 }
  0x99   : >> { %5719 = vmatprep.mubr.msk.bf16.mxu1 %vm6397_vm10, %v6396_v50 }
  0x9a   : >> { %v1403_v30 = vrot.slane %v1401_v25, 2  ;;  %v1406_v31 = vrot.slane %v1404_v26, 3  ;;  %v1534_v47 = vsel %vm1523_vm1, %v1531_v44, %v1533_v46 }
  0x9f   : >> { %5696 = vmatmul.mubr.msk.bf16.gmra.mrb[56].mxu0 %vm261_vm9, %v954_v33  ;;  %v1407_v33 = vor.u32 %v1406_v31, %v1403_v30 }
  0xa0   : >> { %5720 = vmatmul.mubr.msk.bf16.gmra.mrb[56].mxu1 %vm261_vm9, %v1080_v34  ;;  %5727 = vmatprep.mubr.msk.bf16.mxu0 %vm6397_vm10, %v6396_v50  ;;  %v1519_v34 = vld [vmem:[#allocation2 + $0x8] sm:$0x8] }
  0xa1   : >> { %5751 = vmatprep.mubr.msk.bf16.mxu1 %vm6397_vm10, %v6396_v50  ;;  %v5047_v36 = vcombine.low %v1519_v34, %v6766_v21  ;;  %v1408_v37 = vsel %vm1355_vm15, %v1398_v24, %v1407_v33  ;;  %v1527_v21 = vrot.slane %v6783_v40, 3  ;;  %v1532_v40 = vsel %vm1523_vm1, %v1529_v27, %v1531_v44 }
  0xa3   : >> { %v1524_v38 = vrot.slane %v5047_v36, 3  ;;  %v1528_v42 = vsel %vm1523_vm1, %v1525_v39, %v1527_v21  ;;  %v1530_v43 = vsel %vm1523_vm1, %v1527_v21, %v1529_v27 }
  0xa5   : >> { %v1526_v41 = vsel %vm1523_vm1, %v1524_v38, %v1525_v39 }
  0xa7   : >> { %5728 = vmatmul.mubr.msk.bf16.vlgmr.msra.gmra.mrb[60].mxu0 %vm261_vm9, %v1232_v48 }
  0xa8   : >> { %5772 = vmatpush3.bf16.msra.mxu0 %v6290_v49  ;;  %5752 = vmatmul.mubr.msk.bf16.vlgmr.msra.gmra.mrb[60].mxu1 %vm261_vm9, %v1372_v45 }
  0xa9   : >> { %5731 = vmatprep.mubr.msk.bf16.mxu0 %vm6397_vm10, %v6396_v50  ;;  %5755 = vmatprep.mubr.msk.bf16.mxu1 %vm6397_vm10, %v6396_v50 }
  0xaa   : >> { %5773 = vmatprep.subr.bf16.mxu0 %v6396_v50 }
  0xac   : >> { %5774 = vmatpush3.bf16.msra.mxu0 %v6293_v57 }
  0xad   : >> { %5819 = vmatprep.subr.bf16.mxu0 %v6396_v50 }
  0xaf   : >> { %5732 = vmatmul.mubr.msk.bf16.gmra.mrb[64].mxu0 %vm261_vm9, %v1234_v60 }
  0xb0   : >> { %5756 = vmatmul.mubr.msk.bf16.gmra.mrb[64].mxu1 %vm261_vm9, %v1381_v61  ;;  %5735 = vmatprep.mubr.msk.bf16.mxu0 %vm6397_vm10, %v6396_v50 }
  0xb1   : >> { %5759 = vmatprep.mubr.msk.bf16.mxu1 %vm6397_vm10, %v6396_v50 }
  0xb7   : >> { %5736 = vmatmul.mubr.msk.bf16.gmra.mrb[68].mxu0 %vm261_vm9, %v1236_v18 }
  0xb8   : >> { %5760 = vmatmul.mubr.msk.bf16.gmra.mrb[68].mxu1 %vm261_vm9, %v1390_v19  ;;  %5739 = vmatprep.mubr.msk.bf16.mxu0 %vm6397_vm10, %v6396_v50 }
  0xb9   : >> { %5763 = vmatprep.mubr.msk.bf16.mxu1 %vm6397_vm10, %v6396_v50 }
  0xbf   : >> { %5740 = vmatmul.mubr.msk.bf16.gmra.mrb[72].mxu0 %vm261_vm9, %v1238_v14 }
  0xc0   : >> { %5764 = vmatmul.mubr.msk.bf16.gmra.mrb[72].mxu1 %vm261_vm9, %v1399_v29  ;;  %5743 = vmatprep.mubr.msk.bf16.mxu0 %vm6397_vm10, %v6396_v50 }
  0xc1   : >> { %5767 = vmatprep.mubr.msk.bf16.mxu1 %vm6397_vm10, %v6396_v50 }
  0xc7   : >> { %5744 = vmatmul.mubr.msk.bf16.gmra.mrb[76].mxu0 %vm261_vm9, %v1240_v35 }
  0xc8   : >> { %5768 = vmatmul.mubr.msk.bf16.gmra.mrb[76].mxu1 %vm261_vm9, %v1408_v37  ;;  %5775 = vmatprep.mubr.msk.bf16.mxu0 %vm6397_vm10, %v6396_v50 }
  0xc9   : >> { %5799 = vmatprep.mubr.msk.bf16.mxu1 %vm6397_vm10, %v6396_v50 }
  0xcf   : >> { %5776 = vmatmul.mubr.msk.bf16.vlgmr.msra.gmra.mrb[80].mxu0 %vm261_vm9, %v1526_v41 }
  0xd0   : >> { %5779 = vmatprep.mubr.msk.bf16.mxu0 %vm6397_vm10, %v6396_v50 }
  0xd7   : >> { %5780 = vmatmul.mubr.msk.bf16.gmra.mrb[84].mxu0 %vm261_vm9, %v1528_v42 }
  0xd8   : >> { %5783 = vmatprep.mubr.msk.bf16.mxu0 %vm6397_vm10, %v6396_v50 }
  0xdf   : >> { %5784 = vmatmul.mubr.msk.bf16.gmra.mrb[88].mxu0 %vm261_vm9, %v1530_v43 }
  0xe0   : >> { %5787 = vmatprep.mubr.msk.bf16.mxu0 %vm6397_vm10, %v6396_v50 }
  0xe7   : >> { %5788 = vmatmul.mubr.msk.bf16.gmra.mrb[92].mxu0 %vm261_vm9, %v1532_v40 }
  0xe8   : >> { %5791 = vmatprep.mubr.msk.bf16.mxu0 %vm6397_vm10, %v6396_v50 }
  0xef   : >> { %5792 = vmatmul.mubr.msk.bf16.gmra.mrb[96].mxu0 %vm261_vm9, %v1534_v47 }
  0xf0   : >> { %5823 = vmatprep.mubr.msk.bf16.mxu0 %vm6397_vm10, %v6396_v50 }
 0x102   : >> { %v477_v48 = vpop.f32.mrb[0].mxu0  ;;  %v572_v49 = vpop.f32.mrb[0].mxu1 }
 0x103   : >> { %v5585_v45 = vpop.f32.mrb[1].mxu0  ;;  %v573_v51 = vadd.f32 %v572_v49, %v477_v48  ;;  %v5609_v53 = vpop.f32.mrb[1].mxu1 }
 0x104   : >> { %v480_v55 = vpop.f32.mrb[2].mxu0  ;;  %v575_v56 = vpop.f32.mrb[2].mxu1 }
 0x105   : >> { %v5586_v57 = vpop.f32.mrb[3].mxu0  ;;  %v576_v59 = vadd.f32 %v575_v56, %v480_v55  ;;  %v5610_v52 = vpop.f32.mrb[3].mxu1 }
 0x10a   : >> { %v485_v54 = vpop.f32.mrb[4].mxu0 }
 0x10b   : >> { %v580_v60 = vpop.f32.mrb[4].mxu1  ;;  %v5589_v61 = vpop.f32.mrb[5].mxu0 }
 0x10c   : >> { %v581_v62 = vadd.f32 %v580_v60, %v485_v54  ;;  %v5613_v63 = vpop.f32.mrb[5].mxu1  ;;  %v488_v9 = vpop.f32.mrb[6].mxu0 }
 0x10d   : >> { %v583_v11 = vpop.f32.mrb[6].mxu1  ;;  %v5590_v13 = vpop.f32.mrb[7].mxu0 }
 0x10e   : >> { %v584_v16 = vadd.f32 %v583_v11, %v488_v9  ;;  %v5614_v17 = vpop.f32.mrb[7].mxu1 }
 0x112   : >> { %v493_v18 = vpop.f32.mrb[8].mxu0 }
 0x113   : >> { %v588_v19 = vpop.f32.mrb[8].mxu1  ;;  %v5593_v58 = vpop.f32.mrb[9].mxu0 }
 0x114   : >> { %v589_v20 = vadd.f32 %v588_v19, %v493_v18  ;;  %v5617_v22 = vpop.f32.mrb[9].mxu1  ;;  %v496_v23 = vpop.f32.mrb[10].mxu0 }
 0x115   : >> { %v591_v24 = vpop.f32.mrb[10].mxu1  ;;  %v5594_v25 = vpop.f32.mrb[11].mxu0 }
 0x116   : >> { %v592_v26 = vadd.f32 %v591_v24, %v496_v23  ;;  %v5618_v14 = vpop.f32.mrb[11].mxu1  ;;  %v6298_v24 = vld [vmem:[%s6574_s24 + $0xa0] sm:$0xff]   ;;  %v6299_v25 = vld [vmem:[%s6574_s24 + $0x90] sm:$0xff]  }
 0x117   : >> { %5796 = vmatpush3.bf16.msra.mxu1 %v6298_v24  ;;  %5820 = vmatpush3.bf16.msra.mxu0 %v6299_v25 }
 0x118   : >> { %5797 = vmatprep.subr.bf16.mxu1 %v6396_v50  ;;  %5821 = vmatprep.subr.bf16.mxu0 %v6396_v50 }
 0x11a   : >> { %v501_v28 = vpop.f32.mrb[12].mxu0 }
 0x11b   : >> { %v596_v29 = vpop.f32.mrb[12].mxu1  ;;  %v5597_v30 = vpop.f32.mrb[13].mxu0 }
 0x11c   : >> { %v6884_v31 = vadd.f32 %v596_v29, %v501_v28  ;;  %v5621_v32 = vpop.f32.mrb[13].mxu1  ;;  %v504_v33 = vpop.f32.mrb[14].mxu0 }
 0x11d   : >> { %v599_v34 = vpop.f32.mrb[14].mxu1  ;;  %v5598_v35 = vpop.f32.mrb[15].mxu0  ;;  %v6301_v32 = vld [vmem:[%s6574_s24 + $0x98] sm:$0xff]  }
 0x11e   : >> { %v6886_v36 = vadd.f32 %v599_v34, %v504_v33  ;;  %v5622_v37 = vpop.f32.mrb[15].mxu1  ;;  %5822 = vmatpush3.bf16.msra.mxu0 %v6301_v32 }
 0x11f   : >> { %5867 = vmatprep.subr.bf16.mxu0 %v6396_v50 }
 0x122   : >> { %v509_v38 = vpop.f32.mrb[16].mxu0 }
 0x123   : >> { %v604_v39 = vpop.f32.mrb[16].mxu1  ;;  %v5601_v41 = vpop.f32.mrb[17].mxu0 }
 0x124   : >> { %v6888_v21 = vadd.f32 %v604_v39, %v509_v38  ;;  %v5625_v42 = vpop.f32.mrb[17].mxu1  ;;  %v512_v27 = vpop.f32.mrb[18].mxu0 }
 0x125   : >> { %v607_v43 = vpop.f32.mrb[18].mxu1  ;;  %v5602_v44 = vpop.f32.mrb[19].mxu0 }
 0x126   : >> { %v6890_v40 = vadd.f32 %v607_v43, %v512_v27  ;;  %v5626_v46 = vpop.f32.mrb[19].mxu1 }
 0x12a   : >> { %v688_v47 = vpop.f32.mrb[20].mxu0 }
 0x12b   : >> { %v727_v48 = vadd.f32 %v688_v47, %v573_v51  ;;  %v5633_v49 = vpop.f32.mrb[21].mxu0  ;;  %v848_v45 = vpop.f32.mrb[20].mxu1 }
 0x12c   : >> { %v691_v53 = vpop.f32.mrb[22].mxu0  ;;  %v5657_v55 = vpop.f32.mrb[21].mxu1 }
 0x12d   : >> { %v728_v56 = vadd.f32 %v691_v53, %v576_v59  ;;  %v6892_v57 = vadd.f32 %v848_v45, %v727_v48  ;;  %v5634_v52 = vpop.f32.mrb[23].mxu0  ;;  %v851_v54 = vpop.f32.mrb[22].mxu1  ;;  %v6300_v53 = vld [vmem:[%s6574_s24 + $0xa8] sm:$0xff]  }
 0x12e   : >> { %v5658_v60 = vpop.f32.mrb[23].mxu1  ;;  %5798 = vmatpush3.bf16.msra.mxu1 %v6300_v53 }
 0x12f   : >> { %v6894_v61 = vadd.f32 %v851_v54, %v728_v56  ;;  %5843 = vmatprep.subr.bf16.mxu1 %v6396_v50 }
 0x132   : >> { %v696_v63 = vpop.f32.mrb[24].mxu0 }
 0x133   : >> { %v729_v9 = vadd.f32 %v696_v63, %v581_v62  ;;  %v5637_v11 = vpop.f32.mrb[25].mxu0  ;;  %v856_v13 = vpop.f32.mrb[24].mxu1 }
 0x134   : >> { %v699_v17 = vpop.f32.mrb[26].mxu0  ;;  %v5661_v51 = vpop.f32.mrb[25].mxu1 }
 0x135   : >> { %v730_v18 = vadd.f32 %v699_v17, %v584_v16  ;;  %v6896_v19 = vadd.f32 %v856_v13, %v729_v9  ;;  %v5638_v58 = vpop.f32.mrb[27].mxu0  ;;  %v859_v59 = vpop.f32.mrb[26].mxu1 }
 0x136   : >> { %v5662_v22 = vpop.f32.mrb[27].mxu1 }
 0x137   : >> { %v6898_v23 = vadd.f32 %v859_v59, %v730_v18 }
 0x13a   : >> { %v704_v14 = vpop.f32.mrb[28].mxu0 }
 0x13b   : >> { %v731_v62 = vadd.f32 %v704_v14, %v589_v20  ;;  %v5641_v28 = vpop.f32.mrb[29].mxu0  ;;  %v864_v16 = vpop.f32.mrb[28].mxu1 }
 0x13c   : >> { %v707_v29 = vpop.f32.mrb[30].mxu0  ;;  %v5665_v30 = vpop.f32.mrb[29].mxu1 }
 0x13d   : >> { %v732_v33 = vadd.f32 %v707_v29, %v592_v26  ;;  %v891_v34 = vadd.f32 %v864_v16, %v731_v62  ;;  %v5642_v35 = vpop.f32.mrb[31].mxu0  ;;  %v867_v37 = vpop.f32.mrb[30].mxu1 }
 0x13e   : >> { %v5666_v38 = vpop.f32.mrb[31].mxu1 }
 0x13f   : >> { %v892_v39 = vadd.f32 %v867_v37, %v732_v33 }
 0x142   : >> { %v712_v41 = vpop.f32.mrb[32].mxu0 }
 0x143   : >> { %v733_v42 = vadd.f32 %v712_v41, %v6884_v31  ;;  %v5645_v27 = vpop.f32.mrb[33].mxu0  ;;  %v872_v20 = vpop.f32.mrb[32].mxu1 }
 0x144   : >> { %v715_v43 = vpop.f32.mrb[34].mxu0  ;;  %v5669_v44 = vpop.f32.mrb[33].mxu1 }
 0x145   : >> { %v734_v46 = vadd.f32 %v715_v43, %v6886_v36  ;;  %v893_v47 = vadd.f32 %v872_v20, %v733_v42  ;;  %v5646_v26 = vpop.f32.mrb[35].mxu0  ;;  %v875_v48 = vpop.f32.mrb[34].mxu1 }
 0x146   : >> { %v5670_v49 = vpop.f32.mrb[35].mxu1 }
 0x147   : >> { %v894_v45 = vadd.f32 %v875_v48, %v734_v46 }
 0x14a   : >> { %v720_v55 = vpop.f32.mrb[36].mxu0 }
 0x14b   : >> { %v735_v56 = vadd.f32 %v720_v55, %v6888_v21  ;;  %v5649_v52 = vpop.f32.mrb[37].mxu0  ;;  %v880_v31 = vpop.f32.mrb[36].mxu1 }
 0x14c   : >> { %v723_v54 = vpop.f32.mrb[38].mxu0  ;;  %v5673_v60 = vpop.f32.mrb[37].mxu1 }
 0x14d   : >> { %v736_v63 = vadd.f32 %v723_v54, %v6890_v40  ;;  %v895_v9 = vadd.f32 %v880_v31, %v735_v56  ;;  %v5650_v36 = vpop.f32.mrb[39].mxu0  ;;  %v883_v11 = vpop.f32.mrb[38].mxu1 }
 0x14e   : >> { %v5674_v13 = vpop.f32.mrb[39].mxu1 }
 0x14f   : >> { %v896_v17 = vadd.f32 %v883_v11, %v736_v63 }
 0x152   : >> { %v1016_v51 = vpop.f32.mrb[40].mxu0 }
 0x153   : >> { %v1055_v18 = vadd.f32 %v1016_v51, %v6892_v57  ;;  %v5681_v58 = vpop.f32.mrb[41].mxu0  ;;  %v1142_v59 = vpop.f32.mrb[40].mxu1 }
 0x154   : >> { %v1019_v22 = vpop.f32.mrb[42].mxu0  ;;  %v5705_v24 = vpop.f32.mrb[41].mxu1 }
 0x155   : >> { %v1056_v21 = vadd.f32 %v1019_v22, %v6894_v61  ;;  %v1181_v25 = vadd.f32 %v1142_v59, %v1055_v18  ;;  %v5682_v14 = vpop.f32.mrb[43].mxu0  ;;  %v1145_v62 = vpop.f32.mrb[42].mxu1 }
 0x156   : >> { %v5706_v28 = vpop.f32.mrb[43].mxu1 }
 0x157   : >> { %v1182_v16 = vadd.f32 %v1145_v62, %v1056_v21 }
 0x15a   : >> { %v1024_v40 = vpop.f32.mrb[44].mxu0 }
 0x15b   : >> { %v1057_v29 = vadd.f32 %v1024_v40, %v6896_v19  ;;  %v5685_v30 = vpop.f32.mrb[45].mxu0  ;;  %v1150_v32 = vpop.f32.mrb[44].mxu1 }
 0x15c   : >> { %v1027_v33 = vpop.f32.mrb[46].mxu0  ;;  %v5709_v35 = vpop.f32.mrb[45].mxu1 }
 0x15d   : >> { %v1058_v57 = vadd.f32 %v1027_v33, %v6898_v23  ;;  %v1183_v37 = vadd.f32 %v1150_v32, %v1057_v29  ;;  %v5686_v38 = vpop.f32.mrb[47].mxu0  ;;  %v1153_v41 = vpop.f32.mrb[46].mxu1 }
 0x15e   : >> { %v5710_v42 = vpop.f32.mrb[47].mxu1 }
 0x15f   : >> { %v1184_v27 = vadd.f32 %v1153_v41, %v1058_v57 }
 0x162   : >> { %v1032_v61 = vpop.f32.mrb[48].mxu0 }
 0x163   : >> { %v1059_v20 = vadd.f32 %v1032_v61, %v891_v34  ;;  %v5689_v43 = vpop.f32.mrb[49].mxu0  ;;  %v1158_v44 = vpop.f32.mrb[48].mxu1 }
 0x164   : >> { %v1035_v46 = vpop.f32.mrb[50].mxu0  ;;  %v5713_v26 = vpop.f32.mrb[49].mxu1 }
 0x165   : >> { %v1060_v48 = vadd.f32 %v1035_v46, %v892_v39  ;;  %v1185_v49 = vadd.f32 %v1158_v44, %v1059_v20  ;;  %v5690_v19 = vpop.f32.mrb[51].mxu0  ;;  %v1161_v53 = vpop.f32.mrb[50].mxu1 }
 0x166   : >> { %v5714_v55 = vpop.f32.mrb[51].mxu1 }
 0x167   : >> { %v1186_v56 = vadd.f32 %v1161_v53, %v1060_v48 }
 0x16a   : >> { %v1040_v52 = vpop.f32.mrb[52].mxu0 }
 0x16b   : >> { %v1061_v31 = vadd.f32 %v1040_v52, %v893_v47  ;;  %v5693_v23 = vpop.f32.mrb[53].mxu0  ;;  %v1166_v54 = vpop.f32.mrb[52].mxu1 }
 0x16c   : >> { %v1043_v60 = vpop.f32.mrb[54].mxu0  ;;  %v5717_v63 = vpop.f32.mrb[53].mxu1 }
 0x16d   : >> { %v1062_v36 = vadd.f32 %v1043_v60, %v894_v45  ;;  %v1187_v11 = vadd.f32 %v1166_v54, %v1061_v31  ;;  %v5694_v13 = vpop.f32.mrb[55].mxu0  ;;  %v1169_v34 = vpop.f32.mrb[54].mxu1 }
 0x16e   : >> { %v5718_v51 = vpop.f32.mrb[55].mxu1 }
 0x16f   : >> { %v1188_v18 = vadd.f32 %v1169_v34, %v1062_v36 }
 0x172   : >> { %v1048_v58 = vpop.f32.mrb[56].mxu0 }
 0x173   : >> { %v1063_v59 = vadd.f32 %v1048_v58, %v895_v9  ;;  %v5697_v39 = vpop.f32.mrb[57].mxu0  ;;  %v1174_v22 = vpop.f32.mrb[56].mxu1 }
 0x174   : >> { %v1051_v24 = vpop.f32.mrb[58].mxu0  ;;  %v5721_v21 = vpop.f32.mrb[57].mxu1 }
 0x175   : >> { %v1064_v14 = vadd.f32 %v1051_v24, %v896_v17  ;;  %v1189_v62 = vadd.f32 %v1174_v22, %v1063_v59  ;;  %v5698_v28 = vpop.f32.mrb[59].mxu0  ;;  %v1177_v47 = vpop.f32.mrb[58].mxu1 }
 0x176   : >> { %v5722_v40 = vpop.f32.mrb[59].mxu1 }
 0x177   : >> { %v1190_v29 = vadd.f32 %v1177_v47, %v1064_v14 }
 0x17a   : >> { %v1302_v30 = vpop.f32.mrb[60].mxu0 }
 0x17b   : >> { %v1341_v32 = vadd.f32 %v1302_v30, %v1181_v25  ;;  %v5729_v45 = vpop.f32.mrb[61].mxu0  ;;  %v1470_v33 = vpop.f32.mrb[60].mxu1 }
 0x17c   : >> { %v1305_v35 = vpop.f32.mrb[62].mxu0  ;;  %v5753_v57 = vpop.f32.mrb[61].mxu1 }
 0x17d   : >> { %v1342_v38 = vadd.f32 %v1305_v35, %v1182_v16  ;;  %v1509_v41 = vadd.f32 %v1470_v33, %v1341_v32  ;;  %v5730_v42 = vpop.f32.mrb[63].mxu0  ;;  %v1473_v9 = vpop.f32.mrb[62].mxu1 }
 0x17e   : >> { %v5754_v61 = vpop.f32.mrb[63].mxu1 }
 0x17f   : >> { %v1510_v20 = vadd.f32 %v1473_v9, %v1342_v38 }
 0x182   : >> { %v1310_v43 = vpop.f32.mrb[64].mxu0 }
 0x183   : >> { %v1343_v44 = vadd.f32 %v1310_v43, %v1183_v37  ;;  %v5733_v17 = vpop.f32.mrb[65].mxu0  ;;  %v1478_v46 = vpop.f32.mrb[64].mxu1 }
 0x184   : >> { %v1313_v26 = vpop.f32.mrb[66].mxu0  ;;  %v5757_v48 = vpop.f32.mrb[65].mxu1 }
 0x185   : >> { %v1344_v19 = vadd.f32 %v1313_v26, %v1184_v27  ;;  %v6916_v53 = vadd.f32 %v1478_v46, %v1343_v44  ;;  %v5734_v25 = vpop.f32.mrb[67].mxu0  ;;  %v1481_v55 = vpop.f32.mrb[66].mxu1  ;;  %v6939_v44 = vld [vmem:[%s6936_s28] ss:$0 sm:$0xff] }
 0x186   : >> { %v5758_v52 = vpop.f32.mrb[67].mxu1 }
 0x187   : >> { %v6918_v31 = vadd.f32 %v1481_v55, %v1344_v19 }
 0x18a   : >> { %v1318_v16 = vpop.f32.mrb[68].mxu0 }
 0x18b   : >> { %v1345_v23 = vadd.f32 %v1318_v16, %v1185_v49  ;;  %v5737_v54 = vpop.f32.mrb[69].mxu0  ;;  %v1486_v60 = vpop.f32.mrb[68].mxu1 }
 0x18c   : >> { %v1321_v63 = vpop.f32.mrb[70].mxu0  ;;  %v5761_v36 = vpop.f32.mrb[69].mxu1 }
 0x18d   : >> { %v1346_v13 = vadd.f32 %v1321_v63, %v1186_v56  ;;  %v6920_v37 = vadd.f32 %v1486_v60, %v1345_v23  ;;  %v5738_v34 = vpop.f32.mrb[71].mxu0  ;;  %v1489_v51 = vpop.f32.mrb[70].mxu1 }
 0x18e   : >> { %v5762_v58 = vpop.f32.mrb[71].mxu1 }
 0x18f   : >> { %v6922_v27 = vadd.f32 %v1489_v51, %v1346_v13 }
 0x192   : >> { %v1326_v59 = vpop.f32.mrb[72].mxu0 }
 0x193   : >> { %v1347_v39 = vadd.f32 %v1326_v59, %v1187_v11  ;;  %v5741_v22 = vpop.f32.mrb[73].mxu0  ;;  %v1494_v24 = vpop.f32.mrb[72].mxu1 }
 0x194   : >> { %v1329_v21 = vpop.f32.mrb[74].mxu0  ;;  %v5765_v14 = vpop.f32.mrb[73].mxu1 }
 0x195   : >> { %v1348_v49 = vadd.f32 %v1329_v21, %v1188_v18  ;;  %v6924_v28 = vadd.f32 %v1494_v24, %v1347_v39  ;;  %v5742_v47 = vpop.f32.mrb[75].mxu0  ;;  %v1497_v40 = vpop.f32.mrb[74].mxu1 }
 0x196   : >> { %v5766_v56 = vpop.f32.mrb[75].mxu1  ;;  %v6952_v22 = vpop.permute.xlu1 %1705 }
 0x197   : >> { %v6926_v30 = vadd.f32 %v1497_v40, %v1348_v49 }
 0x19a   : >> { %v1334_v32 = vpop.f32.mrb[76].mxu0 }
 0x19b   : >> { %v1349_v45 = vadd.f32 %v1334_v32, %v1189_v62  ;;  %v5745_v33 = vpop.f32.mrb[77].mxu0  ;;  %v1502_v35 = vpop.f32.mrb[76].mxu1 }
 0x19c   : >> { %v1337_v57 = vpop.f32.mrb[78].mxu0  ;;  %v5769_v38 = vpop.f32.mrb[77].mxu1 }
 0x19d   : >> { %v1350_v11 = vadd.f32 %v1337_v57, %v1190_v29  ;;  %v6929_v42 = vadd.f32 %v1502_v35, %v1349_v45  ;;  %v5746_v9 = vpop.f32.mrb[79].mxu0  ;;  %v1505_v61 = vpop.f32.mrb[78].mxu1  ;;  %v1895_v45 = vld [vmem:[#allocation3 + $0x4] sm:$0xe] }
 0x19e   : >> { %v5770_v18 = vpop.f32.mrb[79].mxu1  ;;  %v6941_v29 = vpop.permute.xlu0 %1695 }
 0x19f   : >> { %v6931_v43 = vadd.f32 %v1505_v61, %v1350_v11  ;;  %v6339_v61 = vld [vmem:[%s7800_s1 + $0x6d8] sm:$0xff] (%p288_p4)  }
 0x1a2   : >> { %v1596_v62 = vpop.f32.mrb[80].mxu0  ;;  %v6946_v63 = vpop.permute.xlu0 %1700 }
 0x1a3   : >> { %v1635_v17 = vadd.f32 %v1596_v62, %v1509_v41  ;;  %v5777_v46 = vpop.f32.mrb[81].mxu0 }
 0x1a4   : >> { %v1599_v26 = vpop.f32.mrb[82].mxu0 }
 0x1a5   : >> { %v1653_v48 = vadd.f32 %v6939_v44, %v1635_v17  ;;  %v1636_v19 = vadd.f32 %v1599_v26, %v1510_v20  ;;  %v5778_v25 = vpop.f32.mrb[83].mxu0 }
 0x1a7   : >> { %vm1663_vm2 = vcmp.gt.f32.partialorder %v1653_v48, 0.0  ;;  %v1673_v55 = vmul.f32 0.2, %v1653_v48  ;;  %v1654_v52 = vadd.f32 %v6939_v44, %v1636_v19  ;;  %v6965_v19 = vpop.permute.xlu1 %1710 }
 0x1a9   : >> { %v1683_v16 = vsel %vm1663_vm2, %v1653_v48, %v1673_v55  ;;  %vm1664_vm3 = vcmp.gt.f32.partialorder %v1654_v52, 0.0  ;;  %v1674_v23 = vmul.f32 0.2, %v1654_v52 }
 0x1aa   : >> { %v1743_v54 = vmul.f32 %v6941_v29, %v1683_v16  ;;  %v1604_v60 = vpop.f32.mrb[84].mxu0 }
 0x1ab   : >> { %v1684_v41 = vsel %vm1664_vm3, %v1654_v52, %v1674_v23  ;;  %v1637_v36 = vadd.f32 %v1604_v60, %v6916_v53  ;;  %v5781_v13 = vpop.f32.mrb[85].mxu0  ;;  %vm6958_vm3 = vmor %vm274_vm4, %vm1783_vm6  ;;  %vm6400_vm4 = vmmov (%p288_p4), 0  }
 0x1ac   : >> { %v5340_v34 = vpack.c.bf16 %v1743_v54, %v1743_v54  ;;  %v1744_v20 = vmul.f32 %v6946_v63, %v1684_v41  ;;  %v1607_v51 = vpop.f32.mrb[86].mxu0 }
 0x1ad   : >> { %v1655_v58 = vadd.f32 %v6939_v44, %v1637_v36  ;;  %v1638_v59 = vadd.f32 %v1607_v51, %v6918_v31  ;;  %v5782_v39 = vpop.f32.mrb[87].mxu0 }
 0x1ae   : >> { %v1786_v24 = vshrl.u32 %v5340_v34, 16  ;;  %v1789_v21 = vshll.u32 %v5340_v34, 16  ;;  %v5341_v14 = vpack.c.bf16 %v1744_v20, %v1744_v20 }
 0x1af   : >> { %vm1665_vm8 = vcmp.gt.f32.partialorder %v1655_v58, 0.0  ;;  %v1675_v49 = vmul.f32 0.2, %v1655_v58  ;;  %v1656_v53 = vadd.f32 %v6939_v44, %v1638_v59 }
 0x1b0   : >> { %v1788_v47 = vrot.slane %v1786_v24, 6  ;;  %v1791_v40 = vrot.slane %v1789_v21, 7  ;;  %v1795_v56 = vshrl.u32 %v5341_v14, 16  ;;  %v1798_v32 = vshll.u32 %v5341_v14, 16 }
 0x1b1   : >> { %v1685_v33 = vsel %vm1665_vm8, %v1655_v58, %v1675_v49  ;;  %vm1666_vm2 = vcmp.gt.f32.partialorder %v1656_v53, 0.0  ;;  %v1676_v35 = vmul.f32 0.2, %v1656_v53  ;;  %v6974_v58 = vpop.permute.xlu0 %1715 }
 0x1b2   : >> { %v1792_v31 = vor.u32 %v1791_v40, %v1788_v47  ;;  %v1797_v57 = vrot.slane %v1795_v56, 6  ;;  %v1800_v38 = vrot.slane %v1798_v32, 7  ;;  %v1745_v11 = vmul.f32 %v6952_v22, %v1685_v33  ;;  %v1612_v9 = vpop.f32.mrb[88].mxu0  ;;  %v6978_v33 = vpop.permute.xlu1 %1720 }
 0x1b3   : >> { %v1686_v18 = vsel %vm1666_vm2, %v1656_v53, %v1676_v35  ;;  %v1639_v62 = vadd.f32 %v1612_v9, %v6920_v37  ;;  %v5785_v17 = vpop.f32.mrb[89].mxu0 }
 0x1b4   : >> { %v1793_v46 = vrot.slane %v1792_v31, 4  ;;  %v1896_v26 = vsel %vm6493_vm7, %v1792_v31, %v1895_v45  ;;  %v1801_v48 = vor.u32 %v1800_v38, %v1797_v57  ;;  %v5342_v25 = vpack.c.bf16 %v1745_v11, %v1745_v11  ;;  %v1615_v55 = vpop.f32.mrb[90].mxu0  ;;  %v1960_v45 = vld [vmem:[#allocation3] sm:$0xf] }
 0x1b5   : >> { %1897 = vst [vmem:[#allocation3 + $0x4] sm:$0xe] %v1896_v26  ;;  %v1746_v52 = vmul.f32 %v6965_v19, %v1686_v18  ;;  %v1657_v16 = vadd.f32 %v6939_v44, %v1639_v62  ;;  %v1640_v23 = vadd.f32 %v1615_v55, %v6922_v27  ;;  %v5786_v54 = vpop.f32.mrb[91].mxu0  ;;  %v6308_v26 = vld [vmem:[%s6574_s24 + $0xc0] sm:$0xff]  }
 0x1b6   : >> { %v1802_v37 = vsel %vm6958_vm3, %v1793_v46, %v1801_v48  ;;  %v1805_v60 = vshrl.u32 %v5342_v25, 16  ;;  %v1808_v41 = vshll.u32 %v5342_v25, 16  ;;  %v1803_v24 = vrot.slane %v1801_v48, 4 }
 0x1b7   : >> { %1898 = vst.msk [vmem:[#allocation3 + $0x8] sm:$0xf] %vm222_vm0, %v1802_v37  ;;  %v5343_v36 = vpack.c.bf16 %v1746_v52, %v1746_v52  ;;  %vm1667_vm6 = vcmp.gt.f32.partialorder %v1657_v16, 0.0  ;;  %v1677_v13 = vmul.f32 0.2, %v1657_v16  ;;  %v1658_v34 = vadd.f32 %v6939_v44, %v1640_v23 }
 0x1b8   : >> { %v1807_v20 = vrot.slane %v1805_v60, 6  ;;  %v1810_v51 = vrot.slane %v1808_v41, 7 }
 0x1b9   : >> { %v1815_v59 = vshrl.u32 %v5343_v36, 16  ;;  %v1818_v39 = vshll.u32 %v5343_v36, 16  ;;  %v1687_v27 = vsel %vm1667_vm6, %v1657_v16, %v1677_v13  ;;  %vm1668_vm8 = vcmp.gt.f32.partialorder %v1658_v34, 0.0 }
 0x1ba   : >> { %v1811_v21 = vor.u32 %v1810_v51, %v1807_v20  ;;  %v1747_v14 = vmul.f32 %v6974_v58, %v1687_v27  ;;  %v1678_v49 = vmul.f32 0.2, %v1658_v34  ;;  %v1620_v53 = vpop.f32.mrb[92].mxu0  ;;  %v6310_v20 = vld [vmem:[%s6574_s24 + $0xc8] sm:$0xff]   ;;  %v6998_v51 = vpop.permute.xlu0 %1725 }
 0x1bb   : >> { %v1817_v47 = vrot.slane %v1815_v59, 6  ;;  %v1820_v40 = vrot.slane %v1818_v39, 7  ;;  %v1641_v56 = vadd.f32 %v1620_v53, %v6924_v28  ;;  %v5789_v32 = vpop.f32.mrb[93].mxu0 }
 0x1bc   : >> { %v1812_v35 = vsel %vm6958_vm3, %v1803_v24, %v1811_v21  ;;  %v1813_v31 = vrot.slane %v1811_v21, 4  ;;  %v5344_v57 = vpack.c.bf16 %v1747_v14, %v1747_v14  ;;  %v1688_v38 = vsel %vm1668_vm8, %v1658_v34, %v1678_v49  ;;  %v1623_v11 = vpop.f32.mrb[94].mxu0  ;;  %v6982_v9 = vld [vmem:[#allocation3 + $0x4] sm:$0xf] }
 0x1bd   : >> { %1899 = vst.msk [vmem:[#allocation3 + $0xc] sm:$0xf] %vm222_vm0, %v1812_v35  ;;  %v1821_v18 = vor.u32 %v1820_v40, %v1817_v47  ;;  %v1748_v62 = vmul.f32 %v6978_v33, %v1688_v38  ;;  %v1659_v28 = vadd.f32 %v6939_v44, %v1641_v56  ;;  %v1642_v17 = vadd.f32 %v1623_v11, %v6926_v30  ;;  %v5790_v46 = vpop.f32.mrb[95].mxu0  ;;  %v7004_v40 = vpop.permute.xlu1 %1730 }
 0x1be   : >> { %v1825_v48 = vshrl.u32 %v5344_v57, 16  ;;  %v1828_v25 = vshll.u32 %v5344_v57, 16  ;;  %v5104_v55 = vcombine.low %v1960_v45, %v6982_v9 }
 0x1bf   : >> { %v1822_v52 = vsel %vm6958_vm3, %v1813_v31, %v1821_v18  ;;  %v1823_v16 = vrot.slane %v1821_v18, 4  ;;  %v5345_v23 = vpack.c.bf16 %v1748_v62, %v1748_v62  ;;  %vm1669_vm2 = vcmp.gt.f32.partialorder %v1659_v28, 0.0 }
 0x1c0   : >> { %1900 = vst.msk [vmem:[#allocation3 + $0x10] sm:$0xf] %vm222_vm0, %v1822_v52  ;;  %v1827_v54 = vrot.slane %v1825_v48, 6  ;;  %v1830_v37 = vrot.slane %v1828_v25, 7  ;;  %v1679_v60 = vmul.f32 0.2, %v1659_v28  ;;  %v1660_v30 = vadd.f32 %v6939_v44, %v1642_v17  ;;  %5824 = vmatmul.mubr.msk.bf16.vlgmr.msra.gmra.mrb[100].mxu0 %vm261_vm9, %v5104_v55 }
 0x1c1   : >> { %v1835_v41 = vshrl.u32 %v5345_v23, 16  ;;  %v1838_v36 = vshll.u32 %v5345_v23, 16  ;;  %5827 = vmatprep.mubr.msk.bf16.mxu0 %vm6397_vm10, %v6396_v50  ;;  %v2000_v13 = vshrl.u32 %v5104_v55, 16  ;;  %v2002_v34 = vshll.u32 %v5104_v55, 16  ;;  %5868 = vmatpush3.bf16.msra.mxu0 %v6308_v26 }
 0x1c2   : >> { %v1831_v59 = vor.u32 %v1830_v37, %v1827_v54  ;;  %v1689_v39 = vsel %vm1669_vm2, %v1659_v28, %v1679_v60  ;;  %vm1670_vm6 = vcmp.gt.f32.partialorder %v1660_v30, 0.0  ;;  %v1680_v27 = vmul.f32 0.2, %v1660_v30  ;;  %v1628_v24 = vpop.f32.mrb[96].mxu0  ;;  %5869 = vmatprep.subr.bf16.mxu0 %v6396_v50 }
 0x1c3   : >> { %v1837_v21 = vrot.slane %v1835_v41, 6  ;;  %v1840_v14 = vrot.slane %v1838_v36, 7  ;;  %v1749_v49 = vmul.f32 %v6998_v51, %v1689_v39  ;;  %v1643_v53 = vadd.f32 %v1628_v24, %v6929_v42  ;;  %v5793_v47 = vpop.f32.mrb[97].mxu0 }
 0x1c4   : >> { %v1832_v56 = vsel %vm6958_vm3, %v1823_v16, %v1831_v59  ;;  %v1833_v32 = vrot.slane %v1831_v59, 4  ;;  %v1690_v45 = vsel %vm1670_vm6, %v1660_v30, %v1680_v27  ;;  %v1631_v35 = vpop.f32.mrb[98].mxu0  ;;  %v7008_v31 = vld [vmem:[#allocation3 + $0x8] sm:$0xff]   ;;  %v2004_v57 = vrot.slane %v2002_v34, 1  ;;  %v7025_v30 = vpop.permute.xlu0 %1735 }
 0x1c5   : >> { %1901 = vst.msk [vmem:[#allocation3 + $0x14] sm:$0xf] %vm222_vm0, %v1832_v56  ;;  %v1841_v38 = vor.u32 %v1840_v14, %v1837_v21  ;;  %v5346_v11 = vpack.c.bf16 %v1749_v49, %v1749_v49  ;;  %v1750_v18 = vmul.f32 %v7004_v40, %v1690_v45  ;;  %v1661_v42 = vadd.f32 %v6939_v44, %v1643_v53  ;;  %v5794_v62 = vpop.f32.mrb[99].mxu0  ;;  %v7032_v21 = vpop.permute.xlu1 %1740  ;;  %v6309_v56 = vld [vmem:[%s6574_s24 + $0xb8] sm:$0xff]  }
 0x1c6   : >> { %5870 = vmatpush3.bf16.msra.mxu0 %v6310_v20  ;;  %v1644_v28 = vadd.f32 %v1631_v35, %v6931_v43  ;;  %v2007_v17 = vshll.u32 %v7008_v31, 16  ;;  %v2005_v25 = vor.u32 %v2004_v57, %v2000_v13  ;;  %v6304_v43 = vld [vmem:[%s6574_s24 + $0xb0] sm:$0xff]   ;;  %v2011_v35 = vshrl.u32 %v7008_v31, 16 }
 0x1c7   : >> { %5915 = vmatprep.subr.bf16.mxu0 %v6396_v50  ;;  %v1842_v46 = vsel %vm6958_vm3, %v1833_v32, %v1841_v38  ;;  %v1845_v26 = vshrl.u32 %v5346_v11, 16  ;;  %v1848_v48 = vshll.u32 %v5346_v11, 16  ;;  %v5347_v55 = vpack.c.bf16 %v1750_v18, %v1750_v18 }
 0x1c8   : >> { %1902 = vst.msk [vmem:[#allocation3 + $0x18] sm:$0xf] %vm222_vm0, %v1842_v46  ;;  %vm1671_vm8 = vcmp.gt.f32.partialorder %v1661_v42, 0.0  ;;  %v1681_v52 = vmul.f32 0.2, %v1661_v42  ;;  %v1662_v16 = vadd.f32 %v6939_v44, %v1644_v28  ;;  %5828 = vmatmul.mubr.msk.bf16.gmra.mrb[104].mxu0 %vm261_vm9, %v7008_v31  ;;  %v1843_v23 = vrot.slane %v1841_v38, 4 }
 0x1c9   : >> { %v1847_v54 = vrot.slane %v1845_v26, 6  ;;  %v1850_v37 = vrot.slane %v1848_v48, 7  ;;  %v2009_v60 = vrot.slane %v2007_v17, 1  ;;  %5831 = vmatprep.mubr.msk.bf16.mxu0 %vm6397_vm10, %v6396_v50  ;;  %v1855_v41 = vshrl.u32 %v5347_v55, 16 }
 0x1ca   : >> { %v1858_v36 = vshll.u32 %v5347_v55, 16  ;;  %v1691_v13 = vsel %vm1671_vm8, %v1661_v42, %v1681_v52  ;;  %vm1672_vm2 = vcmp.gt.f32.partialorder %v1662_v16, 0.0  ;;  %v1682_v20 = vmul.f32 0.2, %v1662_v16 }
 0x1cb   : >> { %v1851_v34 = vor.u32 %v1850_v37, %v1847_v54  ;;  %v1751_v44 = vmul.f32 %v7025_v30, %v1691_v13  ;;  %v2010_v59 = vsel %vm371_vm11, %v2005_v25, %v2009_v60  ;;  %v1857_v39 = vrot.slane %v1855_v41, 6  ;;  %v1907_v41 = vld [vmem:[#allocation3 + $0x2c] sm:$0x3] }
 0x1cc   : >> { %v1860_v27 = vrot.slane %v1858_v36, 7  ;;  %5800 = vmatmul.mubr.msk.bf16.vlgmr.msra.gmra.mrb[80].mxu1 %vm261_vm9, %v2010_v59  ;;  %v7030_v24 = vld [vmem:[#allocation3 + $0x10] sm:$0xff]   ;;  %v1692_v47 = vsel %vm1672_vm2, %v1662_v16, %v1682_v20  ;;  %v2013_v62 = vor.u32 %v2011_v35, %v2009_v60 }
 0x1cd   : >> { %v1852_v14 = vsel %vm6958_vm3, %v1843_v23, %v1851_v34  ;;  %v1853_v49 = vrot.slane %v1851_v34, 4  ;;  %v5348_v53 = vpack.c.bf16 %v1751_v44, %v1751_v44  ;;  %5844 = vmatpush3.bf16.msra.mxu1 %v6304_v43  ;;  %5803 = vmatprep.mubr.msk.bf16.mxu1 %vm6397_vm10, %v6396_v50  ;;  %v1752_v45 = vmul.f32 %v7032_v21, %v1692_v47 }
 0x1ce   : >> { %1903 = vst.msk [vmem:[#allocation3 + $0x1c] sm:$0xf] %vm222_vm0, %v1852_v14  ;;  %v1861_v32 = vor.u32 %v1860_v27, %v1857_v39  ;;  %v2015_v57 = vshll.u32 %v7030_v24, 16  ;;  %5845 = vmatprep.subr.bf16.mxu1 %v6396_v50  ;;  %v2019_v36 = vshrl.u32 %v7030_v24, 16 }
 0x1cf   : >> { %v1865_v38 = vshrl.u32 %v5348_v53, 16  ;;  %v1868_v11 = vshll.u32 %v5348_v53, 16  ;;  %v5349_v42 = vpack.c.bf16 %v1752_v45, %v1752_v45 }
 0x1d0   : >> { %v1862_v18 = vsel %vm6958_vm3, %v1853_v49, %v1861_v32  ;;  %5832 = vmatmul.mubr.msk.bf16.gmra.mrb[108].mxu0 %vm261_vm9, %v7030_v24  ;;  %v2017_v28 = vrot.slane %v2015_v57, 1  ;;  %v1863_v55 = vrot.slane %v1861_v32, 4  ;;  %v7078_v49 = vld [vmem:[#allocation3 + $0x8] sm:$0xf]  ;;  %v7082_v32 = vld [vmem:[#allocation3 + $0xc] sm:$0xff]  }
 0x1d1   : >> { %1904 = vst.msk [vmem:[#allocation3 + $0x20] sm:$0xf] %vm222_vm0, %v1862_v18  ;;  %v1867_v17 = vrot.slane %v1865_v38, 6  ;;  %v1870_v46 = vrot.slane %v1868_v11, 7  ;;  %5835 = vmatprep.mubr.msk.bf16.mxu0 %vm6397_vm10, %v6396_v50  ;;  %5846 = vmatpush3.bf16.msra.mxu1 %v6309_v56  ;;  %v1875_v26 = vshrl.u32 %v5349_v42, 16  ;;  %v1878_v48 = vshll.u32 %v5349_v42, 16 }
 0x1d2   : >> { %v2018_v25 = vsel %vm371_vm11, %v2013_v62, %v2017_v28  ;;  %5891 = vmatprep.subr.bf16.mxu1 %v6396_v50  ;;  %v2021_v20 = vor.u32 %v2019_v36, %v2017_v28  ;;  %v2363_v56 = vld [vmem:[#allocation3 + $0x4] sm:$0xe]  ;;  %v2403_v18 = vrot.slane %v7082_v32, 1 }
 0x1d3   : >> { %v1871_v52 = vor.u32 %v1870_v46, %v1867_v17  ;;  %v1877_v16 = vrot.slane %v1875_v26, 6  ;;  %v1880_v43 = vrot.slane %v1878_v48, 7  ;;  %v7091_v38 = vcombine.low %v2363_v56, %v7078_v49  ;;  %v6319_v17 = vld [vmem:[%s6574_s24 + $0xe0] sm:$0xff]  }
 0x1d4   : >> { %5804 = vmatmul.mubr.msk.bf16.gmra.mrb[84].mxu1 %vm261_vm9, %v2018_v25  ;;  %v7103_v25 = vld [vmem:[#allocation3 + $0x14] sm:$0xff]  }
 0x1d5   : >> { %v1872_v23 = vsel %vm6958_vm3, %v1863_v55, %v1871_v52  ;;  %v1873_v54 = vrot.slane %v1871_v52, 4  ;;  %v7056_v37 = vld [vmem:[#allocation3 + $0x18] sm:$0xff]   ;;  %5807 = vmatprep.mubr.msk.bf16.mxu1 %vm6397_vm10, %v6396_v50  ;;  %v1881_v60 = vor.u32 %v1880_v43, %v1877_v16  ;;  %v2402_v62 = vrot.slane %v7091_v38, 1  ;;  %v2238_v52 = vld [vmem:[#allocation3] sm:$0xe] }
 0x1d6   : >> { %1905 = vst.msk [vmem:[#allocation3 + $0x24] sm:$0xf] %vm222_vm0, %v1872_v23  ;;  %v2023_v13 = vshll.u32 %v7056_v37, 16  ;;  %v2027_v53 = vshrl.u32 %v7056_v37, 16  ;;  %v6321_v55 = vld [vmem:[%s6574_s24 + $0xe8] sm:$0xff]   ;;  %v2405_v43 = vrot.slane %v7103_v25, 1  ;;  %v5124_v23 = vcombine.low %v2238_v52, %v6982_v9 }
 0x1d7   : >> { %v1882_v34 = vsel %vm6958_vm3, %v1873_v54, %v1881_v60  ;;  %v1883_v44 = vrot.slane %v1881_v60, 4  ;;  %v2404_v46 = vsel %vm615_vm12, %v2402_v62, %v2403_v18  ;;  %v2243_v60 = vrot.slane %v7008_v31, 1  ;;  %v6320_v31 = vld [vmem:[%s6574_s24 + $0xd8] sm:$0xff]   ;;  %v6327_v52 = vld [vmem:[%s6574_s24 + $0x108] sm:$0xff]  }
 0x1d8   : >> { %5836 = vmatmul.mubr.msk.bf16.gmra.mrb[112].mxu0 %vm261_vm9, %v7056_v37  ;;  %1906 = vst.msk [vmem:[#allocation3 + $0x28] sm:$0xf] %vm222_vm0, %v1882_v34  ;;  %v2025_v59 = vrot.slane %v2023_v13, 1  ;;  %v2406_v54 = vsel %vm615_vm12, %v2403_v18, %v2405_v43  ;;  %v2242_v36 = vrot.slane %v5124_v23, 1  ;;  %v6315_v13 = vld [vmem:[%s6574_s24 + $0xd0] sm:$0xff]   ;;  %v2695_v62 = vrot.slane %v7082_v32, 2 }
 0x1d9   : >> { %5839 = vmatprep.mubr.msk.bf16.mxu0 %vm6397_vm10, %v6396_v50  ;;  %v1908_v39 = vsel %vm6487_vm5, %v1883_v44, %v1907_v41  ;;  %v7119_v41 = vld [vmem:[#allocation3 + $0x1c] sm:$0xff]  }
 0x1da   : >> { %1909 = vst [vmem:[#allocation3 + $0x2c] sm:$0x3] %v1908_v39  ;;  %v2026_v27 = vsel %vm371_vm11, %v2021_v20, %v2025_v59  ;;  %v2029_v35 = vor.u32 %v2027_v53, %v2025_v59  ;;  %v2244_v34 = vsel %vm615_vm12, %v2242_v36, %v2243_v60  ;;  %v2407_v9 = vrot.slane %v7119_v41, 1 }
 0x1db   : >> { %v2245_v20 = vrot.slane %v7030_v24, 1  ;;  %v2247_v53 = vrot.slane %v7056_v37, 1  ;;  %v2690_v37 = vld [vmem:[#allocation3 + $0x4] sm:$0xc]  ;;  %v2545_v36 = vshrl.u32 %v7103_v25, 16 }
 0x1dc   : >> { %5808 = vmatmul.mubr.msk.bf16.gmra.mrb[88].mxu1 %vm261_vm9, %v2026_v27  ;;  %v2408_v44 = vsel %vm615_vm12, %v2405_v43, %v2407_v9  ;;  %v5153_v18 = vcombine.low %v2690_v37, %v7078_v49  ;;  %v2539_v49 = vshll.u32 %v7082_v32, 16 }
 0x1dd   : >> { %v7074_v14 = vld [vmem:[#allocation3 + $0x20] sm:$0xff]   ;;  %5811 = vmatprep.mubr.msk.bf16.mxu1 %vm6397_vm10, %v6396_v50  ;;  %v2246_v39 = vsel %vm615_vm12, %v2243_v60, %v2245_v20  ;;  %v2248_v56 = vsel %vm615_vm12, %v2245_v20, %v2247_v53  ;;  %v2547_v20 = vrot.slane %v2545_v36, 1 }
 0x1de   : >> { %v2031_v47 = vshll.u32 %v7074_v14, 16  ;;  %v2035_v28 = vshrl.u32 %v7074_v14, 16 }
 0x1df   : >> { %v7086_v45 = vld [vmem:[#allocation3 + $0x28] ss:$0 sps:$4 sm:$0x11]  }
 0x1e0   : >> { %5840 = vmatmul.mubr.msk.bf16.gmra.mrb[116].mxu0 %vm261_vm9, %v7074_v14  ;;  %v2033_v57 = vrot.slane %v2031_v47, 1  ;;  %v2039_v42 = vshll.u32 %v7086_v45, 16  ;;  %v7134_v59 = vld [vmem:[#allocation3 + $0x24] sm:$0xff]  }
 0x1e1   : >> { %5871 = vmatprep.mubr.msk.bf16.mxu0 %vm6397_vm10, %v6396_v50  ;;  %v2409_v27 = vrot.slane %v7134_v59, 1  ;;  %v6318_v47 = vld [vmem:[#allocation3 + $0x2c] ss:$0 sps:$4 sm:$0x11]  }
 0x1e2   : >> { %v2034_v11 = vsel %vm371_vm11, %v2029_v35, %v2033_v57  ;;  %v2037_v26 = vor.u32 %v2035_v28, %v2033_v57  ;;  %v2041_v48 = vrot.slane %v2039_v42, 1  ;;  %v2411_v35 = vrot.slane %v6318_v47, 1  ;;  %v6324_v37 = vld [vmem:[#allocation3 + $0x2c] ss:$0 sps:$4 sm:$0x33]  }
 0x1e3   : >> { %v2410_v24 = vsel %vm615_vm12, %v2407_v9, %v2409_v27  ;;  %v2694_v28 = vrot.slane %v5153_v18, 2  ;;  %v6323_v9 = vld [vmem:[%s6574_s24 + $0xf0] sm:$0xff]   ;;  %v2557_v47 = vshll.u32 %v7119_v41, 16  ;;  %v2563_v18 = vshrl.u32 %v7134_v59, 16 }
 0x1e4   : >> { %5812 = vmatmul.mubr.msk.bf16.gmra.mrb[92].mxu1 %vm261_vm9, %v2034_v11  ;;  %v2042_v16 = vsel %vm371_vm11, %v2037_v26, %v2041_v48  ;;  %v2412_v57 = vsel %vm615_vm12, %v2409_v27, %v2411_v35  ;;  %v2249_v11 = vrot.slane %v7074_v14, 1  ;;  %v6325_v14 = vld [vmem:[%s6574_s24 + $0x100] sm:$0xff]   ;;  %v2536_v26 = vshrl.u32 %v7082_v32, 16 }
 0x1e5   : >> { %5815 = vmatprep.mubr.msk.bf16.mxu1 %vm6397_vm10, %v6396_v50  ;;  %v2528_v48 = vshrl.u32 %v7091_v38, 16  ;;  %v2541_v32 = vrot.slane %v2539_v49, 2  ;;  %v2701_v35 = vrot.slane %v7134_v59, 2  ;;  %v2565_v49 = vrot.slane %v2563_v18, 1 }
 0x1e6   : >> { %v2250_v42 = vsel %vm615_vm12, %v2247_v53, %v2249_v11  ;;  %v2538_v43 = vrot.slane %v2536_v26, 1  ;;  %v2554_v53 = vshrl.u32 %v7119_v41, 16  ;;  %v2703_v26 = vrot.slane %v6324_v37, 2 }
 0x1e7   : >> { %v2530_v23 = vrot.slane %v2528_v48, 1  ;;  %v2575_v36 = vshll.u32 %v6324_v37, 16 }
 0x1e8   : >> { %5872 = vmatmul.mubr.msk.bf16.vlgmr.msra.gmra.mrb[120].mxu0 %vm261_vm9, %v2404_v46  ;;  %v2251_v46 = vrot.slane %v7086_v45, 1  ;;  %v2542_v60 = vor.u32 %v2541_v32, %v2538_v43  ;;  %v2704_v43 = vsel %vm1069_vm14, %v2701_v35, %v2703_v26  ;;  %v7251_v26 = vld [vmem:[#allocation3 + $0x28] sm:$0xff]  }
 0x1e9   : >> { %5875 = vmatprep.mubr.msk.bf16.mxu0 %vm6397_vm10, %v6396_v50  ;;  %5916 = vmatpush3.bf16.msra.mxu0 %v6319_v17  ;;  %v2696_v17 = vsel %vm1069_vm14, %v2694_v28, %v2695_v62 }
 0x1ea   : >> { %5917 = vmatprep.subr.bf16.mxu0 %v6396_v50  ;;  %v2252_v45 = vsel %vm615_vm12, %v2249_v11, %v2251_v46  ;;  %v2559_v11 = vrot.slane %v2557_v47, 2 }
 0x1ec   : >> { %5816 = vmatmul.mubr.msk.bf16.gmra.mrb[96].mxu1 %vm261_vm9, %v2042_v16  ;;  %v2697_v16 = vrot.slane %v7103_v25, 2 }
 0x1ed   : >> { %5847 = vmatprep.mubr.msk.bf16.mxu1 %vm6397_vm10, %v6396_v50  ;;  %5918 = vmatpush3.bf16.msra.mxu0 %v6321_v55  ;;  %v2531_v55 = vshll.u32 %v7091_v38, 16 }
 0x1ee   : >> { %5963 = vmatprep.subr.bf16.mxu0 %v6396_v50  ;;  %v2698_v38 = vsel %vm1069_vm14, %v2695_v62, %v2697_v16 }
 0x1f0   : >> { %5876 = vmatmul.mubr.msk.bf16.gmra.mrb[124].mxu0 %vm261_vm9, %v2406_v54  ;;  %v2533_v54 = vrot.slane %v2531_v55, 2 }
 0x1f1   : >> { %5879 = vmatprep.mubr.msk.bf16.mxu0 %vm6397_vm10, %v6396_v50 }
 0x1f4   : >> { %5848 = vmatmul.mubr.msk.bf16.vlgmr.msra.gmra.mrb[100].mxu1 %vm261_vm9, %v2244_v34  ;;  %v2534_v34 = vor.u32 %v2533_v54, %v2530_v23  ;;  %v7226_v23 = vld [vmem:[#allocation3 + $0x18] sm:$0xff]  }
 0x1f5   : >> { %5892 = vmatpush3.bf16.msra.mxu1 %v6315_v13  ;;  %5851 = vmatprep.mubr.msk.bf16.mxu1 %vm6397_vm10, %v6396_v50  ;;  %v2548_v13 = vshll.u32 %v7103_v25, 16  ;;  %v6326_v25 = vld [vmem:[%s6574_s24 + $0xf8] sm:$0xff]  }
 0x1f6   : >> { %5893 = vmatprep.subr.bf16.mxu1 %v6396_v50 }
 0x1f8   : >> { %5880 = vmatmul.mubr.msk.bf16.gmra.mrb[128].mxu0 %vm261_vm9, %v2408_v44  ;;  %v2699_v44 = vrot.slane %v7119_v41, 2  ;;  %v7208_v41 = vld [vmem:[#allocation3 + $0xc] sm:$0xf] }
 0x1f9   : >> { %5883 = vmatprep.mubr.msk.bf16.mxu0 %vm6397_vm10, %v6396_v50  ;;  %5894 = vmatpush3.bf16.msra.mxu1 %v6320_v31  ;;  %v2543_v31 = vsel %vm901_vm13, %v2534_v34, %v2542_v60 }
 0x1fa   : >> { %5939 = vmatprep.subr.bf16.mxu1 %v6396_v50  ;;  %v2700_v27 = vsel %vm1069_vm14, %v2697_v16, %v2699_v44  ;;  %v2702_v62 = vsel %vm1069_vm14, %v2699_v44, %v2701_v35  ;;  %v7238_v35 = vld [vmem:[#allocation3 + $0x20] sm:$0xff]  }
 0x1fb   : >> { %v3009_v18 = vshll.u32 %v7238_v35, 16 }
 0x1fc   : >> { %5852 = vmatmul.mubr.msk.bf16.gmra.mrb[104].mxu1 %vm261_vm9, %v2246_v39  ;;  %v2550_v39 = vrot.slane %v2548_v13, 2 }
 0x1fd   : >> { %5855 = vmatprep.mubr.msk.bf16.mxu1 %vm6397_vm10, %v6396_v50 }
 0x200   : >> { %5884 = vmatmul.mubr.msk.bf16.gmra.mrb[132].mxu0 %vm261_vm9, %v2410_v24  ;;  %v2551_v24 = vor.u32 %v2550_v39, %v2547_v20 }
 0x201   : >> { %5887 = vmatprep.mubr.msk.bf16.mxu0 %vm6397_vm10, %v6396_v50 }
 0x204   : >> { %5856 = vmatmul.mubr.msk.bf16.gmra.mrb[108].mxu1 %vm261_vm9, %v2248_v56  ;;  %v2552_v56 = vsel %vm901_vm13, %v2542_v60, %v2551_v24  ;;  %v2572_v60 = vshrl.u32 %v6324_v37, 16  ;;  %v3006_v37 = vshrl.u32 %v7238_v35, 16 }
 0x205   : >> { %5859 = vmatprep.mubr.msk.bf16.mxu1 %vm6397_vm10, %v6396_v50 }
 0x206   : >> { %v2574_v39 = vrot.slane %v2572_v60, 1 }
 0x208   : >> { %5888 = vmatmul.mubr.msk.bf16.gmra.mrb[136].mxu0 %vm261_vm9, %v2412_v57  ;;  %v2556_v57 = vrot.slane %v2554_v53, 1 }
 0x209   : >> { %5919 = vmatprep.mubr.msk.bf16.mxu0 %vm6397_vm10, %v6396_v50 }
 0x20a   : >> { %v2560_v28 = vor.u32 %v2559_v11, %v2556_v57 }
 0x20c   : >> { %5860 = vmatmul.mubr.msk.bf16.gmra.mrb[112].mxu1 %vm261_vm9, %v2250_v42  ;;  %v2566_v42 = vshll.u32 %v7134_v59, 16  ;;  %v2561_v55 = vsel %vm901_vm13, %v2551_v24, %v2560_v28 }
 0x20d   : >> { %5863 = vmatprep.mubr.msk.bf16.mxu1 %vm6397_vm10, %v6396_v50 }
 0x20e   : >> { %v2568_v48 = vrot.slane %v2566_v42, 2 }
 0x210   : >> { %5920 = vmatmul.mubr.msk.bf16.vlgmr.msra.gmra.mrb[140].mxu0 %vm261_vm9, %v2696_v17  ;;  %v2815_v17 = vld [vmem:[#allocation3 + $0x8] sm:$0xc]  ;;  %v2569_v32 = vor.u32 %v2568_v48, %v2565_v49  ;;  %v6331_v48 = vld [vmem:[%s6574_s24 + $0x110] sm:$0xff]  }
 0x211   : >> { %5923 = vmatprep.mubr.msk.bf16.mxu0 %vm6397_vm10, %v6396_v50  ;;  %5964 = vmatpush3.bf16.msra.mxu0 %v6325_v14  ;;  %v7213_v14 = vld [vmem:[#allocation3 + $0x10] sm:$0xff]   ;;  %v5161_v46 = vcombine.low %v2815_v17, %v7208_v41  ;;  %v3011_v17 = vrot.slane %v3009_v18, 3 }
 0x212   : >> { %5965 = vmatprep.subr.bf16.mxu0 %v6396_v50  ;;  %v2988_v59 = vshrl.u32 %v7213_v14, 16  ;;  %v2570_v44 = vsel %vm901_vm13, %v2560_v28, %v2569_v32  ;;  %v3008_v28 = vrot.slane %v3006_v37, 2  ;;  %v3147_v18 = vrot.slane %v7213_v14, 3 }
 0x213   : >> { %v2983_v16 = vshll.u32 %v5161_v46, 16  ;;  %v2854_v49 = vrot.slane %v5161_v46, 2 }
 0x214   : >> { %5864 = vmatmul.mubr.msk.bf16.gmra.mrb[116].mxu1 %vm261_vm9, %v2252_v45  ;;  %v2980_v45 = vshrl.u32 %v5161_v46, 16  ;;  %v2990_v54 = vrot.slane %v2988_v59, 2  ;;  %v3012_v59 = vor.u32 %v3011_v17, %v3008_v28  ;;  %v3149_v28 = vrot.slane %v7226_v23, 3 }
 0x215   : >> { %5895 = vmatprep.mubr.msk.bf16.mxu1 %vm6397_vm10, %v6396_v50  ;;  %5966 = vmatpush3.bf16.msra.mxu0 %v6327_v52  ;;  %v2991_v52 = vshll.u32 %v7213_v14, 16  ;;  %v2985_v34 = vrot.slane %v2983_v16, 3  ;;  %v6335_v16 = vld [vmem:[%s6574_s24 + $0x118] sm:$0xff]  }
 0x216   : >> { %v2982_v13 = vrot.slane %v2980_v45, 2  ;;  %v3018_v45 = vshll.u32 %v7251_v26, 16  ;;  %v3150_v17 = vsel %vm1523_vm1, %v3147_v18, %v3149_v28 }
 0x218   : >> { %5924 = vmatmul.mubr.msk.bf16.gmra.mrb[144].mxu0 %vm261_vm9, %v2698_v38  ;;  %v2993_v38 = vrot.slane %v2991_v52, 3  ;;  %v3015_v52 = vshrl.u32 %v7251_v26, 16 }
 0x219   : >> { %5927 = vmatprep.mubr.msk.bf16.mxu0 %vm6397_vm10, %v6396_v50 }
 0x21a   : >> { %v2994_v20 = vor.u32 %v2993_v38, %v2990_v54  ;;  %v3020_v54 = vrot.slane %v3018_v45, 3  ;;  %v6334_v38 = vld [vmem:[#allocation3 + $0x30] ss:$0 sps:$4 sm:$0x77]  }
 0x21c   : >> { %5896 = vmatmul.mubr.msk.bf16.vlgmr.msra.gmra.mrb[120].mxu1 %vm261_vm9, %v2543_v31  ;;  %v3000_v31 = vshll.u32 %v7226_v23, 16 }
 0x21d   : >> { %5940 = vmatpush3.bf16.msra.mxu1 %v6323_v9  ;;  %5899 = vmatprep.mubr.msk.bf16.mxu1 %vm6397_vm10, %v6396_v50  ;;  %v2997_v9 = vshrl.u32 %v7226_v23, 16 }
 0x21e   : >> { %5941 = vmatprep.subr.bf16.mxu1 %v6396_v50 }
 0x21f   : >> { %v2999_v47 = vrot.slane %v2997_v9, 2 }
 0x220   : >> { %5928 = vmatmul.mubr.msk.bf16.gmra.mrb[148].mxu0 %vm261_vm9, %v2700_v27  ;;  %v2986_v27 = vor.u32 %v2985_v34, %v2982_v13  ;;  %v3024_v13 = vshrl.u32 %v6334_v38, 16  ;;  %v3027_v34 = vshll.u32 %v6334_v38, 16 }
 0x221   : >> { %5931 = vmatprep.mubr.msk.bf16.mxu0 %vm6397_vm10, %v6396_v50  ;;  %5942 = vmatpush3.bf16.msra.mxu1 %v6326_v25  ;;  %v2577_v25 = vrot.slane %v2575_v36, 2 }
 0x222   : >> { %5987 = vmatprep.subr.bf16.mxu1 %v6396_v50  ;;  %v2995_v24 = vsel %vm1355_vm15, %v2986_v27, %v2994_v20 }
 0x223   : >> { %v2578_v53 = vor.u32 %v2577_v25, %v2574_v39 }
 0x224   : >> { %5900 = vmatmul.mubr.msk.bf16.gmra.mrb[124].mxu1 %vm261_vm9, %v2552_v56  ;;  %v3002_v56 = vrot.slane %v3000_v31, 3  ;;  %v2859_v31 = vrot.slane %v7238_v35, 2 }
 0x225   : >> { %5903 = vmatprep.mubr.msk.bf16.mxu1 %vm6397_vm10, %v6396_v50  ;;  %v2579_v57 = vsel %vm901_vm13, %v2569_v32, %v2578_v53  ;;  %v3017_v32 = vrot.slane %v3015_v52, 2 }
 0x226   : >> { %v3003_v11 = vor.u32 %v3002_v56, %v2999_v47  ;;  %v6336_v47 = vld [vmem:[#allocation3 + $0x30] ss:$0 sps:$4 sm:$0x33]  }
 0x227   : >> { %v3021_v36 = vor.u32 %v3020_v54, %v3017_v32  ;;  %v2863_v56 = vrot.slane %v6336_v47, 2 }
 0x228   : >> { %5932 = vmatmul.mubr.msk.bf16.gmra.mrb[152].mxu0 %vm261_vm9, %v2702_v62  ;;  %v3004_v42 = vsel %vm1355_vm15, %v2994_v20, %v3003_v11  ;;  %v2855_v62 = vrot.slane %v7213_v14, 2  ;;  %v3013_v46 = vsel %vm1355_vm15, %v3003_v11, %v3012_v59  ;;  %v3029_v20 = vrot.slane %v3027_v34, 3  ;;  %v3142_v11 = vld [vmem:[#allocation3 + $0x8] sm:$0x8] }
 0x229   : >> { %5935 = vmatprep.mubr.msk.bf16.mxu0 %vm6397_vm10, %v6396_v50  ;;  %v3022_v9 = vsel %vm1355_vm15, %v3012_v59, %v3021_v36  ;;  %v5182_v37 = vcombine.low %v3142_v11, %v7208_v41  ;;  %v3151_v41 = vrot.slane %v7238_v35, 3 }
 0x22b   : >> { %v3152_v14 = vsel %vm1523_vm1, %v3149_v28, %v3151_v41 }
 0x22c   : >> { %5904 = vmatmul.mubr.msk.bf16.gmra.mrb[128].mxu1 %vm261_vm9, %v2561_v55  ;;  %v2856_v55 = vsel %vm1069_vm14, %v2854_v49, %v2855_v62  ;;  %v3153_v49 = vrot.slane %v7251_v26, 3 }
 0x22d   : >> { %5907 = vmatprep.mubr.msk.bf16.mxu1 %vm6397_vm10, %v6396_v50 }
 0x230   : >> { %5936 = vmatmul.mubr.msk.bf16.gmra.mrb[156].mxu0 %vm261_vm9, %v2704_v43  ;;  %v2857_v43 = vrot.slane %v7226_v23, 2  ;;  %v3154_v23 = vsel %vm1523_vm1, %v3151_v41, %v3153_v49 }
 0x231   : >> { %5967 = vmatprep.mubr.msk.bf16.mxu0 %vm6397_vm10, %v6396_v50 }
 0x232   : >> { %v2858_v60 = vsel %vm1069_vm14, %v2855_v62, %v2857_v43  ;;  %v2860_v39 = vsel %vm1069_vm14, %v2857_v43, %v2859_v31 }
 0x234   : >> { %5908 = vmatmul.mubr.msk.bf16.gmra.mrb[132].mxu1 %vm261_vm9, %v2570_v44  ;;  %v3026_v44 = vrot.slane %v3024_v13, 2 }
 0x235   : >> { %5911 = vmatprep.mubr.msk.bf16.mxu1 %vm6397_vm10, %v6396_v50 }
 0x236   : >> { %v3030_v25 = vor.u32 %v3029_v20, %v3026_v44 }
 0x238   : >> { %5968 = vmatmul.mubr.msk.bf16.vlgmr.msra.gmra.mrb[160].mxu0 %vm261_vm9, %v2995_v24  ;;  %v3031_v27 = vsel %vm1355_vm15, %v3021_v36, %v3030_v25  ;;  %v2861_v24 = vrot.slane %v7251_v26, 2 }
 0x239   : >> { %5971 = vmatprep.mubr.msk.bf16.mxu0 %vm6397_vm10, %v6396_v50 }
 0x23a   : >> { %v2862_v53 = vsel %vm1069_vm14, %v2859_v31, %v2861_v24 }
 0x23c   : >> { %5912 = vmatmul.mubr.msk.bf16.gmra.mrb[136].mxu1 %vm261_vm9, %v2579_v57  ;;  %v2864_v57 = vsel %vm1069_vm14, %v2861_v24, %v2863_v56 }
 0x23d   : >> { %5943 = vmatprep.mubr.msk.bf16.mxu1 %vm6397_vm10, %v6396_v50 }
 0x240   : >> { %5972 = vmatmul.mubr.msk.bf16.gmra.mrb[164].mxu0 %vm261_vm9, %v3004_v42  ;;  %v3146_v42 = vrot.slane %v5182_v37, 3 }
 0x241   : >> { %5975 = vmatprep.mubr.msk.bf16.mxu0 %vm6397_vm10, %v6396_v50 }
 0x242   : >> { %v3148_v62 = vsel %vm1523_vm1, %v3146_v42, %v3147_v18 }
 0x244   : >> { %5944 = vmatmul.mubr.msk.bf16.vlgmr.msra.gmra.mrb[140].mxu1 %vm261_vm9, %v2856_v55 }
 0x245   : >> { %5988 = vmatpush3.bf16.msra.mxu1 %v6331_v48  ;;  %5947 = vmatprep.mubr.msk.bf16.mxu1 %vm6397_vm10, %v6396_v50  ;;  %v3155_v48 = vrot.slane %v6334_v38, 3 }
 0x246   : >> { %5989 = vmatprep.subr.bf16.mxu1 %v6396_v50 }
 0x247   : >> { %v3156_v55 = vsel %vm1523_vm1, %v3153_v49, %v3155_v48 }
 0x248   : >> { %5976 = vmatmul.mubr.msk.bf16.gmra.mrb[168].mxu0 %vm261_vm9, %v3013_v46 }
 0x249   : >> { %5979 = vmatprep.mubr.msk.bf16.mxu0 %vm6397_vm10, %v6396_v50  ;;  %5990 = vmatpush3.bf16.msra.mxu1 %v6335_v16 }
 0x24c   : >> { %5948 = vmatmul.mubr.msk.bf16.gmra.mrb[144].mxu1 %vm261_vm9, %v2858_v60 }
 0x24d   : >> { %5951 = vmatprep.mubr.msk.bf16.mxu1 %vm6397_vm10, %v6396_v50 }
 0x250   : >> { %5980 = vmatmul.mubr.msk.bf16.gmra.mrb[172].mxu0 %vm261_vm9, %v3022_v9 }
 0x251   : >> { %5983 = vmatprep.mubr.msk.bf16.mxu0 %vm6397_vm10, %v6396_v50 }
 0x254   : >> { %5952 = vmatmul.mubr.msk.bf16.gmra.mrb[148].mxu1 %vm261_vm9, %v2860_v39 }
 0x255   : >> { %5955 = vmatprep.mubr.msk.bf16.mxu1 %vm6397_vm10, %v6396_v50 }
 0x258   : >> { %5984 = vmatmul.mubr.msk.bf16.gmra.mrb[176].mxu0 %vm261_vm9, %v3031_v27 }
 0x25c   : >> { %5956 = vmatmul.mubr.msk.bf16.gmra.mrb[152].mxu1 %vm261_vm9, %v2862_v53 }
 0x25d   : >> { %5959 = vmatprep.mubr.msk.bf16.mxu1 %vm6397_vm10, %v6396_v50 }
 0x264   : >> { %5960 = vmatmul.mubr.msk.bf16.gmra.mrb[156].mxu1 %vm261_vm9, %v2864_v57 }
 0x265   : >> { %5991 = vmatprep.mubr.msk.bf16.mxu1 %vm6397_vm10, %v6396_v50 }
 0x26c   : >> { %5992 = vmatmul.mubr.msk.bf16.vlgmr.msra.gmra.mrb[160].mxu1 %vm261_vm9, %v3148_v62 }
 0x26d   : >> { %5995 = vmatprep.mubr.msk.bf16.mxu1 %vm6397_vm10, %v6396_v50 }
 0x274   : >> { %5996 = vmatmul.mubr.msk.bf16.gmra.mrb[164].mxu1 %vm261_vm9, %v3150_v17 }
 0x275   : >> { %5999 = vmatprep.mubr.msk.bf16.mxu1 %vm6397_vm10, %v6396_v50 }
 0x27c   : >> { %6000 = vmatmul.mubr.msk.bf16.gmra.mrb[168].mxu1 %vm261_vm9, %v3152_v14 }
 0x27d   : >> { %6003 = vmatprep.mubr.msk.bf16.mxu1 %vm6397_vm10, %v6396_v50 }
 0x284   : >> { %6004 = vmatmul.mubr.msk.bf16.gmra.mrb[172].mxu1 %vm261_vm9, %v3154_v23 }
 0x285   : >> { %6007 = vmatprep.mubr.msk.bf16.mxu1 %vm6397_vm10, %v6396_v50 }
 0x28c   : >> { %6008 = vmatmul.mubr.msk.bf16.gmra.mrb[176].mxu1 %vm261_vm9, %v3156_v55 }
 0x293   : >> { %v2199_v35 = vpop.f32.mrb[100].mxu0 }
 0x294   : >> { %v5825_v59 = vpop.f32.mrb[101].mxu0 }
 0x295   : >> { %v2202_v52 = vpop.f32.mrb[102].mxu0 }
 0x296   : >> { %v5826_v45 = vpop.f32.mrb[103].mxu0 }
 0x29b   : >> { %v2207_v16 = vpop.f32.mrb[104].mxu0 }
 0x29c   : >> { %v5829_v46 = vpop.f32.mrb[105].mxu0 }
 0x29d   : >> { %v2210_v43 = vpop.f32.mrb[106].mxu0 }
 0x29e   : >> { %v5830_v26 = vpop.f32.mrb[107].mxu0 }
 0x29f   : >> { %v2104_v32 = vpop.f32.mrb[80].mxu1 }
 0x2a0   : >> { %v2200_v54 = vadd.f32 %v2199_v35, %v2104_v32  ;;  %v5801_v60 = vpop.f32.mrb[81].mxu1 }
 0x2a1   : >> { %v2107_v36 = vpop.f32.mrb[82].mxu1 }
 0x2a2   : >> { %v2203_v13 = vadd.f32 %v2202_v52, %v2107_v36  ;;  %v5802_v34 = vpop.f32.mrb[83].mxu1 }
 0x2a3   : >> { %v2215_v50 = vpop.f32.mrb[108].mxu0 }
 0x2a4   : >> { %v5833_v38 = vpop.f32.mrb[109].mxu0 }
 0x2a5   : >> { %v2218_v9 = vpop.f32.mrb[110].mxu0 }
 0x2a6   : >> { %v5834_v31 = vpop.f32.mrb[111].mxu0 }
 0x2a7   : >> { %v2112_v44 = vpop.f32.mrb[84].mxu1 }
 0x2a8   : >> { %v2208_v20 = vadd.f32 %v2207_v16, %v2112_v44  ;;  %v5805_v39 = vpop.f32.mrb[85].mxu1 }
 0x2a9   : >> { %v2115_v25 = vpop.f32.mrb[86].mxu1 }
 0x2aa   : >> { %v2211_v27 = vadd.f32 %v2210_v43, %v2115_v25  ;;  %v5806_v24 = vpop.f32.mrb[87].mxu1 }
 0x2ab   : >> { %v2223_v53 = vpop.f32.mrb[112].mxu0 }
 0x2ac   : >> { %v5837_v47 = vpop.f32.mrb[113].mxu0 }
 0x2ad   : >> { %v2226_v56 = vpop.f32.mrb[114].mxu0 }
 0x2ae   : >> { %v5838_v57 = vpop.f32.mrb[115].mxu0 }
 0x2af   : >> { %v2120_v11 = vpop.f32.mrb[88].mxu1 }
 0x2b0   : >> { %v2216_v37 = vadd.f32 %v2215_v50, %v2120_v11  ;;  %v5809_v18 = vpop.f32.mrb[89].mxu1 }
 0x2b1   : >> { %v2123_v42 = vpop.f32.mrb[90].mxu1 }
 0x2b2   : >> { %v2219_v62 = vadd.f32 %v2218_v9, %v2123_v42  ;;  %v5810_v28 = vpop.f32.mrb[91].mxu1 }
 0x2b3   : >> { %v2231_v17 = vpop.f32.mrb[116].mxu0 }
 0x2b4   : >> { %v5841_v41 = vpop.f32.mrb[117].mxu0 }
 0x2b5   : >> { %v2234_v14 = vpop.f32.mrb[118].mxu0 }
 0x2b6   : >> { %v5842_v49 = vpop.f32.mrb[119].mxu0 }
 0x2b7   : >> { %v2128_v23 = vpop.f32.mrb[92].mxu1 }
 0x2b8   : >> { %v2224_v48 = vadd.f32 %v2223_v53, %v2128_v23  ;;  %v5813_v55 = vpop.f32.mrb[93].mxu1 }
 0x2b9   : >> { %v2131_v35 = vpop.f32.mrb[94].mxu1 }
 0x2ba   : >> { %v2227_v59 = vadd.f32 %v2226_v56, %v2131_v35  ;;  %v5814_v52 = vpop.f32.mrb[95].mxu1 }
 0x2bb   : >> { %v2474_v45 = vpop.f32.mrb[120].mxu0 }
 0x2bc   : >> { %v5873_v16 = vpop.f32.mrb[121].mxu0 }
 0x2bd   : >> { %v2477_v46 = vpop.f32.mrb[122].mxu0 }
 0x2be   : >> { %v5874_v43 = vpop.f32.mrb[123].mxu0 }
 0x2bf   : >> { %v2136_v26 = vpop.f32.mrb[96].mxu1 }
 0x2c0   : >> { %v2232_v32 = vadd.f32 %v2231_v17, %v2136_v26  ;;  %v5817_v60 = vpop.f32.mrb[97].mxu1 }
 0x2c1   : >> { %v2139_v36 = vpop.f32.mrb[98].mxu1 }
 0x2c2   : >> { %v2235_v34 = vadd.f32 %v2234_v14, %v2139_v36  ;;  %v5818_v50 = vpop.f32.mrb[99].mxu1 }
 0x2c3   : >> { %v2482_v38 = vpop.f32.mrb[124].mxu0 }
 0x2c4   : >> { %v5877_v9 = vpop.f32.mrb[125].mxu0 }
 0x2c5   : >> { %v2485_v31 = vpop.f32.mrb[126].mxu0 }
 0x2c6   : >> { %v5878_v44 = vpop.f32.mrb[127].mxu0 }
 0x2c7   : >> { %v2314_v39 = vpop.f32.mrb[100].mxu1 }
 0x2c8   : >> { %v2353_v25 = vadd.f32 %v2314_v39, %v2200_v54  ;;  %v5849_v24 = vpop.f32.mrb[101].mxu1 }
 0x2c9   : >> { %v2317_v53 = vpop.f32.mrb[102].mxu1 }
 0x2ca   : >> { %v2354_v47 = vadd.f32 %v2317_v53, %v2203_v13  ;;  %v5850_v56 = vpop.f32.mrb[103].mxu1  ;;  %v2513_v57 = vadd.f32 %v2474_v45, %v2353_v25 }
 0x2cb   : >> { %v2490_v11 = vpop.f32.mrb[128].mxu0 }
 0x2cc   : >> { %v5881_v18 = vpop.f32.mrb[129].mxu0  ;;  %v2514_v42 = vadd.f32 %v2477_v46, %v2354_v47 }
 0x2cd   : >> { %v2493_v28 = vpop.f32.mrb[130].mxu0 }
 0x2ce   : >> { %v5882_v17 = vpop.f32.mrb[131].mxu0 }
 0x2cf   : >> { %v2322_v41 = vpop.f32.mrb[104].mxu1 }
 0x2d0   : >> { %v2355_v49 = vadd.f32 %v2322_v41, %v2208_v20  ;;  %v5853_v14 = vpop.f32.mrb[105].mxu1 }
 0x2d1   : >> { %v2325_v23 = vpop.f32.mrb[106].mxu1 }
 0x2d2   : >> { %v2356_v55 = vadd.f32 %v2325_v23, %v2211_v27  ;;  %v5854_v35 = vpop.f32.mrb[107].mxu1  ;;  %v2515_v52 = vadd.f32 %v2482_v38, %v2355_v49 }
 0x2d3   : >> { %v2498_v16 = vpop.f32.mrb[132].mxu0 }
 0x2d4   : >> { %v5885_v43 = vpop.f32.mrb[133].mxu0  ;;  %v2516_v54 = vadd.f32 %v2485_v31, %v2356_v55 }
 0x2d5   : >> { %v2501_v26 = vpop.f32.mrb[134].mxu0 }
 0x2d6   : >> { %v5886_v60 = vpop.f32.mrb[135].mxu0 }
 0x2d7   : >> { %v2330_v13 = vpop.f32.mrb[108].mxu1 }
 0x2d8   : >> { %v2357_v36 = vadd.f32 %v2330_v13, %v2216_v37  ;;  %v5857_v45 = vpop.f32.mrb[109].mxu1 }
 0x2d9   : >> { %v2333_v50 = vpop.f32.mrb[110].mxu1 }
 0x2da   : >> { %v2358_v9 = vadd.f32 %v2333_v50, %v2219_v62  ;;  %v5858_v46 = vpop.f32.mrb[111].mxu1  ;;  %v2517_v44 = vadd.f32 %v2490_v11, %v2357_v36 }
 0x2db   : >> { %v2506_v39 = vpop.f32.mrb[136].mxu0 }
 0x2dc   : >> { %v5889_v25 = vpop.f32.mrb[137].mxu0  ;;  %v2518_v20 = vadd.f32 %v2493_v28, %v2358_v9 }
 0x2dd   : >> { %v2509_v24 = vpop.f32.mrb[138].mxu0 }
 0x2de   : >> { %v5890_v53 = vpop.f32.mrb[139].mxu0 }
 0x2df   : >> { %v2338_v27 = vpop.f32.mrb[112].mxu1 }
 0x2e0   : >> { %v2359_v47 = vadd.f32 %v2338_v27, %v2224_v48  ;;  %v5861_v38 = vpop.f32.mrb[113].mxu1 }
 0x2e1   : >> { %v2341_v56 = vpop.f32.mrb[114].mxu1 }
 0x2e2   : >> { %v2360_v18 = vadd.f32 %v2341_v56, %v2227_v59  ;;  %v5862_v31 = vpop.f32.mrb[115].mxu1  ;;  %v2519_v17 = vadd.f32 %v2498_v16, %v2359_v47 }
 0x2e3   : >> { %v2766_v41 = vpop.f32.mrb[140].mxu0 }
 0x2e4   : >> { %v5921_v49 = vpop.f32.mrb[141].mxu0  ;;  %v2520_v37 = vadd.f32 %v2501_v26, %v2360_v18 }
 0x2e5   : >> { %v2769_v14 = vpop.f32.mrb[142].mxu0 }
 0x2e6   : >> { %v5922_v23 = vpop.f32.mrb[143].mxu0 }
 0x2e7   : >> { %v2346_v62 = vpop.f32.mrb[116].mxu1 }
 0x2e8   : >> { %v2361_v55 = vadd.f32 %v2346_v62, %v2232_v32  ;;  %v5865_v11 = vpop.f32.mrb[117].mxu1 }
 0x2e9   : >> { %v2349_v35 = vpop.f32.mrb[118].mxu1 }
 0x2ea   : >> { %v2362_v43 = vadd.f32 %v2349_v35, %v2235_v34  ;;  %v5866_v28 = vpop.f32.mrb[119].mxu1  ;;  %v2521_v60 = vadd.f32 %v2506_v39, %v2361_v55 }
 0x2eb   : >> { %v2774_v13 = vpop.f32.mrb[144].mxu0 }
 0x2ec   : >> { %v5925_v36 = vpop.f32.mrb[145].mxu0  ;;  %v2522_v48 = vadd.f32 %v2509_v24, %v2362_v43 }
 0x2ed   : >> { %v2777_v45 = vpop.f32.mrb[146].mxu0 }
 0x2ee   : >> { %v5926_v50 = vpop.f32.mrb[147].mxu0 }
 0x2ef   : >> { %v2641_v59 = vpop.f32.mrb[120].mxu1 }
 0x2f0   : >> { %v2680_v9 = vadd.f32 %v2641_v59, %v2513_v57  ;;  %v5897_v16 = vpop.f32.mrb[121].mxu1 }
 0x2f1   : >> { %v2644_v46 = vpop.f32.mrb[122].mxu1 }
 0x2f2   : >> { %v2681_v25 = vadd.f32 %v2644_v46, %v2514_v42  ;;  %v5898_v26 = vpop.f32.mrb[123].mxu1  ;;  %v2805_v53 = vadd.f32 %v2766_v41, %v2680_v9 }
 0x2f3   : >> { %v2782_v27 = vpop.f32.mrb[148].mxu0 }
 0x2f4   : >> { %v5929_v47 = vpop.f32.mrb[149].mxu0  ;;  %v2806_v32 = vadd.f32 %v2769_v14, %v2681_v25 }
 0x2f5   : >> { %v2785_v38 = vpop.f32.mrb[150].mxu0 }
 0x2f6   : >> { %v5930_v56 = vpop.f32.mrb[151].mxu0 }
 0x2f7   : >> { %v2649_v34 = vpop.f32.mrb[124].mxu1 }
 0x2f8   : >> { %v2682_v18 = vadd.f32 %v2649_v34, %v2515_v52  ;;  %v5901_v39 = vpop.f32.mrb[125].mxu1 }
 0x2f9   : >> { %v2652_v31 = vpop.f32.mrb[126].mxu1 }
 0x2fa   : >> { %v2683_v49 = vadd.f32 %v2652_v31, %v2516_v54  ;;  %v5902_v24 = vpop.f32.mrb[127].mxu1  ;;  %v2807_v23 = vadd.f32 %v2774_v13, %v2682_v18 }
 0x2fb   : >> { %v2790_v62 = vpop.f32.mrb[152].mxu0 }
 0x2fc   : >> { %v5933_v55 = vpop.f32.mrb[153].mxu0  ;;  %v2808_v57 = vadd.f32 %v2777_v45, %v2683_v49 }
 0x2fd   : >> { %v2793_v11 = vpop.f32.mrb[154].mxu0 }
 0x2fe   : >> { %v5934_v35 = vpop.f32.mrb[155].mxu0 }
 0x2ff   : >> { %v2657_v42 = vpop.f32.mrb[128].mxu1 }
 0x300   : >> { %v2684_v43 = vadd.f32 %v2657_v42, %v2517_v44  ;;  %v5905_v41 = vpop.f32.mrb[129].mxu1 }
 0x301   : >> { %v2660_v28 = vpop.f32.mrb[130].mxu1 }
 0x302   : >> { %v2685_v36 = vadd.f32 %v2660_v28, %v2518_v20  ;;  %v5906_v14 = vpop.f32.mrb[131].mxu1  ;;  %v2809_v50 = vadd.f32 %v2782_v27, %v2684_v43 }
 0x303   : >> { %v2798_v59 = vpop.f32.mrb[156].mxu0 }
 0x304   : >> { %v5937_v9 = vpop.f32.mrb[157].mxu0  ;;  %v2810_v52 = vadd.f32 %v2785_v38, %v2685_v36 }
 0x305   : >> { %v2801_v16 = vpop.f32.mrb[158].mxu0 }
 0x306   : >> { %v5938_v46 = vpop.f32.mrb[159].mxu0 }
 0x307   : >> { %v2665_v54 = vpop.f32.mrb[132].mxu1 }
 0x308   : >> { %v2686_v25 = vadd.f32 %v2665_v54, %v2519_v17  ;;  %v5909_v13 = vpop.f32.mrb[133].mxu1 }
 0x309   : >> { %v2668_v26 = vpop.f32.mrb[134].mxu1 }
 0x30a   : >> { %v2687_v47 = vadd.f32 %v2668_v26, %v2520_v37  ;;  %v5910_v45 = vpop.f32.mrb[135].mxu1  ;;  %v2811_v56 = vadd.f32 %v2790_v62, %v2686_v25 }
 0x30b   : >> { %v3093_v34 = vpop.f32.mrb[160].mxu0 }
 0x30c   : >> { %v5969_v18 = vpop.f32.mrb[161].mxu0  ;;  %v2812_v44 = vadd.f32 %v2793_v11, %v2687_v47 }
 0x30d   : >> { %v3096_v39 = vpop.f32.mrb[162].mxu0 }
 0x30e   : >> { %v5970_v31 = vpop.f32.mrb[163].mxu0 }
 0x30f   : >> { %v2673_v20 = vpop.f32.mrb[136].mxu1 }
 0x310   : >> { %v2688_v49 = vadd.f32 %v2673_v20, %v2521_v60  ;;  %v5913_v27 = vpop.f32.mrb[137].mxu1 }
 0x311   : >> { %v2676_v24 = vpop.f32.mrb[138].mxu1 }
 0x312   : >> { %v2689_v55 = vadd.f32 %v2676_v24, %v2522_v48  ;;  %v5914_v38 = vpop.f32.mrb[139].mxu1  ;;  %v2813_v35 = vadd.f32 %v2798_v59, %v2688_v49 }
 0x313   : >> { %v3101_v42 = vpop.f32.mrb[164].mxu0 }
 0x314   : >> { %v5973_v43 = vpop.f32.mrb[165].mxu0  ;;  %v2814_v17 = vadd.f32 %v2801_v16, %v2689_v55 }
 0x315   : >> { %v3104_v41 = vpop.f32.mrb[166].mxu0 }
 0x316   : >> { %v5974_v28 = vpop.f32.mrb[167].mxu0 }
 0x317   : >> { %v2926_v37 = vpop.f32.mrb[140].mxu1 }
 0x318   : >> { %v2965_v36 = vadd.f32 %v2926_v37, %v2805_v53  ;;  %v5945_v62 = vpop.f32.mrb[141].mxu1 }
 0x319   : >> { %v2929_v14 = vpop.f32.mrb[142].mxu1 }
 0x31a   : >> { %v2966_v9 = vadd.f32 %v2929_v14, %v2806_v32  ;;  %v5946_v11 = vpop.f32.mrb[143].mxu1  ;;  %v3132_v46 = vadd.f32 %v3093_v34, %v2965_v36 }
 0x31b   : >> { %v3109_v54 = vpop.f32.mrb[168].mxu0 }
 0x31c   : >> { %v5977_v25 = vpop.f32.mrb[169].mxu0  ;;  %v3133_v60 = vadd.f32 %v3096_v39, %v2966_v9 }
 0x31d   : >> { %v3112_v13 = vpop.f32.mrb[170].mxu0 }
 0x31e   : >> { %v5978_v26 = vpop.f32.mrb[171].mxu0 }
 0x31f   : >> { %v2934_v48 = vpop.f32.mrb[144].mxu1 }
 0x320   : >> { %v2967_v47 = vadd.f32 %v2934_v48, %v2807_v23  ;;  %v5949_v59 = vpop.f32.mrb[145].mxu1 }
 0x321   : >> { %v2937_v45 = vpop.f32.mrb[146].mxu1 }
 0x322   : >> { %v2968_v18 = vadd.f32 %v2937_v45, %v2808_v57  ;;  %v5950_v16 = vpop.f32.mrb[147].mxu1  ;;  %v3134_v31 = vadd.f32 %v3101_v42, %v2967_v47 }
 0x323   : >> { %v3117_v20 = vpop.f32.mrb[172].mxu0  ;;  %v7330_v16 = vld [vmem:[%s6936_s28 + $0x1] ss:$0 sm:$0xff] }
 0x324   : >> { %v5981_v49 = vpop.f32.mrb[173].mxu0  ;;  %v3135_v53 = vadd.f32 %v3104_v41, %v2968_v18 }
 0x325   : >> { %v3120_v27 = vpop.f32.mrb[174].mxu0 }
 0x326   : >> { %v5982_v24 = vpop.f32.mrb[175].mxu0 }
 0x327   : >> { %v2942_v32 = vpop.f32.mrb[148].mxu1  ;;  %v1910_v24 = vld [vmem:[#allocation4] sm:$0xff] }
 0x328   : >> { %v2969_v55 = vadd.f32 %v2942_v32, %v2809_v50  ;;  %v5953_v34 = vpop.f32.mrb[149].mxu1 }
 0x329   : >> { %v2945_v38 = vpop.f32.mrb[150].mxu1 }
 0x32a   : >> { %v2970_v43 = vadd.f32 %v2945_v38, %v2810_v52  ;;  %v5954_v39 = vpop.f32.mrb[151].mxu1  ;;  %v7317_v28 = vadd.f32 %v3109_v54, %v2969_v55 }
 0x32b   : >> { %v3125_v37 = vpop.f32.mrb[176].mxu0 }
 0x32c   : >> { %v5985_v23 = vpop.f32.mrb[177].mxu0  ;;  %v7319_v36 = vadd.f32 %v3112_v13, %v2970_v43 }
 0x32d   : >> { %v3128_v57 = vpop.f32.mrb[178].mxu0 }
 0x32e   : >> { %v5986_v62 = vpop.f32.mrb[179].mxu0 }
 0x32f   : >> { %v2950_v42 = vpop.f32.mrb[152].mxu1 }
 0x330   : >> { %v2971_v14 = vadd.f32 %v2950_v42, %v2811_v56  ;;  %v5957_v41 = vpop.f32.mrb[153].mxu1 }
 0x331   : >> { %v2953_v9 = vpop.f32.mrb[154].mxu1  ;;  %v1912_v41 = vld [vmem:[#allocation4 + $0x10] sm:$0xff] }
 0x332   : >> { %v2972_v11 = vadd.f32 %v2953_v9, %v2812_v44  ;;  %v5958_v25 = vpop.f32.mrb[155].mxu1  ;;  %v7321_v50 = vadd.f32 %v3117_v20, %v2971_v14 }
 0x334   : >> { %v7323_v26 = vadd.f32 %v3120_v27, %v2972_v11 }
 0x337   : >> { %v2958_v52 = vpop.f32.mrb[156].mxu1 }
 0x338   : >> { %v2973_v54 = vadd.f32 %v2958_v52, %v2813_v35  ;;  %v5961_v48 = vpop.f32.mrb[157].mxu1  ;;  %v1911_v35 = vld [vmem:[#allocation4 + $0x8] sm:$0xff] }
 0x339   : >> { %v2961_v47 = vpop.f32.mrb[158].mxu1 }
 0x33a   : >> { %v2974_v59 = vadd.f32 %v2961_v47, %v2814_v17  ;;  %v5962_v13 = vpop.f32.mrb[159].mxu1  ;;  %v7325_v45 = vadd.f32 %v3125_v37, %v2973_v54  ;;  %v1913_v47 = vld [vmem:[#allocation4 + $0x18] sm:$0xff] }
 0x33c   : >> { %v7327_v18 = vadd.f32 %v3128_v57, %v2974_v59  ;;  %v3455_v59 = vld [vmem:[#allocation2 + $0x4] sm:$0xe] }
 0x33f   : >> { %v3218_v56 = vpop.f32.mrb[160].mxu1 }
 0x340   : >> { %v3257_v49 = vadd.f32 %v3218_v56, %v3132_v46  ;;  %v5993_v44 = vpop.f32.mrb[161].mxu1 }
 0x341   : >> { %v3221_v20 = vpop.f32.mrb[162].mxu1 }
 0x342   : >> { %v3275_v27 = vadd.f32 %v7330_v16, %v3257_v49  ;;  %v3258_v32 = vadd.f32 %v3221_v20, %v3133_v60  ;;  %v5994_v55 = vpop.f32.mrb[163].mxu1 }
 0x344   : >> { %v3285_v34 = vadd.f32 %v3275_v27, %v1910_v24  ;;  %v3276_v17 = vadd.f32 %v7330_v16, %v3258_v32 }
 0x346   : >> { %3295 = vst.msk [vmem:[#allocation4] sm:$0xff] %vm261_vm9, %v3285_v34  ;;  %v3305_v38 = vmul.f32 %v3285_v34, %v6941_v29  ;;  %v3286_v43 = vadd.f32 %v3276_v17, %v1911_v35 }
 0x347   : >> { %v3226_v39 = vpop.f32.mrb[164].mxu1 }
 0x348   : >> { %v5350_v37 = vpack.c.bf16 %v3305_v38, %v3305_v38  ;;  %3296 = vst.msk [vmem:[#allocation4 + $0x8] sm:$0xff] %vm261_vm9, %v3286_v43  ;;  %v3306_v46 = vmul.f32 %v3286_v43, %v6946_v63  ;;  %v3259_v23 = vadd.f32 %v3226_v39, %v3134_v31  ;;  %v5997_v57 = vpop.f32.mrb[165].mxu1  ;;  %v1914_v38 = vld [vmem:[#allocation4 + $0x20] sm:$0xff] }
 0x349   : >> { %v3229_v62 = vpop.f32.mrb[166].mxu1 }
 0x34a   : >> { %v3346_v60 = vshrl.u32 %v5350_v37, 16  ;;  %v3349_v42 = vshll.u32 %v5350_v37, 16  ;;  %v5351_v14 = vpack.c.bf16 %v3306_v46, %v3306_v46  ;;  %v3277_v9 = vadd.f32 %v7330_v16, %v3259_v23  ;;  %v5998_v11 = vpop.f32.mrb[167].mxu1 }
 0x34b   : >> { %v3260_v25 = vadd.f32 %v3229_v62, %v3135_v53  ;;  %v1915_v62 = vld [vmem:[#allocation4 + $0x28] sm:$0xff] }
 0x34c   : >> { %v3348_v52 = vrot.slane %v3346_v60, 6  ;;  %v3351_v29 = vrot.slane %v3349_v42, 7  ;;  %v3355_v54 = vshrl.u32 %v5351_v14, 16  ;;  %v3358_v48 = vshll.u32 %v5351_v14, 16 }
 0x34d   : >> { %v3287_v13 = vadd.f32 %v3277_v9, %v1912_v41  ;;  %v3278_v63 = vadd.f32 %v7330_v16, %v3260_v25 }
 0x34e   : >> { %v3352_v31 = vor.u32 %v3351_v29, %v3348_v52  ;;  %v3357_v56 = vrot.slane %v3355_v54, 6  ;;  %v3360_v49 = vrot.slane %v3358_v48, 7 }
 0x34f   : >> { %3297 = vst.msk [vmem:[#allocation4 + $0x10] sm:$0xff] %vm261_vm9, %v3287_v13  ;;  %v3307_v44 = vmul.f32 %v3287_v13, %v6952_v22  ;;  %v3288_v24 = vadd.f32 %v3278_v63, %v1913_v47  ;;  %v3234_v20 = vpop.f32.mrb[168].mxu1 }
 0x350   : >> { %v3353_v27 = vrot.slane %v3352_v31, 4  ;;  %v3456_v53 = vsel %vm6493_vm7, %v3352_v31, %v3455_v59  ;;  %v3361_v32 = vor.u32 %v3360_v49, %v3357_v56  ;;  %v3261_v55 = vadd.f32 %v3234_v20, %v7317_v28  ;;  %v6001_v35 = vpop.f32.mrb[169].mxu1 }
 0x351   : >> { %3457 = vst [vmem:[#allocation2 + $0x4] sm:$0xe] %v3456_v53  ;;  %v5352_v34 = vpack.c.bf16 %v3307_v44, %v3307_v44  ;;  %3298 = vst.msk [vmem:[#allocation4 + $0x18] sm:$0xff] %vm261_vm9, %v3288_v24  ;;  %v3308_v17 = vmul.f32 %v3288_v24, %v6965_v19  ;;  %v3237_v43 = vpop.f32.mrb[170].mxu1 }
 0x352   : >> { %v3362_v22 = vsel %vm6958_vm3, %v3353_v27, %v3361_v32  ;;  %v3279_v39 = vadd.f32 %v7330_v16, %v3261_v55  ;;  %v3262_v37 = vadd.f32 %v3237_v43, %v7319_v36  ;;  %v6002_v46 = vpop.f32.mrb[171].mxu1  ;;  %v3363_v36 = vrot.slane %v3361_v32, 4  ;;  %v1916_v27 = vld [vmem:[#allocation4 + $0x30] sm:$0xff] }
 0x353   : >> { %3458 = vst.msk [vmem:[#allocation2 + $0x8] sm:$0xf] %vm222_vm0, %v3362_v22  ;;  %v3365_v28 = vshrl.u32 %v5352_v34, 16  ;;  %v3368_v23 = vshll.u32 %v5352_v34, 16  ;;  %v5353_v57 = vpack.c.bf16 %v3308_v17, %v3308_v17 }
 0x354   : >> { %v3289_v60 = vadd.f32 %v3279_v39, %v1914_v38  ;;  %v3280_v42 = vadd.f32 %v7330_v16, %v3262_v37  ;;  %v1917_v38 = vld [vmem:[#allocation4 + $0x38] sm:$0xff] }
 0x355   : >> { %v3367_v19 = vrot.slane %v3365_v28, 6  ;;  %v3370_v14 = vrot.slane %v3368_v23, 7  ;;  %v3375_v41 = vshrl.u32 %v5353_v57, 16  ;;  %v3378_v9 = vshll.u32 %v5353_v57, 16 }
 0x356   : >> { %3299 = vst.msk [vmem:[#allocation4 + $0x20] sm:$0xff] %vm261_vm9, %v3289_v60  ;;  %v3309_v11 = vmul.f32 %v3289_v60, %v6974_v58  ;;  %v3290_v25 = vadd.f32 %v3280_v42, %v1915_v62 }
 0x357   : >> { %v3371_v52 = vor.u32 %v3370_v14, %v3367_v19  ;;  %v3377_v29 = vrot.slane %v3375_v41, 6  ;;  %v3380_v54 = vrot.slane %v3378_v9, 7  ;;  %v3242_v48 = vpop.f32.mrb[172].mxu1 }
 0x358   : >> { %v5354_v47 = vpack.c.bf16 %v3309_v11, %v3309_v11  ;;  %3300 = vst.msk [vmem:[#allocation4 + $0x28] sm:$0xff] %vm261_vm9, %v3290_v25  ;;  %v3310_v59 = vmul.f32 %v3290_v25, %v6978_v33  ;;  %v3263_v13 = vadd.f32 %v3242_v48, %v7321_v50  ;;  %v6005_v63 = vpop.f32.mrb[173].mxu1  ;;  %v1918_v11 = vld [vmem:[#allocation4 + $0x40] sm:$0xff] }
 0x359   : >> { %v3372_v31 = vsel %vm6958_vm3, %v3363_v36, %v3371_v52  ;;  %v3373_v56 = vrot.slane %v3371_v52, 4  ;;  %v3381_v49 = vor.u32 %v3380_v54, %v3377_v29  ;;  %v3245_v58 = vpop.f32.mrb[174].mxu1 }
 0x35a   : >> { %3459 = vst.msk [vmem:[#allocation2 + $0xc] sm:$0xf] %vm222_vm0, %v3372_v31  ;;  %v3385_v44 = vshrl.u32 %v5354_v47, 16  ;;  %v3388_v24 = vshll.u32 %v5354_v47, 16  ;;  %v5355_v20 = vpack.c.bf16 %v3310_v59, %v3310_v59  ;;  %v3281_v53 = vadd.f32 %v7330_v16, %v3263_v13  ;;  %v6006_v32 = vpop.f32.mrb[175].mxu1  ;;  %v1919_v47 = vld [vmem:[#allocation4 + $0x48] sm:$0xff] }
 0x35b   : >> { %v3382_v33 = vsel %vm6958_vm3, %v3373_v56, %v3381_v49  ;;  %v3264_v50 = vadd.f32 %v3245_v58, %v7323_v26  ;;  %v3383_v39 = vrot.slane %v3381_v49, 4 }
 0x35c   : >> { %3460 = vst.msk [vmem:[#allocation2 + $0x10] sm:$0xf] %vm222_vm0, %v3382_v33  ;;  %v3387_v55 = vrot.slane %v3385_v44, 6  ;;  %v3390_v35 = vrot.slane %v3388_v24, 7  ;;  %v3395_v34 = vshrl.u32 %v5355_v20, 16  ;;  %v3398_v17 = vshll.u32 %v5355_v20, 16 }
 0x35d   : >> { %v3291_v43 = vadd.f32 %v3281_v53, %v1916_v27  ;;  %v3282_v22 = vadd.f32 %v7330_v16, %v3264_v50 }
 0x35e   : >> { %v3391_v37 = vor.u32 %v3390_v35, %v3387_v55  ;;  %v3397_v46 = vrot.slane %v3395_v34, 6  ;;  %v3400_v28 = vrot.slane %v3398_v17, 7 }
 0x35f   : >> { %3301 = vst.msk [vmem:[#allocation4 + $0x30] sm:$0xff] %vm261_vm9, %v3291_v43  ;;  %v3311_v23 = vmul.f32 %v3291_v43, %v6998_v51  ;;  %v3292_v57 = vadd.f32 %v3282_v22, %v1917_v38  ;;  %v3250_v26 = vpop.f32.mrb[176].mxu1 }
 0x360   : >> { %v3392_v62 = vsel %vm6958_vm3, %v3383_v39, %v3391_v37  ;;  %v3393_v60 = vrot.slane %v3391_v37, 4  ;;  %v3401_v42 = vor.u32 %v3400_v28, %v3397_v46  ;;  %v3265_v19 = vadd.f32 %v3250_v26, %v7325_v45  ;;  %v6009_v14 = vpop.f32.mrb[177].mxu1 }
 0x361   : >> { %3461 = vst.msk [vmem:[#allocation2 + $0x14] sm:$0xf] %vm222_vm0, %v3392_v62  ;;  %v5356_v41 = vpack.c.bf16 %v3311_v23, %v3311_v23  ;;  %v3312_v9 = vmul.f32 %v3292_v57, %v7004_v40  ;;  %v3253_v25 = vpop.f32.mrb[178].mxu1  ;;  %v3507_v14 = vld [vmem:[#allocation2] sm:$0xf] (%p288_p4)  ;;  %v7417_v1 = vld [vmem:[#allocation2 + $0x8] sm:$0xff] (%p288_p4)  }
 0x362   : >> { %3302 = vst.msk [vmem:[#allocation4 + $0x38] sm:$0xff] %vm261_vm9, %v3292_v57  ;;  %v3402_v51 = vsel %vm6958_vm3, %v3393_v60, %v3401_v42  ;;  %v3283_v36 = vadd.f32 %v7330_v16, %v3265_v19  ;;  %v3266_v52 = vadd.f32 %v3253_v25, %v7327_v18  ;;  %v6010_v29 = vpop.f32.mrb[179].mxu1  ;;  %v3403_v18 = vrot.slane %v3401_v42, 4  ;;  %v3467_v57 = vld [vmem:[#allocation2 + $0x2c] sm:$0x3]  ;;  %v6338_v42 = vld [vmem:[%s7800_s1 + $0x6d0] sm:$0xff] (%p288_p4)  }
 0x363   : >> { %3462 = vst.msk [vmem:[#allocation2 + $0x18] sm:$0xf] %vm222_vm0, %v3402_v51  ;;  %v3405_v45 = vshrl.u32 %v5356_v41, 16  ;;  %v3408_v54 = vshll.u32 %v5356_v41, 16  ;;  %v5357_v48 = vpack.c.bf16 %v3312_v9, %v3312_v9  ;;  %v6399_v19 = vmov (%p288_p4), 0.0   ;;  %v6344_v9 = vld [vmem:[%s7800_s1 + $0x6e0] sm:$0xff] (%p288_p4)  }
 0x364   : >> { %v3293_v59 = vadd.f32 %v3283_v36, %v1918_v11  ;;  %v3284_v13 = vadd.f32 %v7330_v16, %v3266_v52  ;;  %6011 = vmatprep.subr.bf16.mxu0 (%p288_p4), %v6399_v19  ;;  %6227 = vmatprep.subr.bf16.mxu1 (%p288_p4), %v6399_v19  ;;  %v7410_v41 = vld [vmem:[#allocation2 + $0x4] sm:$0xf] (%p288_p4)  ;;  %v3555_v4 = vshll.u32 (%p288_p4), %v7417_v1, 16  ;;  %v3559_v52 = vshrl.u32 (%p288_p4), %v7417_v1, 16 }
 0x365   : >> { %v3407_v40 = vrot.slane %v3405_v45, 6  ;;  %v3410_v63 = vrot.slane %v3408_v54, 7  ;;  %v3415_v31 = vshrl.u32 %v5357_v48, 16  ;;  %v3418_v56 = vshll.u32 %v5357_v48, 16  ;;  %6012 = vmatpush3.bf16.msra.mxu0 (%p288_p4), %v6338_v42  ;;  %6229 = vmatpush3.bf16.msra.mxu1 (%p288_p4), %v6338_v42  ;;  %v6345_v51 = vld [vmem:[%s7800_s1 + $0x6c0] sm:$0xff] (%p288_p4)  }
 0x366   : >> { %3303 = vst.msk [vmem:[#allocation4 + $0x40] sm:$0xff] %vm261_vm9, %v3293_v59  ;;  %v3313_v49 = vmul.f32 %v3293_v59, %v7025_v30  ;;  %v3294_v58 = vadd.f32 %v3284_v13, %v1919_v47  ;;  %6013 = vmatprep.subr.bf16.mxu0 (%p288_p4), %v6399_v19  ;;  %6228 = vmatprep.subr.bf16.mxu1 (%p288_p4), %v6399_v19  ;;  %v3557_v8 = vrot.slane (%p288_p4), %v3555_v4, 1 }
 0x367   : >> { %v3411_v44 = vor.u32 %v3410_v63, %v3407_v40  ;;  %v3417_v24 = vrot.slane %v3415_v31, 6  ;;  %v3420_v20 = vrot.slane %v3418_v56, 7  ;;  %v7415_v0 = vcombine.low (%p288_p4), %v3507_v14, %v7410_v41  ;;  %6015 = vmatprep.mubr.msk.bf16.mxu0 (%p288_p4), %vm6400_vm4, %v6399_v19  ;;  %6027 = vmatprep.mubr.msk.bf16.mxu1 (%p288_p4), %vm6400_vm4, %v6399_v19  ;;  %v6349_v56 = vld [vmem:[%s7800_s1 + $0x6e8] sm:$0xff] (%p288_p4)  }
 0x368   : >> { %v5358_v27 = vpack.c.bf16 %v3313_v49, %v3313_v49  ;;  %3304 = vst.msk [vmem:[#allocation4 + $0x48] sm:$0xff] %vm261_vm9, %v3294_v58  ;;  %v3314_v53 = vmul.f32 %v3294_v58, %v7032_v21  ;;  %v7441_v36 = vld [vmem:[#allocation2 + $0x10] sm:$0xff] (%p288_p4)   ;;  %v3561_v63 = vor.u32 (%p288_p4), %v3559_v52, %v3557_v8 }
 0x369   : >> { %v3412_v16 = vsel %vm6958_vm3, %v3403_v18, %v3411_v44  ;;  %v3413_v32 = vrot.slane %v3411_v44, 4  ;;  %v3421_v33 = vor.u32 %v3420_v20, %v3417_v24  ;;  %v3548_v2 = vshrl.u32 (%p288_p4), %v7415_v0, 16  ;;  %6014 = vmatpush3.bf16.msra.mxu0 (%p288_p4), %v6339_v61  ;;  %6230 = vmatpush3.bf16.msra.mxu1 (%p288_p4), %v6339_v61  ;;  %v6348_v18 = vld [vmem:[%s7800_s1 + $0x6c8] sm:$0xff] (%p288_p4)  }
 0x36a   : >> { %3463 = vst.msk [vmem:[#allocation2 + $0x1c] sm:$0xf] %vm222_vm0, %v3412_v16  ;;  %v3425_v50 = vshrl.u32 %v5358_v27, 16  ;;  %v3428_v55 = vshll.u32 %v5358_v27, 16  ;;  %v5359_v30 = vpack.c.bf16 %v3314_v53, %v3314_v53  ;;  %v3550_v3 = vshll.u32 (%p288_p4), %v7415_v0, 16  ;;  %6059 = vmatprep.subr.bf16.mxu0 (%p288_p4), %v6399_v19  ;;  %6035 = vmatprep.subr.bf16.mxu1 (%p288_p4), %v6399_v19 }
 0x36b   : >> { %v3422_v35 = vsel %vm6958_vm3, %v3413_v32, %v3421_v33  ;;  %v3423_v21 = vrot.slane %v3421_v33, 4  ;;  %v3563_v47 = vshll.u32 (%p288_p4), %v7441_v36, 16  ;;  %v3567_v24 = vshrl.u32 (%p288_p4), %v7441_v36, 16  ;;  %v3786_v53 = vld [vmem:[#allocation2] sm:$0xe] (%p288_p4)  ;;  %v6350_v33 = vld [vmem:[%s7800_s1 + $0x6f0] sm:$0xff] (%p288_p4)  }
 0x36c   : >> { %3464 = vst.msk [vmem:[#allocation2 + $0x20] sm:$0xf] %vm222_vm0, %v3422_v35  ;;  %v3427_v34 = vrot.slane %v3425_v50, 6  ;;  %v3430_v17 = vrot.slane %v3428_v55, 7  ;;  %v3435_v38 = vshrl.u32 %v5359_v30, 16  ;;  %v3438_v43 = vshll.u32 %v5359_v30, 16 }
 0x36d   : > { %v3552_v7 = vrot.slane (%p288_p4), %v3550_v3, 1  ;;  %v3565_v31 = vrot.slane (%p288_p4), %v3563_v47, 1  ;;  %v5259_v32 = vcombine.low (%p288_p4), %v3786_v53, %v7410_v41  ;;  %v3792_v55 = vrot.slane (%p288_p4), %v7417_v1, 1  ;;  %v6353_v30 = vld [vmem:[%s7800_s1 + $0x6f8] sm:$0xff] (%p288_p4)  }
 0x36e   : >> { %v3431_v22 = vor.u32 %v3430_v17, %v3427_v34  ;;  %v3437_v39 = vrot.slane %v3435_v38, 6  ;;  %v3440_v37 = vrot.slane %v3438_v43, 7  ;;  %v6352_v34 = vld [vmem:[%s7800_s1 + $0x700] sm:$0xff] (%p288_p4)   ;;  %v3794_v17 = vrot.slane (%p288_p4), %v7441_v36, 1  ;;  %v6354_v38 = vld [vmem:[%s7800_s1 + $0x708] sm:$0xff] (%p288_p4)  }
 0x36f   : > { %290 = sbr.rel (!%p288_p4) target bundleno = 35 (0x23), region = 79  ;;  %v3553_v11 = vor.u32 (%p288_p4), %v3552_v7, %v3548_v2  ;;  %v3566_v44 = vsel (%p288_p4), %vm371_vm11, %v3561_v63, %v3565_v31  ;;  %v3569_v27 = vor.u32 (%p288_p4), %v3567_v24, %v3565_v31  ;;  %v3791_v50 = vrot.slane (%p288_p4), %v5259_v32, 1  ;;  %v6357_v7 = vld [vmem:[%s7800_s1 + $0x710] sm:$0xff] (%p288_p4)  }
 0x370   : >> { %v3432_v46 = vsel %vm6958_vm3, %v3423_v21, %v3431_v22  ;;  %v3433_v28 = vrot.slane %v3431_v22, 4  ;;  %v3441_v23 = vor.u32 %v3440_v37, %v3437_v39  ;;  %v3795_v43 = vsel (%p288_p4), %vm615_vm12, %v3792_v55, %v3794_v17  ;;  %v3912_v37 = vld [vmem:[#allocation2 + $0x4] sm:$0xe] (%p288_p4) }
 0x371   : >> { %3465 = vst.msk [vmem:[#allocation2 + $0x24] sm:$0xf] %vm222_vm0, %v3432_v46  ;;  %v7426_v5 = vld [vmem:[#allocation2 + $0x18] sm:$0xff] (%p288_p4)   ;;  %v3558_v54 = vsel (%p288_p4), %vm371_vm11, %v3553_v11, %v3557_v8  ;;  %v3793_v35 = vsel (%p288_p4), %vm615_vm12, %v3791_v50, %v3792_v55  ;;  %v7529_v46 = vld [vmem:[#allocation2 + $0x8] sm:$0xf] (%p288_p4) }
 0x372   : >> { %v3442_v26 = vsel %vm6958_vm3, %v3433_v28, %v3441_v23  ;;  %v3443_v62 = vrot.slane %v3441_v23, 4  ;;  %v3571_v10 = vshll.u32 (%p288_p4), %v7426_v5, 16  ;;  %v3575_v12 = vshrl.u32 (%p288_p4), %v7426_v5, 16  ;;  %6016 = vmatmul.mubr.msk.bf16.vlgmr.msra.gmra.mrb[0].mxu0 (%p288_p4), %vm261_vm9, %v3558_v54  ;;  %v7551_v8 = vld [vmem:[#allocation2 + $0x14] sm:$0xff] (%p288_p4)  }
 0x373   : >> { %3466 = vst.msk [vmem:[#allocation2 + $0x28] sm:$0xf] %vm222_vm0, %v3442_v26  ;;  %6060 = vmatpush3.bf16.msra.mxu0 (%p288_p4), %v6344_v9  ;;  %6019 = vmatprep.mubr.msk.bf16.mxu0 (%p288_p4), %vm6400_vm4, %v6399_v19  ;;  %v3796_v21 = vrot.slane (%p288_p4), %v7426_v5, 1  ;;  %v5267_v23 = vcombine.low (%p288_p4), %v3912_v37, %v7529_v46  ;;  %v3954_v9 = vrot.slane (%p288_p4), %v7551_v8, 1  ;;  %v6362_v11 = vld [vmem:[%s7800_s1 + $0x718] sm:$0xff] (%p288_p4)  }
 0x374   : >> { %v3468_v60 = vsel %vm6487_vm5, %v3443_v62, %v3467_v57  ;;  %v3573_v25 = vrot.slane (%p288_p4), %v3571_v10, 1  ;;  %6061 = vmatprep.subr.bf16.mxu0 (%p288_p4), %v6399_v19  ;;  %v7533_v57 = vld [vmem:[#allocation2 + $0xc] sm:$0xff] (%p288_p4)   ;;  %v4366_v37 = vld [vmem:[#allocation2 + $0x8] sm:$0xc] (%p288_p4) }
 0x375   : >> { %3469 = vst [vmem:[#allocation2 + $0x2c] sm:$0x3] %v3468_v60  ;;  %v3797_v22 = vsel (%p288_p4), %vm615_vm12, %v3794_v17, %v3796_v21  ;;  %v4078_v62 = vshrl.u32 (%p288_p4), %v5267_v23, 16  ;;  %v4081_v60 = vshll.u32 (%p288_p4), %v5267_v23, 16  ;;  %v4086_v42 = vshrl.u32 (%p288_p4), %v7533_v57, 16 }
 0x376   : > { %v3577_v48 = vor.u32 %v3575_v12, %v3573_v25  ;;  %v3574_v16 = vsel %vm371_vm11, %v3569_v27, %v3573_v25  ;;  %v4089_v61 = vshll.u32 %v7533_v57, 16  ;;  %v3951_v14 = vrot.slane %v5267_v23, 1 }
 0x377   : > { %6062 = vmatpush3.bf16.msra.mxu0 %v6349_v56  ;;  %v3952_v41 = vrot.slane %v7533_v57, 1  ;;  %v4083_v2 = vrot.slane %v4081_v60, 2  ;;  %v4088_v3 = vrot.slane %v4086_v42, 1  ;;  %v4095_v12 = vshrl.u32 %v7551_v8, 16  ;;  %v7627_v60 = vld [vmem:[#allocation2 + $0x10] sm:$0xff]  }
 0x378   : > { %v7428_v6 = vld [vmem:[#allocation2 + $0x20] sm:$0xff]   ;;  %6107 = vmatprep.subr.bf16.mxu0 %v6399_v19  ;;  %v4091_v4 = vrot.slane %v4089_v61, 2  ;;  %v6367_v61 = vld [vmem:[%s7800_s1 + $0x730] sm:$0xff]  }
 0x379   : > { %v3579_v15 = vshll.u32 %v7428_v6, 16  ;;  %v3583_v59 = vshrl.u32 %v7428_v6, 16  ;;  %v3798_v39 = vrot.slane %v7428_v6, 1 }
 0x37a   : > { %v7444_v45 = vld [vmem:[#allocation2 + $0x28] ss:$0 sps:$4 sm:$0x11]   ;;  %6020 = vmatmul.mubr.msk.bf16.gmra.mrb[4].mxu0 %vm261_vm9, %v3566_v44  ;;  %v4092_v10 = vor.u32 %v4091_v4, %v4088_v3  ;;  %v7649_v3 = vld [vmem:[#allocation2 + $0x18] sm:$0xff]  }
 0x37b   : > { %v3581_v29 = vrot.slane %v3579_v15, 1  ;;  %v3587_v13 = vshll.u32 %v7444_v45, 16  ;;  %6023 = vmatprep.mubr.msk.bf16.mxu0 %vm6400_vm4, %v6399_v19  ;;  %v3799_v28 = vsel %vm615_vm12, %v3796_v21, %v3798_v39  ;;  %v3800_v26 = vrot.slane %v7444_v45, 1  ;;  %v7571_v45 = vld [vmem:[#allocation2 + $0x1c] sm:$0xff]  }
 0x37c   : > { %v4098_v15 = vshll.u32 %v7551_v8, 16  ;;  %v4107_v47 = vshll.u32 %v7571_v45, 16 }
 0x37d   : > { %v3582_v40 = vsel %vm371_vm11, %v3577_v48, %v3581_v29  ;;  %v3585_v49 = vor.u32 %v3583_v59, %v3581_v29  ;;  %v3589_v58 = vrot.slane %v3587_v13, 1  ;;  %v3955_v29 = vsel %vm615_vm12, %v3952_v41, %v3954_v9  ;;  %v6363_v59 = vld [vmem:[%s7800_s1 + $0x728] sm:$0xff]  }
 0x37e   : > { %6028 = vmatmul.mubr.msk.bf16.vlgmr.msra.gmra.mrb[0].mxu1 %vm261_vm9, %v3582_v40  ;;  %v4100_v52 = vrot.slane %v4098_v15, 2  ;;  %v4104_v48 = vshrl.u32 %v7571_v45, 16  ;;  %v3956_v13 = vrot.slane %v7571_v45, 1  ;;  %v4109_v31 = vrot.slane %v4107_v47, 2 }
 0x37f   : > { %6031 = vmatprep.mubr.msk.bf16.mxu1 %vm6400_vm4, %v6399_v19  ;;  %6036 = vmatpush3.bf16.msra.mxu1 %v6345_v51  ;;  %v3590_v20 = vsel %vm371_vm11, %v3585_v49, %v3589_v58  ;;  %v6359_v51 = vld [vmem:[%s7800_s1 + $0x720] sm:$0xff]  }
 0x380   : > { %6037 = vmatprep.subr.bf16.mxu1 %v6399_v19  ;;  %v4106_v63 = vrot.slane %v4104_v48, 1  ;;  %v3957_v56 = vsel %vm615_vm12, %v3954_v9, %v3956_v13  ;;  %v7590_v49 = vld [vmem:[#allocation2 + $0x24] sm:$0xff]   ;;  %v4543_v48 = vshll.u32 %v7627_v60, 16 }
 0x381   : > { %v4116_v44 = vshll.u32 %v7590_v49, 16  ;;  %v3958_v24 = vrot.slane %v7590_v49, 1  ;;  %v4252_v9 = vrot.slane %v7590_v49, 2 }
 0x382   : > { %6024 = vmatmul.mubr.msk.bf16.gmra.mrb[8].mxu0 %vm261_vm9, %v3574_v16  ;;  %v4110_v58 = vor.u32 %v4109_v31, %v4106_v63  ;;  %v7602_v16 = vld [vmem:[#allocation2 + $0x2c] ss:$0 sps:$4 sm:$0x33]  }
 0x383   : > { %6038 = vmatpush3.bf16.msra.mxu1 %v6348_v18  ;;  %6063 = vmatprep.mubr.msk.bf16.mxu0 %vm6400_vm4, %v6399_v19  ;;  %v4113_v18 = vshrl.u32 %v7590_v49, 16  ;;  %v4118_v53 = vrot.slane %v4116_v44, 2  ;;  %v3959_v32 = vsel %vm615_vm12, %v3956_v13, %v3958_v24  ;;  %v4122_v55 = vshrl.u32 %v7602_v16, 16 }
 0x384   : > { %6083 = vmatprep.subr.bf16.mxu1 %v6399_v19 }
 0x385   : > { %v4115_v27 = vrot.slane %v4113_v18, 1 }
 0x386   : > { %6032 = vmatmul.mubr.msk.bf16.gmra.mrb[4].mxu1 %vm261_vm9, %v3590_v20 }
 0x387   : > { %6039 = vmatprep.mubr.msk.bf16.mxu1 %vm6400_vm4, %v6399_v19  ;;  %v4119_v50 = vor.u32 %v4118_v53, %v4115_v27 }
 0x389   : > { %v4120_v17 = vsel %vm901_vm13, %v4110_v58, %v4119_v50 }
 0x38a   : > { %6064 = vmatmul.mubr.msk.bf16.vlgmr.msra.gmra.mrb[12].mxu0 %vm261_vm9, %v3793_v35 }
 0x38b   : > { %6108 = vmatpush3.bf16.msra.mxu0 %v6352_v34  ;;  %6067 = vmatprep.mubr.msk.bf16.mxu0 %vm6400_vm4, %v6399_v19  ;;  %v4240_v34 = vld [vmem:[#allocation2 + $0x4] sm:$0xc] }
 0x38c   : > { %6109 = vmatprep.subr.bf16.mxu0 %v6399_v19 }
 0x38e   : > { %6040 = vmatmul.mubr.msk.bf16.vlgmr.msra.gmra.mrb[8].mxu1 %vm261_vm9, %v7415_v0  ;;  %v3801_v0 = vsel %vm615_vm12, %v3798_v39, %v3800_v26  ;;  %v4246_v26 = vrot.slane %v7533_v57, 2  ;;  %v4406_v57 = vrot.slane %v7627_v60, 2 }
 0x38f   : > { %6043 = vmatprep.mubr.msk.bf16.mxu1 %vm6400_vm4, %v6399_v19  ;;  %6084 = vmatpush3.bf16.msra.mxu1 %v6350_v33  ;;  %v6364_v33 = vld [vmem:[#allocation2 + $0x2c] ss:$0 sps:$4 sm:$0x11]  }
 0x390   : > { %6085 = vmatprep.subr.bf16.mxu1 %v6399_v19  ;;  %6110 = vmatpush3.bf16.msra.mxu0 %v6354_v38  ;;  %v3960_v35 = vrot.slane %v6364_v33, 1  ;;  %v4124_v38 = vrot.slane %v4122_v55, 1  ;;  %v4700_v55 = vrot.slane %v7627_v60, 3 }
 0x391   : > { %6155 = vmatprep.subr.bf16.mxu0 %v6399_v19 }
 0x392   : > { %6068 = vmatmul.mubr.msk.bf16.gmra.mrb[16].mxu0 %vm261_vm9, %v3795_v43  ;;  %v3961_v21 = vsel %vm615_vm12, %v3958_v24, %v3960_v35  ;;  %v4549_v24 = vshrl.u32 %v7649_v3, 16 }
 0x393   : > { %6086 = vmatpush3.bf16.msra.mxu1 %v6353_v30  ;;  %6071 = vmatprep.mubr.msk.bf16.mxu0 %vm6400_vm4, %v6399_v19  ;;  %v4125_v30 = vshll.u32 %v7602_v16, 16 }
 0x394   : > { %6131 = vmatprep.subr.bf16.mxu1 %v6399_v19 }
 0x395   : > { %v4127_v43 = vrot.slane %v4125_v30, 2 }
 0x396   : > { %6044 = vmatmul.mubr.msk.bf16.gmra.mrb[12].mxu1 %vm261_vm9, %v7417_v1  ;;  %v4080_v1 = vrot.slane %v4078_v62, 1 }
 0x397   : > { %6047 = vmatprep.mubr.msk.bf16.mxu1 %vm6400_vm4, %v6399_v19  ;;  %v4128_v39 = vor.u32 %v4127_v43, %v4124_v38 }
 0x399   : > { %v4129_v62 = vsel %vm901_vm13, %v4119_v50, %v4128_v39 }
 0x39a   : > { %6072 = vmatmul.mubr.msk.bf16.gmra.mrb[20].mxu0 %vm261_vm9, %v3797_v22  ;;  %v5288_v22 = vcombine.low %v4240_v34, %v7529_v46 }
 0x39b   : > { %6075 = vmatprep.mubr.msk.bf16.mxu0 %vm6400_vm4, %v6399_v19 }
 0x39c   : > { %v4245_v23 = vrot.slane %v5288_v22, 2  ;;  %v4702_v22 = vrot.slane %v7649_v3, 3 }
 0x39e   : > { %6048 = vmatmul.mubr.msk.bf16.gmra.mrb[16].mxu1 %vm261_vm9, %v7441_v36  ;;  %v4097_v36 = vrot.slane %v4095_v12, 1  ;;  %v4247_v42 = vsel %vm1069_vm14, %v4245_v23, %v4246_v26  ;;  %v4703_v23 = vsel %vm1523_vm1, %v4700_v55, %v4702_v22 }
 0x39f   : > { %6051 = vmatprep.mubr.msk.bf16.mxu1 %vm6400_vm4, %v6399_v19 }
 0x3a0   : > { %v4101_v54 = vor.u32 %v4100_v52, %v4097_v36  ;;  %v4254_v52 = vrot.slane %v7602_v16, 2 }
 0x3a2   : > { %6076 = vmatmul.mubr.msk.bf16.gmra.mrb[24].mxu0 %vm261_vm9, %v3799_v28  ;;  %v4102_v40 = vsel %vm901_vm13, %v4092_v10, %v4101_v54  ;;  %v4111_v20 = vsel %vm901_vm13, %v4101_v54, %v4110_v58  ;;  %v7620_v28 = vld [vmem:[#allocation2 + $0xc] sm:$0xf]  ;;  %v4540_v54 = vshrl.u32 %v7627_v60, 16  ;;  %v4255_v13 = vsel %vm1069_vm14, %v4252_v9, %v4254_v52  ;;  %v4694_v58 = vld [vmem:[#allocation2 + $0x8] sm:$0x8] }
 0x3a3   : > { %6079 = vmatprep.mubr.msk.bf16.mxu0 %vm6400_vm4, %v6399_v19  ;;  %v5296_v46 = vcombine.low %v4366_v37, %v7620_v28  ;;  %v5317_v53 = vcombine.low %v4694_v58, %v7620_v28  ;;  %v6378_v60 = vld [vmem:[#allocation2 + $0x30] ss:$0 sps:$4 sm:$0x77]  }
 0x3a4   : > { %v4542_v31 = vrot.slane %v4540_v54, 2 }
 0x3a5   : > { %v4699_v50 = vrot.slane %v5317_v53, 3 }
 0x3a6   : > { %6052 = vmatmul.mubr.msk.bf16.gmra.mrb[20].mxu1 %vm261_vm9, %v7426_v5  ;;  %v3953_v5 = vsel %vm615_vm12, %v3951_v14, %v3952_v41  ;;  %v4405_v14 = vrot.slane %v5296_v46, 2  ;;  %v4248_v41 = vrot.slane %v7551_v8, 2  ;;  %v4250_v8 = vrot.slane %v7571_v45, 2 }
 0x3a7   : > { %6055 = vmatprep.mubr.msk.bf16.mxu1 %vm6400_vm4, %v6399_v19  ;;  %v4535_v45 = vshll.u32 %v5296_v46, 16 }
 0x3a8   : > { %v4249_v4 = vsel %vm1069_vm14, %v4246_v26, %v4248_v41  ;;  %v4251_v12 = vsel %vm1069_vm14, %v4248_v41, %v4250_v8 }
 0x3a9   : > { %v4537_v63 = vrot.slane %v4535_v45, 3 }
 0x3aa   : > { %6080 = vmatmul.mubr.msk.bf16.gmra.mrb[28].mxu0 %vm261_vm9, %v3801_v0  ;;  %v6373_v0 = vld [vmem:[%s7800_s1 + $0x738] sm:$0xff]  }
 0x3ab   : > { %6111 = vmatprep.mubr.msk.bf16.mxu0 %vm6400_vm4, %v6399_v19 }
 0x3ae   : > { %6056 = vmatmul.mubr.msk.bf16.gmra.mrb[24].mxu1 %vm261_vm9, %v7428_v6  ;;  %v4084_v6 = vor.u32 %v4083_v2, %v4080_v1  ;;  %v4407_v1 = vsel %vm1069_vm14, %v4405_v14, %v4406_v57  ;;  %v6370_v2 = vld [vmem:[%s7800_s1 + $0x740] sm:$0xff]   ;;  %v4576_v14 = vshrl.u32 %v6378_v60, 16 }
 0x3af   : > { %6087 = vmatprep.mubr.msk.bf16.mxu1 %vm6400_vm4, %v6399_v19 }
 0x3b0   : > { %v4093_v25 = vsel %vm901_vm13, %v4084_v6, %v4092_v10  ;;  %v7665_v10 = vld [vmem:[#allocation2 + $0x20] sm:$0xff]  }
 0x3b1   : > { %v4410_v15 = vrot.slane %v7665_v10, 2  ;;  %v4558_v35 = vshrl.u32 %v7665_v10, 16  ;;  %v4561_v34 = vshll.u32 %v7665_v10, 16 }
 0x3b2   : > { %6112 = vmatmul.mubr.msk.bf16.vlgmr.msra.gmra.mrb[32].mxu0 %vm261_vm9, %v4093_v25  ;;  %v7677_v25 = vld [vmem:[#allocation2 + $0x28] sm:$0xff]  }
 0x3b3   : > { %6156 = vmatpush3.bf16.msra.mxu0 %v6359_v51  ;;  %6115 = vmatprep.mubr.msk.bf16.mxu0 %vm6400_vm4, %v6399_v19  ;;  %v4253_v51 = vsel %vm1069_vm14, %v4250_v8, %v4252_v9  ;;  %v4412_v36 = vrot.slane %v7677_v25, 2  ;;  %v4560_v43 = vrot.slane %v4558_v35, 2  ;;  %v4567_v37 = vshrl.u32 %v7677_v25, 16 }
 0x3b4   : > { %6157 = vmatprep.subr.bf16.mxu0 %v6399_v19  ;;  %v4570_v28 = vshll.u32 %v7677_v25, 16  ;;  %v4708_v8 = vrot.slane %v6378_v60, 3 }
 0x3b5   : > { %v4413_v47 = vsel %vm1069_vm14, %v4410_v15, %v4412_v36 }
 0x3b6   : > { %6088 = vmatmul.mubr.msk.bf16.vlgmr.msra.gmra.mrb[28].mxu1 %vm261_vm9, %v3953_v5  ;;  %v4408_v5 = vrot.slane %v7649_v3, 2 }
 0x3b7   : > { %6091 = vmatprep.mubr.msk.bf16.mxu1 %vm6400_vm4, %v6399_v19  ;;  %6132 = vmatpush3.bf16.msra.mxu1 %v6357_v7  ;;  %v6374_v7 = vld [vmem:[%s7800_s1 + $0x748] sm:$0xff]  }
 0x3b8   : > { %6133 = vmatprep.subr.bf16.mxu1 %v6399_v19  ;;  %6158 = vmatpush3.bf16.msra.mxu0 %v6363_v59  ;;  %v4409_v6 = vsel %vm1069_vm14, %v4406_v57, %v4408_v5  ;;  %v6376_v59 = vld [vmem:[#allocation2 + $0x30] ss:$0 sps:$4 sm:$0x33]   ;;  %v4579_v57 = vshll.u32 %v6378_v60, 16 }
 0x3b9   : > { %6203 = vmatprep.subr.bf16.mxu0 %v6399_v19  ;;  %v4414_v49 = vrot.slane %v6376_v59, 2 }
 0x3ba   : > { %6116 = vmatmul.mubr.msk.bf16.gmra.mrb[36].mxu0 %vm261_vm9, %v4102_v40 }
 0x3bb   : > { %6134 = vmatpush3.bf16.msra.mxu1 %v6362_v11  ;;  %6119 = vmatprep.mubr.msk.bf16.mxu0 %vm6400_vm4, %v6399_v19  ;;  %v4411_v11 = vsel %vm1069_vm14, %v4408_v5, %v4410_v15  ;;  %v4415_v27 = vsel %vm1069_vm14, %v4412_v36, %v4414_v49 }
 0x3bc   : > { %6179 = vmatprep.subr.bf16.mxu1 %v6399_v19 }
 0x3be   : > { %6092 = vmatmul.mubr.msk.bf16.gmra.mrb[32].mxu1 %vm261_vm9, %v3955_v29  ;;  %v4532_v29 = vshrl.u32 %v5296_v46, 16  ;;  %v4572_v46 = vrot.slane %v4570_v28, 3 }
 0x3bf   : > { %6095 = vmatprep.mubr.msk.bf16.mxu1 %vm6400_vm4, %v6399_v19 }
 0x3c0   : > { %v4534_v40 = vrot.slane %v4532_v29, 2 }
 0x3c2   : > { %6120 = vmatmul.mubr.msk.bf16.gmra.mrb[40].mxu0 %vm261_vm9, %v4111_v20  ;;  %v4538_v18 = vor.u32 %v4537_v63, %v4534_v40  ;;  %v4552_v20 = vshll.u32 %v7649_v3, 16  ;;  %v4706_v3 = vrot.slane %v7677_v25, 3 }
 0x3c3   : > { %6123 = vmatprep.mubr.msk.bf16.mxu0 %vm6400_vm4, %v6399_v19 }
 0x3c4   : > { %v4554_v33 = vrot.slane %v4552_v20, 3 }
 0x3c6   : > { %6096 = vmatmul.mubr.msk.bf16.gmra.mrb[36].mxu1 %vm261_vm9, %v3957_v56  ;;  %v4545_v56 = vrot.slane %v4543_v48, 3 }
 0x3c7   : > { %6099 = vmatprep.mubr.msk.bf16.mxu1 %vm6400_vm4, %v6399_v19 }
 0x3c8   : > { %v4546_v44 = vor.u32 %v4545_v56, %v4542_v31 }
 0x3ca   : > { %6124 = vmatmul.mubr.msk.bf16.gmra.mrb[44].mxu0 %vm261_vm9, %v4120_v17  ;;  %v4547_v16 = vsel %vm1355_vm15, %v4538_v18, %v4546_v44  ;;  %v4701_v17 = vsel %vm1523_vm1, %v4699_v50, %v4700_v55 }
 0x3cb   : > { %6127 = vmatprep.mubr.msk.bf16.mxu0 %vm6400_vm4, %v6399_v19 }
 0x3ce   : > { %6100 = vmatmul.mubr.msk.bf16.gmra.mrb[40].mxu1 %vm261_vm9, %v3959_v32  ;;  %v4551_v32 = vrot.slane %v4549_v24, 2 }
 0x3cf   : > { %6103 = vmatprep.mubr.msk.bf16.mxu1 %vm6400_vm4, %v6399_v19 }
 0x3d0   : > { %v4555_v30 = vor.u32 %v4554_v33, %v4551_v32 }
 0x3d2   : > { %6128 = vmatmul.mubr.msk.bf16.gmra.mrb[48].mxu0 %vm261_vm9, %v4129_v62  ;;  %v4556_v38 = vsel %vm1355_vm15, %v4546_v44, %v4555_v30  ;;  %v4569_v62 = vrot.slane %v4567_v37, 2 }
 0x3d3   : > { %6159 = vmatprep.mubr.msk.bf16.mxu0 %vm6400_vm4, %v6399_v19 }
 0x3d6   : > { %6104 = vmatmul.mubr.msk.bf16.gmra.mrb[44].mxu1 %vm261_vm9, %v3961_v21  ;;  %v4563_v21 = vrot.slane %v4561_v34, 3 }
 0x3d7   : > { %6135 = vmatprep.mubr.msk.bf16.mxu1 %vm6400_vm4, %v6399_v19 }
 0x3d8   : > { %v4564_v39 = vor.u32 %v4563_v21, %v4560_v43 }
 0x3da   : > { %6160 = vmatmul.mubr.msk.bf16.vlgmr.msra.gmra.mrb[52].mxu0 %vm261_vm9, %v4407_v1  ;;  %v4565_v26 = vsel %vm1355_vm15, %v4555_v30, %v4564_v39  ;;  %v4578_v1 = vrot.slane %v4576_v14, 2 }
 0x3db   : > { %6204 = vmatpush3.bf16.msra.mxu0 %v6370_v2  ;;  %6163 = vmatprep.mubr.msk.bf16.mxu0 %vm6400_vm4, %v6399_v19  ;;  %v4581_v2 = vrot.slane %v4579_v57, 3 }
 0x3dc   : > { %6205 = vmatprep.subr.bf16.mxu0 %v6399_v19 }
 0x3de   : > { %6136 = vmatmul.mubr.msk.bf16.vlgmr.msra.gmra.mrb[48].mxu1 %vm261_vm9, %v4247_v42  ;;  %v4704_v42 = vrot.slane %v7665_v10, 3 }
 0x3df   : > { %6139 = vmatprep.mubr.msk.bf16.mxu1 %vm6400_vm4, %v6399_v19  ;;  %6180 = vmatpush3.bf16.msra.mxu1 %v6367_v61  ;;  %v4573_v61 = vor.u32 %v4572_v46, %v4569_v62 }
 0x3e0   : > { %6181 = vmatprep.subr.bf16.mxu1 %v6399_v19  ;;  %6206 = vmatpush3.bf16.msra.mxu0 %v6374_v7  ;;  %v4705_v41 = vsel %vm1523_vm1, %v4702_v22, %v4704_v42  ;;  %v4707_v5 = vsel %vm1523_vm1, %v4704_v42, %v4706_v3 }
 0x3e2   : > { %6164 = vmatmul.mubr.msk.bf16.gmra.mrb[56].mxu0 %vm261_vm9, %v4409_v6  ;;  %v4709_v6 = vsel %vm1523_vm1, %v4706_v3, %v4708_v8 }
 0x3e3   : > { %6182 = vmatpush3.bf16.msra.mxu1 %v6373_v0  ;;  %6167 = vmatprep.mubr.msk.bf16.mxu0 %vm6400_vm4, %v6399_v19  ;;  %v4574_v0 = vsel %vm1355_vm15, %v4564_v39, %v4573_v61 }
 0x3e6   : > { %6140 = vmatmul.mubr.msk.bf16.gmra.mrb[52].mxu1 %vm261_vm9, %v4249_v4  ;;  %v4582_v4 = vor.u32 %v4581_v2, %v4578_v1 }
 0x3e7   : > { %6143 = vmatprep.mubr.msk.bf16.mxu1 %vm6400_vm4, %v6399_v19 }
 0x3e8   : > { %v4583_v7 = vsel %vm1355_vm15, %v4573_v61, %v4582_v4 }
 0x3ea   : > { %6168 = vmatmul.mubr.msk.bf16.gmra.mrb[60].mxu0 %vm261_vm9, %v4411_v11 }
 0x3eb   : > { %6171 = vmatprep.mubr.msk.bf16.mxu0 %vm6400_vm4, %v6399_v19 }
 0x3ee   : > { %6144 = vmatmul.mubr.msk.bf16.gmra.mrb[56].mxu1 %vm261_vm9, %v4251_v12 }
 0x3ef   : > { %6147 = vmatprep.mubr.msk.bf16.mxu1 %vm6400_vm4, %v6399_v19 }
 0x3f2   : > { %6172 = vmatmul.mubr.msk.bf16.gmra.mrb[64].mxu0 %vm261_vm9, %v4413_v47 }
 0x3f3   : > { %6175 = vmatprep.mubr.msk.bf16.mxu0 %vm6400_vm4, %v6399_v19 }
 0x3f6   : > { %6148 = vmatmul.mubr.msk.bf16.gmra.mrb[60].mxu1 %vm261_vm9, %v4253_v51 }
 0x3f7   : > { %6151 = vmatprep.mubr.msk.bf16.mxu1 %vm6400_vm4, %v6399_v19 }
 0x3fa   : > { %6176 = vmatmul.mubr.msk.bf16.gmra.mrb[68].mxu0 %vm261_vm9, %v4415_v27 }
 0x3fb   : > { %6207 = vmatprep.mubr.msk.bf16.mxu0 %vm6400_vm4, %v6399_v19 }
 0x3fe   : > { %6152 = vmatmul.mubr.msk.bf16.gmra.mrb[64].mxu1 %vm261_vm9, %v4255_v13 }
 0x3ff   : > { %6183 = vmatprep.mubr.msk.bf16.mxu1 %vm6400_vm4, %v6399_v19 }
 0x402   : > { %6208 = vmatmul.mubr.msk.bf16.vlgmr.msra.gmra.mrb[72].mxu0 %vm261_vm9, %v4701_v17 }
 0x403   : > { %6211 = vmatprep.mubr.msk.bf16.mxu0 %vm6400_vm4, %v6399_v19 }
 0x406   : > { %6184 = vmatmul.mubr.msk.bf16.vlgmr.msra.gmra.mrb[68].mxu1 %vm261_vm9, %v4547_v16 }
 0x407   : > { %6187 = vmatprep.mubr.msk.bf16.mxu1 %vm6400_vm4, %v6399_v19 }
 0x40a   : > { %6212 = vmatmul.mubr.msk.bf16.gmra.mrb[76].mxu0 %vm261_vm9, %v4703_v23 }
 0x40b   : > { %6215 = vmatprep.mubr.msk.bf16.mxu0 %vm6400_vm4, %v6399_v19 }
 0x40e   : > { %6188 = vmatmul.mubr.msk.bf16.gmra.mrb[72].mxu1 %vm261_vm9, %v4556_v38 }
 0x40f   : > { %6191 = vmatprep.mubr.msk.bf16.mxu1 %vm6400_vm4, %v6399_v19 }
 0x412   : > { %6216 = vmatmul.mubr.msk.bf16.gmra.mrb[80].mxu0 %vm261_vm9, %v4705_v41 }
 0x413   : > { %6219 = vmatprep.mubr.msk.bf16.mxu0 %vm6400_vm4, %v6399_v19 }
 0x416   : > { %6192 = vmatmul.mubr.msk.bf16.gmra.mrb[76].mxu1 %vm261_vm9, %v4565_v26 }
 0x417   : > { %6195 = vmatprep.mubr.msk.bf16.mxu1 %vm6400_vm4, %v6399_v19 }
 0x41a   : > { %6220 = vmatmul.mubr.msk.bf16.gmra.mrb[84].mxu0 %vm261_vm9, %v4707_v5 }
 0x41b   : > { %6223 = vmatprep.mubr.msk.bf16.mxu0 %vm6400_vm4, %v6399_v19 }
 0x41e   : > { %6196 = vmatmul.mubr.msk.bf16.gmra.mrb[80].mxu1 %vm261_vm9, %v4574_v0 }
 0x41f   : > { %6199 = vmatprep.mubr.msk.bf16.mxu1 %vm6400_vm4, %v6399_v19 }
 0x422   : > { %6224 = vmatmul.mubr.msk.bf16.gmra.mrb[88].mxu0 %vm261_vm9, %v4709_v6 }
 0x426   : > { %6200 = vmatmul.mubr.msk.bf16.gmra.mrb[84].mxu1 %vm261_vm9, %v4583_v7 }
 0x445   : > { %v3652_v10 = vpop.f32.mrb[0].mxu0 }
 0x446   : > { %v6017_v12 = vpop.f32.mrb[1].mxu0 }
 0x447   : > { %v3655_v15 = vpop.f32.mrb[2].mxu0 }
 0x448   : > { %v6018_v11 = vpop.f32.mrb[3].mxu0 }
 0x44d   : > { %v3660_v52 = vpop.f32.mrb[4].mxu0 }
 0x44e   : > { %v6021_v29 = vpop.f32.mrb[5].mxu0 }
 0x44f   : > { %v3663_v45 = vpop.f32.mrb[6].mxu0 }
 0x450   : > { %v6022_v19 = vpop.f32.mrb[7].mxu0 }
 0x451   : > { %v3676_v9 = vpop.f32.mrb[0].mxu1 }
 0x452   : > { %v6029_v25 = vpop.f32.mrb[1].mxu1 }
 0x453   : > { %v3679_v51 = vpop.f32.mrb[2].mxu1 }
 0x454   : > { %v6030_v36 = vpop.f32.mrb[3].mxu1 }
 0x455   : > { %v3668_v13 = vpop.f32.mrb[8].mxu0 }
 0x456   : > { %v6025_v40 = vpop.f32.mrb[9].mxu0 }
 0x457   : > { %v3671_v31 = vpop.f32.mrb[10].mxu0 }
 0x458   : > { %v6026_v58 = vpop.f32.mrb[11].mxu0 }
 0x459   : > { %v3684_v54 = vpop.f32.mrb[4].mxu1 }
 0x45a   : > { %v6033_v48 = vpop.f32.mrb[5].mxu1 }
 0x45b   : > { %v3687_v47 = vpop.f32.mrb[6].mxu1 }
 0x45c   : > { %v6034_v59 = vpop.f32.mrb[7].mxu1 }
 0x45d   : > { %v3863_v20 = vpop.f32.mrb[12].mxu0 }
 0x45e   : > { %v6065_v53 = vpop.f32.mrb[13].mxu0 }
 0x45f   : > { %v3866_v32 = vpop.f32.mrb[14].mxu0 }
 0x460   : > { %v6066_v30 = vpop.f32.mrb[15].mxu0 }
 0x461   : > { %v3747_v63 = vpop.f32.mrb[8].mxu1 }
 0x462   : > { %v3748_v56 = vadd.f32 %v3747_v63, %v3652_v10  ;;  %v6041_v49 = vpop.f32.mrb[9].mxu1 }
 0x463   : > { %v3750_v18 = vpop.f32.mrb[10].mxu1 }
 0x464   : > { %v3751_v44 = vadd.f32 %v3750_v18, %v3655_v15  ;;  %v6042_v24 = vpop.f32.mrb[11].mxu1  ;;  %v3902_v27 = vadd.f32 %v3863_v20, %v3748_v56 }
 0x465   : > { %v3871_v38 = vpop.f32.mrb[16].mxu0 }
 0x466   : > { %v3903_v55 = vadd.f32 %v3866_v32, %v3751_v44  ;;  %v6069_v21 = vpop.f32.mrb[17].mxu0 }
 0x467   : > { %v3874_v39 = vpop.f32.mrb[18].mxu0 }
 0x468   : > { %v6070_v26 = vpop.f32.mrb[19].mxu0 }
 0x469   : > { %v3755_v16 = vpop.f32.mrb[12].mxu1 }
 0x46a   : > { %v3756_v33 = vadd.f32 %v3755_v16, %v3660_v52  ;;  %v6045_v50 = vpop.f32.mrb[13].mxu1 }
 0x46b   : > { %v3758_v35 = vpop.f32.mrb[14].mxu1 }
 0x46c   : > { %v3759_v34 = vadd.f32 %v3758_v35, %v3663_v45  ;;  %v6046_v17 = vpop.f32.mrb[15].mxu1  ;;  %v3904_v43 = vadd.f32 %v3871_v38, %v3756_v33 }
 0x46d   : > { %v3879_v42 = vpop.f32.mrb[20].mxu0 }
 0x46e   : > { %v3905_v23 = vadd.f32 %v3874_v39, %v3759_v34  ;;  %v6073_v14 = vpop.f32.mrb[21].mxu0 }
 0x46f   : > { %v3882_v41 = vpop.f32.mrb[22].mxu0 }
 0x470   : > { %v6074_v3 = vpop.f32.mrb[23].mxu0 }
 0x471   : > { %v3763_v22 = vpop.f32.mrb[16].mxu1 }
 0x472   : > { %v3764_v37 = vadd.f32 %v3763_v22, %v3668_v13  ;;  %v6049_v28 = vpop.f32.mrb[17].mxu1 }
 0x473   : > { %v3766_v62 = vpop.f32.mrb[18].mxu1 }
 0x474   : > { %v3767_v46 = vadd.f32 %v3766_v62, %v3671_v31  ;;  %v6050_v60 = vpop.f32.mrb[19].mxu1  ;;  %v3906_v61 = vadd.f32 %v3879_v42, %v3764_v37 }
 0x475   : > { %v3887_v8 = vpop.f32.mrb[24].mxu0 }
 0x476   : > { %v3907_v2 = vadd.f32 %v3882_v41, %v3767_v46  ;;  %v6077_v10 = vpop.f32.mrb[25].mxu0 }
 0x477   : > { %v3890_v15 = vpop.f32.mrb[26].mxu0 }
 0x478   : > { %v6078_v52 = vpop.f32.mrb[27].mxu0 }
 0x479   : > { %v3771_v57 = vpop.f32.mrb[20].mxu1 }
 0x47a   : > { %v3772_v0 = vadd.f32 %v3771_v57, %v3676_v9  ;;  %v6053_v1 = vpop.f32.mrb[21].mxu1 }
 0x47b   : > { %v3774_v4 = vpop.f32.mrb[22].mxu1 }
 0x47c   : > { %v3775_v5 = vadd.f32 %v3774_v4, %v3679_v51  ;;  %v6054_v7 = vpop.f32.mrb[23].mxu1  ;;  %v3908_v6 = vadd.f32 %v3887_v8, %v3772_v0 }
 0x47d   : > { %v3895_v48 = vpop.f32.mrb[28].mxu0 }
 0x47e   : > { %v3909_v36 = vadd.f32 %v3890_v15, %v3775_v5  ;;  %v6081_v59 = vpop.f32.mrb[29].mxu0 }
 0x47f   : > { %v3898_v40 = vpop.f32.mrb[30].mxu0 }
 0x480   : > { %v6082_v56 = vpop.f32.mrb[31].mxu0 }
 0x481   : > { %v3779_v12 = vpop.f32.mrb[24].mxu1 }
 0x482   : > { %v3780_v11 = vadd.f32 %v3779_v12, %v3684_v54  ;;  %v6057_v25 = vpop.f32.mrb[25].mxu1 }
 0x483   : > { %v3782_v29 = vpop.f32.mrb[26].mxu1 }
 0x484   : > { %v3783_v45 = vadd.f32 %v3782_v29, %v3687_v47  ;;  %v6058_v19 = vpop.f32.mrb[27].mxu1  ;;  %v3910_v9 = vadd.f32 %v3895_v48, %v3780_v11 }
 0x485   : > { %v4191_v44 = vpop.f32.mrb[32].mxu0 }
 0x486   : > { %v3911_v31 = vadd.f32 %v3898_v40, %v3783_v45  ;;  %v6113_v24 = vpop.f32.mrb[33].mxu0 }
 0x487   : > { %v4194_v53 = vpop.f32.mrb[34].mxu0 }
 0x488   : > { %v6114_v33 = vpop.f32.mrb[35].mxu0 }
 0x489   : > { %v4023_v13 = vpop.f32.mrb[28].mxu1 }
 0x48a   : > { %v4062_v63 = vadd.f32 %v4023_v13, %v3902_v27  ;;  %v6089_v51 = vpop.f32.mrb[29].mxu1 }
 0x48b   : > { %v4026_v49 = vpop.f32.mrb[30].mxu1 }
 0x48c   : > { %v4063_v58 = vadd.f32 %v4026_v49, %v3903_v55  ;;  %v6090_v18 = vpop.f32.mrb[31].mxu1  ;;  %v4230_v54 = vadd.f32 %v4191_v44, %v4062_v63 }
 0x48d   : > { %v4199_v34 = vpop.f32.mrb[36].mxu0 }
 0x48e   : > { %v4231_v32 = vadd.f32 %v4194_v53, %v4063_v58  ;;  %v6117_v17 = vpop.f32.mrb[37].mxu0 }
 0x48f   : > { %v4202_v21 = vpop.f32.mrb[38].mxu0 }
 0x490   : > { %v6118_v37 = vpop.f32.mrb[39].mxu0 }
 0x491   : > { %v4031_v20 = vpop.f32.mrb[32].mxu1 }
 0x492   : > { %v4064_v16 = vadd.f32 %v4031_v20, %v3904_v43  ;;  %v6093_v47 = vpop.f32.mrb[33].mxu1 }
 0x493   : > { %v4034_v50 = vpop.f32.mrb[34].mxu1 }
 0x494   : > { %v4065_v30 = vadd.f32 %v4034_v50, %v3905_v23  ;;  %v6094_v35 = vpop.f32.mrb[35].mxu1  ;;  %v4232_v27 = vadd.f32 %v4199_v34, %v4064_v16 }
 0x495   : > { %v4207_v46 = vpop.f32.mrb[40].mxu0 }
 0x496   : > { %v4233_v39 = vadd.f32 %v4202_v21, %v4065_v30  ;;  %v6121_v60 = vpop.f32.mrb[41].mxu0 }
 0x497   : > { %v4210_v14 = vpop.f32.mrb[42].mxu0 }
 0x498   : > { %v6122_v0 = vpop.f32.mrb[43].mxu0 }
 0x499   : > { %v4039_v38 = vpop.f32.mrb[36].mxu1 }
 0x49a   : > { %v4066_v22 = vadd.f32 %v4039_v38, %v3906_v61  ;;  %v6097_v55 = vpop.f32.mrb[37].mxu1 }
 0x49b   : > { %v4042_v28 = vpop.f32.mrb[38].mxu1 }
 0x49c   : > { %v4067_v26 = vadd.f32 %v4042_v28, %v3907_v2  ;;  %v6098_v62 = vpop.f32.mrb[39].mxu1  ;;  %v4234_v43 = vadd.f32 %v4207_v46, %v4066_v22 }
 0x49d   : > { %v4215_v5 = vpop.f32.mrb[44].mxu0 }
 0x49e   : > { %v4235_v41 = vadd.f32 %v4210_v14, %v4067_v26  ;;  %v6125_v7 = vpop.f32.mrb[45].mxu0 }
 0x49f   : > { %v4218_v10 = vpop.f32.mrb[46].mxu0 }
 0x4a0   : > { %v6126_v11 = vpop.f32.mrb[47].mxu0 }
 0x4a1   : > { %v4047_v42 = vpop.f32.mrb[40].mxu1 }
 0x4a2   : > { %v4068_v57 = vadd.f32 %v4047_v42, %v3908_v6  ;;  %v6101_v23 = vpop.f32.mrb[41].mxu1 }
 0x4a3   : > { %v4050_v1 = vpop.f32.mrb[42].mxu1 }
 0x4a4   : > { %v4069_v3 = vadd.f32 %v4050_v1, %v3909_v36  ;;  %v6102_v4 = vpop.f32.mrb[43].mxu1  ;;  %v4236_v61 = vadd.f32 %v4215_v5, %v4068_v57 }
 0x4a5   : > { %v4223_v45 = vpop.f32.mrb[48].mxu0 }
 0x4a6   : > { %v4237_v15 = vadd.f32 %v4218_v10, %v4069_v3  ;;  %v6129_v19 = vpop.f32.mrb[49].mxu0 }
 0x4a7   : > { %v4226_v59 = vpop.f32.mrb[50].mxu0 }
 0x4a8   : > { %v6130_v63 = vpop.f32.mrb[51].mxu0 }
 0x4a9   : > { %v4055_v8 = vpop.f32.mrb[44].mxu1 }
 0x4aa   : > { %v4070_v12 = vadd.f32 %v4055_v8, %v3910_v9  ;;  %v6105_v2 = vpop.f32.mrb[45].mxu1 }
 0x4ab   : > { %v4058_v25 = vpop.f32.mrb[46].mxu1 }
 0x4ac   : > { %v4071_v52 = vadd.f32 %v4058_v25, %v3911_v31  ;;  %v6106_v29 = vpop.f32.mrb[47].mxu1  ;;  %v4238_v6 = vadd.f32 %v4223_v45, %v4070_v12 }
 0x4ad   : > { %v4477_v58 = vpop.f32.mrb[52].mxu0 }
 0x4ae   : > { %v4239_v40 = vadd.f32 %v4226_v59, %v4071_v52  ;;  %v6161_v18 = vpop.f32.mrb[53].mxu0 }
 0x4af   : > { %v4480_v24 = vpop.f32.mrb[54].mxu0 }
 0x4b0   : > { %v6162_v16 = vpop.f32.mrb[55].mxu0 }
 0x4b1   : > { %v4317_v48 = vpop.f32.mrb[48].mxu1 }
 0x4b2   : > { %v4356_v13 = vadd.f32 %v4317_v48, %v4230_v54  ;;  %v6137_v36 = vpop.f32.mrb[49].mxu1 }
 0x4b3   : > { %v4320_v51 = vpop.f32.mrb[50].mxu1 }
 0x4b4   : > { %v4357_v56 = vadd.f32 %v4320_v51, %v4231_v32  ;;  %v6138_v49 = vpop.f32.mrb[51].mxu1  ;;  %v4516_v9 = vadd.f32 %v4477_v58, %v4356_v13 }
 0x4b5   : > { %v4485_v30 = vpop.f32.mrb[56].mxu0 }
 0x4b6   : > { %v4517_v53 = vadd.f32 %v4480_v24, %v4357_v56  ;;  %v6165_v35 = vpop.f32.mrb[57].mxu0 }
 0x4b7   : > { %v4488_v17 = vpop.f32.mrb[58].mxu0 }
 0x4b8   : > { %v6166_v22 = vpop.f32.mrb[59].mxu0 }
 0x4b9   : > { %v4325_v44 = vpop.f32.mrb[52].mxu1 }
 0x4ba   : > { %v4358_v20 = vadd.f32 %v4325_v44, %v4232_v27  ;;  %v6141_v31 = vpop.f32.mrb[53].mxu1 }
 0x4bb   : > { %v4328_v47 = vpop.f32.mrb[54].mxu1 }
 0x4bc   : > { %v4359_v33 = vadd.f32 %v4328_v47, %v4233_v39  ;;  %v6142_v50 = vpop.f32.mrb[55].mxu1  ;;  %v4518_v54 = vadd.f32 %v4485_v30, %v4358_v20 }
 0x4bd   : > { %v4493_v26 = vpop.f32.mrb[60].mxu0 }
 0x4be   : > { %v4519_v21 = vadd.f32 %v4488_v17, %v4359_v33  ;;  %v6169_v62 = vpop.f32.mrb[61].mxu0 }
 0x4bf   : > { %v4496_v60 = vpop.f32.mrb[62].mxu0 }
 0x4c0   : > { %v6170_v57 = vpop.f32.mrb[63].mxu0 }
 0x4c1   : > { %v4333_v34 = vpop.f32.mrb[56].mxu1 }
 0x4c2   : > { %v4360_v38 = vadd.f32 %v4333_v34, %v4234_v43  ;;  %v6145_v32 = vpop.f32.mrb[57].mxu1 }
 0x4c3   : > { %v4336_v55 = vpop.f32.mrb[58].mxu1 }
 0x4c4   : > { %v4361_v37 = vadd.f32 %v4336_v55, %v4235_v41  ;;  %v6146_v28 = vpop.f32.mrb[59].mxu1  ;;  %v4520_v27 = vadd.f32 %v4493_v26, %v4360_v38 }
 0x4c5   : > { %v4501_v3 = vpop.f32.mrb[64].mxu0 }
 0x4c6   : > { %v4521_v14 = vadd.f32 %v4496_v60, %v4361_v37  ;;  %v6173_v4 = vpop.f32.mrb[65].mxu0 }
 0x4c7   : > { %v4504_v7 = vpop.f32.mrb[66].mxu0 }
 0x4c8   : > { %v6174_v12 = vpop.f32.mrb[67].mxu0 }
 0x4c9   : > { %v4341_v46 = vpop.f32.mrb[60].mxu1 }
 0x4ca   : > { %v4362_v42 = vadd.f32 %v4341_v46, %v4236_v61  ;;  %v6149_v39 = vpop.f32.mrb[61].mxu1 }
 0x4cb   : > { %v4344_v23 = vpop.f32.mrb[62].mxu1 }
 0x4cc   : > { %v4363_v0 = vadd.f32 %v4344_v23, %v4237_v15  ;;  %v6150_v1 = vpop.f32.mrb[63].mxu1  ;;  %v7749_v43 = vadd.f32 %v4501_v3, %v4362_v42 }
 0x4cd   : > { %v4509_v25 = vpop.f32.mrb[68].mxu0 }
 0x4ce   : > { %v7751_v10 = vadd.f32 %v4504_v7, %v4363_v0  ;;  %v6177_v29 = vpop.f32.mrb[69].mxu0 }
 0x4cf   : > { %v4512_v45 = vpop.f32.mrb[70].mxu0 }
 0x4d0   : > { %v6178_v13 = vpop.f32.mrb[71].mxu0 }
 0x4d1   : > { %v4349_v5 = vpop.f32.mrb[64].mxu1 }
 0x4d2   : > { %v4364_v41 = vadd.f32 %v4349_v5, %v4238_v6  ;;  %v6153_v8 = vpop.f32.mrb[65].mxu1 }
 0x4d3   : > { %v4352_v2 = vpop.f32.mrb[66].mxu1 }
 0x4d4   : > { %v4365_v11 = vadd.f32 %v4352_v2, %v4239_v40  ;;  %v6154_v61 = vpop.f32.mrb[67].mxu1  ;;  %v7753_v52 = vadd.f32 %v4509_v25, %v4364_v41  ;;  %v7760_v40 = vld [vmem:[%s7801_s2 + $0xc] ss:$0 sm:$0xff] }
 0x4d5   : > { %v4771_v51 = vpop.f32.mrb[72].mxu0 }
 0x4d6   : > { %v7755_v59 = vadd.f32 %v4512_v45, %v4365_v11  ;;  %v6209_v49 = vpop.f32.mrb[73].mxu0 }
 0x4d7   : > { %v4774_v18 = vpop.f32.mrb[74].mxu0 }
 0x4d8   : > { %v6210_v31 = vpop.f32.mrb[75].mxu0 }
 0x4d9   : > { %v4645_v15 = vpop.f32.mrb[68].mxu1 }
 0x4da   : > { %v4684_v19 = vadd.f32 %v4645_v15, %v4516_v9  ;;  %v6185_v48 = vpop.f32.mrb[69].mxu1 }
 0x4db   : > { %v4648_v36 = vpop.f32.mrb[70].mxu1 }
 0x4dc   : > { %v4685_v6 = vadd.f32 %v4648_v36, %v4517_v53  ;;  %v6186_v63 = vpop.f32.mrb[71].mxu1  ;;  %v4810_v56 = vadd.f32 %v4771_v51, %v4684_v19 }
 0x4dd   : > { %v4779_v35 = vpop.f32.mrb[76].mxu0 }
 0x4de   : > { %v4828_v44 = vadd.f32 %v7760_v40, %v4810_v56  ;;  %v4811_v20 = vadd.f32 %v4774_v18, %v4685_v6 }
 0x4e0   : > { %v5360_v16 = vpack.c.bf16 %v4828_v44, %v4828_v44  ;;  %v4829_v33 = vadd.f32 %v7760_v40, %v4811_v20 }
 0x4e1   : > { %v4653_v58 = vpop.f32.mrb[72].mxu1 }
 0x4e2   : > { %v4686_v9 = vadd.f32 %v4653_v58, %v4518_v54  ;;  %v6189_v24 = vpop.f32.mrb[73].mxu1  ;;  %4878 = vst.msk [vmem:[%s6507_s19] sm:$0xf] %vm222_vm0, %v5360_v16  ;;  %v5361_v30 = vpack.c.bf16 %v4829_v33, %v4829_v33  ;;  %v6213_v54 = vpop.f32.mrb[77].mxu0 }
 0x4e3   : > { %v4656_v53 = vpop.f32.mrb[74].mxu1  ;;  %v4782_v38 = vpop.f32.mrb[78].mxu0 }
 0x4e4   : > { %v4687_v47 = vadd.f32 %v4656_v53, %v4519_v21  ;;  %v6190_v50 = vpop.f32.mrb[75].mxu1  ;;  %4879 = vst.msk [vmem:[%s6507_s19 + $0x4] sm:$0xf] %vm222_vm0, %v5361_v30  ;;  %v4812_v34 = vadd.f32 %v4779_v35, %v4686_v9  ;;  %v6214_v37 = vpop.f32.mrb[79].mxu0 }
 0x4e5   : > { %v4787_v39 = vpop.f32.mrb[80].mxu0 }
 0x4e6   : > { %v4830_v22 = vadd.f32 %v7760_v40, %v4812_v34  ;;  %v4813_v21 = vadd.f32 %v4782_v38, %v4687_v47 }
 0x4e8   : > { %v5362_v26 = vpack.c.bf16 %v4830_v22, %v4830_v22  ;;  %v4831_v46 = vadd.f32 %v7760_v40, %v4813_v21 }
 0x4e9   : > { %v4661_v17 = vpop.f32.mrb[76].mxu1 }
 0x4ea   : > { %v4688_v32 = vadd.f32 %v4661_v17, %v4520_v27  ;;  %v6193_v55 = vpop.f32.mrb[77].mxu1  ;;  %4880 = vst.msk [vmem:[%s6507_s19 + $0x8] sm:$0xf] %vm222_vm0, %v5362_v26  ;;  %v5363_v42 = vpack.c.bf16 %v4831_v46, %v4831_v46  ;;  %v6217_v27 = vpop.f32.mrb[81].mxu0 }
 0x4eb   : > { %v4664_v28 = vpop.f32.mrb[78].mxu1  ;;  %v4790_v0 = vpop.f32.mrb[82].mxu0 }
 0x4ec   : > { %v4689_v62 = vadd.f32 %v4664_v28, %v4521_v14  ;;  %v6194_v60 = vpop.f32.mrb[79].mxu1  ;;  %4881 = vst.msk [vmem:[%s6507_s19 + $0xc] sm:$0xf] %vm222_vm0, %v5363_v42  ;;  %v4814_v57 = vadd.f32 %v4787_v39, %v4688_v32  ;;  %v6218_v5 = vpop.f32.mrb[83].mxu0 }
 0x4ed   : > { %v4795_v61 = vpop.f32.mrb[84].mxu0 }
 0x4ee   : > { %v4832_v3 = vadd.f32 %v7760_v40, %v4814_v57  ;;  %v4815_v4 = vadd.f32 %v4790_v0, %v4689_v62  ;;  %v6221_v25 = vpop.f32.mrb[85].mxu0 }
 0x4ef   : > { %v4798_v15 = vpop.f32.mrb[86].mxu0 }
 0x4f0   : > { %v5364_v41 = vpack.c.bf16 %v4832_v3, %v4832_v3  ;;  %v4833_v12 = vadd.f32 %v7760_v40, %v4815_v4  ;;  %v6222_v13 = vpop.f32.mrb[87].mxu0 }
 0x4f1   : > { %v4669_v23 = vpop.f32.mrb[80].mxu1 }
 0x4f2   : > { %v4690_v1 = vadd.f32 %v4669_v23, %v7749_v43  ;;  %v6197_v14 = vpop.f32.mrb[81].mxu1  ;;  %4882 = vst.msk [vmem:[%s6507_s19 + $0x10] sm:$0xf] %vm222_vm0, %v5364_v41  ;;  %v5365_v11 = vpack.c.bf16 %v4833_v12, %v4833_v12 }
 0x4f3   : > { %v4672_v7 = vpop.f32.mrb[82].mxu1 }
 0x4f4   : > { %v4691_v8 = vadd.f32 %v4672_v7, %v7751_v10  ;;  %v6198_v2 = vpop.f32.mrb[83].mxu1  ;;  %4883 = vst.msk [vmem:[%s6507_s19 + $0x14] sm:$0xf] %vm222_vm0, %v5365_v11  ;;  %v4816_v43 = vadd.f32 %v4795_v61, %v4690_v1 }
 0x4f5   : > { %v4803_v58 = vpop.f32.mrb[88].mxu0 }
 0x4f6   : > { %v4834_v19 = vadd.f32 %v7760_v40, %v4816_v43  ;;  %v4817_v48 = vadd.f32 %v4798_v15, %v4691_v8  ;;  %v6225_v18 = vpop.f32.mrb[89].mxu0 }
 0x4f7   : > { %v4806_v9 = vpop.f32.mrb[90].mxu0 }
 0x4f8   : > { %v5366_v6 = vpack.c.bf16 %v4834_v19, %v4834_v19  ;;  %v4835_v51 = vadd.f32 %v7760_v40, %v4817_v48  ;;  %v6226_v20 = vpop.f32.mrb[91].mxu0 }
 0x4f9   : > { %v4677_v29 = vpop.f32.mrb[84].mxu1 }
 0x4fa   : > { %v4692_v45 = vadd.f32 %v4677_v29, %v7753_v52  ;;  %v6201_v10 = vpop.f32.mrb[85].mxu1  ;;  %4884 = vst.msk [vmem:[%s6507_s19 + $0x18] sm:$0xf] %vm222_vm0, %v5366_v6  ;;  %v5367_v49 = vpack.c.bf16 %v4835_v51, %v4835_v51 }
 0x4fb   : > { %v4680_v36 = vpop.f32.mrb[86].mxu1 }
 0x4fc   : > { %v4693_v63 = vadd.f32 %v4680_v36, %v7755_v59  ;;  %v6202_v56 = vpop.f32.mrb[87].mxu1  ;;  %4885 = vst.msk [vmem:[%s6507_s19 + $0x1c] sm:$0xf] %vm222_vm0, %v5367_v49  ;;  %v4818_v52 = vadd.f32 %v4803_v58, %v4692_v45 }
 0x4fe   : > { %v4836_v44 = vadd.f32 %v7760_v40, %v4818_v52  ;;  %v4819_v24 = vadd.f32 %v4806_v9, %v4693_v63 }
 0x500   : > { %v5368_v31 = vpack.c.bf16 %v4836_v44, %v4836_v44  ;;  %v4837_v59 = vadd.f32 %v7760_v40, %v4819_v24 }
 0x502   : > { %4886 = vst.msk [vmem:[%s6507_s19 + $0x20] sm:$0xf] %vm222_vm0, %v5368_v31  ;;  %v5369_v53 = vpack.c.bf16 %v4837_v59, %v4837_v59 }
 0x504   : > { %4887 = vst.msk [vmem:[%s6507_s19 + $0x24] sm:$0xf] %vm222_vm0, %v5369_v53 }
 0x505 PF: > { %s14_s15 = sadd.s32 1, %s6389_s15  }
 0x506   : > { %p11_p5 = scmp.ge.s32.totalorder %s14_s15, 4  }
 0x508   :  { %13 = sbr.rel (!%p11_p5) target bundleno = 1 (0x1), region = 90 }

</bundles_post_ra>
